<compile_context>
chip_gen: v5e
topology: v5e:2x2
jax: 0.10.0
libtpu: 0.0.40
codegen_flags: <defaults>
</compile_context>

<pallas_src>
import functools

import jax
import jax.numpy as jnp
from jax import lax
from jax.experimental import pallas as pl
from jax.experimental.pallas import tpu as pltpu


# ----------------------------------------------------------------------------
# small tiling helpers
# ----------------------------------------------------------------------------

def _row_tile(m, target=64):
    """Largest multiple-of-8 divisor of m that is <= target (else full m)."""
    if m <= target or m % 8:
        return m
    for t in range(target, 7, -8):
        if m % t == 0:
            return t
    return m


def _k_tile(k, target=512):
    """Largest multiple-of-128 divisor of k that is <= target (else full k)."""
    if k <= target or k % 128:
        return k
    for t in range(target, 127, -128):
        if k % t == 0:
            return t
    return k


# ----------------------------------------------------------------------------
# fc1: Linear(1024, width) + ReLU — tiled over rows and K with accumulator
# ----------------------------------------------------------------------------

def _fc1_kernel(x_ref, w_ref, b_ref, o_ref, acc_ref):
    @pl.when(pl.program_id(1) == 0)
    def _init():
        acc_ref[...] = jnp.zeros_like(acc_ref)

    acc_ref[...] += jnp.dot(x_ref[...].astype(jnp.bfloat16), w_ref[...],
                            preferred_element_type=jnp.float32)

    @pl.when(pl.program_id(1) == pl.num_programs(1) - 1)
    def _finish():
        o_ref[...] = jnp.maximum(acc_ref[...] + b_ref[...], 0.0)


def fc1_relu(x, w_bf16, b):
    M, K = x.shape
    N = w_bf16.shape[1]
    tm = _row_tile(M)
    tk = _k_tile(K)
    return pl.pallas_call(
        _fc1_kernel,
        out_shape=jax.ShapeDtypeStruct((M, N), jnp.float32),
        grid=(M // tm, K // tk),
        in_specs=[
            pl.BlockSpec((tm, tk), lambda i, k: (i, k)),
            pl.BlockSpec((tk, N), lambda i, k: (k, 0)),
            pl.BlockSpec((1, N), lambda i, k: (0, 0)),
        ],
        out_specs=pl.BlockSpec((tm, N), lambda i, k: (i, 0)),
        scratch_shapes=[pltpu.VMEM((tm, N), jnp.float32)],
        compiler_params=pltpu.CompilerParams(
            dimension_semantics=("parallel", "arbitrary")),
    )(x, w_bf16, b.reshape(1, N))


# ----------------------------------------------------------------------------
# fused LayerNorm + (bias-free) qkv projection
# ----------------------------------------------------------------------------

def _ln_matmul_kernel(x_ref, g_ref, b_ref, w_ref, o_ref, *, eps):
    x = x_ref[...]
    mu = jnp.mean(x, axis=-1, keepdims=True)
    var = jnp.mean((x - mu) * (x - mu), axis=-1, keepdims=True)
    ln = (x - mu) * lax.rsqrt(var + eps) * g_ref[...] + b_ref[...]
    o_ref[...] = jnp.dot(ln.astype(jnp.bfloat16), w_ref[...],
                         preferred_element_type=jnp.float32)


def layernorm_matmul(x, gamma, beta, w_bf16):
    M, D = x.shape
    N = w_bf16.shape[1]
    tm = _row_tile(M)
    return pl.pallas_call(
        functools.partial(_ln_matmul_kernel, eps=1e-5),
        out_shape=jax.ShapeDtypeStruct((M, N), jnp.float32),
        grid=(M // tm,),
        in_specs=[
            pl.BlockSpec((tm, D), lambda i: (i, 0)),
            pl.BlockSpec((1, D), lambda i: (0, 0)),
            pl.BlockSpec((1, D), lambda i: (0, 0)),
            pl.BlockSpec((D, N), lambda i: (0, 0)),
        ],
        out_specs=pl.BlockSpec((tm, N), lambda i: (i, 0)),
        compiler_params=pltpu.CompilerParams(dimension_semantics=("parallel",)),
    )(x, gamma.reshape(1, D), beta.reshape(1, D), w_bf16)


# ----------------------------------------------------------------------------
# fused LayerNorm + FeedForward (ff1 -> GELU -> ff2) + residual
# ----------------------------------------------------------------------------

def _ln_ff_kernel(x_ref, g_ref, b_ref, w1_ref, b1_ref, w2_ref, b2_ref, o_ref, *, eps):
    x = x_ref[...]
    mu = jnp.mean(x, axis=-1, keepdims=True)
    var = jnp.mean((x - mu) * (x - mu), axis=-1, keepdims=True)
    ln = (x - mu) * lax.rsqrt(var + eps) * g_ref[...] + b_ref[...]
    h = jnp.dot(ln.astype(jnp.bfloat16), w1_ref[...],
                preferred_element_type=jnp.float32) + b1_ref[...]
    # TODO(synk): PyTorch nn.GELU() is the exact erf form; tanh approximation used here.
    h = 0.5 * h * (1.0 + jnp.tanh(0.7978845608028654 * (h + 0.044715 * h * h * h)))
    y = jnp.dot(h.astype(jnp.bfloat16), w2_ref[...],
                preferred_element_type=jnp.float32) + b2_ref[...]
    o_ref[...] = x + y


def layernorm_ff(x, gamma, beta, w1_bf16, b1, w2_bf16, b2):
    M, D = x.shape
    H = w1_bf16.shape[1]
    tm = _row_tile(M)
    return pl.pallas_call(
        functools.partial(_ln_ff_kernel, eps=1e-5),
        out_shape=jax.ShapeDtypeStruct((M, D), jnp.float32),
        grid=(M // tm,),
        in_specs=[
            pl.BlockSpec((tm, D), lambda i: (i, 0)),
            pl.BlockSpec((1, D), lambda i: (0, 0)),
            pl.BlockSpec((1, D), lambda i: (0, 0)),
            pl.BlockSpec((D, H), lambda i: (0, 0)),
            pl.BlockSpec((1, H), lambda i: (0, 0)),
            pl.BlockSpec((H, D), lambda i: (0, 0)),
            pl.BlockSpec((1, D), lambda i: (0, 0)),
        ],
        out_specs=pl.BlockSpec((tm, D), lambda i: (i, 0)),
        compiler_params=pltpu.CompilerParams(dimension_semantics=("parallel",)),
    )(x, gamma.reshape(1, D), beta.reshape(1, D), w1_bf16, b1.reshape(1, H),
      w2_bf16, b2.reshape(1, D))


# ----------------------------------------------------------------------------
# Nystrom attention (all heads per grid step) + depthwise-conv residual
# + output projection + residual add, fused into one kernel.  grid=(B,)
# ----------------------------------------------------------------------------

def _nystrom_layer_kernel(qkv_ref, x_ref, p_ref, eye_ref, t_ref, ow_ref, ob_ref,
                          o_ref, *, heads, dim_head, pinv_iters, scale, pad_len):
    width = heads * dim_head
    qkv = qkv_ref[0]                              # (n_pad, 3W) f32
    q = qkv[:, :width] * scale
    k = qkv[:, width:2 * width]
    v = qkv[:, 2 * width:]
    P = p_ref[...]                                # (m, n_pad)
    eye = eye_ref[...]                            # (m, m)
    ow = ow_ref[...]                              # (W, W) bf16

    # landmark means for all heads at once (heads live on lanes)
    q_land = jnp.dot(P, q, preferred_element_type=jnp.float32)   # (m, W)
    k_land = jnp.dot(P, k, preferred_element_type=jnp.float32)   # (m, W)

    dn_nt = (((1,), (1,)), ((), ()))              # A @ B^T

    def _softmax(s):
        s = s - jnp.max(s, axis=-1, keepdims=True)
        e = jnp.exp(s)
        return e * pl.reciprocal(jnp.sum(e, axis=-1, keepdims=True), approx=True)

    # residual input + out-projection bias (added once)
    acc = x_ref[0] + ob_ref[...]                  # (N, W)

    for h in range(heads):
        lo = h * dim_head
        hi = lo + dim_head
        q_h, k_h, v_h = q[:, lo:hi], k[:, lo:hi], v[:, lo:hi]
        ql_h, kl_h = q_land[:, lo:hi], k_land[:, lo:hi]

        a1 = _softmax(lax.dot_general(q_h, kl_h, dn_nt,
                                      preferred_element_type=jnp.float32))   # (n, m)
        a2 = _softmax(lax.dot_general(ql_h, kl_h, dn_nt,
                                      preferred_element_type=jnp.float32))   # (m, m)
        a3 = _softmax(lax.dot_general(ql_h, k_h, dn_nt,
                                      preferred_element_type=jnp.float32))   # (m, n)

        # Moore-Penrose iterative pseudoinverse of a2
        abs_a = jnp.abs(a2)
        denom = (jnp.max(jnp.sum(abs_a, axis=-1, keepdims=True)) *
                 jnp.max(jnp.sum(abs_a, axis=-2, keepdims=True)))
        z = jnp.transpose(a2) / denom
        for _ in range(pinv_iters):
            az = jnp.dot(a2, z, preferred_element_type=jnp.float32)
            t = 7.0 * eye - az
            t = 15.0 * eye - jnp.dot(az, t, preferred_element_type=jnp.float32)
            t = 13.0 * eye - jnp.dot(az, t, preferred_element_type=jnp.float32)
            z = 0.25 * jnp.dot(z, t, preferred_element_type=jnp.float32)

        out_h = jnp.dot(jnp.dot(a1, z, preferred_element_type=jnp.float32),
                        jnp.dot(a3, v_h, preferred_element_type=jnp.float32),
                        preferred_element_type=jnp.float32)                  # (n_pad, d)

        # depthwise residual conv over the sequence axis (precomputed Toeplitz)
        out_h = out_h + jnp.dot(t_ref[h], v_h, preferred_element_type=jnp.float32)

        # drop front padding, fold this head's block of the output projection
        out_h = out_h[pad_len:, :]                                           # (N, d)
        acc = acc + jnp.dot(out_h.astype(jnp.bfloat16), ow[lo:hi, :],
                            preferred_element_type=jnp.float32)

    o_ref[0] = acc


def nystrom_layer(qkv, xx, P, eye, T, out_w_bf16, out_b, *, heads, dim_head,
                  pinv_iters, pad_len):
    B, n_pad, _ = qkv.shape
    N = xx.shape[1]
    width = heads * dim_head
    scale = float(dim_head) ** -0.5
    kernel = functools.partial(_nystrom_layer_kernel, heads=heads,
                               dim_head=dim_head, pinv_iters=pinv_iters,
                               scale=scale, pad_len=pad_len)
    return pl.pallas_call(
        kernel,
        out_shape=jax.ShapeDtypeStruct((B, N, width), jnp.float32),
        grid=(B,),
        in_specs=[
            pl.BlockSpec((1, n_pad, 3 * width), lambda b: (b, 0, 0)),
            pl.BlockSpec((1, N, width), lambda b: (b, 0, 0)),
            pl.BlockSpec(P.shape, lambda b: (0, 0)),
            pl.BlockSpec(eye.shape, lambda b: (0, 0)),
            pl.BlockSpec(T.shape, lambda b: (0, 0, 0)),
            pl.BlockSpec(out_w_bf16.shape, lambda b: (0, 0)),
            pl.BlockSpec((1, width), lambda b: (0, 0)),
        ],
        out_specs=pl.BlockSpec((1, N, width), lambda b: (b, 0, 0)),
        compiler_params=pltpu.CompilerParams(dimension_semantics=("parallel",)),
    )(qkv, xx, P, eye, T, out_w_bf16, out_b.reshape(1, width))


# ----------------------------------------------------------------------------
# fused gated-attention pooling head + fc2:
#   att1 -> tanh -> att2 -> softmax (lane-dense) -> weighted sum -> fc2
# ----------------------------------------------------------------------------

def _attn_pool_fc2_kernel(y_ref, w1_ref, b1_ref, w2r_ref, b2_ref, fw_ref, fb_ref,
                          attn_ref, logit_ref):
    y = y_ref[0]                                                      # (N, W)
    a1 = jnp.tanh(jnp.dot(y, w1_ref[...], preferred_element_type=jnp.float32)
                  + b1_ref[...])                                      # (N, W/4)
    dn_nt = (((1,), (1,)), ((), ()))
    logits = lax.dot_general(w2r_ref[...], a1, dn_nt,
                             preferred_element_type=jnp.float32) + b2_ref[...]  # (1, N)
    logits = logits - jnp.max(logits, axis=-1, keepdims=True)
    e = jnp.exp(logits)
    w = e * pl.reciprocal(jnp.sum(e, axis=-1, keepdims=True), approx=True)      # (1, N)
    attn_ref[0] = w
    z = jnp.dot(w, y, preferred_element_type=jnp.float32)                       # (1, W)
    logit_ref[0] = jnp.dot(z, fw_ref[...],
                           preferred_element_type=jnp.float32) + fb_ref[...]    # (1, C)


def attn_pool_fc2(y, att1_w, att1_b, att2_w, att2_b, fc2_w, fc2_b):
    B, N, W = y.shape
    W4 = att1_w.shape[1]
    C = fc2_w.shape[1]
    attn, logits = pl.pallas_call(
        _attn_pool_fc2_kernel,
        out_shape=(jax.ShapeDtypeStruct((B, 1, N), jnp.float32),
                   jax.ShapeDtypeStruct((B, 1, C), jnp.float32)),
        grid=(B,),
        in_specs=[
            pl.BlockSpec((1, N, W), lambda b: (b, 0, 0)),
            pl.BlockSpec((W, W4), lambda b: (0, 0)),
            pl.BlockSpec((1, W4), lambda b: (0, 0)),
            pl.BlockSpec((1, W4), lambda b: (0, 0)),
            pl.BlockSpec((1, 1), lambda b: (0, 0)),
            pl.BlockSpec((W, C), lambda b: (0, 0)),
            pl.BlockSpec((1, C), lambda b: (0, 0)),
        ],
        out_specs=(pl.BlockSpec((1, 1, N), lambda b: (b, 0, 0)),
                   pl.BlockSpec((1, 1, C), lambda b: (b, 0, 0))),
        compiler_params=pltpu.CompilerParams(dimension_semantics=("parallel",)),
    )(y, att1_w, att1_b.reshape(1, W4), att2_w.reshape(1, W4),
      att2_b.reshape(1, 1), fc2_w, fc2_b.reshape(1, C))
    return attn, logits.reshape(B, C)


# ----------------------------------------------------------------------------
# Parameter init (deterministic, synthetic) and forward pass glue
# ----------------------------------------------------------------------------

def init_params(key, *, in_dim, width, heads, depth, num_classes,
                ff_mult=4, conv_ks=33):
    keys = jax.random.split(key, 8 + 6 * depth)
    ki = iter(range(len(keys)))

    def rnd(shape, scale=0.02):
        return jax.random.normal(keys[next(ki)], shape, jnp.float32) * scale

    p = {
        "fc1_w": rnd((in_dim, width)),
        "fc1_b": rnd((width,)),
        "att1_w": rnd((width, width // 4)),
        "att1_b": jnp.zeros((width // 4,), jnp.float32),
        "att2_w": rnd((width // 4, 1)),
        "att2_b": jnp.zeros((1,), jnp.float32),
        "fc2_w": rnd((width, num_classes)),
        "fc2_b": jnp.zeros((num_classes,), jnp.float32),
        "layers": [],
    }
    for _ in range(depth):
        p["layers"].append({
            "ln1_g": jnp.ones((width,), jnp.float32),
            "ln1_b": jnp.zeros((width,), jnp.float32),
            "qkv_w": rnd((width, 3 * width)),
            "out_w": rnd((width, width)),
            "out_b": jnp.zeros((width,), jnp.float32),
            "conv_w": rnd((heads, conv_ks)),
            "ln2_g": jnp.ones((width,), jnp.float32),
            "ln2_b": jnp.zeros((width,), jnp.float32),
            "ff1_w": rnd((width, ff_mult * width)),
            "ff1_b": jnp.zeros((ff_mult * width,), jnp.float32),
            "ff2_w": rnd((ff_mult * width, width)),
            "ff2_b": jnp.zeros((width,), jnp.float32),
        })
    return p


def trans_att_forward(x, params, *, width, heads, conv_ks=33, pinv_iters=6):
    B, N, in_dim = x.shape
    dh = width // heads
    m = width // 2                       # num_landmarks
    pad_len = (-N) % m                   # front padding so seq divides into landmarks
    n_pad = N + pad_len
    l = n_pad // m

    # Constant matrices for the attention kernel (built once in plain JAX, tiny):
    #   P    : landmark mean-pooling matrix (m, n_pad)
    #   eye  : identity for the Moore-Penrose iteration (m, m)
    r = jnp.arange(m, dtype=jnp.int32)[:, None]
    c = jnp.arange(n_pad, dtype=jnp.int32)[None, :]
    P = jnp.where((c // l) == r, 1.0 / l, 0.0).astype(jnp.float32)
    eye = jnp.eye(m, dtype=jnp.float32)

    # Toeplitz structure for the depthwise residual Conv2d (kernel (33,1), groups=heads)
    i_idx = jnp.arange(n_pad)[:, None]
    j_idx = jnp.arange(n_pad)[None, :]
    delta = j_idx - i_idx + conv_ks // 2
    valid = (delta >= 0) & (delta < conv_ks)
    tap = jnp.clip(delta, 0, conv_ks - 1)

    # _fc1: Linear(1024, width) + ReLU
    h = fc1_relu(x.reshape(B * N, in_dim),
                 params["fc1_w"].astype(jnp.bfloat16), params["fc1_b"])

    # TransLayer == Nystromformer(depth layers)
    xx = h  # (B*N, width)
    for L in params["layers"]:
        T = jnp.where(valid[None, :, :], L["conv_w"][:, tap], 0.0)   # (H, n_pad, n_pad)

        # PreNorm + to_qkv (bias-free), fused
        qkv = layernorm_matmul(xx, L["ln1_g"], L["ln1_b"],
                               L["qkv_w"].astype(jnp.bfloat16))
        qkv = qkv.reshape(B, N, 3 * width)
        if pad_len:
            qkv = jnp.pad(qkv, ((0, 0), (pad_len, 0), (0, 0)))       # pad at the front

        # Nystrom attention + conv residual + out-projection + residual, fused
        xx = nystrom_layer(qkv, xx.reshape(B, N, width), P, eye, T,
                           L["out_w"].astype(jnp.bfloat16), L["out_b"],
                           heads=heads, dim_head=dh,
                           pinv_iters=pinv_iters, pad_len=pad_len)
        xx = xx.reshape(B * N, width)

        # PreNorm + FeedForward + residual, fused
        xx = layernorm_ff(xx, L["ln2_g"], L["ln2_b"],
                          L["ff1_w"].astype(jnp.bfloat16), L["ff1_b"],
                          L["ff2_w"].astype(jnp.bfloat16), L["ff2_b"])

    # gated-attention pooling head + classifier, fused
    y = xx.reshape(B, N, width)
    attn, logits = attn_pool_fc2(y, params["att1_w"], params["att1_b"],
                                 params["att2_w"], params["att2_b"],
                                 params["fc2_w"], params["fc2_b"])
    Y_hat = jnp.argmax(logits, axis=1)
    Y_prob = jax.nn.softmax(logits, axis=1)
    return {"logits": logits, "Y_prob": Y_prob, "Y_hat": Y_hat, "Attention": attn}


# ----------------------------------------------------------------------------

if __name__ == "__main__":
    B, N, IN_DIM = 2, 64, 1024
    WIDTH, HEADS, DEPTH, NUM_CLASSES = 32, 4, 1, 3

    key = jax.random.PRNGKey(0)
    kx, kp = jax.random.split(key)
    x = jax.random.normal(kx, (B, N, IN_DIM), jnp.float32)
    params = init_params(kp, in_dim=IN_DIM, width=WIDTH, heads=HEADS,
                         depth=DEPTH, num_classes=NUM_CLASSES)

    fwd = jax.jit(functools.partial(trans_att_forward, width=WIDTH, heads=HEADS))
    out = fwd(x, params)
    jax.block_until_ready(out)

    assert out["logits"].shape == (B, NUM_CLASSES)
    assert out["Y_prob"].shape == (B, NUM_CLASSES)
    assert out["Y_hat"].shape == (B,)
    assert out["Attention"].shape == (B, 1, N)
    print("KERNEL_OK")
</pallas_src>

<mosaic_0001>
module attributes {stable_mosaic.version = 11 : i64} {
  func.func @_fc1_kernel(%arg0: i32, %arg1: i32, %arg2: memref<64x512xf32, #tpu.memory_space<vmem>>, %arg3: memref<512x32xbf16, #tpu.memory_space<vmem>>, %arg4: memref<1x32xf32, #tpu.memory_space<vmem>>, %arg5: memref<64x32xf32, #tpu.memory_space<vmem>>, %arg6: memref<64x32xf32, #tpu.memory_space<vmem>>) attributes {dimension_semantics = [#tpu.dimension_semantics<parallel>, #tpu.dimension_semantics<arbitrary>], iteration_bounds = array<i64: 2, 2>, scalar_prefetch = 0 : i64, scratch_operands = 1 : i64, tpu.core_type = #tpu.core_type<tc>, window_params = [{transform_indices = @transform_0, window_bounds = array<i64: 64, 512>}, {transform_indices = @transform_1, window_bounds = array<i64: 512, 32>}, {pipeline_mode = #tpu.pipeline_mode<synchronous>, transform_indices = @transform_2, window_bounds = array<i64: 1, 32>}, {transform_indices = @transform_3, window_bounds = array<i64: 64, 32>}]} {
    %c0_i32 = arith.constant 0 : i32
    %0 = arith.cmpi eq, %arg1, %c0_i32 : i32
    %1 = arith.extui %0 : i1 to i32
    %c0_i32_0 = arith.constant 0 : i32
    %2 = arith.cmpi ne, %1, %c0_i32_0 : i32
    scf.if %2 {
      %cst_9 = arith.constant 0.000000e+00 : f32
      %13 = vector.broadcast %cst_9 : f32 to vector<64x32xf32>
      %c0_10 = arith.constant 0 : index
      %c0_11 = arith.constant 0 : index
      %14 = vector.load %arg6[%c0_10, %c0_11] : memref<64x32xf32, #tpu.memory_space<vmem>>, vector<64x32xf32>
      tpu.vector_store %arg6[%c0_10, %c0_11], %13 {strides = array<i32>} : memref<64x32xf32, #tpu.memory_space<vmem>>, vector<64x32xf32>,
    } else {
    }
    %c0 = arith.constant 0 : index
    %c0_1 = arith.constant 0 : index
    %3 = vector.load %arg6[%c0, %c0_1] : memref<64x32xf32, #tpu.memory_space<vmem>>, vector<64x32xf32>
    %c0_2 = arith.constant 0 : index
    %c0_3 = arith.constant 0 : index
    %4 = vector.load %arg2[%c0_2, %c0_3] : memref<64x512xf32, #tpu.memory_space<vmem>>, vector<64x512xf32>
    %5 = arith.truncf %4 : vector<64x512xf32> to vector<64x512xbf16>
    %c0_4 = arith.constant 0 : index
    %c0_5 = arith.constant 0 : index
    %6 = vector.load %arg3[%c0_4, %c0_5] : memref<512x32xbf16, #tpu.memory_space<vmem>>, vector<512x32xbf16>
    %cst = arith.constant dense<0.000000e+00> : vector<64x32xf32>
    %7 = tpu.matmul %5, %6, %cst {dimension_numbers = #tpu.dot_dimension_numbers<[1], [0], [0], [1], [0, 0, 1, 1], [], []>} : vector<64x512xbf16>, vector<512x32xbf16>, vector<64x32xf32> -> vector<64x32xf32>
    %8 = arith.addf %3, %7 : vector<64x32xf32>
    %c0_6 = arith.constant 0 : index
    %c0_7 = arith.constant 0 : index
    %9 = vector.load %arg6[%c0_6, %c0_7] : memref<64x32xf32, #tpu.memory_space<vmem>>, vector<64x32xf32>
    tpu.vector_store %arg6[%c0_6, %c0_7], %8 {strides = array<i32>} : memref<64x32xf32, #tpu.memory_space<vmem>>, vector<64x32xf32>,
    %c1_i32 = arith.constant 1 : i32
    %10 = arith.cmpi eq, %arg1, %c1_i32 : i32
    %11 = arith.extui %10 : i1 to i32
    %c0_i32_8 = arith.constant 0 : i32
    %12 = arith.cmpi ne, %11, %c0_i32_8 : i32
    scf.if %12 {
      %c0_9 = arith.constant 0 : index
      %c0_10 = arith.constant 0 : index
      %13 = vector.load %arg6[%c0_9, %c0_10] : memref<64x32xf32, #tpu.memory_space<vmem>>, vector<64x32xf32>
      %c0_11 = arith.constant 0 : index
      %c0_12 = arith.constant 0 : index
      %14 = vector.load %arg4[%c0_11, %c0_12] : memref<1x32xf32, #tpu.memory_space<vmem>>, vector<1x32xf32>
      %15 = vector.broadcast %14 : vector<1x32xf32> to vector<64x32xf32>
      %16 = arith.addf %13, %15 : vector<64x32xf32>
      %cst_13 = arith.constant 0.000000e+00 : f32
      %17 = vector.broadcast %cst_13 : f32 to vector<64x32xf32>
      %18 = arith.maximumf %16, %17 : vector<64x32xf32>
      %c0_14 = arith.constant 0 : index
      %c0_15 = arith.constant 0 : index
      %19 = vector.load %arg5[%c0_14, %c0_15] : memref<64x32xf32, #tpu.memory_space<vmem>>, vector<64x32xf32>
      tpu.vector_store %arg5[%c0_14, %c0_15], %18 {strides = array<i32>} : memref<64x32xf32, #tpu.memory_space<vmem>>, vector<64x32xf32>,
    } else {
    }
    return
  }
  func.func @transform_0(%arg0: i32, %arg1: i32) -> (i32, i32) {
    %c0_i32 = arith.constant 0 : i32
    return %arg0, %arg1 : i32, i32
  }
  func.func @transform_1(%arg0: i32, %arg1: i32) -> (i32, i32) {
    %c0_i32 = arith.constant 0 : i32
    %c0_i32_0 = arith.constant 0 : i32
    return %arg1, %c0_i32 : i32, i32
  }
  func.func @transform_2(%arg0: i32, %arg1: i32) -> (i32, i32) {
    %c0_i32 = arith.constant 0 : i32
    %c0_i32_0 = arith.constant 0 : i32
    %c0_i32_1 = arith.constant 0 : i32
    return %c0_i32, %c0_i32_0 : i32, i32
  }
  func.func @transform_3(%arg0: i32, %arg1: i32) -> (i32, i32) {
    %c0_i32 = arith.constant 0 : i32
    %c0_i32_0 = arith.constant 0 : i32
    return %arg0, %c0_i32 : i32, i32
  }
}

module attributes {stable_mosaic.version = 11 : i64} {
  func.func @_ln_matmul_kernel(%arg0: i32, %arg1: memref<64x32xf32, #tpu.memory_space<vmem>>, %arg2: memref<1x32xf32, #tpu.memory_space<vmem>>, %arg3: memref<1x32xf32, #tpu.memory_space<vmem>>, %arg4: memref<32x96xbf16, #tpu.memory_space<vmem>>, %arg5: memref<64x96xf32, #tpu.memory_space<vmem>>) attributes {dimension_semantics = [#tpu.dimension_semantics<parallel>], iteration_bounds = array<i64: 2>, scalar_prefetch = 0 : i64, scratch_operands = 0 : i64, tpu.core_type = #tpu.core_type<tc>, window_params = [{transform_indices = @transform_0, window_bounds = array<i64: 64, 32>}, {pipeline_mode = #tpu.pipeline_mode<synchronous>, transform_indices = @transform_1, window_bounds = array<i64: 1, 32>}, {pipeline_mode = #tpu.pipeline_mode<synchronous>, transform_indices = @transform_2, window_bounds = array<i64: 1, 32>}, {pipeline_mode = #tpu.pipeline_mode<synchronous>, transform_indices = @transform_3, window_bounds = array<i64: 32, 96>}, {transform_indices = @transform_4, window_bounds = array<i64: 64, 96>}]} {
    %c0 = arith.constant 0 : index
    %c0_0 = arith.constant 0 : index
    %0 = vector.load %arg1[%c0, %c0_0] : memref<64x32xf32, #tpu.memory_space<vmem>>, vector<64x32xf32>
    %cst = arith.constant dense<0.000000e+00> : vector<64xf32>
    %1 = vector.multi_reduction <add>, %0, %cst [1] : vector<64x32xf32> to vector<64xf32>
    %2 = vector.shape_cast %1 : vector<64xf32> to vector<64x1xf32>
    %cst_1 = arith.constant 3.200000e+01 : f32
    %3 = vector.broadcast %cst_1 : f32 to vector<64x1xf32>
    %4 = arith.divf %2, %3 : vector<64x1xf32>
    %5 = vector.broadcast %4 : vector<64x1xf32> to vector<64x32xf32>
    %6 = arith.subf %0, %5 : vector<64x32xf32>
    %7 = vector.broadcast %4 : vector<64x1xf32> to vector<64x32xf32>
    %8 = arith.subf %0, %7 : vector<64x32xf32>
    %9 = arith.mulf %6, %8 : vector<64x32xf32>
    %cst_2 = arith.constant dense<0.000000e+00> : vector<64xf32>
    %10 = vector.multi_reduction <add>, %9, %cst_2 [1] : vector<64x32xf32> to vector<64xf32>
    %11 = vector.shape_cast %10 : vector<64xf32> to vector<64x1xf32>
    %cst_3 = arith.constant 3.200000e+01 : f32
    %12 = vector.broadcast %cst_3 : f32 to vector<64x1xf32>
    %13 = arith.divf %11, %12 : vector<64x1xf32>
    %14 = vector.broadcast %4 : vector<64x1xf32> to vector<64x32xf32>
    %15 = arith.subf %0, %14 : vector<64x32xf32>
    %cst_4 = arith.constant 9.99999974E-6 : f32
    %16 = vector.broadcast %cst_4 : f32 to vector<64x1xf32>
    %17 = arith.addf %13, %16 : vector<64x1xf32>
    %18 = math.rsqrt %17 : vector<64x1xf32>
    %19 = vector.broadcast %18 : vector<64x1xf32> to vector<64x32xf32>
    %20 = arith.mulf %15, %19 : vector<64x32xf32>
    %c0_5 = arith.constant 0 : index
    %c0_6 = arith.constant 0 : index
    %21 = vector.load %arg2[%c0_5, %c0_6] : memref<1x32xf32, #tpu.memory_space<vmem>>, vector<1x32xf32>
    %22 = vector.broadcast %21 : vector<1x32xf32> to vector<64x32xf32>
    %23 = arith.mulf %20, %22 : vector<64x32xf32>
    %c0_7 = arith.constant 0 : index
    %c0_8 = arith.constant 0 : index
    %24 = vector.load %arg3[%c0_7, %c0_8] : memref<1x32xf32, #tpu.memory_space<vmem>>, vector<1x32xf32>
    %25 = vector.broadcast %24 : vector<1x32xf32> to vector<64x32xf32>
    %26 = arith.addf %23, %25 : vector<64x32xf32>
    %27 = arith.truncf %26 : vector<64x32xf32> to vector<64x32xbf16>
    %c0_9 = arith.constant 0 : index
    %c0_10 = arith.constant 0 : index
    %28 = vector.load %arg4[%c0_9, %c0_10] : memref<32x96xbf16, #tpu.memory_space<vmem>>, vector<32x96xbf16>
    %cst_11 = arith.constant dense<0.000000e+00> : vector<64x96xf32>
    %29 = tpu.matmul %27, %28, %cst_11 {dimension_numbers = #tpu.dot_dimension_numbers<[1], [0], [0], [1], [0, 0, 1, 1], [], []>} : vector<64x32xbf16>, vector<32x96xbf16>, vector<64x96xf32> -> vector<64x96xf32>
    %c0_12 = arith.constant 0 : index
    %c0_13 = arith.constant 0 : index
    %30 = vector.load %arg5[%c0_12, %c0_13] : memref<64x96xf32, #tpu.memory_space<vmem>>, vector<64x96xf32>
    tpu.vector_store %arg5[%c0_12, %c0_13], %29 {strides = array<i32>} : memref<64x96xf32, #tpu.memory_space<vmem>>, vector<64x96xf32>,
    return
  }
  func.func @transform_0(%arg0: i32) -> (i32, i32) {
    %c0_i32 = arith.constant 0 : i32
    %c0_i32_0 = arith.constant 0 : i32
    return %arg0, %c0_i32 : i32, i32
  }
  func.func @transform_1(%arg0: i32) -> (i32, i32) {
    %c0_i32 = arith.constant 0 : i32
    %c0_i32_0 = arith.constant 0 : i32
    %c0_i32_1 = arith.constant 0 : i32
    return %c0_i32, %c0_i32_0 : i32, i32
  }
  func.func @transform_2(%arg0: i32) -> (i32, i32) {
    %c0_i32 = arith.constant 0 : i32
    %c0_i32_0 = arith.constant 0 : i32
    %c0_i32_1 = arith.constant 0 : i32
    return %c0_i32, %c0_i32_0 : i32, i32
  }
  func.func @transform_3(%arg0: i32) -> (i32, i32) {
    %c0_i32 = arith.constant 0 : i32
    %c0_i32_0 = arith.constant 0 : i32
    %c0_i32_1 = arith.constant 0 : i32
    return %c0_i32, %c0_i32_0 : i32, i32
  }
  func.func @transform_4(%arg0: i32) -> (i32, i32) {
    %c0_i32 = arith.constant 0 : i32
    %c0_i32_0 = arith.constant 0 : i32
    return %arg0, %c0_i32 : i32, i32
  }
}

module attributes {stable_mosaic.version = 11 : i64} {
  func.func @_ln_ff_kernel(%arg0: i32, %arg1: memref<64x32xf32, #tpu.memory_space<vmem>>, %arg2: memref<1x32xf32, #tpu.memory_space<vmem>>, %arg3: memref<1x32xf32, #tpu.memory_space<vmem>>, %arg4: memref<32x128xbf16, #tpu.memory_space<vmem>>, %arg5: memref<1x128xf32, #tpu.memory_space<vmem>>, %arg6: memref<128x32xbf16, #tpu.memory_space<vmem>>, %arg7: memref<1x32xf32, #tpu.memory_space<vmem>>, %arg8: memref<64x32xf32, #tpu.memory_space<vmem>>) attributes {dimension_semantics = [#tpu.dimension_semantics<parallel>], iteration_bounds = array<i64: 2>, scalar_prefetch = 0 : i64, scratch_operands = 0 : i64, tpu.core_type = #tpu.core_type<tc>, window_params = [{transform_indices = @transform_0, window_bounds = array<i64: 64, 32>}, {pipeline_mode = #tpu.pipeline_mode<synchronous>, transform_indices = @transform_1, window_bounds = array<i64: 1, 32>}, {pipeline_mode = #tpu.pipeline_mode<synchronous>, transform_indices = @transform_2, window_bounds = array<i64: 1, 32>}, {pipeline_mode = #tpu.pipeline_mode<synchronous>, transform_indices = @transform_3, window_bounds = array<i64: 32, 128>}, {pipeline_mode = #tpu.pipeline_mode<synchronous>, transform_indices = @transform_4, window_bounds = array<i64: 1, 128>}, {pipeline_mode = #tpu.pipeline_mode<synchronous>, transform_indices = @transform_5, window_bounds = array<i64: 128, 32>}, {pipeline_mode = #tpu.pipeline_mode<synchronous>, transform_indices = @transform_6, window_bounds = array<i64: 1, 32>}, {transform_indices = @transform_7, window_bounds = array<i64: 64, 32>}]} {
    %c0 = arith.constant 0 : index
    %c0_0 = arith.constant 0 : index
    %0 = vector.load %arg1[%c0, %c0_0] : memref<64x32xf32, #tpu.memory_space<vmem>>, vector<64x32xf32>
    %cst = arith.constant dense<0.000000e+00> : vector<64xf32>
    %1 = vector.multi_reduction <add>, %0, %cst [1] : vector<64x32xf32> to vector<64xf32>
    %2 = vector.shape_cast %1 : vector<64xf32> to vector<64x1xf32>
    %cst_1 = arith.constant 3.200000e+01 : f32
    %3 = vector.broadcast %cst_1 : f32 to vector<64x1xf32>
    %4 = arith.divf %2, %3 : vector<64x1xf32>
    %5 = vector.broadcast %4 : vector<64x1xf32> to vector<64x32xf32>
    %6 = arith.subf %0, %5 : vector<64x32xf32>
    %7 = vector.broadcast %4 : vector<64x1xf32> to vector<64x32xf32>
    %8 = arith.subf %0, %7 : vector<64x32xf32>
    %9 = arith.mulf %6, %8 : vector<64x32xf32>
    %cst_2 = arith.constant dense<0.000000e+00> : vector<64xf32>
    %10 = vector.multi_reduction <add>, %9, %cst_2 [1] : vector<64x32xf32> to vector<64xf32>
    %11 = vector.shape_cast %10 : vector<64xf32> to vector<64x1xf32>
    %cst_3 = arith.constant 3.200000e+01 : f32
    %12 = vector.broadcast %cst_3 : f32 to vector<64x1xf32>
    %13 = arith.divf %11, %12 : vector<64x1xf32>
    %14 = vector.broadcast %4 : vector<64x1xf32> to vector<64x32xf32>
    %15 = arith.subf %0, %14 : vector<64x32xf32>
    %cst_4 = arith.constant 9.99999974E-6 : f32
    %16 = vector.broadcast %cst_4 : f32 to vector<64x1xf32>
    %17 = arith.addf %13, %16 : vector<64x1xf32>
    %18 = math.rsqrt %17 : vector<64x1xf32>
    %19 = vector.broadcast %18 : vector<64x1xf32> to vector<64x32xf32>
    %20 = arith.mulf %15, %19 : vector<64x32xf32>
    %c0_5 = arith.constant 0 : index
    %c0_6 = arith.constant 0 : index
    %21 = vector.load %arg2[%c0_5, %c0_6] : memref<1x32xf32, #tpu.memory_space<vmem>>, vector<1x32xf32>
    %22 = vector.broadcast %21 : vector<1x32xf32> to vector<64x32xf32>
    %23 = arith.mulf %20, %22 : vector<64x32xf32>
    %c0_7 = arith.constant 0 : index
    %c0_8 = arith.constant 0 : index
    %24 = vector.load %arg3[%c0_7, %c0_8] : memref<1x32xf32, #tpu.memory_space<vmem>>, vector<1x32xf32>
    %25 = vector.broadcast %24 : vector<1x32xf32> to vector<64x32xf32>
    %26 = arith.addf %23, %25 : vector<64x32xf32>
    %27 = arith.truncf %26 : vector<64x32xf32> to vector<64x32xbf16>
    %c0_9 = arith.constant 0 : index
    %c0_10 = arith.constant 0 : index
    %28 = vector.load %arg4[%c0_9, %c0_10] : memref<32x128xbf16, #tpu.memory_space<vmem>>, vector<32x128xbf16>
    %cst_11 = arith.constant dense<0.000000e+00> : vector<64x128xf32>
    %29 = tpu.matmul %27, %28, %cst_11 {dimension_numbers = #tpu.dot_dimension_numbers<[1], [0], [0], [1], [0, 0, 1, 1], [], []>} : vector<64x32xbf16>, vector<32x128xbf16>, vector<64x128xf32> -> vector<64x128xf32>
    %c0_12 = arith.constant 0 : index
    %c0_13 = arith.constant 0 : index
    %30 = vector.load %arg5[%c0_12, %c0_13] : memref<1x128xf32, #tpu.memory_space<vmem>>, vector<1x128xf32>
    %31 = vector.broadcast %30 : vector<1x128xf32> to vector<64x128xf32>
    %32 = arith.addf %29, %31 : vector<64x128xf32>
    %cst_14 = arith.constant 5.000000e-01 : f32
    %33 = vector.broadcast %cst_14 : f32 to vector<64x128xf32>
    %34 = arith.mulf %33, %32 : vector<64x128xf32>
    %cst_15 = arith.constant 4.471500e-02 : f32
    %35 = vector.broadcast %cst_15 : f32 to vector<64x128xf32>
    %36 = arith.mulf %35, %32 : vector<64x128xf32>
    %37 = arith.mulf %36, %32 : vector<64x128xf32>
    %38 = arith.mulf %37, %32 : vector<64x128xf32>
    %39 = arith.addf %32, %38 : vector<64x128xf32>
    %cst_16 = arith.constant 0.797884583 : f32
    %40 = vector.broadcast %cst_16 : f32 to vector<64x128xf32>
    %41 = arith.mulf %40, %39 : vector<64x128xf32>
    %42 = math.tanh %41 : vector<64x128xf32>
    %cst_17 = arith.constant 1.000000e+00 : f32
    %43 = vector.broadcast %cst_17 : f32 to vector<64x128xf32>
    %44 = arith.addf %43, %42 : vector<64x128xf32>
    %45 = arith.mulf %34, %44 : vector<64x128xf32>
    %46 = arith.truncf %45 : vector<64x128xf32> to vector<64x128xbf16>
    %c0_18 = arith.constant 0 : index
    %c0_19 = arith.constant 0 : index
    %47 = vector.load %arg6[%c0_18, %c0_19] : memref<128x32xbf16, #tpu.memory_space<vmem>>, vector<128x32xbf16>
    %cst_20 = arith.constant dense<0.000000e+00> : vector<64x32xf32>
    %48 = tpu.matmul %46, %47, %cst_20 {dimension_numbers = #tpu.dot_dimension_numbers<[1], [0], [0], [1], [0, 0, 1, 1], [], []>} : vector<64x128xbf16>, vector<128x32xbf16>, vector<64x32xf32> -> vector<64x32xf32>
    %c0_21 = arith.constant 0 : index
    %c0_22 = arith.constant 0 : index
    %49 = vector.load %arg7[%c0_21, %c0_22] : memref<1x32xf32, #tpu.memory_space<vmem>>, vector<1x32xf32>
    %50 = vector.broadcast %49 : vector<1x32xf32> to vector<64x32xf32>
    %51 = arith.addf %48, %50 : vector<64x32xf32>
    %52 = arith.addf %0, %51 : vector<64x32xf32>
    %c0_23 = arith.constant 0 : index
    %c0_24 = arith.constant 0 : index
    %53 = vector.load %arg8[%c0_23, %c0_24] : memref<64x32xf32, #tpu.memory_space<vmem>>, vector<64x32xf32>
    tpu.vector_store %arg8[%c0_23, %c0_24], %52 {strides = array<i32>} : memref<64x32xf32, #tpu.memory_space<vmem>>, vector<64x32xf32>,
    return
  }
  func.func @transform_0(%arg0: i32) -> (i32, i32) {
    %c0_i32 = arith.constant 0 : i32
    %c0_i32_0 = arith.constant 0 : i32
    return %arg0, %c0_i32 : i32, i32
  }
  func.func @transform_1(%arg0: i32) -> (i32, i32) {
    %c0_i32 = arith.constant 0 : i32
    %c0_i32_0 = arith.constant 0 : i32
    %c0_i32_1 = arith.constant 0 : i32
    return %c0_i32, %c0_i32_0 : i32, i32
  }
  func.func @transform_2(%arg0: i32) -> (i32, i32) {
    %c0_i32 = arith.constant 0 : i32
    %c0_i32_0 = arith.constant 0 : i32
    %c0_i32_1 = arith.constant 0 : i32
    return %c0_i32, %c0_i32_0 : i32, i32
  }
  func.func @transform_3(%arg0: i32) -> (i32, i32) {
    %c0_i32 = arith.constant 0 : i32
    %c0_i32_0 = arith.constant 0 : i32
    %c0_i32_1 = arith.constant 0 : i32
    return %c0_i32, %c0_i32_0 : i32, i32
  }
  func.func @transform_4(%arg0: i32) -> (i32, i32) {
    %c0_i32 = arith.constant 0 : i32
    %c0_i32_0 = arith.constant 0 : i32
    %c0_i32_1 = arith.constant 0 : i32
    return %c0_i32, %c0_i32_0 : i32, i32
  }
  func.func @transform_5(%arg0: i32) -> (i32, i32) {
    %c0_i32 = arith.constant 0 : i32
    %c0_i32_0 = arith.constant 0 : i32
    %c0_i32_1 = arith.constant 0 : i32
    return %c0_i32, %c0_i32_0 : i32, i32
  }
  func.func @transform_6(%arg0: i32) -> (i32, i32) {
    %c0_i32 = arith.constant 0 : i32
    %c0_i32_0 = arith.constant 0 : i32
    %c0_i32_1 = arith.constant 0 : i32
    return %c0_i32, %c0_i32_0 : i32, i32
  }
  func.func @transform_7(%arg0: i32) -> (i32, i32) {
    %c0_i32 = arith.constant 0 : i32
    %c0_i32_0 = arith.constant 0 : i32
    return %arg0, %c0_i32 : i32, i32
  }
}

module attributes {stable_mosaic.version = 11 : i64} {
  func.func @_nystrom_layer_kernel(%arg0: i32, %arg1: memref<1x64x96xf32, #tpu.memory_space<vmem>>, %arg2: memref<1x64x32xf32, #tpu.memory_space<vmem>>, %arg3: memref<16x64xf32, #tpu.memory_space<vmem>>, %arg4: memref<16x16xf32, #tpu.memory_space<vmem>>, %arg5: memref<4x64x64xf32, #tpu.memory_space<vmem>>, %arg6: memref<32x32xbf16, #tpu.memory_space<vmem>>, %arg7: memref<1x32xf32, #tpu.memory_space<vmem>>, %arg8: memref<1x64x32xf32, #tpu.memory_space<vmem>>) attributes {dimension_semantics = [#tpu.dimension_semantics<parallel>], iteration_bounds = array<i64: 2>, scalar_prefetch = 0 : i64, scratch_operands = 0 : i64, tpu.core_type = #tpu.core_type<tc>, window_params = [{transform_indices = @transform_0, window_bounds = array<i64: 1, 64, 96>}, {transform_indices = @transform_1, window_bounds = array<i64: 1, 64, 32>}, {pipeline_mode = #tpu.pipeline_mode<synchronous>, transform_indices = @transform_2, window_bounds = array<i64: 16, 64>}, {pipeline_mode = #tpu.pipeline_mode<synchronous>, transform_indices = @transform_3, window_bounds = array<i64: 16, 16>}, {pipeline_mode = #tpu.pipeline_mode<synchronous>, transform_indices = @transform_4, window_bounds = array<i64: 4, 64, 64>}, {pipeline_mode = #tpu.pipeline_mode<synchronous>, transform_indices = @transform_5, window_bounds = array<i64: 32, 32>}, {pipeline_mode = #tpu.pipeline_mode<synchronous>, transform_indices = @transform_6, window_bounds = array<i64: 1, 32>}, {transform_indices = @transform_7, window_bounds = array<i64: 1, 64, 32>}]} {
    %c0 = arith.constant 0 : index
    %c0_0 = arith.constant 0 : index
    %c0_1 = arith.constant 0 : index
    %0 = vector.load %arg1[%c0, %c0_0, %c0_1] : memref<1x64x96xf32, #tpu.memory_space<vmem>>, vector<1x64x96xf32>
    %1 = vector.shape_cast %0 : vector<1x64x96xf32> to vector<64x96xf32>
    %2 = vector.extract_strided_slice %1 {offsets = [0, 0], sizes = [64, 32], strides = [1, 1]} : vector<64x96xf32> to vector<64x32xf32>
    %cst = arith.constant 0.353553385 : f32
    %3 = vector.broadcast %cst : f32 to vector<64x32xf32>
    %4 = arith.mulf %2, %3 : vector<64x32xf32>
    %5 = vector.extract_strided_slice %1 {offsets = [0, 32], sizes = [64, 32], strides = [1, 1]} : vector<64x96xf32> to vector<64x32xf32>
    %6 = vector.extract_strided_slice %1 {offsets = [0, 64], sizes = [64, 32], strides = [1, 1]} : vector<64x96xf32> to vector<64x32xf32>
    %c0_2 = arith.constant 0 : index
    %c0_3 = arith.constant 0 : index
    %7 = vector.load %arg3[%c0_2, %c0_3] : memref<16x64xf32, #tpu.memory_space<vmem>>, vector<16x64xf32>
    %c0_4 = arith.constant 0 : index
    %c0_5 = arith.constant 0 : index
    %8 = vector.load %arg4[%c0_4, %c0_5] : memref<16x16xf32, #tpu.memory_space<vmem>>, vector<16x16xf32>
    %c0_6 = arith.constant 0 : index
    %c0_7 = arith.constant 0 : index
    %9 = vector.load %arg6[%c0_6, %c0_7] : memref<32x32xbf16, #tpu.memory_space<vmem>>, vector<32x32xbf16>
    %cst_8 = arith.constant dense<0.000000e+00> : vector<16x32xf32>
    %10 = tpu.matmul %7, %4, %cst_8 {dimension_numbers = #tpu.dot_dimension_numbers<[1], [0], [0], [1], [0, 0, 1, 1], [], []>} : vector<16x64xf32>, vector<64x32xf32>, vector<16x32xf32> -> vector<16x32xf32>
    %cst_9 = arith.constant dense<0.000000e+00> : vector<16x32xf32>
    %11 = tpu.matmul %7, %5, %cst_9 {dimension_numbers = #tpu.dot_dimension_numbers<[1], [0], [0], [1], [0, 0, 1, 1], [], []>} : vector<16x64xf32>, vector<64x32xf32>, vector<16x32xf32> -> vector<16x32xf32>
    %c0_10 = arith.constant 0 : index
    %c0_11 = arith.constant 0 : index
    %c0_12 = arith.constant 0 : index
    %12 = vector.load %arg2[%c0_10, %c0_11, %c0_12] : memref<1x64x32xf32, #tpu.memory_space<vmem>>, vector<1x64x32xf32>
    %13 = vector.shape_cast %12 : vector<1x64x32xf32> to vector<64x32xf32>
    %c0_13 = arith.constant 0 : index
    %c0_14 = arith.constant 0 : index
    %14 = vector.load %arg7[%c0_13, %c0_14] : memref<1x32xf32, #tpu.memory_space<vmem>>, vector<1x32xf32>
    %15 = vector.broadcast %14 : vector<1x32xf32> to vector<64x32xf32>
    %16 = arith.addf %13, %15 : vector<64x32xf32>
    %17 = vector.extract_strided_slice %4 {offsets = [0, 0], sizes = [64, 8], strides = [1, 1]} : vector<64x32xf32> to vector<64x8xf32>
    %18 = vector.extract_strided_slice %5 {offsets = [0, 0], sizes = [64, 8], strides = [1, 1]} : vector<64x32xf32> to vector<64x8xf32>
    %19 = vector.extract_strided_slice %6 {offsets = [0, 0], sizes = [64, 8], strides = [1, 1]} : vector<64x32xf32> to vector<64x8xf32>
    %20 = vector.extract_strided_slice %10 {offsets = [0, 0], sizes = [16, 8], strides = [1, 1]} : vector<16x32xf32> to vector<16x8xf32>
    %21 = vector.extract_strided_slice %11 {offsets = [0, 0], sizes = [16, 8], strides = [1, 1]} : vector<16x32xf32> to vector<16x8xf32>
    %cst_15 = arith.constant dense<0.000000e+00> : vector<64x16xf32>
    %22 = tpu.matmul %17, %21, %cst_15 {dimension_numbers = #tpu.dot_dimension_numbers<[1], [1], [0], [0], [0, 0, 1, 0], [], []>} : vector<64x8xf32>, vector<16x8xf32>, vector<64x16xf32> -> vector<64x16xf32>
    %cst_16 = arith.constant dense<0xFF800000> : vector<64xf32>
    %23 = vector.multi_reduction <maximumf>, %22, %cst_16 [1] : vector<64x16xf32> to vector<64xf32>
    %24 = vector.shape_cast %23 : vector<64xf32> to vector<64x1xf32>
    %25 = vector.broadcast %24 : vector<64x1xf32> to vector<64x16xf32>
    %26 = arith.subf %22, %25 : vector<64x16xf32>
    %27 = math.exp %26 : vector<64x16xf32>
    %cst_17 = arith.constant dense<0.000000e+00> : vector<64xf32>
    %28 = vector.multi_reduction <add>, %27, %cst_17 [1] : vector<64x16xf32> to vector<64xf32>
    %29 = vector.shape_cast %28 : vector<64xf32> to vector<64x1xf32>
    %30 = tpu.reciprocal %29 {approx = true} : vector<64x1xf32> -> vector<64x1xf32>
    %31 = vector.broadcast %30 : vector<64x1xf32> to vector<64x16xf32>
    %32 = arith.mulf %27, %31 : vector<64x16xf32>
    %cst_18 = arith.constant dense<0.000000e+00> : vector<16x16xf32>
    %33 = tpu.matmul %20, %21, %cst_18 {dimension_numbers = #tpu.dot_dimension_numbers<[1], [1], [0], [0], [0, 0, 1, 0], [], []>} : vector<16x8xf32>, vector<16x8xf32>, vector<16x16xf32> -> vector<16x16xf32>
    %cst_19 = arith.constant dense<0xFF800000> : vector<16xf32>
    %34 = vector.multi_reduction <maximumf>, %33, %cst_19 [1] : vector<16x16xf32> to vector<16xf32>
    %35 = vector.shape_cast %34 : vector<16xf32> to vector<16x1xf32>
    %36 = vector.broadcast %35 : vector<16x1xf32> to vector<16x16xf32>
    %37 = arith.subf %33, %36 : vector<16x16xf32>
    %38 = math.exp %37 : vector<16x16xf32>
    %cst_20 = arith.constant dense<0.000000e+00> : vector<16xf32>
    %39 = vector.multi_reduction <add>, %38, %cst_20 [1] : vector<16x16xf32> to vector<16xf32>
    %40 = vector.shape_cast %39 : vector<16xf32> to vector<16x1xf32>
    %41 = tpu.reciprocal %40 {approx = true} : vector<16x1xf32> -> vector<16x1xf32>
    %42 = vector.broadcast %41 : vector<16x1xf32> to vector<16x16xf32>
    %43 = arith.mulf %38, %42 : vector<16x16xf32>
    %cst_21 = arith.constant dense<0.000000e+00> : vector<16x64xf32>
    %44 = tpu.matmul %20, %18, %cst_21 {dimension_numbers = #tpu.dot_dimension_numbers<[1], [1], [0], [0], [0, 0, 1, 0], [], []>} : vector<16x8xf32>, vector<64x8xf32>, vector<16x64xf32> -> vector<16x64xf32>
    %cst_22 = arith.constant dense<0xFF800000> : vector<16xf32>
    %45 = vector.multi_reduction <maximumf>, %44, %cst_22 [1] : vector<16x64xf32> to vector<16xf32>
    %46 = vector.shape_cast %45 : vector<16xf32> to vector<16x1xf32>
    %47 = vector.broadcast %46 : vector<16x1xf32> to vector<16x64xf32>
    %48 = arith.subf %44, %47 : vector<16x64xf32>
    %49 = math.exp %48 : vector<16x64xf32>
    %cst_23 = arith.constant dense<0.000000e+00> : vector<16xf32>
    %50 = vector.multi_reduction <add>, %49, %cst_23 [1] : vector<16x64xf32> to vector<16xf32>
    %51 = vector.shape_cast %50 : vector<16xf32> to vector<16x1xf32>
    %52 = tpu.reciprocal %51 {approx = true} : vector<16x1xf32> -> vector<16x1xf32>
    %53 = vector.broadcast %52 : vector<16x1xf32> to vector<16x64xf32>
    %54 = arith.mulf %49, %53 : vector<16x64xf32>
    %55 = math.absf %43 : vector<16x16xf32>
    %cst_24 = arith.constant dense<0.000000e+00> : vector<16xf32>
    %56 = vector.multi_reduction <add>, %55, %cst_24 [1] : vector<16x16xf32> to vector<16xf32>
    %57 = vector.shape_cast %56 : vector<16xf32> to vector<16x1xf32>
    %58 = vector.shape_cast %57 : vector<16x1xf32> to vector<1x16x1xf32>
    %cst_25 = arith.constant dense<0xFF800000> : vector<1xf32>
    %59 = vector.multi_reduction <maximumf>, %58, %cst_25 [1, 2] : vector<1x16x1xf32> to vector<1xf32>
    %60 = vector.shape_cast %59 : vector<1xf32> to vector<1x1x1xf32>
    %61 = vector.extract %60[0, 0, 0] : f32 from vector<1x1x1xf32>
    %cst_26 = arith.constant dense<0.000000e+00> : vector<16xf32>
    %62 = vector.multi_reduction <add>, %55, %cst_26 [0] : vector<16x16xf32> to vector<16xf32>
    %63 = vector.shape_cast %62 : vector<16xf32> to vector<1x16xf32>
    %64 = vector.shape_cast %63 : vector<1x16xf32> to vector<1x1x16xf32>
    %cst_27 = arith.constant dense<0xFF800000> : vector<1xf32>
    %65 = vector.multi_reduction <maximumf>, %64, %cst_27 [1, 2] : vector<1x1x16xf32> to vector<1xf32>
    %66 = vector.shape_cast %65 : vector<1xf32> to vector<1x1x1xf32>
    %67 = vector.extract %66[0, 0, 0] : f32 from vector<1x1x1xf32>
    %68 = arith.mulf %61, %67 : f32
    %69 = tpu.transpose %43, [1, 0] : vector<16x16xf32> -> vector<16x16xf32>
    %70 = vector.broadcast %68 : f32 to vector<16x16xf32>
    %71 = arith.divf %69, %70 : vector<16x16xf32>
    %cst_28 = arith.constant dense<0.000000e+00> : vector<16x16xf32>
    %72 = tpu.matmul %43, %71, %cst_28 {dimension_numbers = #tpu.dot_dimension_numbers<[1], [0], [0], [1], [0, 0, 1, 1], [], []>} : vector<16x16xf32>, vector<16x16xf32>, vector<16x16xf32> -> vector<16x16xf32>
    %cst_29 = arith.constant 7.000000e+00 : f32
    %73 = vector.broadcast %cst_29 : f32 to vector<16x16xf32>
    %74 = arith.mulf %73, %8 : vector<16x16xf32>
    %75 = arith.subf %74, %72 : vector<16x16xf32>
    %cst_30 = arith.constant 1.500000e+01 : f32
    %76 = vector.broadcast %cst_30 : f32 to vector<16x16xf32>
    %77 = arith.mulf %76, %8 : vector<16x16xf32>
    %cst_31 = arith.constant dense<0.000000e+00> : vector<16x16xf32>
    %78 = tpu.matmul %72, %75, %cst_31 {dimension_numbers = #tpu.dot_dimension_numbers<[1], [0], [0], [1], [0, 0, 1, 1], [], []>} : vector<16x16xf32>, vector<16x16xf32>, vector<16x16xf32> -> vector<16x16xf32>
    %79 = arith.subf %77, %78 : vector<16x16xf32>
    %cst_32 = arith.constant 1.300000e+01 : f32
    %80 = vector.broadcast %cst_32 : f32 to vector<16x16xf32>
    %81 = arith.mulf %80, %8 : vector<16x16xf32>
    %cst_33 = arith.constant dense<0.000000e+00> : vector<16x16xf32>
    %82 = tpu.matmul %72, %79, %cst_33 {dimension_numbers = #tpu.dot_dimension_numbers<[1], [0], [0], [1], [0, 0, 1, 1], [], []>} : vector<16x16xf32>, vector<16x16xf32>, vector<16x16xf32> -> vector<16x16xf32>
    %83 = arith.subf %81, %82 : vector<16x16xf32>
    %cst_34 = arith.constant dense<0.000000e+00> : vector<16x16xf32>
    %84 = tpu.matmul %71, %83, %cst_34 {dimension_numbers = #tpu.dot_dimension_numbers<[1], [0], [0], [1], [0, 0, 1, 1], [], []>} : vector<16x16xf32>, vector<16x16xf32>, vector<16x16xf32> -> vector<16x16xf32>
    %cst_35 = arith.constant 2.500000e-01 : f32
    %85 = vector.broadcast %cst_35 : f32 to vector<16x16xf32>
    %86 = arith.mulf %85, %84 : vector<16x16xf32>
    %cst_36 = arith.constant dense<0.000000e+00> : vector<16x16xf32>
    %87 = tpu.matmul %43, %86, %cst_36 {dimension_numbers = #tpu.dot_dimension_numbers<[1], [0], [0], [1], [0, 0, 1, 1], [], []>} : vector<16x16xf32>, vector<16x16xf32>, vector<16x16xf32> -> vector<16x16xf32>
    %cst_37 = arith.constant 7.000000e+00 : f32
    %88 = vector.broadcast %cst_37 : f32 to vector<16x16xf32>
    %89 = arith.mulf %88, %8 : vector<16x16xf32>
    %90 = arith.subf %89, %87 : vector<16x16xf32>
    %cst_38 = arith.constant 1.500000e+01 : f32
    %91 = vector.broadcast %cst_38 : f32 to vector<16x16xf32>
    %92 = arith.mulf %91, %8 : vector<16x16xf32>
    %cst_39 = arith.constant dense<0.000000e+00> : vector<16x16xf32>
    %93 = tpu.matmul %87, %90, %cst_39 {dimension_numbers = #tpu.dot_dimension_numbers<[1], [0], [0], [1], [0, 0, 1, 1], [], []>} : vector<16x16xf32>, vector<16x16xf32>, vector<16x16xf32> -> vector<16x16xf32>
    %94 = arith.subf %92, %93 : vector<16x16xf32>
    %cst_40 = arith.constant 1.300000e+01 : f32
    %95 = vector.broadcast %cst_40 : f32 to vector<16x16xf32>
    %96 = arith.mulf %95, %8 : vector<16x16xf32>
    %cst_41 = arith.constant dense<0.000000e+00> : vector<16x16xf32>
    %97 = tpu.matmul %87, %94, %cst_41 {dimension_numbers = #tpu.dot_dimension_numbers<[1], [0], [0], [1], [0, 0, 1, 1], [], []>} : vector<16x16xf32>, vector<16x16xf32>, vector<16x16xf32> -> vector<16x16xf32>
    %98 = arith.subf %96, %97 : vector<16x16xf32>
    %cst_42 = arith.constant dense<0.000000e+00> : vector<16x16xf32>
    %99 = tpu.matmul %86, %98, %cst_42 {dimension_numbers = #tpu.dot_dimension_numbers<[1], [0], [0], [1], [0, 0, 1, 1], [], []>} : vector<16x16xf32>, vector<16x16xf32>, vector<16x16xf32> -> vector<16x16xf32>
    %cst_43 = arith.constant 2.500000e-01 : f32
    %100 = vector.broadcast %cst_43 : f32 to vector<16x16xf32>
    %101 = arith.mulf %100, %99 : vector<16x16xf32>
    %cst_44 = arith.constant dense<0.000000e+00> : vector<16x16xf32>
    %102 = tpu.matmul %43, %101, %cst_44 {dimension_numbers = #tpu.dot_dimension_numbers<[1], [0], [0], [1], [0, 0, 1, 1], [], []>} : vector<16x16xf32>, vector<16x16xf32>, vector<16x16xf32> -> vector<16x16xf32>
    %cst_45 = arith.constant 7.000000e+00 : f32
    %103 = vector.broadcast %cst_45 : f32 to vector<16x16xf32>
    %104 = arith.mulf %103, %8 : vector<16x16xf32>
    %105 = arith.subf %104, %102 : vector<16x16xf32>
    %cst_46 = arith.constant 1.500000e+01 : f32
    %106 = vector.broadcast %cst_46 : f32 to vector<16x16xf32>
    %107 = arith.mulf %106, %8 : vector<16x16xf32>
    %cst_47 = arith.constant dense<0.000000e+00> : vector<16x16xf32>
    %108 = tpu.matmul %102, %105, %cst_47 {dimension_numbers = #tpu.dot_dimension_numbers<[1], [0], [0], [1], [0, 0, 1, 1], [], []>} : vector<16x16xf32>, vector<16x16xf32>, vector<16x16xf32> -> vector<16x16xf32>
    %109 = arith.subf %107, %108 : vector<16x16xf32>
    %cst_48 = arith.constant 1.300000e+01 : f32
    %110 = vector.broadcast %cst_48 : f32 to vector<16x16xf32>
    %111 = arith.mulf %110, %8 : vector<16x16xf32>
    %cst_49 = arith.constant dense<0.000000e+00> : vector<16x16xf32>
    %112 = tpu.matmul %102, %109, %cst_49 {dimension_numbers = #tpu.dot_dimension_numbers<[1], [0], [0], [1], [0, 0, 1, 1], [], []>} : vector<16x16xf32>, vector<16x16xf32>, vector<16x16xf32> -> vector<16x16xf32>
    %113 = arith.subf %111, %112 : vector<16x16xf32>
    %cst_50 = arith.constant dense<0.000000e+00> : vector<16x16xf32>
    %114 = tpu.matmul %101, %113, %cst_50 {dimension_numbers = #tpu.dot_dimension_numbers<[1], [0], [0], [1], [0, 0, 1, 1], [], []>} : vector<16x16xf32>, vector<16x16xf32>, vector<16x16xf32> -> vector<16x16xf32>
    %cst_51 = arith.constant 2.500000e-01 : f32
    %115 = vector.broadcast %cst_51 : f32 to vector<16x16xf32>
    %116 = arith.mulf %115, %114 : vector<16x16xf32>
    %cst_52 = arith.constant dense<0.000000e+00> : vector<16x16xf32>
    %117 = tpu.matmul %43, %116, %cst_52 {dimension_numbers = #tpu.dot_dimension_numbers<[1], [0], [0], [1], [0, 0, 1, 1], [], []>} : vector<16x16xf32>, vector<16x16xf32>, vector<16x16xf32> -> vector<16x16xf32>
    %cst_53 = arith.constant 7.000000e+00 : f32
    %118 = vector.broadcast %cst_53 : f32 to vector<16x16xf32>
    %119 = arith.mulf %118, %8 : vector<16x16xf32>
    %120 = arith.subf %119, %117 : vector<16x16xf32>
    %cst_54 = arith.constant 1.500000e+01 : f32
    %121 = vector.broadcast %cst_54 : f32 to vector<16x16xf32>
    %122 = arith.mulf %121, %8 : vector<16x16xf32>
    %cst_55 = arith.constant dense<0.000000e+00> : vector<16x16xf32>
    %123 = tpu.matmul %117, %120, %cst_55 {dimension_numbers = #tpu.dot_dimension_numbers<[1], [0], [0], [1], [0, 0, 1, 1], [], []>} : vector<16x16xf32>, vector<16x16xf32>, vector<16x16xf32> -> vector<16x16xf32>
    %124 = arith.subf %122, %123 : vector<16x16xf32>
    %cst_56 = arith.constant 1.300000e+01 : f32
    %125 = vector.broadcast %cst_56 : f32 to vector<16x16xf32>
    %126 = arith.mulf %125, %8 : vector<16x16xf32>
    %cst_57 = arith.constant dense<0.000000e+00> : vector<16x16xf32>
    %127 = tpu.matmul %117, %124, %cst_57 {dimension_numbers = #tpu.dot_dimension_numbers<[1], [0], [0], [1], [0, 0, 1, 1], [], []>} : vector<16x16xf32>, vector<16x16xf32>, vector<16x16xf32> -> vector<16x16xf32>
    %128 = arith.subf %126, %127 : vector<16x16xf32>
    %cst_58 = arith.constant dense<0.000000e+00> : vector<16x16xf32>
    %129 = tpu.matmul %116, %128, %cst_58 {dimension_numbers = #tpu.dot_dimension_numbers<[1], [0], [0], [1], [0, 0, 1, 1], [], []>} : vector<16x16xf32>, vector<16x16xf32>, vector<16x16xf32> -> vector<16x16xf32>
    %cst_59 = arith.constant 2.500000e-01 : f32
    %130 = vector.broadcast %cst_59 : f32 to vector<16x16xf32>
    %131 = arith.mulf %130, %129 : vector<16x16xf32>
    %cst_60 = arith.constant dense<0.000000e+00> : vector<16x16xf32>
    %132 = tpu.matmul %43, %131, %cst_60 {dimension_numbers = #tpu.dot_dimension_numbers<[1], [0], [0], [1], [0, 0, 1, 1], [], []>} : vector<16x16xf32>, vector<16x16xf32>, vector<16x16xf32> -> vector<16x16xf32>
    %cst_61 = arith.constant 7.000000e+00 : f32
    %133 = vector.broadcast %cst_61 : f32 to vector<16x16xf32>
    %134 = arith.mulf %133, %8 : vector<16x16xf32>
    %135 = arith.subf %134, %132 : vector<16x16xf32>
    %cst_62 = arith.constant 1.500000e+01 : f32
    %136 = vector.broadcast %cst_62 : f32 to vector<16x16xf32>
    %137 = arith.mulf %136, %8 : vector<16x16xf32>
    %cst_63 = arith.constant dense<0.000000e+00> : vector<16x16xf32>
    %138 = tpu.matmul %132, %135, %cst_63 {dimension_numbers = #tpu.dot_dimension_numbers<[1], [0], [0], [1], [0, 0, 1, 1], [], []>} : vector<16x16xf32>, vector<16x16xf32>, vector<16x16xf32> -> vector<16x16xf32>
    %139 = arith.subf %137, %138 : vector<16x16xf32>
    %cst_64 = arith.constant 1.300000e+01 : f32
    %140 = vector.broadcast %cst_64 : f32 to vector<16x16xf32>
    %141 = arith.mulf %140, %8 : vector<16x16xf32>
    %cst_65 = arith.constant dense<0.000000e+00> : vector<16x16xf32>
    %142 = tpu.matmul %132, %139, %cst_65 {dimension_numbers = #tpu.dot_dimension_numbers<[1], [0], [0], [1], [0, 0, 1, 1], [], []>} : vector<16x16xf32>, vector<16x16xf32>, vector<16x16xf32> -> vector<16x16xf32>
    %143 = arith.subf %141, %142 : vector<16x16xf32>
    %cst_66 = arith.constant dense<0.000000e+00> : vector<16x16xf32>
    %144 = tpu.matmul %131, %143, %cst_66 {dimension_numbers = #tpu.dot_dimension_numbers<[1], [0], [0], [1], [0, 0, 1, 1], [], []>} : vector<16x16xf32>, vector<16x16xf32>, vector<16x16xf32> -> vector<16x16xf32>
    %cst_67 = arith.constant 2.500000e-01 : f32
    %145 = vector.broadcast %cst_67 : f32 to vector<16x16xf32>
    %146 = arith.mulf %145, %144 : vector<16x16xf32>
    %cst_68 = arith.constant dense<0.000000e+00> : vector<16x16xf32>
    %147 = tpu.matmul %43, %146, %cst_68 {dimension_numbers = #tpu.dot_dimension_numbers<[1], [0], [0], [1], [0, 0, 1, 1], [], []>} : vector<16x16xf32>, vector<16x16xf32>, vector<16x16xf32> -> vector<16x16xf32>
    %cst_69 = arith.constant 7.000000e+00 : f32
    %148 = vector.broadcast %cst_69 : f32 to vector<16x16xf32>
    %149 = arith.mulf %148, %8 : vector<16x16xf32>
    %150 = arith.subf %149, %147 : vector<16x16xf32>
    %cst_70 = arith.constant 1.500000e+01 : f32
    %151 = vector.broadcast %cst_70 : f32 to vector<16x16xf32>
    %152 = arith.mulf %151, %8 : vector<16x16xf32>
    %cst_71 = arith.constant dense<0.000000e+00> : vector<16x16xf32>
    %153 = tpu.matmul %147, %150, %cst_71 {dimension_numbers = #tpu.dot_dimension_numbers<[1], [0], [0], [1], [0, 0, 1, 1], [], []>} : vector<16x16xf32>, vector<16x16xf32>, vector<16x16xf32> -> vector<16x16xf32>
    %154 = arith.subf %152, %153 : vector<16x16xf32>
    %cst_72 = arith.constant 1.300000e+01 : f32
    %155 = vector.broadcast %cst_72 : f32 to vector<16x16xf32>
    %156 = arith.mulf %155, %8 : vector<16x16xf32>
    %cst_73 = arith.constant dense<0.000000e+00> : vector<16x16xf32>
    %157 = tpu.matmul %147, %154, %cst_73 {dimension_numbers = #tpu.dot_dimension_numbers<[1], [0], [0], [1], [0, 0, 1, 1], [], []>} : vector<16x16xf32>, vector<16x16xf32>, vector<16x16xf32> -> vector<16x16xf32>
    %158 = arith.subf %156, %157 : vector<16x16xf32>
    %cst_74 = arith.constant dense<0.000000e+00> : vector<16x16xf32>
    %159 = tpu.matmul %146, %158, %cst_74 {dimension_numbers = #tpu.dot_dimension_numbers<[1], [0], [0], [1], [0, 0, 1, 1], [], []>} : vector<16x16xf32>, vector<16x16xf32>, vector<16x16xf32> -> vector<16x16xf32>
    %cst_75 = arith.constant 2.500000e-01 : f32
    %160 = vector.broadcast %cst_75 : f32 to vector<16x16xf32>
    %161 = arith.mulf %160, %159 : vector<16x16xf32>
    %cst_76 = arith.constant dense<0.000000e+00> : vector<64x16xf32>
    %162 = tpu.matmul %32, %161, %cst_76 {dimension_numbers = #tpu.dot_dimension_numbers<[1], [0], [0], [1], [0, 0, 1, 1], [], []>} : vector<64x16xf32>, vector<16x16xf32>, vector<64x16xf32> -> vector<64x16xf32>
    %cst_77 = arith.constant dense<0.000000e+00> : vector<16x8xf32>
    %163 = tpu.matmul %54, %19, %cst_77 {dimension_numbers = #tpu.dot_dimension_numbers<[1], [0], [0], [1], [0, 0, 1, 1], [], []>} : vector<16x64xf32>, vector<64x8xf32>, vector<16x8xf32> -> vector<16x8xf32>
    %cst_78 = arith.constant dense<0.000000e+00> : vector<64x8xf32>
    %164 = tpu.matmul %162, %163, %cst_78 {dimension_numbers = #tpu.dot_dimension_numbers<[1], [0], [0], [1], [0, 0, 1, 1], [], []>} : vector<64x16xf32>, vector<16x8xf32>, vector<64x8xf32> -> vector<64x8xf32>
    %c0_79 = arith.constant 0 : index
    %c0_80 = arith.constant 0 : index
    %c0_81 = arith.constant 0 : index
    %165 = vector.load %arg5[%c0_79, %c0_80, %c0_81] : memref<4x64x64xf32, #tpu.memory_space<vmem>>, vector<1x64x64xf32>
    %166 = vector.shape_cast %165 : vector<1x64x64xf32> to vector<64x64xf32>
    %cst_82 = arith.constant dense<0.000000e+00> : vector<64x8xf32>
    %167 = tpu.matmul %166, %19, %cst_82 {dimension_numbers = #tpu.dot_dimension_numbers<[1], [0], [0], [1], [0, 0, 1, 1], [], []>} : vector<64x64xf32>, vector<64x8xf32>, vector<64x8xf32> -> vector<64x8xf32>
    %168 = arith.addf %164, %167 : vector<64x8xf32>
    %169 = arith.truncf %168 : vector<64x8xf32> to vector<64x8xbf16>
    %170 = vector.extract_strided_slice %9 {offsets = [0, 0], sizes = [8, 32], strides = [1, 1]} : vector<32x32xbf16> to vector<8x32xbf16>
    %cst_83 = arith.constant dense<0.000000e+00> : vector<64x32xf32>
    %171 = tpu.matmul %169, %170, %cst_83 {dimension_numbers = #tpu.dot_dimension_numbers<[1], [0], [0], [1], [0, 0, 1, 1], [], []>} : vector<64x8xbf16>, vector<8x32xbf16>, vector<64x32xf32> -> vector<64x32xf32>
    %172 = arith.addf %16, %171 : vector<64x32xf32>
    %173 = vector.extract_strided_slice %4 {offsets = [0, 8], sizes = [64, 8], strides = [1, 1]} : vector<64x32xf32> to vector<64x8xf32>
    %174 = vector.extract_strided_slice %5 {offsets = [0, 8], sizes = [64, 8], strides = [1, 1]} : vector<64x32xf32> to vector<64x8xf32>
    %175 = vector.extract_strided_slice %6 {offsets = [0, 8], sizes = [64, 8], strides = [1, 1]} : vector<64x32xf32> to vector<64x8xf32>
    %176 = vector.extract_strided_slice %10 {offsets = [0, 8], sizes = [16, 8], strides = [1, 1]} : vector<16x32xf32> to vector<16x8xf32>
    %177 = vector.extract_strided_slice %11 {offsets = [0, 8], sizes = [16, 8], strides = [1, 1]} : vector<16x32xf32> to vector<16x8xf32>
    %cst_84 = arith.constant dense<0.000000e+00> : vector<64x16xf32>
    %178 = tpu.matmul %173, %177, %cst_84 {dimension_numbers = #tpu.dot_dimension_numbers<[1], [1], [0], [0], [0, 0, 1, 0], [], []>} : vector<64x8xf32>, vector<16x8xf32>, vector<64x16xf32> -> vector<64x16xf32>
    %cst_85 = arith.constant dense<0xFF800000> : vector<64xf32>
    %179 = vector.multi_reduction <maximumf>, %178, %cst_85 [1] : vector<64x16xf32> to vector<64xf32>
    %180 = vector.shape_cast %179 : vector<64xf32> to vector<64x1xf32>
    %181 = vector.broadcast %180 : vector<64x1xf32> to vector<64x16xf32>
    %182 = arith.subf %178, %181 : vector<64x16xf32>
    %183 = math.exp %182 : vector<64x16xf32>
    %cst_86 = arith.constant dense<0.000000e+00> : vector<64xf32>
    %184 = vector.multi_reduction <add>, %183, %cst_86 [1] : vector<64x16xf32> to vector<64xf32>
    %185 = vector.shape_cast %184 : vector<64xf32> to vector<64x1xf32>
    %186 = tpu.reciprocal %185 {approx = true} : vector<64x1xf32> -> vector<64x1xf32>
    %187 = vector.broadcast %186 : vector<64x1xf32> to vector<64x16xf32>
    %188 = arith.mulf %183, %187 : vector<64x16xf32>
    %cst_87 = arith.constant dense<0.000000e+00> : vector<16x16xf32>
    %189 = tpu.matmul %176, %177, %cst_87 {dimension_numbers = #tpu.dot_dimension_numbers<[1], [1], [0], [0], [0, 0, 1, 0], [], []>} : vector<16x8xf32>, vector<16x8xf32>, vector<16x16xf32> -> vector<16x16xf32>
    %cst_88 = arith.constant dense<0xFF800000> : vector<16xf32>
    %190 = vector.multi_reduction <maximumf>, %189, %cst_88 [1] : vector<16x16xf32> to vector<16xf32>
    %191 = vector.shape_cast %190 : vector<16xf32> to vector<16x1xf32>
    %192 = vector.broadcast %191 : vector<16x1xf32> to vector<16x16xf32>
    %193 = arith.subf %189, %192 : vector<16x16xf32>
    %194 = math.exp %193 : vector<16x16xf32>
    %cst_89 = arith.constant dense<0.000000e+00> : vector<16xf32>
    %195 = vector.multi_reduction <add>, %194, %cst_89 [1] : vector<16x16xf32> to vector<16xf32>
    %196 = vector.shape_cast %195 : vector<16xf32> to vector<16x1xf32>
    %197 = tpu.reciprocal %196 {approx = true} : vector<16x1xf32> -> vector<16x1xf32>
    %198 = vector.broadcast %197 : vector<16x1xf32> to vector<16x16xf32>
    %199 = arith.mulf %194, %198 : vector<16x16xf32>
    %cst_90 = arith.constant dense<0.000000e+00> : vector<16x64xf32>
    %200 = tpu.matmul %176, %174, %cst_90 {dimension_numbers = #tpu.dot_dimension_numbers<[1], [1], [0], [0], [0, 0, 1, 0], [], []>} : vector<16x8xf32>, vector<64x8xf32>, vector<16x64xf32> -> vector<16x64xf32>
    %cst_91 = arith.constant dense<0xFF800000> : vector<16xf32>
    %201 = vector.multi_reduction <maximumf>, %200, %cst_91 [1] : vector<16x64xf32> to vector<16xf32>
    %202 = vector.shape_cast %201 : vector<16xf32> to vector<16x1xf32>
    %203 = vector.broadcast %202 : vector<16x1xf32> to vector<16x64xf32>
    %204 = arith.subf %200, %203 : vector<16x64xf32>
    %205 = math.exp %204 : vector<16x64xf32>
    %cst_92 = arith.constant dense<0.000000e+00> : vector<16xf32>
    %206 = vector.multi_reduction <add>, %205, %cst_92 [1] : vector<16x64xf32> to vector<16xf32>
    %207 = vector.shape_cast %206 : vector<16xf32> to vector<16x1xf32>
    %208 = tpu.reciprocal %207 {approx = true} : vector<16x1xf32> -> vector<16x1xf32>
    %209 = vector.broadcast %208 : vector<16x1xf32> to vector<16x64xf32>
    %210 = arith.mulf %205, %209 : vector<16x64xf32>
    %211 = math.absf %199 : vector<16x16xf32>
    %cst_93 = arith.constant dense<0.000000e+00> : vector<16xf32>
    %212 = vector.multi_reduction <add>, %211, %cst_93 [1] : vector<16x16xf32> to vector<16xf32>
    %213 = vector.shape_cast %212 : vector<16xf32> to vector<16x1xf32>
    %214 = vector.shape_cast %213 : vector<16x1xf32> to vector<1x16x1xf32>
    %cst_94 = arith.constant dense<0xFF800000> : vector<1xf32>
    %215 = vector.multi_reduction <maximumf>, %214, %cst_94 [1, 2] : vector<1x16x1xf32> to vector<1xf32>
    %216 = vector.shape_cast %215 : vector<1xf32> to vector<1x1x1xf32>
    %217 = vector.extract %216[0, 0, 0] : f32 from vector<1x1x1xf32>
    %cst_95 = arith.constant dense<0.000000e+00> : vector<16xf32>
    %218 = vector.multi_reduction <add>, %211, %cst_95 [0] : vector<16x16xf32> to vector<16xf32>
    %219 = vector.shape_cast %218 : vector<16xf32> to vector<1x16xf32>
    %220 = vector.shape_cast %219 : vector<1x16xf32> to vector<1x1x16xf32>
    %cst_96 = arith.constant dense<0xFF800000> : vector<1xf32>
    %221 = vector.multi_reduction <maximumf>, %220, %cst_96 [1, 2] : vector<1x1x16xf32> to vector<1xf32>
    %222 = vector.shape_cast %221 : vector<1xf32> to vector<1x1x1xf32>
    %223 = vector.extract %222[0, 0, 0] : f32 from vector<1x1x1xf32>
    %224 = arith.mulf %217, %223 : f32
    %225 = tpu.transpose %199, [1, 0] : vector<16x16xf32> -> vector<16x16xf32>
    %226 = vector.broadcast %224 : f32 to vector<16x16xf32>
    %227 = arith.divf %225, %226 : vector<16x16xf32>
    %cst_97 = arith.constant dense<0.000000e+00> : vector<16x16xf32>
    %228 = tpu.matmul %199, %227, %cst_97 {dimension_numbers = #tpu.dot_dimension_numbers<[1], [0], [0], [1], [0, 0, 1, 1], [], []>} : vector<16x16xf32>, vector<16x16xf32>, vector<16x16xf32> -> vector<16x16xf32>
    %cst_98 = arith.constant 7.000000e+00 : f32
    %229 = vector.broadcast %cst_98 : f32 to vector<16x16xf32>
    %230 = arith.mulf %229, %8 : vector<16x16xf32>
    %231 = arith.subf %230, %228 : vector<16x16xf32>
    %cst_99 = arith.constant 1.500000e+01 : f32
    %232 = vector.broadcast %cst_99 : f32 to vector<16x16xf32>
    %233 = arith.mulf %232, %8 : vector<16x16xf32>
    %cst_100 = arith.constant dense<0.000000e+00> : vector<16x16xf32>
    %234 = tpu.matmul %228, %231, %cst_100 {dimension_numbers = #tpu.dot_dimension_numbers<[1], [0], [0], [1], [0, 0, 1, 1], [], []>} : vector<16x16xf32>, vector<16x16xf32>, vector<16x16xf32> -> vector<16x16xf32>
    %235 = arith.subf %233, %234 : vector<16x16xf32>
    %cst_101 = arith.constant 1.300000e+01 : f32
    %236 = vector.broadcast %cst_101 : f32 to vector<16x16xf32>
    %237 = arith.mulf %236, %8 : vector<16x16xf32>
    %cst_102 = arith.constant dense<0.000000e+00> : vector<16x16xf32>
    %238 = tpu.matmul %228, %235, %cst_102 {dimension_numbers = #tpu.dot_dimension_numbers<[1], [0], [0], [1], [0, 0, 1, 1], [], []>} : vector<16x16xf32>, vector<16x16xf32>, vector<16x16xf32> -> vector<16x16xf32>
    %239 = arith.subf %237, %238 : vector<16x16xf32>
    %cst_103 = arith.constant dense<0.000000e+00> : vector<16x16xf32>
    %240 = tpu.matmul %227, %239, %cst_103 {dimension_numbers = #tpu.dot_dimension_numbers<[1], [0], [0], [1], [0, 0, 1, 1], [], []>} : vector<16x16xf32>, vector<16x16xf32>, vector<16x16xf32> -> vector<16x16xf32>
    %cst_104 = arith.constant 2.500000e-01 : f32
    %241 = vector.broadcast %cst_104 : f32 to vector<16x16xf32>
    %242 = arith.mulf %241, %240 : vector<16x16xf32>
    %cst_105 = arith.constant dense<0.000000e+00> : vector<16x16xf32>
    %243 = tpu.matmul %199, %242, %cst_105 {dimension_numbers = #tpu.dot_dimension_numbers<[1], [0], [0], [1], [0, 0, 1, 1], [], []>} : vector<16x16xf32>, vector<16x16xf32>, vector<16x16xf32> -> vector<16x16xf32>
    %cst_106 = arith.constant 7.000000e+00 : f32
    %244 = vector.broadcast %cst_106 : f32 to vector<16x16xf32>
    %245 = arith.mulf %244, %8 : vector<16x16xf32>
    %246 = arith.subf %245, %243 : vector<16x16xf32>
    %cst_107 = arith.constant 1.500000e+01 : f32
    %247 = vector.broadcast %cst_107 : f32 to vector<16x16xf32>
    %248 = arith.mulf %247, %8 : vector<16x16xf32>
    %cst_108 = arith.constant dense<0.000000e+00> : vector<16x16xf32>
    %249 = tpu.matmul %243, %246, %cst_108 {dimension_numbers = #tpu.dot_dimension_numbers<[1], [0], [0], [1], [0, 0, 1, 1], [], []>} : vector<16x16xf32>, vector<16x16xf32>, vector<16x16xf32> -> vector<16x16xf32>
    %250 = arith.subf %248, %249 : vector<16x16xf32>
    %cst_109 = arith.constant 1.300000e+01 : f32
    %251 = vector.broadcast %cst_109 : f32 to vector<16x16xf32>
    %252 = arith.mulf %251, %8 : vector<16x16xf32>
    %cst_110 = arith.constant dense<0.000000e+00> : vector<16x16xf32>
    %253 = tpu.matmul %243, %250, %cst_110 {dimension_numbers = #tpu.dot_dimension_numbers<[1], [0], [0], [1], [0, 0, 1, 1], [], []>} : vector<16x16xf32>, vector<16x16xf32>, vector<16x16xf32> -> vector<16x16xf32>
    %254 = arith.subf %252, %253 : vector<16x16xf32>
    %cst_111 = arith.constant dense<0.000000e+00> : vector<16x16xf32>
    %255 = tpu.matmul %242, %254, %cst_111 {dimension_numbers = #tpu.dot_dimension_numbers<[1], [0], [0], [1], [0, 0, 1, 1], [], []>} : vector<16x16xf32>, vector<16x16xf32>, vector<16x16xf32> -> vector<16x16xf32>
    %cst_112 = arith.constant 2.500000e-01 : f32
    %256 = vector.broadcast %cst_112 : f32 to vector<16x16xf32>
    %257 = arith.mulf %256, %255 : vector<16x16xf32>
    %cst_113 = arith.constant dense<0.000000e+00> : vector<16x16xf32>
    %258 = tpu.matmul %199, %257, %cst_113 {dimension_numbers = #tpu.dot_dimension_numbers<[1], [0], [0], [1], [0, 0, 1, 1], [], []>} : vector<16x16xf32>, vector<16x16xf32>, vector<16x16xf32> -> vector<16x16xf32>
    %cst_114 = arith.constant 7.000000e+00 : f32
    %259 = vector.broadcast %cst_114 : f32 to vector<16x16xf32>
    %260 = arith.mulf %259, %8 : vector<16x16xf32>
    %261 = arith.subf %260, %258 : vector<16x16xf32>
    %cst_115 = arith.constant 1.500000e+01 : f32
    %262 = vector.broadcast %cst_115 : f32 to vector<16x16xf32>
    %263 = arith.mulf %262, %8 : vector<16x16xf32>
    %cst_116 = arith.constant dense<0.000000e+00> : vector<16x16xf32>
    %264 = tpu.matmul %258, %261, %cst_116 {dimension_numbers = #tpu.dot_dimension_numbers<[1], [0], [0], [1], [0, 0, 1, 1], [], []>} : vector<16x16xf32>, vector<16x16xf32>, vector<16x16xf32> -> vector<16x16xf32>
    %265 = arith.subf %263, %264 : vector<16x16xf32>
    %cst_117 = arith.constant 1.300000e+01 : f32
    %266 = vector.broadcast %cst_117 : f32 to vector<16x16xf32>
    %267 = arith.mulf %266, %8 : vector<16x16xf32>
    %cst_118 = arith.constant dense<0.000000e+00> : vector<16x16xf32>
    %268 = tpu.matmul %258, %265, %cst_118 {dimension_numbers = #tpu.dot_dimension_numbers<[1], [0], [0], [1], [0, 0, 1, 1], [], []>} : vector<16x16xf32>, vector<16x16xf32>, vector<16x16xf32> -> vector<16x16xf32>
    %269 = arith.subf %267, %268 : vector<16x16xf32>
    %cst_119 = arith.constant dense<0.000000e+00> : vector<16x16xf32>
    %270 = tpu.matmul %257, %269, %cst_119 {dimension_numbers = #tpu.dot_dimension_numbers<[1], [0], [0], [1], [0, 0, 1, 1], [], []>} : vector<16x16xf32>, vector<16x16xf32>, vector<16x16xf32> -> vector<16x16xf32>
    %cst_120 = arith.constant 2.500000e-01 : f32
    %271 = vector.broadcast %cst_120 : f32 to vector<16x16xf32>
    %272 = arith.mulf %271, %270 : vector<16x16xf32>
    %cst_121 = arith.constant dense<0.000000e+00> : vector<16x16xf32>
    %273 = tpu.matmul %199, %272, %cst_121 {dimension_numbers = #tpu.dot_dimension_numbers<[1], [0], [0], [1], [0, 0, 1, 1], [], []>} : vector<16x16xf32>, vector<16x16xf32>, vector<16x16xf32> -> vector<16x16xf32>
    %cst_122 = arith.constant 7.000000e+00 : f32
    %274 = vector.broadcast %cst_122 : f32 to vector<16x16xf32>
    %275 = arith.mulf %274, %8 : vector<16x16xf32>
    %276 = arith.subf %275, %273 : vector<16x16xf32>
    %cst_123 = arith.constant 1.500000e+01 : f32
    %277 = vector.broadcast %cst_123 : f32 to vector<16x16xf32>
    %278 = arith.mulf %277, %8 : vector<16x16xf32>
    %cst_124 = arith.constant dense<0.000000e+00> : vector<16x16xf32>
    %279 = tpu.matmul %273, %276, %cst_124 {dimension_numbers = #tpu.dot_dimension_numbers<[1], [0], [0], [1], [0, 0, 1, 1], [], []>} : vector<16x16xf32>, vector<16x16xf32>, vector<16x16xf32> -> vector<16x16xf32>
    %280 = arith.subf %278, %279 : vector<16x16xf32>
    %cst_125 = arith.constant 1.300000e+01 : f32
    %281 = vector.broadcast %cst_125 : f32 to vector<16x16xf32>
    %282 = arith.mulf %281, %8 : vector<16x16xf32>
    %cst_126 = arith.constant dense<0.000000e+00> : vector<16x16xf32>
    %283 = tpu.matmul %273, %280, %cst_126 {dimension_numbers = #tpu.dot_dimension_numbers<[1], [0], [0], [1], [0, 0, 1, 1], [], []>} : vector<16x16xf32>, vector<16x16xf32>, vector<16x16xf32> -> vector<16x16xf32>
    %284 = arith.subf %282, %283 : vector<16x16xf32>
    %cst_127 = arith.constant dense<0.000000e+00> : vector<16x16xf32>
    %285 = tpu.matmul %272, %284, %cst_127 {dimension_numbers = #tpu.dot_dimension_numbers<[1], [0], [0], [1], [0, 0, 1, 1], [], []>} : vector<16x16xf32>, vector<16x16xf32>, vector<16x16xf32> -> vector<16x16xf32>
    %cst_128 = arith.constant 2.500000e-01 : f32
    %286 = vector.broadcast %cst_128 : f32 to vector<16x16xf32>
    %287 = arith.mulf %286, %285 : vector<16x16xf32>
    %cst_129 = arith.constant dense<0.000000e+00> : vector<16x16xf32>
    %288 = tpu.matmul %199, %287, %cst_129 {dimension_numbers = #tpu.dot_dimension_numbers<[1], [0], [0], [1], [0, 0, 1, 1], [], []>} : vector<16x16xf32>, vector<16x16xf32>, vector<16x16xf32> -> vector<16x16xf32>
    %cst_130 = arith.constant 7.000000e+00 : f32
    %289 = vector.broadcast %cst_130 : f32 to vector<16x16xf32>
    %290 = arith.mulf %289, %8 : vector<16x16xf32>
    %291 = arith.subf %290, %288 : vector<16x16xf32>
    %cst_131 = arith.constant 1.500000e+01 : f32
    %292 = vector.broadcast %cst_131 : f32 to vector<16x16xf32>
    %293 = arith.mulf %292, %8 : vector<16x16xf32>
    %cst_132 = arith.constant dense<0.000000e+00> : vector<16x16xf32>
    %294 = tpu.matmul %288, %291, %cst_132 {dimension_numbers = #tpu.dot_dimension_numbers<[1], [0], [0], [1], [0, 0, 1, 1], [], []>} : vector<16x16xf32>, vector<16x16xf32>, vector<16x16xf32> -> vector<16x16xf32>
    %295 = arith.subf %293, %294 : vector<16x16xf32>
    %cst_133 = arith.constant 1.300000e+01 : f32
    %296 = vector.broadcast %cst_133 : f32 to vector<16x16xf32>
    %297 = arith.mulf %296, %8 : vector<16x16xf32>
    %cst_134 = arith.constant dense<0.000000e+00> : vector<16x16xf32>
    %298 = tpu.matmul %288, %295, %cst_134 {dimension_numbers = #tpu.dot_dimension_numbers<[1], [0], [0], [1], [0, 0, 1, 1], [], []>} : vector<16x16xf32>, vector<16x16xf32>, vector<16x16xf32> -> vector<16x16xf32>
    %299 = arith.subf %297, %298 : vector<16x16xf32>
    %cst_135 = arith.constant dense<0.000000e+00> : vector<16x16xf32>
    %300 = tpu.matmul %287, %299, %cst_135 {dimension_numbers = #tpu.dot_dimension_numbers<[1], [0], [0], [1], [0, 0, 1, 1], [], []>} : vector<16x16xf32>, vector<16x16xf32>, vector<16x16xf32> -> vector<16x16xf32>
    %cst_136 = arith.constant 2.500000e-01 : f32
    %301 = vector.broadcast %cst_136 : f32 to vector<16x16xf32>
    %302 = arith.mulf %301, %300 : vector<16x16xf32>
    %cst_137 = arith.constant dense<0.000000e+00> : vector<16x16xf32>
    %303 = tpu.matmul %199, %302, %cst_137 {dimension_numbers = #tpu.dot_dimension_numbers<[1], [0], [0], [1], [0, 0, 1, 1], [], []>} : vector<16x16xf32>, vector<16x16xf32>, vector<16x16xf32> -> vector<16x16xf32>
    %cst_138 = arith.constant 7.000000e+00 : f32
    %304 = vector.broadcast %cst_138 : f32 to vector<16x16xf32>
    %305 = arith.mulf %304, %8 : vector<16x16xf32>
    %306 = arith.subf %305, %303 : vector<16x16xf32>
    %cst_139 = arith.constant 1.500000e+01 : f32
    %307 = vector.broadcast %cst_139 : f32 to vector<16x16xf32>
    %308 = arith.mulf %307, %8 : vector<16x16xf32>
    %cst_140 = arith.constant dense<0.000000e+00> : vector<16x16xf32>
    %309 = tpu.matmul %303, %306, %cst_140 {dimension_numbers = #tpu.dot_dimension_numbers<[1], [0], [0], [1], [0, 0, 1, 1], [], []>} : vector<16x16xf32>, vector<16x16xf32>, vector<16x16xf32> -> vector<16x16xf32>
    %310 = arith.subf %308, %309 : vector<16x16xf32>
    %cst_141 = arith.constant 1.300000e+01 : f32
    %311 = vector.broadcast %cst_141 : f32 to vector<16x16xf32>
    %312 = arith.mulf %311, %8 : vector<16x16xf32>
    %cst_142 = arith.constant dense<0.000000e+00> : vector<16x16xf32>
    %313 = tpu.matmul %303, %310, %cst_142 {dimension_numbers = #tpu.dot_dimension_numbers<[1], [0], [0], [1], [0, 0, 1, 1], [], []>} : vector<16x16xf32>, vector<16x16xf32>, vector<16x16xf32> -> vector<16x16xf32>
    %314 = arith.subf %312, %313 : vector<16x16xf32>
    %cst_143 = arith.constant dense<0.000000e+00> : vector<16x16xf32>
    %315 = tpu.matmul %302, %314, %cst_143 {dimension_numbers = #tpu.dot_dimension_numbers<[1], [0], [0], [1], [0, 0, 1, 1], [], []>} : vector<16x16xf32>, vector<16x16xf32>, vector<16x16xf32> -> vector<16x16xf32>
    %cst_144 = arith.constant 2.500000e-01 : f32
    %316 = vector.broadcast %cst_144 : f32 to vector<16x16xf32>
    %317 = arith.mulf %316, %315 : vector<16x16xf32>
    %cst_145 = arith.constant dense<0.000000e+00> : vector<64x16xf32>
    %318 = tpu.matmul %188, %317, %cst_145 {dimension_numbers = #tpu.dot_dimension_numbers<[1], [0], [0], [1], [0, 0, 1, 1], [], []>} : vector<64x16xf32>, vector<16x16xf32>, vector<64x16xf32> -> vector<64x16xf32>
    %cst_146 = arith.constant dense<0.000000e+00> : vector<16x8xf32>
    %319 = tpu.matmul %210, %175, %cst_146 {dimension_numbers = #tpu.dot_dimension_numbers<[1], [0], [0], [1], [0, 0, 1, 1], [], []>} : vector<16x64xf32>, vector<64x8xf32>, vector<16x8xf32> -> vector<16x8xf32>
    %cst_147 = arith.constant dense<0.000000e+00> : vector<64x8xf32>
    %320 = tpu.matmul %318, %319, %cst_147 {dimension_numbers = #tpu.dot_dimension_numbers<[1], [0], [0], [1], [0, 0, 1, 1], [], []>} : vector<64x16xf32>, vector<16x8xf32>, vector<64x8xf32> -> vector<64x8xf32>
    %c1 = arith.constant 1 : index
    %c0_148 = arith.constant 0 : index
    %c0_149 = arith.constant 0 : index
    %321 = vector.load %arg5[%c1, %c0_148, %c0_149] : memref<4x64x64xf32, #tpu.memory_space<vmem>>, vector<1x64x64xf32>
    %322 = vector.shape_cast %321 : vector<1x64x64xf32> to vector<64x64xf32>
    %cst_150 = arith.constant dense<0.000000e+00> : vector<64x8xf32>
    %323 = tpu.matmul %322, %175, %cst_150 {dimension_numbers = #tpu.dot_dimension_numbers<[1], [0], [0], [1], [0, 0, 1, 1], [], []>} : vector<64x64xf32>, vector<64x8xf32>, vector<64x8xf32> -> vector<64x8xf32>
    %324 = arith.addf %320, %323 : vector<64x8xf32>
    %325 = arith.truncf %324 : vector<64x8xf32> to vector<64x8xbf16>
    %326 = vector.extract_strided_slice %9 {offsets = [8, 0], sizes = [8, 32], strides = [1, 1]} : vector<32x32xbf16> to vector<8x32xbf16>
    %cst_151 = arith.constant dense<0.000000e+00> : vector<64x32xf32>
    %327 = tpu.matmul %325, %326, %cst_151 {dimension_numbers = #tpu.dot_dimension_numbers<[1], [0], [0], [1], [0, 0, 1, 1], [], []>} : vector<64x8xbf16>, vector<8x32xbf16>, vector<64x32xf32> -> vector<64x32xf32>
    %328 = arith.addf %172, %327 : vector<64x32xf32>
    %329 = vector.extract_strided_slice %4 {offsets = [0, 16], sizes = [64, 8], strides = [1, 1]} : vector<64x32xf32> to vector<64x8xf32>
    %330 = vector.extract_strided_slice %5 {offsets = [0, 16], sizes = [64, 8], strides = [1, 1]} : vector<64x32xf32> to vector<64x8xf32>
    %331 = vector.extract_strided_slice %6 {offsets = [0, 16], sizes = [64, 8], strides = [1, 1]} : vector<64x32xf32> to vector<64x8xf32>
    %332 = vector.extract_strided_slice %10 {offsets = [0, 16], sizes = [16, 8], strides = [1, 1]} : vector<16x32xf32> to vector<16x8xf32>
    %333 = vector.extract_strided_slice %11 {offsets = [0, 16], sizes = [16, 8], strides = [1, 1]} : vector<16x32xf32> to vector<16x8xf32>
    %cst_152 = arith.constant dense<0.000000e+00> : vector<64x16xf32>
    %334 = tpu.matmul %329, %333, %cst_152 {dimension_numbers = #tpu.dot_dimension_numbers<[1], [1], [0], [0], [0, 0, 1, 0], [], []>} : vector<64x8xf32>, vector<16x8xf32>, vector<64x16xf32> -> vector<64x16xf32>
    %cst_153 = arith.constant dense<0xFF800000> : vector<64xf32>
    %335 = vector.multi_reduction <maximumf>, %334, %cst_153 [1] : vector<64x16xf32> to vector<64xf32>
    %336 = vector.shape_cast %335 : vector<64xf32> to vector<64x1xf32>
    %337 = vector.broadcast %336 : vector<64x1xf32> to vector<64x16xf32>
    %338 = arith.subf %334, %337 : vector<64x16xf32>
    %339 = math.exp %338 : vector<64x16xf32>
    %cst_154 = arith.constant dense<0.000000e+00> : vector<64xf32>
    %340 = vector.multi_reduction <add>, %339, %cst_154 [1] : vector<64x16xf32> to vector<64xf32>
    %341 = vector.shape_cast %340 : vector<64xf32> to vector<64x1xf32>
    %342 = tpu.reciprocal %341 {approx = true} : vector<64x1xf32> -> vector<64x1xf32>
    %343 = vector.broadcast %342 : vector<64x1xf32> to vector<64x16xf32>
    %344 = arith.mulf %339, %343 : vector<64x16xf32>
    %cst_155 = arith.constant dense<0.000000e+00> : vector<16x16xf32>
    %345 = tpu.matmul %332, %333, %cst_155 {dimension_numbers = #tpu.dot_dimension_numbers<[1], [1], [0], [0], [0, 0, 1, 0], [], []>} : vector<16x8xf32>, vector<16x8xf32>, vector<16x16xf32> -> vector<16x16xf32>
    %cst_156 = arith.constant dense<0xFF800000> : vector<16xf32>
    %346 = vector.multi_reduction <maximumf>, %345, %cst_156 [1] : vector<16x16xf32> to vector<16xf32>
    %347 = vector.shape_cast %346 : vector<16xf32> to vector<16x1xf32>
    %348 = vector.broadcast %347 : vector<16x1xf32> to vector<16x16xf32>
    %349 = arith.subf %345, %348 : vector<16x16xf32>
    %350 = math.exp %349 : vector<16x16xf32>
    %cst_157 = arith.constant dense<0.000000e+00> : vector<16xf32>
    %351 = vector.multi_reduction <add>, %350, %cst_157 [1] : vector<16x16xf32> to vector<16xf32>
    %352 = vector.shape_cast %351 : vector<16xf32> to vector<16x1xf32>
    %353 = tpu.reciprocal %352 {approx = true} : vector<16x1xf32> -> vector<16x1xf32>
    %354 = vector.broadcast %353 : vector<16x1xf32> to vector<16x16xf32>
    %355 = arith.mulf %350, %354 : vector<16x16xf32>
    %cst_158 = arith.constant dense<0.000000e+00> : vector<16x64xf32>
    %356 = tpu.matmul %332, %330, %cst_158 {dimension_numbers = #tpu.dot_dimension_numbers<[1], [1], [0], [0], [0, 0, 1, 0], [], []>} : vector<16x8xf32>, vector<64x8xf32>, vector<16x64xf32> -> vector<16x64xf32>
    %cst_159 = arith.constant dense<0xFF800000> : vector<16xf32>
    %357 = vector.multi_reduction <maximumf>, %356, %cst_159 [1] : vector<16x64xf32> to vector<16xf32>
    %358 = vector.shape_cast %357 : vector<16xf32> to vector<16x1xf32>
    %359 = vector.broadcast %358 : vector<16x1xf32> to vector<16x64xf32>
    %360 = arith.subf %356, %359 : vector<16x64xf32>
    %361 = math.exp %360 : vector<16x64xf32>
    %cst_160 = arith.constant dense<0.000000e+00> : vector<16xf32>
    %362 = vector.multi_reduction <add>, %361, %cst_160 [1] : vector<16x64xf32> to vector<16xf32>
    %363 = vector.shape_cast %362 : vector<16xf32> to vector<16x1xf32>
    %364 = tpu.reciprocal %363 {approx = true} : vector<16x1xf32> -> vector<16x1xf32>
    %365 = vector.broadcast %364 : vector<16x1xf32> to vector<16x64xf32>
    %366 = arith.mulf %361, %365 : vector<16x64xf32>
    %367 = math.absf %355 : vector<16x16xf32>
    %cst_161 = arith.constant dense<0.000000e+00> : vector<16xf32>
    %368 = vector.multi_reduction <add>, %367, %cst_161 [1] : vector<16x16xf32> to vector<16xf32>
    %369 = vector.shape_cast %368 : vector<16xf32> to vector<16x1xf32>
    %370 = vector.shape_cast %369 : vector<16x1xf32> to vector<1x16x1xf32>
    %cst_162 = arith.constant dense<0xFF800000> : vector<1xf32>
    %371 = vector.multi_reduction <maximumf>, %370, %cst_162 [1, 2] : vector<1x16x1xf32> to vector<1xf32>
    %372 = vector.shape_cast %371 : vector<1xf32> to vector<1x1x1xf32>
    %373 = vector.extract %372[0, 0, 0] : f32 from vector<1x1x1xf32>
    %cst_163 = arith.constant dense<0.000000e+00> : vector<16xf32>
    %374 = vector.multi_reduction <add>, %367, %cst_163 [0] : vector<16x16xf32> to vector<16xf32>
    %375 = vector.shape_cast %374 : vector<16xf32> to vector<1x16xf32>
    %376 = vector.shape_cast %375 : vector<1x16xf32> to vector<1x1x16xf32>
    %cst_164 = arith.constant dense<0xFF800000> : vector<1xf32>
    %377 = vector.multi_reduction <maximumf>, %376, %cst_164 [1, 2] : vector<1x1x16xf32> to vector<1xf32>
    %378 = vector.shape_cast %377 : vector<1xf32> to vector<1x1x1xf32>
    %379 = vector.extract %378[0, 0, 0] : f32 from vector<1x1x1xf32>
    %380 = arith.mulf %373, %379 : f32
    %381 = tpu.transpose %355, [1, 0] : vector<16x16xf32> -> vector<16x16xf32>
    %382 = vector.broadcast %380 : f32 to vector<16x16xf32>
    %383 = arith.divf %381, %382 : vector<16x16xf32>
    %cst_165 = arith.constant dense<0.000000e+00> : vector<16x16xf32>
    %384 = tpu.matmul %355, %383, %cst_165 {dimension_numbers = #tpu.dot_dimension_numbers<[1], [0], [0], [1], [0, 0, 1, 1], [], []>} : vector<16x16xf32>, vector<16x16xf32>, vector<16x16xf32> -> vector<16x16xf32>
    %cst_166 = arith.constant 7.000000e+00 : f32
    %385 = vector.broadcast %cst_166 : f32 to vector<16x16xf32>
    %386 = arith.mulf %385, %8 : vector<16x16xf32>
    %387 = arith.subf %386, %384 : vector<16x16xf32>
    %cst_167 = arith.constant 1.500000e+01 : f32
    %388 = vector.broadcast %cst_167 : f32 to vector<16x16xf32>
    %389 = arith.mulf %388, %8 : vector<16x16xf32>
    %cst_168 = arith.constant dense<0.000000e+00> : vector<16x16xf32>
    %390 = tpu.matmul %384, %387, %cst_168 {dimension_numbers = #tpu.dot_dimension_numbers<[1], [0], [0], [1], [0, 0, 1, 1], [], []>} : vector<16x16xf32>, vector<16x16xf32>, vector<16x16xf32> -> vector<16x16xf32>
    %391 = arith.subf %389, %390 : vector<16x16xf32>
    %cst_169 = arith.constant 1.300000e+01 : f32
    %392 = vector.broadcast %cst_169 : f32 to vector<16x16xf32>
    %393 = arith.mulf %392, %8 : vector<16x16xf32>
    %cst_170 = arith.constant dense<0.000000e+00> : vector<16x16xf32>
    %394 = tpu.matmul %384, %391, %cst_170 {dimension_numbers = #tpu.dot_dimension_numbers<[1], [0], [0], [1], [0, 0, 1, 1], [], []>} : vector<16x16xf32>, vector<16x16xf32>, vector<16x16xf32> -> vector<16x16xf32>
    %395 = arith.subf %393, %394 : vector<16x16xf32>
    %cst_171 = arith.constant dense<0.000000e+00> : vector<16x16xf32>
    %396 = tpu.matmul %383, %395, %cst_171 {dimension_numbers = #tpu.dot_dimension_numbers<[1], [0], [0], [1], [0, 0, 1, 1], [], []>} : vector<16x16xf32>, vector<16x16xf32>, vector<16x16xf32> -> vector<16x16xf32>
    %cst_172 = arith.constant 2.500000e-01 : f32
    %397 = vector.broadcast %cst_172 : f32 to vector<16x16xf32>
    %398 = arith.mulf %397, %396 : vector<16x16xf32>
    %cst_173 = arith.constant dense<0.000000e+00> : vector<16x16xf32>
    %399 = tpu.matmul %355, %398, %cst_173 {dimension_numbers = #tpu.dot_dimension_numbers<[1], [0], [0], [1], [0, 0, 1, 1], [], []>} : vector<16x16xf32>, vector<16x16xf32>, vector<16x16xf32> -> vector<16x16xf32>
    %cst_174 = arith.constant 7.000000e+00 : f32
    %400 = vector.broadcast %cst_174 : f32 to vector<16x16xf32>
    %401 = arith.mulf %400, %8 : vector<16x16xf32>
    %402 = arith.subf %401, %399 : vector<16x16xf32>
    %cst_175 = arith.constant 1.500000e+01 : f32
    %403 = vector.broadcast %cst_175 : f32 to vector<16x16xf32>
    %404 = arith.mulf %403, %8 : vector<16x16xf32>
    %cst_176 = arith.constant dense<0.000000e+00> : vector<16x16xf32>
    %405 = tpu.matmul %399, %402, %cst_176 {dimension_numbers = #tpu.dot_dimension_numbers<[1], [0], [0], [1], [0, 0, 1, 1], [], []>} : vector<16x16xf32>, vector<16x16xf32>, vector<16x16xf32> -> vector<16x16xf32>
    %406 = arith.subf %404, %405 : vector<16x16xf32>
    %cst_177 = arith.constant 1.300000e+01 : f32
    %407 = vector.broadcast %cst_177 : f32 to vector<16x16xf32>
    %408 = arith.mulf %407, %8 : vector<16x16xf32>
    %cst_178 = arith.constant dense<0.000000e+00> : vector<16x16xf32>
    %409 = tpu.matmul %399, %406, %cst_178 {dimension_numbers = #tpu.dot_dimension_numbers<[1], [0], [0], [1], [0, 0, 1, 1], [], []>} : vector<16x16xf32>, vector<16x16xf32>, vector<16x16xf32> -> vector<16x16xf32>
    %410 = arith.subf %408, %409 : vector<16x16xf32>
    %cst_179 = arith.constant dense<0.000000e+00> : vector<16x16xf32>
    %411 = tpu.matmul %398, %410, %cst_179 {dimension_numbers = #tpu.dot_dimension_numbers<[1], [0], [0], [1], [0, 0, 1, 1], [], []>} : vector<16x16xf32>, vector<16x16xf32>, vector<16x16xf32> -> vector<16x16xf32>
    %cst_180 = arith.constant 2.500000e-01 : f32
    %412 = vector.broadcast %cst_180 : f32 to vector<16x16xf32>
    %413 = arith.mulf %412, %411 : vector<16x16xf32>
    %cst_181 = arith.constant dense<0.000000e+00> : vector<16x16xf32>
    %414 = tpu.matmul %355, %413, %cst_181 {dimension_numbers = #tpu.dot_dimension_numbers<[1], [0], [0], [1], [0, 0, 1, 1], [], []>} : vector<16x16xf32>, vector<16x16xf32>, vector<16x16xf32> -> vector<16x16xf32>
    %cst_182 = arith.constant 7.000000e+00 : f32
    %415 = vector.broadcast %cst_182 : f32 to vector<16x16xf32>
    %416 = arith.mulf %415, %8 : vector<16x16xf32>
    %417 = arith.subf %416, %414 : vector<16x16xf32>
    %cst_183 = arith.constant 1.500000e+01 : f32
    %418 = vector.broadcast %cst_183 : f32 to vector<16x16xf32>
    %419 = arith.mulf %418, %8 : vector<16x16xf32>
    %cst_184 = arith.constant dense<0.000000e+00> : vector<16x16xf32>
    %420 = tpu.matmul %414, %417, %cst_184 {dimension_numbers = #tpu.dot_dimension_numbers<[1], [0], [0], [1], [0, 0, 1, 1], [], []>} : vector<16x16xf32>, vector<16x16xf32>, vector<16x16xf32> -> vector<16x16xf32>
    %421 = arith.subf %419, %420 : vector<16x16xf32>
    %cst_185 = arith.constant 1.300000e+01 : f32
    %422 = vector.broadcast %cst_185 : f32 to vector<16x16xf32>
    %423 = arith.mulf %422, %8 : vector<16x16xf32>
    %cst_186 = arith.constant dense<0.000000e+00> : vector<16x16xf32>
    %424 = tpu.matmul %414, %421, %cst_186 {dimension_numbers = #tpu.dot_dimension_numbers<[1], [0], [0], [1], [0, 0, 1, 1], [], []>} : vector<16x16xf32>, vector<16x16xf32>, vector<16x16xf32> -> vector<16x16xf32>
    %425 = arith.subf %423, %424 : vector<16x16xf32>
    %cst_187 = arith.constant dense<0.000000e+00> : vector<16x16xf32>
    %426 = tpu.matmul %413, %425, %cst_187 {dimension_numbers = #tpu.dot_dimension_numbers<[1], [0], [0], [1], [0, 0, 1, 1], [], []>} : vector<16x16xf32>, vector<16x16xf32>, vector<16x16xf32> -> vector<16x16xf32>
    %cst_188 = arith.constant 2.500000e-01 : f32
    %427 = vector.broadcast %cst_188 : f32 to vector<16x16xf32>
    %428 = arith.mulf %427, %426 : vector<16x16xf32>
    %cst_189 = arith.constant dense<0.000000e+00> : vector<16x16xf32>
    %429 = tpu.matmul %355, %428, %cst_189 {dimension_numbers = #tpu.dot_dimension_numbers<[1], [0], [0], [1], [0, 0, 1, 1], [], []>} : vector<16x16xf32>, vector<16x16xf32>, vector<16x16xf32> -> vector<16x16xf32>
    %cst_190 = arith.constant 7.000000e+00 : f32
    %430 = vector.broadcast %cst_190 : f32 to vector<16x16xf32>
    %431 = arith.mulf %430, %8 : vector<16x16xf32>
    %432 = arith.subf %431, %429 : vector<16x16xf32>
    %cst_191 = arith.constant 1.500000e+01 : f32
    %433 = vector.broadcast %cst_191 : f32 to vector<16x16xf32>
    %434 = arith.mulf %433, %8 : vector<16x16xf32>
    %cst_192 = arith.constant dense<0.000000e+00> : vector<16x16xf32>
    %435 = tpu.matmul %429, %432, %cst_192 {dimension_numbers = #tpu.dot_dimension_numbers<[1], [0], [0], [1], [0, 0, 1, 1], [], []>} : vector<16x16xf32>, vector<16x16xf32>, vector<16x16xf32> -> vector<16x16xf32>
    %436 = arith.subf %434, %435 : vector<16x16xf32>
    %cst_193 = arith.constant 1.300000e+01 : f32
    %437 = vector.broadcast %cst_193 : f32 to vector<16x16xf32>
    %438 = arith.mulf %437, %8 : vector<16x16xf32>
    %cst_194 = arith.constant dense<0.000000e+00> : vector<16x16xf32>
    %439 = tpu.matmul %429, %436, %cst_194 {dimension_numbers = #tpu.dot_dimension_numbers<[1], [0], [0], [1], [0, 0, 1, 1], [], []>} : vector<16x16xf32>, vector<16x16xf32>, vector<16x16xf32> -> vector<16x16xf32>
    %440 = arith.subf %438, %439 : vector<16x16xf32>
    %cst_195 = arith.constant dense<0.000000e+00> : vector<16x16xf32>
    %441 = tpu.matmul %428, %440, %cst_195 {dimension_numbers = #tpu.dot_dimension_numbers<[1], [0], [0], [1], [0, 0, 1, 1], [], []>} : vector<16x16xf32>, vector<16x16xf32>, vector<16x16xf32> -> vector<16x16xf32>
    %cst_196 = arith.constant 2.500000e-01 : f32
    %442 = vector.broadcast %cst_196 : f32 to vector<16x16xf32>
    %443 = arith.mulf %442, %441 : vector<16x16xf32>
    %cst_197 = arith.constant dense<0.000000e+00> : vector<16x16xf32>
    %444 = tpu.matmul %355, %443, %cst_197 {dimension_numbers = #tpu.dot_dimension_numbers<[1], [0], [0], [1], [0, 0, 1, 1], [], []>} : vector<16x16xf32>, vector<16x16xf32>, vector<16x16xf32> -> vector<16x16xf32>
    %cst_198 = arith.constant 7.000000e+00 : f32
    %445 = vector.broadcast %cst_198 : f32 to vector<16x16xf32>
    %446 = arith.mulf %445, %8 : vector<16x16xf32>
    %447 = arith.subf %446, %444 : vector<16x16xf32>
    %cst_199 = arith.constant 1.500000e+01 : f32
    %448 = vector.broadcast %cst_199 : f32 to vector<16x16xf32>
    %449 = arith.mulf %448, %8 : vector<16x16xf32>
    %cst_200 = arith.constant dense<0.000000e+00> : vector<16x16xf32>
    %450 = tpu.matmul %444, %447, %cst_200 {dimension_numbers = #tpu.dot_dimension_numbers<[1], [0], [0], [1], [0, 0, 1, 1], [], []>} : vector<16x16xf32>, vector<16x16xf32>, vector<16x16xf32> -> vector<16x16xf32>
    %451 = arith.subf %449, %450 : vector<16x16xf32>
    %cst_201 = arith.constant 1.300000e+01 : f32
    %452 = vector.broadcast %cst_201 : f32 to vector<16x16xf32>
    %453 = arith.mulf %452, %8 : vector<16x16xf32>
    %cst_202 = arith.constant dense<0.000000e+00> : vector<16x16xf32>
    %454 = tpu.matmul %444, %451, %cst_202 {dimension_numbers = #tpu.dot_dimension_numbers<[1], [0], [0], [1], [0, 0, 1, 1], [], []>} : vector<16x16xf32>, vector<16x16xf32>, vector<16x16xf32> -> vector<16x16xf32>
    %455 = arith.subf %453, %454 : vector<16x16xf32>
    %cst_203 = arith.constant dense<0.000000e+00> : vector<16x16xf32>
    %456 = tpu.matmul %443, %455, %cst_203 {dimension_numbers = #tpu.dot_dimension_numbers<[1], [0], [0], [1], [0, 0, 1, 1], [], []>} : vector<16x16xf32>, vector<16x16xf32>, vector<16x16xf32> -> vector<16x16xf32>
    %cst_204 = arith.constant 2.500000e-01 : f32
    %457 = vector.broadcast %cst_204 : f32 to vector<16x16xf32>
    %458 = arith.mulf %457, %456 : vector<16x16xf32>
    %cst_205 = arith.constant dense<0.000000e+00> : vector<16x16xf32>
    %459 = tpu.matmul %355, %458, %cst_205 {dimension_numbers = #tpu.dot_dimension_numbers<[1], [0], [0], [1], [0, 0, 1, 1], [], []>} : vector<16x16xf32>, vector<16x16xf32>, vector<16x16xf32> -> vector<16x16xf32>
    %cst_206 = arith.constant 7.000000e+00 : f32
    %460 = vector.broadcast %cst_206 : f32 to vector<16x16xf32>
    %461 = arith.mulf %460, %8 : vector<16x16xf32>
    %462 = arith.subf %461, %459 : vector<16x16xf32>
    %cst_207 = arith.constant 1.500000e+01 : f32
    %463 = vector.broadcast %cst_207 : f32 to vector<16x16xf32>
    %464 = arith.mulf %463, %8 : vector<16x16xf32>
    %cst_208 = arith.constant dense<0.000000e+00> : vector<16x16xf32>
    %465 = tpu.matmul %459, %462, %cst_208 {dimension_numbers = #tpu.dot_dimension_numbers<[1], [0], [0], [1], [0, 0, 1, 1], [], []>} : vector<16x16xf32>, vector<16x16xf32>, vector<16x16xf32> -> vector<16x16xf32>
    %466 = arith.subf %464, %465 : vector<16x16xf32>
    %cst_209 = arith.constant 1.300000e+01 : f32
    %467 = vector.broadcast %cst_209 : f32 to vector<16x16xf32>
    %468 = arith.mulf %467, %8 : vector<16x16xf32>
    %cst_210 = arith.constant dense<0.000000e+00> : vector<16x16xf32>
    %469 = tpu.matmul %459, %466, %cst_210 {dimension_numbers = #tpu.dot_dimension_numbers<[1], [0], [0], [1], [0, 0, 1, 1], [], []>} : vector<16x16xf32>, vector<16x16xf32>, vector<16x16xf32> -> vector<16x16xf32>
    %470 = arith.subf %468, %469 : vector<16x16xf32>
    %cst_211 = arith.constant dense<0.000000e+00> : vector<16x16xf32>
    %471 = tpu.matmul %458, %470, %cst_211 {dimension_numbers = #tpu.dot_dimension_numbers<[1], [0], [0], [1], [0, 0, 1, 1], [], []>} : vector<16x16xf32>, vector<16x16xf32>, vector<16x16xf32> -> vector<16x16xf32>
    %cst_212 = arith.constant 2.500000e-01 : f32
    %472 = vector.broadcast %cst_212 : f32 to vector<16x16xf32>
    %473 = arith.mulf %472, %471 : vector<16x16xf32>
    %cst_213 = arith.constant dense<0.000000e+00> : vector<64x16xf32>
    %474 = tpu.matmul %344, %473, %cst_213 {dimension_numbers = #tpu.dot_dimension_numbers<[1], [0], [0], [1], [0, 0, 1, 1], [], []>} : vector<64x16xf32>, vector<16x16xf32>, vector<64x16xf32> -> vector<64x16xf32>
    %cst_214 = arith.constant dense<0.000000e+00> : vector<16x8xf32>
    %475 = tpu.matmul %366, %331, %cst_214 {dimension_numbers = #tpu.dot_dimension_numbers<[1], [0], [0], [1], [0, 0, 1, 1], [], []>} : vector<16x64xf32>, vector<64x8xf32>, vector<16x8xf32> -> vector<16x8xf32>
    %cst_215 = arith.constant dense<0.000000e+00> : vector<64x8xf32>
    %476 = tpu.matmul %474, %475, %cst_215 {dimension_numbers = #tpu.dot_dimension_numbers<[1], [0], [0], [1], [0, 0, 1, 1], [], []>} : vector<64x16xf32>, vector<16x8xf32>, vector<64x8xf32> -> vector<64x8xf32>
    %c2 = arith.constant 2 : index
    %c0_216 = arith.constant 0 : index
    %c0_217 = arith.constant 0 : index
    %477 = vector.load %arg5[%c2, %c0_216, %c0_217] : memref<4x64x64xf32, #tpu.memory_space<vmem>>, vector<1x64x64xf32>
    %478 = vector.shape_cast %477 : vector<1x64x64xf32> to vector<64x64xf32>
    %cst_218 = arith.constant dense<0.000000e+00> : vector<64x8xf32>
    %479 = tpu.matmul %478, %331, %cst_218 {dimension_numbers = #tpu.dot_dimension_numbers<[1], [0], [0], [1], [0, 0, 1, 1], [], []>} : vector<64x64xf32>, vector<64x8xf32>, vector<64x8xf32> -> vector<64x8xf32>
    %480 = arith.addf %476, %479 : vector<64x8xf32>
    %481 = arith.truncf %480 : vector<64x8xf32> to vector<64x8xbf16>
    %482 = vector.extract_strided_slice %9 {offsets = [16, 0], sizes = [8, 32], strides = [1, 1]} : vector<32x32xbf16> to vector<8x32xbf16>
    %cst_219 = arith.constant dense<0.000000e+00> : vector<64x32xf32>
    %483 = tpu.matmul %481, %482, %cst_219 {dimension_numbers = #tpu.dot_dimension_numbers<[1], [0], [0], [1], [0, 0, 1, 1], [], []>} : vector<64x8xbf16>, vector<8x32xbf16>, vector<64x32xf32> -> vector<64x32xf32>
    %484 = arith.addf %328, %483 : vector<64x32xf32>
    %485 = vector.extract_strided_slice %4 {offsets = [0, 24], sizes = [64, 8], strides = [1, 1]} : vector<64x32xf32> to vector<64x8xf32>
    %486 = vector.extract_strided_slice %5 {offsets = [0, 24], sizes = [64, 8], strides = [1, 1]} : vector<64x32xf32> to vector<64x8xf32>
    %487 = vector.extract_strided_slice %6 {offsets = [0, 24], sizes = [64, 8], strides = [1, 1]} : vector<64x32xf32> to vector<64x8xf32>
    %488 = vector.extract_strided_slice %10 {offsets = [0, 24], sizes = [16, 8], strides = [1, 1]} : vector<16x32xf32> to vector<16x8xf32>
    %489 = vector.extract_strided_slice %11 {offsets = [0, 24], sizes = [16, 8], strides = [1, 1]} : vector<16x32xf32> to vector<16x8xf32>
    %cst_220 = arith.constant dense<0.000000e+00> : vector<64x16xf32>
    %490 = tpu.matmul %485, %489, %cst_220 {dimension_numbers = #tpu.dot_dimension_numbers<[1], [1], [0], [0], [0, 0, 1, 0], [], []>} : vector<64x8xf32>, vector<16x8xf32>, vector<64x16xf32> -> vector<64x16xf32>
    %cst_221 = arith.constant dense<0xFF800000> : vector<64xf32>
    %491 = vector.multi_reduction <maximumf>, %490, %cst_221 [1] : vector<64x16xf32> to vector<64xf32>
    %492 = vector.shape_cast %491 : vector<64xf32> to vector<64x1xf32>
    %493 = vector.broadcast %492 : vector<64x1xf32> to vector<64x16xf32>
    %494 = arith.subf %490, %493 : vector<64x16xf32>
    %495 = math.exp %494 : vector<64x16xf32>
    %cst_222 = arith.constant dense<0.000000e+00> : vector<64xf32>
    %496 = vector.multi_reduction <add>, %495, %cst_222 [1] : vector<64x16xf32> to vector<64xf32>
    %497 = vector.shape_cast %496 : vector<64xf32> to vector<64x1xf32>
    %498 = tpu.reciprocal %497 {approx = true} : vector<64x1xf32> -> vector<64x1xf32>
    %499 = vector.broadcast %498 : vector<64x1xf32> to vector<64x16xf32>
    %500 = arith.mulf %495, %499 : vector<64x16xf32>
    %cst_223 = arith.constant dense<0.000000e+00> : vector<16x16xf32>
    %501 = tpu.matmul %488, %489, %cst_223 {dimension_numbers = #tpu.dot_dimension_numbers<[1], [1], [0], [0], [0, 0, 1, 0], [], []>} : vector<16x8xf32>, vector<16x8xf32>, vector<16x16xf32> -> vector<16x16xf32>
    %cst_224 = arith.constant dense<0xFF800000> : vector<16xf32>
    %502 = vector.multi_reduction <maximumf>, %501, %cst_224 [1] : vector<16x16xf32> to vector<16xf32>
    %503 = vector.shape_cast %502 : vector<16xf32> to vector<16x1xf32>
    %504 = vector.broadcast %503 : vector<16x1xf32> to vector<16x16xf32>
    %505 = arith.subf %501, %504 : vector<16x16xf32>
    %506 = math.exp %505 : vector<16x16xf32>
    %cst_225 = arith.constant dense<0.000000e+00> : vector<16xf32>
    %507 = vector.multi_reduction <add>, %506, %cst_225 [1] : vector<16x16xf32> to vector<16xf32>
    %508 = vector.shape_cast %507 : vector<16xf32> to vector<16x1xf32>
    %509 = tpu.reciprocal %508 {approx = true} : vector<16x1xf32> -> vector<16x1xf32>
    %510 = vector.broadcast %509 : vector<16x1xf32> to vector<16x16xf32>
    %511 = arith.mulf %506, %510 : vector<16x16xf32>
    %cst_226 = arith.constant dense<0.000000e+00> : vector<16x64xf32>
    %512 = tpu.matmul %488, %486, %cst_226 {dimension_numbers = #tpu.dot_dimension_numbers<[1], [1], [0], [0], [0, 0, 1, 0], [], []>} : vector<16x8xf32>, vector<64x8xf32>, vector<16x64xf32> -> vector<16x64xf32>
    %cst_227 = arith.constant dense<0xFF800000> : vector<16xf32>
    %513 = vector.multi_reduction <maximumf>, %512, %cst_227 [1] : vector<16x64xf32> to vector<16xf32>
    %514 = vector.shape_cast %513 : vector<16xf32> to vector<16x1xf32>
    %515 = vector.broadcast %514 : vector<16x1xf32> to vector<16x64xf32>
    %516 = arith.subf %512, %515 : vector<16x64xf32>
    %517 = math.exp %516 : vector<16x64xf32>
    %cst_228 = arith.constant dense<0.000000e+00> : vector<16xf32>
    %518 = vector.multi_reduction <add>, %517, %cst_228 [1] : vector<16x64xf32> to vector<16xf32>
    %519 = vector.shape_cast %518 : vector<16xf32> to vector<16x1xf32>
    %520 = tpu.reciprocal %519 {approx = true} : vector<16x1xf32> -> vector<16x1xf32>
    %521 = vector.broadcast %520 : vector<16x1xf32> to vector<16x64xf32>
    %522 = arith.mulf %517, %521 : vector<16x64xf32>
    %523 = math.absf %511 : vector<16x16xf32>
    %cst_229 = arith.constant dense<0.000000e+00> : vector<16xf32>
    %524 = vector.multi_reduction <add>, %523, %cst_229 [1] : vector<16x16xf32> to vector<16xf32>
    %525 = vector.shape_cast %524 : vector<16xf32> to vector<16x1xf32>
    %526 = vector.shape_cast %525 : vector<16x1xf32> to vector<1x16x1xf32>
    %cst_230 = arith.constant dense<0xFF800000> : vector<1xf32>
    %527 = vector.multi_reduction <maximumf>, %526, %cst_230 [1, 2] : vector<1x16x1xf32> to vector<1xf32>
    %528 = vector.shape_cast %527 : vector<1xf32> to vector<1x1x1xf32>
    %529 = vector.extract %528[0, 0, 0] : f32 from vector<1x1x1xf32>
    %cst_231 = arith.constant dense<0.000000e+00> : vector<16xf32>
    %530 = vector.multi_reduction <add>, %523, %cst_231 [0] : vector<16x16xf32> to vector<16xf32>
    %531 = vector.shape_cast %530 : vector<16xf32> to vector<1x16xf32>
    %532 = vector.shape_cast %531 : vector<1x16xf32> to vector<1x1x16xf32>
    %cst_232 = arith.constant dense<0xFF800000> : vector<1xf32>
    %533 = vector.multi_reduction <maximumf>, %532, %cst_232 [1, 2] : vector<1x1x16xf32> to vector<1xf32>
    %534 = vector.shape_cast %533 : vector<1xf32> to vector<1x1x1xf32>
    %535 = vector.extract %534[0, 0, 0] : f32 from vector<1x1x1xf32>
    %536 = arith.mulf %529, %535 : f32
    %537 = tpu.transpose %511, [1, 0] : vector<16x16xf32> -> vector<16x16xf32>
    %538 = vector.broadcast %536 : f32 to vector<16x16xf32>
    %539 = arith.divf %537, %538 : vector<16x16xf32>
    %cst_233 = arith.constant dense<0.000000e+00> : vector<16x16xf32>
    %540 = tpu.matmul %511, %539, %cst_233 {dimension_numbers = #tpu.dot_dimension_numbers<[1], [0], [0], [1], [0, 0, 1, 1], [], []>} : vector<16x16xf32>, vector<16x16xf32>, vector<16x16xf32> -> vector<16x16xf32>
    %cst_234 = arith.constant 7.000000e+00 : f32
    %541 = vector.broadcast %cst_234 : f32 to vector<16x16xf32>
    %542 = arith.mulf %541, %8 : vector<16x16xf32>
    %543 = arith.subf %542, %540 : vector<16x16xf32>
    %cst_235 = arith.constant 1.500000e+01 : f32
    %544 = vector.broadcast %cst_235 : f32 to vector<16x16xf32>
    %545 = arith.mulf %544, %8 : vector<16x16xf32>
    %cst_236 = arith.constant dense<0.000000e+00> : vector<16x16xf32>
    %546 = tpu.matmul %540, %543, %cst_236 {dimension_numbers = #tpu.dot_dimension_numbers<[1], [0], [0], [1], [0, 0, 1, 1], [], []>} : vector<16x16xf32>, vector<16x16xf32>, vector<16x16xf32> -> vector<16x16xf32>
    %547 = arith.subf %545, %546 : vector<16x16xf32>
    %cst_237 = arith.constant 1.300000e+01 : f32
    %548 = vector.broadcast %cst_237 : f32 to vector<16x16xf32>
    %549 = arith.mulf %548, %8 : vector<16x16xf32>
    %cst_238 = arith.constant dense<0.000000e+00> : vector<16x16xf32>
    %550 = tpu.matmul %540, %547, %cst_238 {dimension_numbers = #tpu.dot_dimension_numbers<[1], [0], [0], [1], [0, 0, 1, 1], [], []>} : vector<16x16xf32>, vector<16x16xf32>, vector<16x16xf32> -> vector<16x16xf32>
    %551 = arith.subf %549, %550 : vector<16x16xf32>
    %cst_239 = arith.constant dense<0.000000e+00> : vector<16x16xf32>
    %552 = tpu.matmul %539, %551, %cst_239 {dimension_numbers = #tpu.dot_dimension_numbers<[1], [0], [0], [1], [0, 0, 1, 1], [], []>} : vector<16x16xf32>, vector<16x16xf32>, vector<16x16xf32> -> vector<16x16xf32>
    %cst_240 = arith.constant 2.500000e-01 : f32
    %553 = vector.broadcast %cst_240 : f32 to vector<16x16xf32>
    %554 = arith.mulf %553, %552 : vector<16x16xf32>
    %cst_241 = arith.constant dense<0.000000e+00> : vector<16x16xf32>
    %555 = tpu.matmul %511, %554, %cst_241 {dimension_numbers = #tpu.dot_dimension_numbers<[1], [0], [0], [1], [0, 0, 1, 1], [], []>} : vector<16x16xf32>, vector<16x16xf32>, vector<16x16xf32> -> vector<16x16xf32>
    %cst_242 = arith.constant 7.000000e+00 : f32
    %556 = vector.broadcast %cst_242 : f32 to vector<16x16xf32>
    %557 = arith.mulf %556, %8 : vector<16x16xf32>
    %558 = arith.subf %557, %555 : vector<16x16xf32>
    %cst_243 = arith.constant 1.500000e+01 : f32
    %559 = vector.broadcast %cst_243 : f32 to vector<16x16xf32>
    %560 = arith.mulf %559, %8 : vector<16x16xf32>
    %cst_244 = arith.constant dense<0.000000e+00> : vector<16x16xf32>
    %561 = tpu.matmul %555, %558, %cst_244 {dimension_numbers = #tpu.dot_dimension_numbers<[1], [0], [0], [1], [0, 0, 1, 1], [], []>} : vector<16x16xf32>, vector<16x16xf32>, vector<16x16xf32> -> vector<16x16xf32>
    %562 = arith.subf %560, %561 : vector<16x16xf32>
    %cst_245 = arith.constant 1.300000e+01 : f32
    %563 = vector.broadcast %cst_245 : f32 to vector<16x16xf32>
    %564 = arith.mulf %563, %8 : vector<16x16xf32>
    %cst_246 = arith.constant dense<0.000000e+00> : vector<16x16xf32>
    %565 = tpu.matmul %555, %562, %cst_246 {dimension_numbers = #tpu.dot_dimension_numbers<[1], [0], [0], [1], [0, 0, 1, 1], [], []>} : vector<16x16xf32>, vector<16x16xf32>, vector<16x16xf32> -> vector<16x16xf32>
    %566 = arith.subf %564, %565 : vector<16x16xf32>
    %cst_247 = arith.constant dense<0.000000e+00> : vector<16x16xf32>
    %567 = tpu.matmul %554, %566, %cst_247 {dimension_numbers = #tpu.dot_dimension_numbers<[1], [0], [0], [1], [0, 0, 1, 1], [], []>} : vector<16x16xf32>, vector<16x16xf32>, vector<16x16xf32> -> vector<16x16xf32>
    %cst_248 = arith.constant 2.500000e-01 : f32
    %568 = vector.broadcast %cst_248 : f32 to vector<16x16xf32>
    %569 = arith.mulf %568, %567 : vector<16x16xf32>
    %cst_249 = arith.constant dense<0.000000e+00> : vector<16x16xf32>
    %570 = tpu.matmul %511, %569, %cst_249 {dimension_numbers = #tpu.dot_dimension_numbers<[1], [0], [0], [1], [0, 0, 1, 1], [], []>} : vector<16x16xf32>, vector<16x16xf32>, vector<16x16xf32> -> vector<16x16xf32>
    %cst_250 = arith.constant 7.000000e+00 : f32
    %571 = vector.broadcast %cst_250 : f32 to vector<16x16xf32>
    %572 = arith.mulf %571, %8 : vector<16x16xf32>
    %573 = arith.subf %572, %570 : vector<16x16xf32>
    %cst_251 = arith.constant 1.500000e+01 : f32
    %574 = vector.broadcast %cst_251 : f32 to vector<16x16xf32>
    %575 = arith.mulf %574, %8 : vector<16x16xf32>
    %cst_252 = arith.constant dense<0.000000e+00> : vector<16x16xf32>
    %576 = tpu.matmul %570, %573, %cst_252 {dimension_numbers = #tpu.dot_dimension_numbers<[1], [0], [0], [1], [0, 0, 1, 1], [], []>} : vector<16x16xf32>, vector<16x16xf32>, vector<16x16xf32> -> vector<16x16xf32>
    %577 = arith.subf %575, %576 : vector<16x16xf32>
    %cst_253 = arith.constant 1.300000e+01 : f32
    %578 = vector.broadcast %cst_253 : f32 to vector<16x16xf32>
    %579 = arith.mulf %578, %8 : vector<16x16xf32>
    %cst_254 = arith.constant dense<0.000000e+00> : vector<16x16xf32>
    %580 = tpu.matmul %570, %577, %cst_254 {dimension_numbers = #tpu.dot_dimension_numbers<[1], [0], [0], [1], [0, 0, 1, 1], [], []>} : vector<16x16xf32>, vector<16x16xf32>, vector<16x16xf32> -> vector<16x16xf32>
    %581 = arith.subf %579, %580 : vector<16x16xf32>
    %cst_255 = arith.constant dense<0.000000e+00> : vector<16x16xf32>
    %582 = tpu.matmul %569, %581, %cst_255 {dimension_numbers = #tpu.dot_dimension_numbers<[1], [0], [0], [1], [0, 0, 1, 1], [], []>} : vector<16x16xf32>, vector<16x16xf32>, vector<16x16xf32> -> vector<16x16xf32>
    %cst_256 = arith.constant 2.500000e-01 : f32
    %583 = vector.broadcast %cst_256 : f32 to vector<16x16xf32>
    %584 = arith.mulf %583, %582 : vector<16x16xf32>
    %cst_257 = arith.constant dense<0.000000e+00> : vector<16x16xf32>
    %585 = tpu.matmul %511, %584, %cst_257 {dimension_numbers = #tpu.dot_dimension_numbers<[1], [0], [0], [1], [0, 0, 1, 1], [], []>} : vector<16x16xf32>, vector<16x16xf32>, vector<16x16xf32> -> vector<16x16xf32>
    %cst_258 = arith.constant 7.000000e+00 : f32
    %586 = vector.broadcast %cst_258 : f32 to vector<16x16xf32>
    %587 = arith.mulf %586, %8 : vector<16x16xf32>
    %588 = arith.subf %587, %585 : vector<16x16xf32>
    %cst_259 = arith.constant 1.500000e+01 : f32
    %589 = vector.broadcast %cst_259 : f32 to vector<16x16xf32>
    %590 = arith.mulf %589, %8 : vector<16x16xf32>
    %cst_260 = arith.constant dense<0.000000e+00> : vector<16x16xf32>
    %591 = tpu.matmul %585, %588, %cst_260 {dimension_numbers = #tpu.dot_dimension_numbers<[1], [0], [0], [1], [0, 0, 1, 1], [], []>} : vector<16x16xf32>, vector<16x16xf32>, vector<16x16xf32> -> vector<16x16xf32>
    %592 = arith.subf %590, %591 : vector<16x16xf32>
    %cst_261 = arith.constant 1.300000e+01 : f32
    %593 = vector.broadcast %cst_261 : f32 to vector<16x16xf32>
    %594 = arith.mulf %593, %8 : vector<16x16xf32>
    %cst_262 = arith.constant dense<0.000000e+00> : vector<16x16xf32>
    %595 = tpu.matmul %585, %592, %cst_262 {dimension_numbers = #tpu.dot_dimension_numbers<[1], [0], [0], [1], [0, 0, 1, 1], [], []>} : vector<16x16xf32>, vector<16x16xf32>, vector<16x16xf32> -> vector<16x16xf32>
    %596 = arith.subf %594, %595 : vector<16x16xf32>
    %cst_263 = arith.constant dense<0.000000e+00> : vector<16x16xf32>
    %597 = tpu.matmul %584, %596, %cst_263 {dimension_numbers = #tpu.dot_dimension_numbers<[1], [0], [0], [1], [0, 0, 1, 1], [], []>} : vector<16x16xf32>, vector<16x16xf32>, vector<16x16xf32> -> vector<16x16xf32>
    %cst_264 = arith.constant 2.500000e-01 : f32
    %598 = vector.broadcast %cst_264 : f32 to vector<16x16xf32>
    %599 = arith.mulf %598, %597 : vector<16x16xf32>
    %cst_265 = arith.constant dense<0.000000e+00> : vector<16x16xf32>
    %600 = tpu.matmul %511, %599, %cst_265 {dimension_numbers = #tpu.dot_dimension_numbers<[1], [0], [0], [1], [0, 0, 1, 1], [], []>} : vector<16x16xf32>, vector<16x16xf32>, vector<16x16xf32> -> vector<16x16xf32>
    %cst_266 = arith.constant 7.000000e+00 : f32
    %601 = vector.broadcast %cst_266 : f32 to vector<16x16xf32>
    %602 = arith.mulf %601, %8 : vector<16x16xf32>
    %603 = arith.subf %602, %600 : vector<16x16xf32>
    %cst_267 = arith.constant 1.500000e+01 : f32
    %604 = vector.broadcast %cst_267 : f32 to vector<16x16xf32>
    %605 = arith.mulf %604, %8 : vector<16x16xf32>
    %cst_268 = arith.constant dense<0.000000e+00> : vector<16x16xf32>
    %606 = tpu.matmul %600, %603, %cst_268 {dimension_numbers = #tpu.dot_dimension_numbers<[1], [0], [0], [1], [0, 0, 1, 1], [], []>} : vector<16x16xf32>, vector<16x16xf32>, vector<16x16xf32> -> vector<16x16xf32>
    %607 = arith.subf %605, %606 : vector<16x16xf32>
    %cst_269 = arith.constant 1.300000e+01 : f32
    %608 = vector.broadcast %cst_269 : f32 to vector<16x16xf32>
    %609 = arith.mulf %608, %8 : vector<16x16xf32>
    %cst_270 = arith.constant dense<0.000000e+00> : vector<16x16xf32>
    %610 = tpu.matmul %600, %607, %cst_270 {dimension_numbers = #tpu.dot_dimension_numbers<[1], [0], [0], [1], [0, 0, 1, 1], [], []>} : vector<16x16xf32>, vector<16x16xf32>, vector<16x16xf32> -> vector<16x16xf32>
    %611 = arith.subf %609, %610 : vector<16x16xf32>
    %cst_271 = arith.constant dense<0.000000e+00> : vector<16x16xf32>
    %612 = tpu.matmul %599, %611, %cst_271 {dimension_numbers = #tpu.dot_dimension_numbers<[1], [0], [0], [1], [0, 0, 1, 1], [], []>} : vector<16x16xf32>, vector<16x16xf32>, vector<16x16xf32> -> vector<16x16xf32>
    %cst_272 = arith.constant 2.500000e-01 : f32
    %613 = vector.broadcast %cst_272 : f32 to vector<16x16xf32>
    %614 = arith.mulf %613, %612 : vector<16x16xf32>
    %cst_273 = arith.constant dense<0.000000e+00> : vector<16x16xf32>
    %615 = tpu.matmul %511, %614, %cst_273 {dimension_numbers = #tpu.dot_dimension_numbers<[1], [0], [0], [1], [0, 0, 1, 1], [], []>} : vector<16x16xf32>, vector<16x16xf32>, vector<16x16xf32> -> vector<16x16xf32>
    %cst_274 = arith.constant 7.000000e+00 : f32
    %616 = vector.broadcast %cst_274 : f32 to vector<16x16xf32>
    %617 = arith.mulf %616, %8 : vector<16x16xf32>
    %618 = arith.subf %617, %615 : vector<16x16xf32>
    %cst_275 = arith.constant 1.500000e+01 : f32
    %619 = vector.broadcast %cst_275 : f32 to vector<16x16xf32>
    %620 = arith.mulf %619, %8 : vector<16x16xf32>
    %cst_276 = arith.constant dense<0.000000e+00> : vector<16x16xf32>
    %621 = tpu.matmul %615, %618, %cst_276 {dimension_numbers = #tpu.dot_dimension_numbers<[1], [0], [0], [1], [0, 0, 1, 1], [], []>} : vector<16x16xf32>, vector<16x16xf32>, vector<16x16xf32> -> vector<16x16xf32>
    %622 = arith.subf %620, %621 : vector<16x16xf32>
    %cst_277 = arith.constant 1.300000e+01 : f32
    %623 = vector.broadcast %cst_277 : f32 to vector<16x16xf32>
    %624 = arith.mulf %623, %8 : vector<16x16xf32>
    %cst_278 = arith.constant dense<0.000000e+00> : vector<16x16xf32>
    %625 = tpu.matmul %615, %622, %cst_278 {dimension_numbers = #tpu.dot_dimension_numbers<[1], [0], [0], [1], [0, 0, 1, 1], [], []>} : vector<16x16xf32>, vector<16x16xf32>, vector<16x16xf32> -> vector<16x16xf32>
    %626 = arith.subf %624, %625 : vector<16x16xf32>
    %cst_279 = arith.constant dense<0.000000e+00> : vector<16x16xf32>
    %627 = tpu.matmul %614, %626, %cst_279 {dimension_numbers = #tpu.dot_dimension_numbers<[1], [0], [0], [1], [0, 0, 1, 1], [], []>} : vector<16x16xf32>, vector<16x16xf32>, vector<16x16xf32> -> vector<16x16xf32>
    %cst_280 = arith.constant 2.500000e-01 : f32
    %628 = vector.broadcast %cst_280 : f32 to vector<16x16xf32>
    %629 = arith.mulf %628, %627 : vector<16x16xf32>
    %cst_281 = arith.constant dense<0.000000e+00> : vector<64x16xf32>
    %630 = tpu.matmul %500, %629, %cst_281 {dimension_numbers = #tpu.dot_dimension_numbers<[1], [0], [0], [1], [0, 0, 1, 1], [], []>} : vector<64x16xf32>, vector<16x16xf32>, vector<64x16xf32> -> vector<64x16xf32>
    %cst_282 = arith.constant dense<0.000000e+00> : vector<16x8xf32>
    %631 = tpu.matmul %522, %487, %cst_282 {dimension_numbers = #tpu.dot_dimension_numbers<[1], [0], [0], [1], [0, 0, 1, 1], [], []>} : vector<16x64xf32>, vector<64x8xf32>, vector<16x8xf32> -> vector<16x8xf32>
    %cst_283 = arith.constant dense<0.000000e+00> : vector<64x8xf32>
    %632 = tpu.matmul %630, %631, %cst_283 {dimension_numbers = #tpu.dot_dimension_numbers<[1], [0], [0], [1], [0, 0, 1, 1], [], []>} : vector<64x16xf32>, vector<16x8xf32>, vector<64x8xf32> -> vector<64x8xf32>
    %c3 = arith.constant 3 : index
    %c0_284 = arith.constant 0 : index
    %c0_285 = arith.constant 0 : index
    %633 = vector.load %arg5[%c3, %c0_284, %c0_285] : memref<4x64x64xf32, #tpu.memory_space<vmem>>, vector<1x64x64xf32>
    %634 = vector.shape_cast %633 : vector<1x64x64xf32> to vector<64x64xf32>
    %cst_286 = arith.constant dense<0.000000e+00> : vector<64x8xf32>
    %635 = tpu.matmul %634, %487, %cst_286 {dimension_numbers = #tpu.dot_dimension_numbers<[1], [0], [0], [1], [0, 0, 1, 1], [], []>} : vector<64x64xf32>, vector<64x8xf32>, vector<64x8xf32> -> vector<64x8xf32>
    %636 = arith.addf %632, %635 : vector<64x8xf32>
    %637 = arith.truncf %636 : vector<64x8xf32> to vector<64x8xbf16>
    %638 = vector.extract_strided_slice %9 {offsets = [24, 0], sizes = [8, 32], strides = [1, 1]} : vector<32x32xbf16> to vector<8x32xbf16>
    %cst_287 = arith.constant dense<0.000000e+00> : vector<64x32xf32>
    %639 = tpu.matmul %637, %638, %cst_287 {dimension_numbers = #tpu.dot_dimension_numbers<[1], [0], [0], [1], [0, 0, 1, 1], [], []>} : vector<64x8xbf16>, vector<8x32xbf16>, vector<64x32xf32> -> vector<64x32xf32>
    %640 = arith.addf %484, %639 : vector<64x32xf32>
    %c0_288 = arith.constant 0 : index
    %c0_289 = arith.constant 0 : index
    %c0_290 = arith.constant 0 : index
    %641 = vector.load %arg8[%c0_288, %c0_289, %c0_290] : memref<1x64x32xf32, #tpu.memory_space<vmem>>, vector<1x64x32xf32>
    %642 = vector.shape_cast %641 : vector<1x64x32xf32> to vector<64x32xf32>
    %643 = vector.shape_cast %640 : vector<64x32xf32> to vector<1x64x32xf32>
    tpu.vector_store %arg8[%c0_288, %c0_289, %c0_290], %643 {strides = array<i32>} : memref<1x64x32xf32, #tpu.memory_space<vmem>>, vector<1x64x32xf32>,
    return
  }
  func.func @transform_0(%arg0: i32) -> (i32, i32, i32) {
    %c0_i32 = arith.constant 0 : i32
    %c0_i32_0 = arith.constant 0 : i32
    %c0_i32_1 = arith.constant 0 : i32
    return %arg0, %c0_i32, %c0_i32_0 : i32, i32, i32
  }
  func.func @transform_1(%arg0: i32) -> (i32, i32, i32) {
    %c0_i32 = arith.constant 0 : i32
    %c0_i32_0 = arith.constant 0 : i32
    %c0_i32_1 = arith.constant 0 : i32
    return %arg0, %c0_i32, %c0_i32_0 : i32, i32, i32
  }
  func.func @transform_2(%arg0: i32) -> (i32, i32) {
    %c0_i32 = arith.constant 0 : i32
    %c0_i32_0 = arith.constant 0 : i32
    %c0_i32_1 = arith.constant 0 : i32
    return %c0_i32, %c0_i32_0 : i32, i32
  }
  func.func @transform_3(%arg0: i32) -> (i32, i32) {
    %c0_i32 = arith.constant 0 : i32
    %c0_i32_0 = arith.constant 0 : i32
    %c0_i32_1 = arith.constant 0 : i32
    return %c0_i32, %c0_i32_0 : i32, i32
  }
  func.func @transform_4(%arg0: i32) -> (i32, i32, i32) {
    %c0_i32 = arith.constant 0 : i32
    %c0_i32_0 = arith.constant 0 : i32
    %c0_i32_1 = arith.constant 0 : i32
    %c0_i32_2 = arith.constant 0 : i32
    return %c0_i32, %c0_i32_0, %c0_i32_1 : i32, i32, i32
  }
  func.func @transform_5(%arg0: i32) -> (i32, i32) {
    %c0_i32 = arith.constant 0 : i32
    %c0_i32_0 = arith.constant 0 : i32
    %c0_i32_1 = arith.constant 0 : i32
    return %c0_i32, %c0_i32_0 : i32, i32
  }
  func.func @transform_6(%arg0: i32) -> (i32, i32) {
    %c0_i32 = arith.constant 0 : i32
    %c0_i32_0 = arith.constant 0 : i32
    %c0_i32_1 = arith.constant 0 : i32
    return %c0_i32, %c0_i32_0 : i32, i32
  }
  func.func @transform_7(%arg0: i32) -> (i32, i32, i32) {
    %c0_i32 = arith.constant 0 : i32
    %c0_i32_0 = arith.constant 0 : i32
    %c0_i32_1 = arith.constant 0 : i32
    return %arg0, %c0_i32, %c0_i32_0 : i32, i32, i32
  }
}

module attributes {stable_mosaic.version = 11 : i64} {
  func.func @_attn_pool_fc2_kernel(%arg0: i32, %arg1: memref<1x64x32xf32, #tpu.memory_space<vmem>>, %arg2: memref<32x8xf32, #tpu.memory_space<vmem>>, %arg3: memref<1x8xf32, #tpu.memory_space<vmem>>, %arg4: memref<1x8xf32, #tpu.memory_space<vmem>>, %arg5: memref<1x1xf32, #tpu.memory_space<vmem>>, %arg6: memref<32x3xf32, #tpu.memory_space<vmem>>, %arg7: memref<1x3xf32, #tpu.memory_space<vmem>>, %arg8: memref<1x1x64xf32, #tpu.memory_space<vmem>>, %arg9: memref<1x1x3xf32, #tpu.memory_space<vmem>>) attributes {dimension_semantics = [#tpu.dimension_semantics<parallel>], iteration_bounds = array<i64: 2>, scalar_prefetch = 0 : i64, scratch_operands = 0 : i64, tpu.core_type = #tpu.core_type<tc>, window_params = [{transform_indices = @transform_0, window_bounds = array<i64: 1, 64, 32>}, {pipeline_mode = #tpu.pipeline_mode<synchronous>, transform_indices = @transform_1, window_bounds = array<i64: 32, 8>}, {pipeline_mode = #tpu.pipeline_mode<synchronous>, transform_indices = @transform_2, window_bounds = array<i64: 1, 8>}, {pipeline_mode = #tpu.pipeline_mode<synchronous>, transform_indices = @transform_3, window_bounds = array<i64: 1, 8>}, {pipeline_mode = #tpu.pipeline_mode<synchronous>, transform_indices = @transform_4, window_bounds = array<i64: 1, 1>}, {pipeline_mode = #tpu.pipeline_mode<synchronous>, transform_indices = @transform_5, window_bounds = array<i64: 32, 3>}, {pipeline_mode = #tpu.pipeline_mode<synchronous>, transform_indices = @transform_6, window_bounds = array<i64: 1, 3>}, {transform_indices = @transform_7, window_bounds = array<i64: 1, 1, 64>}, {transform_indices = @transform_8, window_bounds = array<i64: 1, 1, 3>}]} {
    %c0 = arith.constant 0 : index
    %c0_0 = arith.constant 0 : index
    %c0_1 = arith.constant 0 : index
    %0 = vector.load %arg1[%c0, %c0_0, %c0_1] : memref<1x64x32xf32, #tpu.memory_space<vmem>>, vector<1x64x32xf32>
    %1 = vector.shape_cast %0 : vector<1x64x32xf32> to vector<64x32xf32>
    %c0_2 = arith.constant 0 : index
    %c0_3 = arith.constant 0 : index
    %2 = vector.load %arg2[%c0_2, %c0_3] : memref<32x8xf32, #tpu.memory_space<vmem>>, vector<32x8xf32>
    %cst = arith.constant dense<0.000000e+00> : vector<64x8xf32>
    %3 = tpu.matmul %1, %2, %cst {dimension_numbers = #tpu.dot_dimension_numbers<[1], [0], [0], [1], [0, 0, 1, 1], [], []>} : vector<64x32xf32>, vector<32x8xf32>, vector<64x8xf32> -> vector<64x8xf32>
    %c0_4 = arith.constant 0 : index
    %c0_5 = arith.constant 0 : index
    %4 = vector.load %arg3[%c0_4, %c0_5] : memref<1x8xf32, #tpu.memory_space<vmem>>, vector<1x8xf32>
    %5 = vector.broadcast %4 : vector<1x8xf32> to vector<64x8xf32>
    %6 = arith.addf %3, %5 : vector<64x8xf32>
    %7 = math.tanh %6 : vector<64x8xf32>
    %c0_6 = arith.constant 0 : index
    %c0_7 = arith.constant 0 : index
    %8 = vector.load %arg4[%c0_6, %c0_7] : memref<1x8xf32, #tpu.memory_space<vmem>>, vector<1x8xf32>
    %cst_8 = arith.constant dense<0.000000e+00> : vector<1x64xf32>
    %9 = tpu.matmul %8, %7, %cst_8 {dimension_numbers = #tpu.dot_dimension_numbers<[1], [1], [0], [0], [0, 0, 1, 0], [], []>} : vector<1x8xf32>, vector<64x8xf32>, vector<1x64xf32> -> vector<1x64xf32>
    %c0_9 = arith.constant 0 : index
    %c0_10 = arith.constant 0 : index
    %10 = vector.load %arg5[%c0_9, %c0_10] : memref<1x1xf32, #tpu.memory_space<vmem>>, vector<1x1xf32>
    %11 = vector.broadcast %10 : vector<1x1xf32> to vector<1x64xf32>
    %12 = arith.addf %9, %11 : vector<1x64xf32>
    %cst_11 = arith.constant dense<0xFF800000> : vector<1xf32>
    %13 = vector.multi_reduction <maximumf>, %12, %cst_11 [1] : vector<1x64xf32> to vector<1xf32>
    %14 = vector.shape_cast %13 : vector<1xf32> to vector<1x1xf32>
    %15 = vector.broadcast %14 : vector<1x1xf32> to vector<1x64xf32>
    %16 = arith.subf %12, %15 : vector<1x64xf32>
    %17 = math.exp %16 : vector<1x64xf32>
    %cst_12 = arith.constant dense<0.000000e+00> : vector<1xf32>
    %18 = vector.multi_reduction <add>, %17, %cst_12 [1] : vector<1x64xf32> to vector<1xf32>
    %19 = vector.shape_cast %18 : vector<1xf32> to vector<1x1xf32>
    %20 = tpu.reciprocal %19 {approx = true} : vector<1x1xf32> -> vector<1x1xf32>
    %21 = vector.broadcast %20 : vector<1x1xf32> to vector<1x64xf32>
    %22 = arith.mulf %17, %21 : vector<1x64xf32>
    %c0_13 = arith.constant 0 : index
    %c0_14 = arith.constant 0 : index
    %c0_15 = arith.constant 0 : index
    %23 = vector.load %arg8[%c0_13, %c0_14, %c0_15] : memref<1x1x64xf32, #tpu.memory_space<vmem>>, vector<1x1x64xf32>
    %24 = vector.shape_cast %23 : vector<1x1x64xf32> to vector<1x64xf32>
    %25 = vector.shape_cast %22 : vector<1x64xf32> to vector<1x1x64xf32>
    tpu.vector_store %arg8[%c0_13, %c0_14, %c0_15], %25 {strides = array<i32>} : memref<1x1x64xf32, #tpu.memory_space<vmem>>, vector<1x1x64xf32>,
    %cst_16 = arith.constant dense<0.000000e+00> : vector<1x32xf32>
    %26 = tpu.matmul %22, %1, %cst_16 {dimension_numbers = #tpu.dot_dimension_numbers<[1], [0], [0], [1], [0, 0, 1, 1], [], []>} : vector<1x64xf32>, vector<64x32xf32>, vector<1x32xf32> -> vector<1x32xf32>
    %c0_17 = arith.constant 0 : index
    %c0_18 = arith.constant 0 : index
    %27 = vector.load %arg6[%c0_17, %c0_18] : memref<32x3xf32, #tpu.memory_space<vmem>>, vector<32x3xf32>
    %cst_19 = arith.constant dense<0.000000e+00> : vector<1x3xf32>
    %28 = tpu.matmul %26, %27, %cst_19 {dimension_numbers = #tpu.dot_dimension_numbers<[1], [0], [0], [1], [0, 0, 1, 1], [], []>} : vector<1x32xf32>, vector<32x3xf32>, vector<1x3xf32> -> vector<1x3xf32>
    %c0_20 = arith.constant 0 : index
    %c0_21 = arith.constant 0 : index
    %29 = vector.load %arg7[%c0_20, %c0_21] : memref<1x3xf32, #tpu.memory_space<vmem>>, vector<1x3xf32>
    %30 = arith.addf %28, %29 : vector<1x3xf32>
    %c0_22 = arith.constant 0 : index
    %c0_23 = arith.constant 0 : index
    %c0_24 = arith.constant 0 : index
    %31 = vector.load %arg9[%c0_22, %c0_23, %c0_24] : memref<1x1x3xf32, #tpu.memory_space<vmem>>, vector<1x1x3xf32>
    %32 = vector.shape_cast %31 : vector<1x1x3xf32> to vector<1x3xf32>
    %33 = vector.shape_cast %30 : vector<1x3xf32> to vector<1x1x3xf32>
    tpu.vector_store %arg9[%c0_22, %c0_23, %c0_24], %33 {strides = array<i32>} : memref<1x1x3xf32, #tpu.memory_space<vmem>>, vector<1x1x3xf32>,
    return
  }
  func.func @transform_0(%arg0: i32) -> (i32, i32, i32) {
    %c0_i32 = arith.constant 0 : i32
    %c0_i32_0 = arith.constant 0 : i32
    %c0_i32_1 = arith.constant 0 : i32
    return %arg0, %c0_i32, %c0_i32_0 : i32, i32, i32
  }
  func.func @transform_1(%arg0: i32) -> (i32, i32) {
    %c0_i32 = arith.constant 0 : i32
    %c0_i32_0 = arith.constant 0 : i32
    %c0_i32_1 = arith.constant 0 : i32
    return %c0_i32, %c0_i32_0 : i32, i32
  }
  func.func @transform_2(%arg0: i32) -> (i32, i32) {
    %c0_i32 = arith.constant 0 : i32
    %c0_i32_0 = arith.constant 0 : i32
    %c0_i32_1 = arith.constant 0 : i32
    return %c0_i32, %c0_i32_0 : i32, i32
  }
  func.func @transform_3(%arg0: i32) -> (i32, i32) {
    %c0_i32 = arith.constant 0 : i32
    %c0_i32_0 = arith.constant 0 : i32
    %c0_i32_1 = arith.constant 0 : i32
    return %c0_i32, %c0_i32_0 : i32, i32
  }
  func.func @transform_4(%arg0: i32) -> (i32, i32) {
    %c0_i32 = arith.constant 0 : i32
    %c0_i32_0 = arith.constant 0 : i32
    %c0_i32_1 = arith.constant 0 : i32
    return %c0_i32, %c0_i32_0 : i32, i32
  }
  func.func @transform_5(%arg0: i32) -> (i32, i32) {
    %c0_i32 = arith.constant 0 : i32
    %c0_i32_0 = arith.constant 0 : i32
    %c0_i32_1 = arith.constant 0 : i32
    return %c0_i32, %c0_i32_0 : i32, i32
  }
  func.func @transform_6(%arg0: i32) -> (i32, i32) {
    %c0_i32 = arith.constant 0 : i32
    %c0_i32_0 = arith.constant 0 : i32
    %c0_i32_1 = arith.constant 0 : i32
    return %c0_i32, %c0_i32_0 : i32, i32
  }
  func.func @transform_7(%arg0: i32) -> (i32, i32, i32) {
    %c0_i32 = arith.constant 0 : i32
    %c0_i32_0 = arith.constant 0 : i32
    %c0_i32_1 = arith.constant 0 : i32
    return %arg0, %c0_i32, %c0_i32_0 : i32, i32, i32
  }
  func.func @transform_8(%arg0: i32) -> (i32, i32, i32) {
    %c0_i32 = arith.constant 0 : i32
    %c0_i32_0 = arith.constant 0 : i32
    %c0_i32_1 = arith.constant 0 : i32
    return %arg0, %c0_i32, %c0_i32_0 : i32, i32, i32
  }
}

</mosaic_0001>

<bundles_post_ra>
// kernel: trans_att_forward.6
= control target key start
LH: loop header
LB: loop body
LE: loop exit
PB: predicated region body
PF: predicated region fallthrough
CT: control target
= control target key end

     0   :  { %9 = vsyncpa [#allocation3], 0  ;;  %s989_s0 = inlined_call_operand.vmem [shape: f32[128,32], index: 0, kind: input, shape index: {}]   ;;  %s990_s1 = inlined_call_operand.hbm [shape: f32[1,32], index: 1, kind: input, shape index: {}]   ;;  %s991_s2 = inlined_call_operand.hbm [shape: f32[1,32], index: 2, kind: input, shape index: {}]   ;;  %s992_s3 = inlined_call_operand.vmem [shape: bf16[32,96], index: 3, kind: input, shape index: {}]   ;;  %s993_s4 = inlined_call_operand.vmem [shape: f32[128,96], index: 4, kind: output, shape index: {}]  }
   0x1   :  { %10 = vsyncpa [#allocation5], 0  ;;  %s785_s15 = smov 0  }
   0x2 LB: > { %s148_s18 = sshll.u32 %s990_s1, 4  ;;  %s596_s19 = sadd.s32 4294967295, %s755_s15   ;;  %s755_s15 = sphi %s785_s15, %s16_s15   ;;  %s149_s18 = int_to_ptr.hbm [resolvable:$true] %s148_s18 }
   0x3   : > { %p598_p0 = scmp.ge.s32.totalorder %s755_s15, 1  ;;  %p136_p1 = scmp.lt.s32.totalorder %s755_s15, 3 }
   0x4   : > { %p796_p2 = scmp.eq.s32.totalorder %s596_s19, 0  ;;  %s757_s22 = smov [#allocation2]  }
   0x5   : > { %p800_p3 = pnand %p598_p0, %p136_p1  ;;  %s150_s23 = sshll.u32 %s757_s22, 4  ;;  %s151_s23 = int_to_ptr.vmem [resolvable:$true] %s150_s23 }
   0x6   : > { %s160_s26 = sshll.u32 %s991_s2, 4  ;;  %s758_s27 = smov [#allocation4]   ;;  %s161_s26 = int_to_ptr.hbm [resolvable:$true] %s160_s26 }
   0x7   : > { %p639_p4 = pneg %p800_p3  ;;  %s162_s28 = sshll.u32 %s758_s27, 4  ;;  %s163_s28 = int_to_ptr.vmem [resolvable:$true] %s162_s28 }
   0x8   : > { %187 = sbr.rel (%p800_p3) target bundleno = 453 (0x1c5), region = 36 }
   0x9   : > { %p640_p5 = pnand %p796_p2, %p639_p4 }
   0xb   : > { %642 = dma.hbm_to_vmem [thread:$0]  (!%p640_p5), %s149_s18, 16, %s151_s23, [#allocation3]  }
   0xc   : > { %645 = dma.hbm_to_vmem [thread:$0]  (!%p640_p5), %s161_s26, 16, %s163_s28, [#allocation5]  }
   0xd   : > { %746 = dma.done.wait (%p796_p2), [#allocation3], 16  }
   0xe   : > { %748 = vsyncadd (%p796_p2), [#allocation3], 4294967280 }
   0xf   : > { %750 = dma.done.wait (%p796_p2), [#allocation5], 16  }
  0x10   : > { %752 = vsyncadd (%p796_p2), [#allocation5], 4294967280  ;;  %s605_s29 = sshll.u32 %s596_s19, 3  ;;  %vm240_vm0 = vcmask 261120   ;;  %v759_v16 = vmov 32.0  }
  0x11   : > { %p220_p6 = scmp.lt.s32.totalorder %s605_s29, 15  ;;  %663 = vrcp.f32 %v759_v16 }
  0x13   : > { %s1003_s29 = smov (!%p220_p6, %s605_s29), 15 }
  0x14   : > { %s606_s30 = sshll.u32 %s1003_s29, 3 }
  0x15   : > { %s223_s7 = scalar_lea.vmem %s989_s0, %s606_s30  ;;  %s229_s14 = scalar_lea.vmem %s993_s4, %s606_s30 }
  0x16   : > { %v238_v0 = vld [vmem:[%s223_s7 + $0x30] sm:$0xff]  ;;  %v236_v1 = vld [vmem:[%s223_s7 + $0x20] sm:$0xff]  ;;  %v239_v6 = vld [vmem:[%s223_s7 + $0x38] sm:$0xff] }
  0x17   : > { %v232_v2 = vld [vmem:[%s223_s7] sm:$0xff]  ;;  %v259_v3 = vsel %vm240_vm0, %v238_v0, 0.0  ;;  %v253_v4 = vsel %vm240_vm0, %v236_v1, 0.0  ;;  %v237_v7 = vld [vmem:[%s223_s7 + $0x28] sm:$0xff]  ;;  %v262_v9 = vsel %vm240_vm0, %v239_v6, 0.0  ;;  %v234_v12 = vld [vmem:[%s223_s7 + $0x10] sm:$0xff]  ;;  %v664_v17 = vpop.eup %663 }
  0x18   : > { %v241_v5 = vsel %vm240_vm0, %v232_v2, 0.0  ;;  %260 = vadd.xlane.f32.xlu1 %v259_v3  ;;  %254 = vadd.xlane.f32.xlu0 %v253_v4  ;;  %v233_v8 = vld [vmem:[%s223_s7 + $0x8] sm:$0xff]  ;;  %v256_v10 = vsel %vm240_vm0, %v237_v7, 0.0  ;;  %v235_v13 = vld [vmem:[%s223_s7 + $0x18] sm:$0xff]  ;;  %v247_v14 = vsel %vm240_vm0, %v234_v12, 0.0  ;;  %v266_v18 = vmul.f32 32.0, %v664_v17 }
  0x19   : > { %242 = vadd.xlane.f32.xlu2 %v241_v5  ;;  %v244_v11 = vsel %vm240_vm0, %v233_v8, 0.0  ;;  %v250_v15 = vsel %vm240_vm0, %v235_v13, 0.0  ;;  %vm270_vm1 = vweird.f32 %v664_v17  ;;  %v624_v3 = vld [vmem:[%s992_s3 + $0x8] sm:$0xff] }
  0x1a   : > { %v267_v19 = vsub.f32 1.0, %v266_v18  ;;  %626 = vmatpush.bf16.msra.mxu2 %v624_v3  ;;  %627 = vmatpush.bf16.msra.mxu3 %v624_v3 }
  0x1b   : > { %486 = vmatpush.bf16.msra.mxu0 %v624_v3  ;;  %625 = vmatpush.bf16.msra.mxu1 %v624_v3 }
  0x1c   : > { %v268_v20 = vmul.f32 %v664_v17, %v267_v19 }
  0x1e   : > { %v269_v21 = vadd.f32 %v664_v17, %v268_v20 }
  0x20   : > { %263 = vadd.xlane.f32.xlu1 %v262_v9  ;;  %257 = vadd.xlane.f32.xlu0 %v256_v10  ;;  %v837_v22 = vsel %vm270_vm1, %v664_v17, %v269_v21 }
  0x21   : > { %245 = vadd.xlane.f32.xlu2 %v244_v11 }
  0x28   : > { %248 = vadd.xlane.f32.xlu0 %v247_v14  ;;  %251 = vadd.xlane.f32.xlu1 %v250_v15 }
  0x8b   : > { %v261_v23 = vpop.xlane.xlu1 %260  ;;  %v255_v24 = vpop.xlane.xlu0 %254 }
  0x8c   : > { %v278_v25 = vmul.f32 %v837_v22, %v261_v23  ;;  %v276_v26 = vmul.f32 %v837_v22, %v255_v24  ;;  %v243_v27 = vpop.xlane.xlu2 %242 }
  0x8d   : > { %v272_v36 = vmul.f32 %v837_v22, %v243_v27 }
  0x8e   : > { %v841_v28 = vsub.f32 %v238_v0, %v278_v25  ;;  %v843_v29 = vsub.f32 %v236_v1, %v276_v26 }
  0x8f   : > { %v861_v44 = vsub.f32 %v232_v2, %v272_v36 }
  0x90   : > { %v294_v30 = vmul.f32 %v841_v28, %v841_v28  ;;  %v292_v31 = vmul.f32 %v843_v29, %v843_v29 }
  0x91   : > { %v288_v55 = vmul.f32 %v861_v44, %v861_v44 }
  0x92   : > { %v314_v32 = vsel %vm240_vm0, %v294_v30, 0.0  ;;  %v308_v33 = vsel %vm240_vm0, %v292_v31, 0.0 }
  0x93   : > { %v264_v34 = vpop.xlane.xlu1 %263  ;;  %v258_v35 = vpop.xlane.xlu0 %257  ;;  %315 = vadd.xlane.f32.xlu1 %v314_v32  ;;  %309 = vadd.xlane.f32.xlu2 %v308_v33  ;;  %v296_v59 = vsel %vm240_vm0, %v288_v55, 0.0 }
  0x94   : > { %v279_v37 = vmul.f32 %v837_v22, %v264_v34  ;;  %v277_v38 = vmul.f32 %v837_v22, %v258_v35  ;;  %v246_v39 = vpop.xlane.xlu2 %245 }
  0x95   : > { %v273_v40 = vmul.f32 %v837_v22, %v246_v39 }
  0x96   : > { %v855_v41 = vsub.f32 %v239_v6, %v279_v37  ;;  %v857_v42 = vsub.f32 %v237_v7, %v277_v38  ;;  %v623_v6 = vld [vmem:[%s992_s3] sm:$0xff] }
  0x97   : > { %v859_v43 = vsub.f32 %v233_v8, %v273_v40  ;;  %629 = vmatpush.bf16.msra.mxu2 %v623_v6  ;;  %630 = vmatpush.bf16.msra.mxu3 %v623_v6 }
  0x98   : > { %v293_v45 = vmul.f32 %v857_v42, %v857_v42  ;;  %v295_v46 = vmul.f32 %v855_v41, %v855_v41  ;;  %487 = vmatpush.bf16.msra.mxu0 %v623_v6  ;;  %628 = vmatpush.bf16.msra.mxu1 %v623_v6 }
  0x99   : > { %v289_v47 = vmul.f32 %v859_v43, %v859_v43 }
  0x9a   : > { %v311_v48 = vsel %vm240_vm0, %v293_v45, 0.0  ;;  %v317_v49 = vsel %vm240_vm0, %v295_v46, 0.0 }
  0x9b   : > { %312 = vadd.xlane.f32.xlu0 %v311_v48  ;;  %v249_v50 = vpop.xlane.xlu0 %248  ;;  %318 = vadd.xlane.f32.xlu2 %v317_v49  ;;  %v299_v51 = vsel %vm240_vm0, %v289_v47, 0.0  ;;  %v252_v52 = vpop.xlane.xlu1 %251 }
  0x9c   : > { %v274_v53 = vmul.f32 %v837_v22, %v249_v50  ;;  %300 = vadd.xlane.f32.xlu1 %v299_v51  ;;  %v275_v54 = vmul.f32 %v837_v22, %v252_v52 }
  0x9e   : > { %v876_v56 = vsub.f32 %v234_v12, %v274_v53  ;;  %v878_v57 = vsub.f32 %v235_v13, %v275_v54 }
  0xa0   : > { %v290_v58 = vmul.f32 %v876_v56, %v876_v56  ;;  %v291_v61 = vmul.f32 %v878_v57, %v878_v57 }
  0xa2   : > { %v302_v60 = vsel %vm240_vm0, %v290_v58, 0.0  ;;  %v305_v62 = vsel %vm240_vm0, %v291_v61, 0.0 }
  0xa3   : > { %303 = vadd.xlane.f32.xlu2 %v302_v60  ;;  %297 = vadd.xlane.f32.xlu0 %v296_v59 }
  0xab   : > { %306 = vadd.xlane.f32.xlu0 %v305_v62 }
 0x106   : > { %v316_v63 = vpop.xlane.xlu1 %315  ;;  %v310_v0 = vpop.xlane.xlu2 %309 }
 0x107   : > { %v326_v1 = vmul.f32 %v316_v63, %v837_v22  ;;  %v324_v2 = vmul.f32 %v310_v0, %v837_v22  ;;  %v931_v63 = vld [vmem:[#allocation2] ss:$0 sm:$0xff] }
 0x109   : > { %v334_v4 = vadd.f32 1e-05, %v326_v1  ;;  %v332_v5 = vadd.f32 1e-05, %v324_v2 }
 0x10b   : > { %665 = vrsqrt.f32 %v334_v4  ;;  %vm402_vm2 = vweird.f32 %v334_v4  ;;  %vm382_vm5 = vweird.f32 %v332_v5 }
 0x10c   : > { %667 = vrsqrt.f32 %v332_v5 }
 0x10e   : > { %v313_v7 = vpop.xlane.xlu0 %312  ;;  %v319_v8 = vpop.xlane.xlu2 %318 }
 0x10f   : > { %v325_v9 = vmul.f32 %v313_v7, %v837_v22  ;;  %v301_v10 = vpop.xlane.xlu1 %300  ;;  %v327_v11 = vmul.f32 %v319_v8, %v837_v22 }
 0x110   : > { %v321_v12 = vmul.f32 %v301_v10, %v837_v22 }
 0x111   : > { %v666_v13 = vpop.eup %665  ;;  %v333_v14 = vadd.f32 1e-05, %v325_v9  ;;  %v898_v15 = vadd.f32 1e-05, %v327_v11  ;;  %v662_v11 = vld [vmem:[#allocation4] ss:$0 sm:$0xff] }
 0x112   : > { %v668_v16 = vpop.eup %667  ;;  %v397_v17 = vmul.f32 %v666_v13, %v334_v4  ;;  %v329_v18 = vadd.f32 1e-05, %v321_v12  ;;  %vm403_vm4 = vweird.f32 %v666_v13 }
 0x113   : > { %v377_v19 = vmul.f32 %v668_v16, %v332_v5  ;;  %669 = vrsqrt.f32 %v333_v14  ;;  %vm383_vm3 = vweird.f32 %v668_v16  ;;  %vm392_vm7 = vweird.f32 %v333_v14  ;;  %vm921_vm8 = vmor %vm402_vm2, %vm403_vm4 }
 0x114   : > { %v398_v20 = vmul.f32 %v666_v13, %v397_v17  ;;  %671 = vrsqrt.f32 %v329_v18  ;;  %vm911_vm6 = vmor %vm382_vm5, %vm383_vm3  ;;  %vm352_vm9 = vweird.f32 %v329_v18  ;;  %vm412_vm12 = vweird.f32 %v898_v15 }
 0x115   : > { %v378_v21 = vmul.f32 %v668_v16, %v377_v19  ;;  %673 = vrsqrt.f32 %v898_v15 }
 0x116   : > { %v399_v23 = vmul.f32 0.5, %v398_v20  ;;  %v298_v24 = vpop.xlane.xlu0 %297  ;;  %v304_v25 = vpop.xlane.xlu2 %303 }
 0x117   : > { %v379_v26 = vmul.f32 0.5, %v378_v21  ;;  %v320_v27 = vmul.f32 %v298_v24, %v837_v22  ;;  %v322_v30 = vmul.f32 %v304_v25, %v837_v22 }
 0x118   : > { %v400_v31 = vsub.f32 1.5, %v399_v23 }
 0x119   : > { %v670_v32 = vpop.eup %669  ;;  %v380_v33 = vsub.f32 1.5, %v379_v26  ;;  %v903_v34 = vadd.f32 1e-05, %v320_v27  ;;  %v907_v37 = vadd.f32 1e-05, %v322_v30 }
 0x11a   : > { %v905_v35 = vpop.eup %671  ;;  %v387_v36 = vmul.f32 %v670_v32, %v333_v14  ;;  %v401_v39 = vmul.f32 %v666_v13, %v400_v31  ;;  %vm393_vm10 = vweird.f32 %v670_v32 }
 0x11b   : > { %v674_v38 = vpop.eup %673  ;;  %v381_v40 = vmul.f32 %v668_v16, %v380_v33  ;;  %v347_v45 = vmul.f32 %v905_v35, %v329_v18  ;;  %675 = vrsqrt.f32 %v903_v34  ;;  %vm353_vm11 = vweird.f32 %v905_v35  ;;  %vm394_vm14 = vmor %vm392_vm7, %vm393_vm10 }
 0x11c   : > { %v388_v47 = vmul.f32 %v670_v32, %v387_v36  ;;  %v407_v48 = vmul.f32 %v674_v38, %v898_v15  ;;  %677 = vrsqrt.f32 %v907_v37  ;;  %v405_v55 = vsel %vm921_vm8, %v666_v13, %v401_v39  ;;  %vm940_vm15 = vmor %vm352_vm9, %vm353_vm11 }
 0x11d   : > { %v385_v49 = vsel %vm911_vm6, %v668_v16, %v381_v40  ;;  %v348_v50 = vmul.f32 %v905_v35, %v347_v45  ;;  %vm413_vm13 = vweird.f32 %v674_v38  ;;  %v422_v3 = vmul.f32 %v405_v55, %v841_v28 }
 0x11e   : > { %v389_v52 = vmul.f32 0.5, %v388_v47  ;;  %v408_v53 = vmul.f32 %v674_v38, %v407_v48  ;;  %v307_v54 = vpop.xlane.xlu0 %306  ;;  %v420_v60 = vmul.f32 %v385_v49, %v843_v29  ;;  %vm414_vm1 = vmor %vm412_vm12, %vm413_vm13  ;;  %vm342_vm2 = vweird.f32 %v903_v34 }
 0x11f   : > { %v349_v58 = vmul.f32 0.5, %v348_v50  ;;  %v323_v59 = vmul.f32 %v307_v54, %v837_v22  ;;  %v434_v18 = vmul.f32 %v931_v63, %v422_v3  ;;  %vm362_vm4 = vweird.f32 %v907_v37 }
 0x120   : > { %v390_v61 = vsub.f32 1.5, %v389_v52  ;;  %v409_v62 = vmul.f32 0.5, %v408_v53  ;;  %v432_v28 = vmul.f32 %v931_v63, %v420_v60  ;;  %vm509_vm11 = vcmask 785408  }
 0x121   : > { %v676_v0 = vpop.eup %675  ;;  %v350_v1 = vsub.f32 1.5, %v349_v58  ;;  %v331_v2 = vadd.f32 1e-05, %v323_v59 }
 0x122   : > { %v391_v4 = vmul.f32 %v670_v32, %v390_v61  ;;  %v410_v22 = vsub.f32 1.5, %v409_v62  ;;  %v337_v29 = vmul.f32 %v676_v0, %v903_v34  ;;  %v678_v7 = vpop.eup %677  ;;  %vm343_vm3 = vweird.f32 %v676_v0 }
 0x123   : > { %v351_v5 = vmul.f32 %v905_v35, %v350_v1  ;;  %679 = vrsqrt.f32 %v331_v2  ;;  %v357_v13 = vmul.f32 %v678_v7, %v907_v37  ;;  %v444_v15 = vadd.f32 %v662_v11, %v432_v28  ;;  %vm344_vm5 = vmor %vm342_vm2, %vm343_vm3 }
 0x124   : > { %v395_v8 = vsel %vm394_vm14, %v670_v32, %v391_v4  ;;  %v411_v9 = vmul.f32 %v674_v38, %v410_v22  ;;  %v338_v10 = vmul.f32 %v676_v0, %v337_v29  ;;  %vm363_vm6 = vweird.f32 %v678_v7 }
 0x125   : > { %v421_v12 = vmul.f32 %v395_v8, %v857_v42  ;;  %v355_v14 = vsel %vm940_vm15, %v905_v35, %v351_v5  ;;  %v358_v20 = vmul.f32 %v678_v7, %v357_v13  ;;  %vm364_vm7 = vmor %vm362_vm4, %vm363_vm6  ;;  %vm372_vm9 = vweird.f32 %v331_v2 }
 0x126   : > { %v415_v16 = vsel %vm414_vm1, %v674_v38, %v411_v9  ;;  %v339_v17 = vmul.f32 0.5, %v338_v10  ;;  %v417_v24 = vmul.f32 %v355_v14, %v859_v43 }
 0x127   : > { %v423_v19 = vmul.f32 %v415_v16, %v855_v41  ;;  %v433_v21 = vmul.f32 %v931_v63, %v421_v12  ;;  %v359_v25 = vmul.f32 0.5, %v358_v20  ;;  %v446_v41 = vadd.f32 %v662_v11, %v434_v18 }
 0x128   : > { %v340_v42 = vsub.f32 1.5, %v339_v17  ;;  %v429_v40 = vmul.f32 %v931_v63, %v417_v24 }
 0x129   : > { %v680_v23 = vpop.eup %679  ;;  %v445_v26 = vadd.f32 %v662_v11, %v433_v21  ;;  %v435_v27 = vmul.f32 %v931_v63, %v423_v19  ;;  %v360_v32 = vsub.f32 1.5, %v359_v25 }
 0x12a   : > { %v341_v30 = vmul.f32 %v676_v0, %v340_v42  ;;  %v367_v31 = vmul.f32 %v680_v23, %v331_v2  ;;  %vm373_vm8 = vweird.f32 %v680_v23  ;;  %v441_v50 = vadd.f32 %v662_v11, %v429_v40 }
 0x12b   : > { %v450_v33 = vpack.c.bf16 %v445_v26, %v444_v15  ;;  %v447_v35 = vadd.f32 %v662_v11, %v435_v27  ;;  %v361_v39 = vmul.f32 %v678_v7, %v360_v32  ;;  %vm374_vm10 = vmor %vm372_vm9, %vm373_vm8 }
 0x12c   : > { %v345_v34 = vsel %vm344_vm5, %v676_v0, %v341_v30  ;;  %v368_v36 = vmul.f32 %v680_v23, %v367_v31 }
 0x12d   : > { %v416_v38 = vmul.f32 %v345_v34, %v861_v44  ;;  %619 = vmatmul.msk.bf16.vlgmr.msra.gmra.mxu2 %vm240_vm0, %v450_v33  ;;  %v451_v43 = vpack.c.bf16 %v447_v35, %v446_v41  ;;  %v365_v46 = vsel %vm364_vm7, %v678_v7, %v361_v39 }
 0x12e   : > { %v369_v45 = vmul.f32 0.5, %v368_v36  ;;  %v418_v49 = vmul.f32 %v365_v46, %v876_v56 }
 0x12f   : > { %620 = vmatmul.msk.bf16.vlgmr.msra.gmra.mxu3 %vm240_vm0, %v451_v43  ;;  %v428_v47 = vmul.f32 %v931_v63, %v416_v38 }
 0x130   : > { %v370_v48 = vsub.f32 1.5, %v369_v45  ;;  %v430_v54 = vmul.f32 %v931_v63, %v418_v49 }
 0x131   : > { %v440_v44 = vadd.f32 %v662_v11, %v428_v47 }
 0x132   : > { %v371_v51 = vmul.f32 %v680_v23, %v370_v48  ;;  %v442_v58 = vadd.f32 %v662_v11, %v430_v54 }
 0x133   : > { %v448_v52 = vpack.c.bf16 %v441_v50, %v440_v44 }
 0x134   : > { %v375_v53 = vsel %vm374_vm10, %v680_v23, %v371_v51 }
 0x135   : > { %v419_v37 = vmul.f32 %v375_v53, %v878_v57  ;;  %617 = vmatmul.msk.bf16.vlgmr.msra.gmra.mxu0 %vm240_vm0, %v448_v52 }
 0x137   : > { %v431_v55 = vmul.f32 %v931_v63, %v419_v37 }
 0x139   : > { %v443_v59 = vadd.f32 %v662_v11, %v431_v55 }
 0x13b   : > { %v449_v60 = vpack.c.bf16 %v443_v59, %v442_v58 }
 0x13d   : > { %618 = vmatmul.msk.bf16.vlgmr.msra.gmra.mxu1 %vm240_vm0, %v449_v60 }
 0x1b0   : > { %v499_v56 = vpop.f32.mrf.mxu2 }
 0x1b1   : > { %514 = vst.msk [vmem:[%s229_s14 + $0x20] sm:$0xff] %vm509_vm11, %v499_v56 }
 0x1b2   : > { %v504_v57 = vpop.f32.mrf.mxu3  ;;  %v489_v61 = vpop.f32.mrf.mxu0 }
 0x1b3   : > { %516 = vst.msk [vmem:[%s229_s14 + $0x30] sm:$0xff] %vm509_vm11, %v504_v57 }
 0x1b4   : > { %510 = vst.msk [vmem:[%s229_s14] sm:$0xff] %vm509_vm11, %v489_v61 }
 0x1b8   : > { %v501_v62 = vpop.f32.mrf.mxu2 }
 0x1b9   : > { %515 = vst.msk [vmem:[%s229_s14 + $0x28] sm:$0xff] %vm509_vm11, %v501_v62 }
 0x1ba   : > { %v506_v63 = vpop.f32.mrf.mxu3  ;;  %v491_v0 = vpop.f32.mrf.mxu0 }
 0x1bb   : > { %517 = vst.msk [vmem:[%s229_s14 + $0x38] sm:$0xff] %vm509_vm11, %v506_v63  ;;  %v494_v1 = vpop.f32.mrf.mxu1 }
 0x1bc   : > { %511 = vst.msk [vmem:[%s229_s14 + $0x8] sm:$0xff] %vm509_vm11, %v491_v0 }
 0x1bd   : > { %512 = vst.msk [vmem:[%s229_s14 + $0x10] sm:$0xff] %vm509_vm11, %v494_v1 }
 0x1c3   : > { %v496_v2 = vpop.f32.mrf.mxu1 }
 0x1c4   : > { %513 = vst.msk [vmem:[%s229_s14 + $0x18] sm:$0xff] %vm509_vm11, %v496_v2 }
 0x1c5 PF: > { %s16_s15 = sadd.s32 1, %s755_s15  }
 0x1c6   : > { %p13_p7 = scmp.ge.s32.totalorder %s16_s15, 4  }
 0x1c8   :  { %15 = sbr.rel (!%p13_p7) target bundleno = 2 (0x2), region = 75 }
 0x1cd   :  { %540 = vsyncpa [#allocation3], 1 }
 0x1ce   :  { %542 = vsyncpa [#allocation3 + $0x1], 1 }
 0x1cf   :  { %543 = vsyncpa [#allocation5], 1 }

// kernel: trans_att_forward.5
= control target key start
LH: loop header
LB: loop body
LE: loop exit
PB: predicated region body
PF: predicated region fallthrough
CT: control target
= control target key end

     0   :  { %s1519_s0 = inlined_call_operand.hbm [shape: f32[128,1024], index: 0, kind: input, shape index: {}]   ;;  %s1520_s1 = inlined_call_operand.vmem [shape: bf16[1024,32], index: 1, kind: input, shape index: {}]   ;;  %s1521_s2 = inlined_call_operand.hbm [shape: f32[1,32], index: 2, kind: input, shape index: {}]   ;;  %s1522_s3 = inlined_call_operand.vmem [shape: f32[128,32], index: 3, kind: output, shape index: {}]  }
   0x1   :  { %1526 = sst [smem:[#allocation12_spill]] %s1521_s2 }
   0x2   :  { %1527 = sst [smem:[#allocation13_spill]] %s1522_s3 }
   0x3   :  { %8 = vsyncpa [#allocation4], 0 }
   0x4   :  { %10 = vsyncpa [#allocation4 + $0x1], 0 }
   0x5   :  { %11 = vsyncpa [#allocation6], 0  ;;  %s1278_s12 = smov 0   ;;  %s1280_s13 = smov 0  }
   0x6   :  { %s1282_s14 = smov 0   ;;  %s1284_s15 = smov 0  }
   0x7   :  { %s1286_s16 = smov 0   ;;  %s1288_s17 = smov 0  }
   0x8   :  { %s1290_s18 = smov 0   ;;  %s1292_s19 = smov 0  }
   0x9 LB: > { %1528 = sst [smem:[#allocation9_spill]] %s1243_s17  ;;  %s852_s20 = sadd.s32 4294967295, %s1251_s19   ;;  %s1251_s19 = sphi %s1292_s19, %s17_s19   ;;  %s1247_s18 = sphi %s1290_s18, %s1547_s18   ;;  %s1243_s17 = sphi %s1288_s17, %s1546_s17   ;;  %s1239_s16 = sphi %s1286_s16, %s1545_s16   ;;  %s1235_s15 = sphi %s1284_s15, %s1540_s15   ;;  %s1231_s14 = sphi %s1282_s14, %s1544_s14   ;;  %s1227_s13 = sphi %s1280_s13, %s1543_s13   ;;  %s1223_s12 = sphi %s1278_s12, %s1542_s12  }
   0xa   : > { %1529 = sst [smem:[#allocation10_spill]] %s1251_s19  ;;  %p45_p0 = scmp.ne.s32.totalorder %s1231_s14, %s1227_s13 }
   0xb   : > { %p46_p1 = scmp.eq.s32.totalorder %s1251_s19, 0  ;;  %p51_p2 = scmp.ne.s32.totalorder %s1227_s13, %s1223_s12 }
   0xc   : > { %p1322_p3 = scmp.eq.s32.totalorder %s852_s20, 0  ;;  %p854_p5 = scmp.ge.s32.totalorder %s1251_s19, 1 }
   0xd   : > { %p1326_p4 = por %p46_p1, %p45_p0  ;;  %p135_p7 = scmp.lt.s32.totalorder %s1251_s19, 5 }
   0xe   : > { %p1333_p6 = por %p1322_p3, %p51_p2  ;;  %s1533_s2 = sld [smem:[#allocation12_spill]] }
   0xf   : > { %p1341_p8 = pnand %p854_p5, %p135_p7  ;;  %s1253_s29 = smov [#allocation5]  }
  0x10   : > { %s149_s30 = sshll.u32 %s1253_s29, 4  ;;  %p1049_p10 = scmp.lt.s32.totalorder %s1251_s19, 4  ;;  %s150_s30 = int_to_ptr.vmem [resolvable:$true] %s149_s30 }
  0x11   : > { %p1040_p9 = pneg %p1341_p8  ;;  %s26_s5 = sadd.s32 1, %s1243_s17 }
  0x12   : > { %p1352_p12 = pnand %p1049_p10, %p1326_p4  ;;  %s29_s6 = sadd.s32 1, %s1247_s18 }
  0x13   : > { %p1041_p11 = pnand %p1040_p9, %p1322_p3  ;;  %p27_p13 = scmp.ge.s32.totalorder %s26_s5, 2 }
  0x14   : > { %s147_s27 = sshll.u32 %s1533_s2, 4  ;;  %s160_s7 = sand.u32 1, %s1231_s14   ;;  %s148_s27 = int_to_ptr.hbm [resolvable:$true] %s147_s27 }
  0x15   : > { %1043 = dma.hbm_to_vmem [thread:$0]  (!%p1041_p11), %s148_s27, 16, %s150_s30, [#allocation6]  }
  0x16   : > { %s857_s8 = sshll.u32 %s160_s7, 8  ;;  %s1549_s5 = smov (%p27_p13, %s26_s5), 0 }
  0x17   : > { %1536 = sst [smem:[#allocation11_spill]] %s1549_s5  ;;  %s1551_s6 = smov (!%p27_p13, %s29_s6), %s1247_s18 }
  0x18   : > { %s34_s9 = ssub.s32 %s1243_s17, %s1549_s5  ;;  %p31_p0 = scmp.ge.s32.totalorder %s1551_s6, 2 }
  0x19   : > { %s859_s10 = sshll.u32 %s1243_s17, 2  ;;  %s1001_s11 = sshll.u32 %s1247_s18, 6 }
  0x1a   : > { %s164_s12 = scalar_lea.vmem [#allocation3], %s857_s8  ;;  %s1553_s6 = smov (%p31_p0, %s1551_s6), 0 }
  0x1b   : > { %s175_s20 = sshll.u32 %s164_s12, 4  ;;  %s170_s23 = sadd.s32 %s1001_s11, %s859_s10  ;;  %s176_s20 = int_to_ptr.vmem [resolvable:$true] %s175_s20 }
  0x1c   : > { %s33_s25 = ssub.s32 %s1247_s18, %s1553_s6  ;;  %s861_s26 = sshll.u32 %s170_s23, 3 }
  0x1d   : > { %s35_s27 = sor.u32 %s34_s9, %s33_s25  ;;  %s172_s21 = scalar_lea.hbm %s1519_s0, %s861_s26 }
  0x1e   : > { %p36_p1 = scmp.eq.s32.totalorder %s35_s27, 0  ;;  %s173_s2 = sshll.u32 %s172_s21, 4  ;;  %s174_s2 = int_to_ptr.hbm [resolvable:$true] %s173_s2 }
  0x1f   : > { %s1537_s5 = sadd.s32 1, %s1231_s14  ;;  %s161_s8 = scalar_lea.sflag [#allocation4], %s160_s7 }
  0x20   : > { %s1376_s17 = scalar_select %p36_p1, %s1231_s14, %s1537_s5  }
  0x21   : > { %s1254_s12 = smov 1024   ;;  %s1255_s19 = smov 512  }
  0x22   : > { %s1256_s3 = smov 32   ;;  %196 = sbr.rel (%p1341_p8) target bundleno = 304 (0x130), region = 32 }
  0x23   : > { %1047 = dma.hbm_to_vmem [thread:$0]  (!%p1352_p12), %s174_s2, 4096, %s176_s20, %s161_s8, %s1254_s12, %s1255_s19, %s1256_s3  }
  0x24   : > { %s198_s9 = sand.u32 (!%p1341_p8), 1, %s1227_s13  }
  0x25   : > { %s863_s10 = sshll.u32 (!%p1341_p8), %s198_s9, 8  ;;  %s199_s11 = scalar_lea.sflag (!%p1341_p8), [#allocation4], %s198_s9 }
  0x26   : > { %s1383_s23 = scalar_lea.vmem (!%p1341_p8), [#allocation3], %s863_s10 }
  0x27   : > { %1214 = dma.done.wait (%p1333_p6), %s199_s11, 4096  }
  0x28   : > { %1216 = vsyncadd (%p1333_p6), %s199_s11, 4294963200 }
  0x29   : > { %1218 = dma.done.wait (%p1322_p3), [#allocation6], 16  }
  0x2a   : > { %1220 = vsyncadd (%p1322_p3), [#allocation6], 4294967280  ;;  %s865_s2 = sshll.u32 %s1235_s15, 6  ;;  %s867_s3 = sshll.u32 %s1239_s16, 3 }
  0x2b   : > { %p239_p2 = scmp.lt.s32.totalorder %s865_s2, 127  ;;  %p245_p4 = scmp.lt.s32.totalorder %s867_s3, 15 }
  0x2c   : > { %s1538_s20 = sld [smem:[#allocation13_spill]]  ;;  %p869_p3 = scmp.ne.s32.totalorder %s1235_s15, 0 }
  0x2d   : > { %s1555_s2 = smov (!%p239_p2, %s865_s2), 127  ;;  %s1557_s3 = smov (!%p245_p4, %s867_s3), 15 }
  0x2e   : > { %s866_s19 = sshll.u32 %s1555_s2, 2  ;;  %s868_s4 = sshll.u32 %s1557_s3, 3 }
  0x2f   : > { %s1398_s24 = scalar_lea.vmem %s1520_s1, %s866_s19  ;;  %253 = sbr.rel (%p869_p3) target bundleno = 61 (0x3d), region = 44 }
  0x32   : > { %s1403_s22 = scalar_lea.vmem %s1538_s20, %s868_s4 }
  0x34   : > { %vm254_vm0 = vcmask 261120   ;;  %v1257_v0 = vmov 0.0  }
  0x35   : > { %255 = vst.msk [vmem:[#allocation2] sm:$0xff] %vm254_vm0, %v1257_v0 }
  0x36   : > { %256 = vst.msk [vmem:[#allocation2 + $0x8] sm:$0xff] %vm254_vm0, %v1257_v0 }
  0x37   : > { %257 = vst.msk [vmem:[#allocation2 + $0x10] sm:$0xff] %vm254_vm0, %v1257_v0 }
  0x38   : > { %258 = vst.msk [vmem:[#allocation2 + $0x18] sm:$0xff] %vm254_vm0, %v1257_v0 }
  0x39   : > { %259 = vst.msk [vmem:[#allocation2 + $0x20] sm:$0xff] %vm254_vm0, %v1257_v0 }
  0x3a   : > { %260 = vst.msk [vmem:[#allocation2 + $0x28] sm:$0xff] %vm254_vm0, %v1257_v0 }
  0x3b   : > { %261 = vst.msk [vmem:[#allocation2 + $0x30] sm:$0xff] %vm254_vm0, %v1257_v0 }
  0x3c   : > { %262 = vst.msk [vmem:[#allocation2 + $0x38] sm:$0xff] %vm254_vm0, %v1257_v0 }
  0x3d PF: > { %v1009_v1 = vld [vmem:[%s1398_s24 + $0x38] sm:$0xff]  ;;  %v1008_v5 = vld [vmem:[%s1398_s24 + $0x30] sm:$0xff]  ;;  %v1007_v9 = vld [vmem:[%s1398_s24 + $0x28] sm:$0xff]  ;;  %vm699_vm1 = vcmask 261120   ;;  %p998_p5 = scmp.ne.s32.totalorder %s1235_s15, 1 }
  0x3e   : > { %v1017_v2 = vld [vmem:[%s1398_s24 + $0x78] sm:$0xff]  ;;  %575 = vmatpush.bf16.msra.mxu0 %v1009_v1  ;;  %v1016_v6 = vld [vmem:[%s1398_s24 + $0x70] sm:$0xff]  ;;  %v1015_v10 = vld [vmem:[%s1398_s24 + $0x68] sm:$0xff] }
  0x3f   : > { %v1025_v3 = vld [vmem:[%s1398_s24 + $0xb8] sm:$0xff]  ;;  %604 = vmatpush.bf16.msra.mxu1 %v1017_v2  ;;  %v1024_v7 = vld [vmem:[%s1398_s24 + $0xb0] sm:$0xff]  ;;  %v1023_v11 = vld [vmem:[%s1398_s24 + $0xa8] sm:$0xff] }
  0x40   : > { %v1033_v4 = vld [vmem:[%s1398_s24 + $0xf8] sm:$0xff]  ;;  %633 = vmatpush.bf16.msra.mxu2 %v1025_v3  ;;  %v1032_v8 = vld [vmem:[%s1398_s24 + $0xf0] sm:$0xff]  ;;  %v1031_v12 = vld [vmem:[%s1398_s24 + $0xe8] sm:$0xff] }
  0x41   : > { %662 = vmatpush.bf16.msra.mxu3 %v1033_v4  ;;  %v1006_v13 = vld [vmem:[%s1398_s24 + $0x20] sm:$0xff]  ;;  %v1005_v17 = vld [vmem:[%s1398_s24 + $0x18] sm:$0xff]  ;;  %v1004_v21 = vld [vmem:[%s1398_s24 + $0x10] sm:$0xff] }
  0x42   : > { %576 = vmatpush.bf16.msra.mxu0 %v1008_v5  ;;  %v1014_v14 = vld [vmem:[%s1398_s24 + $0x60] sm:$0xff]  ;;  %v1013_v18 = vld [vmem:[%s1398_s24 + $0x58] sm:$0xff]  ;;  %v1012_v22 = vld [vmem:[%s1398_s24 + $0x50] sm:$0xff] }
  0x43   : > { %605 = vmatpush.bf16.msra.mxu1 %v1016_v6  ;;  %v1022_v15 = vld [vmem:[%s1398_s24 + $0xa0] sm:$0xff]  ;;  %v1021_v19 = vld [vmem:[%s1398_s24 + $0x98] sm:$0xff]  ;;  %v1020_v23 = vld [vmem:[%s1398_s24 + $0x90] sm:$0xff] }
  0x44   : > { %634 = vmatpush.bf16.msra.mxu2 %v1024_v7  ;;  %v1030_v16 = vld [vmem:[%s1398_s24 + $0xe0] sm:$0xff]  ;;  %v1029_v20 = vld [vmem:[%s1398_s24 + $0xd8] sm:$0xff]  ;;  %v1028_v24 = vld [vmem:[%s1398_s24 + $0xd0] sm:$0xff] }
  0x45   : > { %663 = vmatpush.bf16.msra.mxu3 %v1032_v8  ;;  %v1003_v25 = vld [vmem:[%s1398_s24 + $0x8] sm:$0xff]  ;;  %v1002_v29 = vld [vmem:[%s1398_s24] sm:$0xff]  ;;  %v273_v37 = vld [vmem:[%s1383_s23 + $0x10] sm:$0xff] }
  0x46   : > { %577 = vmatpush.bf16.msra.mxu0 %v1007_v9  ;;  %v1011_v26 = vld [vmem:[%s1398_s24 + $0x48] sm:$0xff]  ;;  %v1010_v30 = vld [vmem:[%s1398_s24 + $0x40] sm:$0xff]  ;;  %v277_v38 = vld [vmem:[%s1383_s23 + $0x30] sm:$0xff] }
  0x47   : > { %606 = vmatpush.bf16.msra.mxu1 %v1015_v10  ;;  %v1019_v27 = vld [vmem:[%s1398_s24 + $0x88] sm:$0xff]  ;;  %v1018_v31 = vld [vmem:[%s1398_s24 + $0x80] sm:$0xff]  ;;  %v274_v39 = vld [vmem:[%s1383_s23 + $0x18] sm:$0xff]  ;;  %v305_v43 = vpack.c.bf16 %v277_v38, %v273_v37 }
  0x48   : > { %635 = vmatpush.bf16.msra.mxu2 %v1023_v11  ;;  %v1027_v28 = vld [vmem:[%s1398_s24 + $0xc8] sm:$0xff]  ;;  %v1026_v32 = vld [vmem:[%s1398_s24 + $0xc0] sm:$0xff]  ;;  %v278_v40 = vld [vmem:[%s1383_s23 + $0x38] sm:$0xff] }
  0x49   : > { %664 = vmatpush.bf16.msra.mxu3 %v1031_v12  ;;  %v271_v33 = vld [vmem:[%s1383_s23] sm:$0xff]  ;;  %v272_v35 = vld [vmem:[%s1383_s23 + $0x8] sm:$0xff]  ;;  %v306_v44 = vpack.c.bf16 %v278_v40, %v274_v39  ;;  %v281_v49 = vld [vmem:[%s1383_s23 + $0x50] sm:$0xff] }
  0x4a   : > { %578 = vmatpush.bf16.msra.mxu0 %v1006_v13  ;;  %v275_v34 = vld [vmem:[%s1383_s23 + $0x20] sm:$0xff]  ;;  %v276_v36 = vld [vmem:[%s1383_s23 + $0x28] sm:$0xff]  ;;  %v285_v50 = vld [vmem:[%s1383_s23 + $0x70] sm:$0xff] }
  0x4b   : > { %607 = vmatpush.bf16.msra.mxu1 %v1014_v14  ;;  %v303_v41 = vpack.c.bf16 %v275_v34, %v271_v33  ;;  %v304_v42 = vpack.c.bf16 %v276_v36, %v272_v35  ;;  %v279_v45 = vld [vmem:[%s1383_s23 + $0x40] sm:$0xff]  ;;  %v280_v47 = vld [vmem:[%s1383_s23 + $0x48] sm:$0xff]  ;;  %v282_v51 = vld [vmem:[%s1383_s23 + $0x58] sm:$0xff]  ;;  %v309_v55 = vpack.c.bf16 %v285_v50, %v281_v49 }
  0x4c   : > { %636 = vmatpush.bf16.msra.mxu2 %v1022_v15  ;;  %v283_v46 = vld [vmem:[%s1383_s23 + $0x60] sm:$0xff]  ;;  %v284_v48 = vld [vmem:[%s1383_s23 + $0x68] sm:$0xff]  ;;  %v286_v52 = vld [vmem:[%s1383_s23 + $0x78] sm:$0xff] }
  0x4d   : > { %665 = vmatpush.bf16.msra.mxu3 %v1030_v16  ;;  %v307_v53 = vpack.c.bf16 %v283_v46, %v279_v45  ;;  %v308_v54 = vpack.c.bf16 %v284_v48, %v280_v47  ;;  %v310_v56 = vpack.c.bf16 %v286_v52, %v282_v51  ;;  %v287_v57 = vld [vmem:[%s1383_s23 + $0x80] sm:$0xff]  ;;  %v288_v59 = vld [vmem:[%s1383_s23 + $0x88] sm:$0xff]  ;;  %v289_v61 = vld [vmem:[%s1383_s23 + $0x90] sm:$0xff] }
  0x4e   : > { %579 = vmatpush.bf16.msra.mxu0 %v1005_v17  ;;  %v291_v58 = vld [vmem:[%s1383_s23 + $0xa0] sm:$0xff]  ;;  %v292_v60 = vld [vmem:[%s1383_s23 + $0xa8] sm:$0xff]  ;;  %v293_v62 = vld [vmem:[%s1383_s23 + $0xb0] sm:$0xff] }
  0x4f   : > { %608 = vmatpush.bf16.msra.mxu1 %v1013_v18  ;;  %v290_v63 = vld [vmem:[%s1383_s23 + $0x98] sm:$0xff]  ;;  %v311_v1 = vpack.c.bf16 %v291_v58, %v287_v57  ;;  %v312_v2 = vpack.c.bf16 %v292_v60, %v288_v59  ;;  %v313_v3 = vpack.c.bf16 %v293_v62, %v289_v61  ;;  %v295_v5 = vld [vmem:[%s1383_s23 + $0xc0] sm:$0xff]  ;;  %v296_v7 = vld [vmem:[%s1383_s23 + $0xc8] sm:$0xff] }
  0x50   : > { %637 = vmatpush.bf16.msra.mxu2 %v1021_v19  ;;  %v294_v0 = vld [vmem:[%s1383_s23 + $0xb8] sm:$0xff]  ;;  %v299_v6 = vld [vmem:[%s1383_s23 + $0xe0] sm:$0xff]  ;;  %v300_v8 = vld [vmem:[%s1383_s23 + $0xe8] sm:$0xff] }
  0x51   : > { %666 = vmatpush.bf16.msra.mxu3 %v1029_v20  ;;  %v314_v4 = vpack.c.bf16 %v294_v0, %v290_v63  ;;  %v297_v9 = vld [vmem:[%s1383_s23 + $0xd0] sm:$0xff]  ;;  %v298_v11 = vld [vmem:[%s1383_s23 + $0xd8] sm:$0xff]  ;;  %v315_v13 = vpack.c.bf16 %v299_v6, %v295_v5  ;;  %v316_v14 = vpack.c.bf16 %v300_v8, %v296_v7  ;;  %v264_v34 = vld [vmem:[#allocation2 + $0x8] sm:$0xff] }
  0x52   : > { %580 = vmatpush.bf16.msra.mxu0 %v1004_v21  ;;  %v301_v10 = vld [vmem:[%s1383_s23 + $0xf0] sm:$0xff]  ;;  %v302_v12 = vld [vmem:[%s1383_s23 + $0xf8] sm:$0xff]  ;;  %v267_v61 = vld [vmem:[#allocation2 + $0x20] sm:$0xff] }
  0x53   : > { %609 = vmatpush.bf16.msra.mxu1 %v1012_v22  ;;  %v317_v15 = vpack.c.bf16 %v301_v10, %v297_v9  ;;  %v318_v16 = vpack.c.bf16 %v302_v12, %v298_v11  ;;  %v266_v52 = vld [vmem:[#allocation2 + $0x18] sm:$0xff] }
  0x54   : > { %638 = vmatpush.bf16.msra.mxu2 %v1020_v23 }
  0x55   : > { %667 = vmatpush.bf16.msra.mxu3 %v1028_v24 }
  0x56   : > { %581 = vmatpush.bf16.msra.mxu0 %v1003_v25  ;;  %v263_v25 = vld [vmem:[#allocation2] sm:$0xff] }
  0x57   : > { %610 = vmatpush.bf16.msra.mxu1 %v1011_v26 }
  0x58   : > { %639 = vmatpush.bf16.msra.mxu2 %v1019_v27 }
  0x59   : > { %668 = vmatpush.bf16.msra.mxu3 %v1027_v28 }
  0x5a   : > { %582 = vmatpush.bf16.msra.mxu0 %v1002_v29 }
  0x5b   : > { %611 = vmatpush.bf16.msra.mxu1 %v1010_v30 }
  0x5c   : > { %640 = vmatpush.bf16.msra.mxu2 %v1018_v31 }
  0x5d   : > { %669 = vmatpush.bf16.msra.mxu3 %v1026_v32  ;;  %583 = vmatmul.bf16.vlgmr.msra.gmra.mxu0 %v303_v41 }
  0x5e   : > { %612 = vmatmul.bf16.vlgmr.msra.gmra.mxu1 %v304_v42 }
  0x5f   : > { %641 = vmatmul.bf16.vlgmr.msra.gmra.mxu2 %v305_v43  ;;  %v265_v43 = vld [vmem:[#allocation2 + $0x10] sm:$0xff] }
  0x60   : > { %670 = vmatmul.bf16.vlgmr.msra.gmra.mxu3 %v306_v44 }
  0x6d   : > { %588 = vmatmul.bf16.gmra.mxu0 %v307_v53 }
  0x6e   : > { %617 = vmatmul.bf16.gmra.mxu1 %v308_v54 }
  0x6f   : > { %646 = vmatmul.bf16.gmra.mxu2 %v309_v55 }
  0x70   : > { %675 = vmatmul.bf16.gmra.mxu3 %v310_v56 }
  0x7d   : > { %593 = vmatmul.bf16.gmra.mxu0 %v311_v1 }
  0x7e   : > { %622 = vmatmul.bf16.gmra.mxu1 %v312_v2 }
  0x7f   : > { %651 = vmatmul.bf16.gmra.mxu2 %v313_v3 }
  0x80   : > { %680 = vmatmul.bf16.gmra.mxu3 %v314_v4  ;;  %v268_v4 = vld [vmem:[#allocation2 + $0x28] sm:$0xff] }
  0x8d   : > { %598 = vmatmul.bf16.gmra.mxu0 %v315_v13  ;;  %v269_v13 = vld [vmem:[#allocation2 + $0x30] sm:$0xff] }
  0x8e   : > { %627 = vmatmul.bf16.gmra.mxu1 %v316_v14 }
  0x8f   : > { %656 = vmatmul.bf16.gmra.mxu2 %v317_v15 }
  0x90   : > { %685 = vmatmul.bf16.gmra.mxu3 %v318_v16 }
  0xda   : > { %v584_v17 = vpop.f32.mrf.mxu0 }
  0xdb   : > { %v613_v18 = vpop.f32.mrf.mxu1 }
  0xdc   : > { %v614_v19 = vadd.f32 %v613_v18, %v584_v17 }
  0xe2   : > { %v642_v20 = vpop.f32.mrf.mxu2  ;;  %v586_v23 = vpop.f32.mrf.mxu0 }
  0xe3   : > { %v671_v21 = vpop.f32.mrf.mxu3  ;;  %v643_v22 = vadd.f32 %v642_v20, %v614_v19  ;;  %v615_v24 = vpop.f32.mrf.mxu1 }
  0xe4   : > { %v616_v28 = vadd.f32 %v615_v24, %v586_v23 }
  0xe5   : > { %v672_v26 = vadd.f32 %v671_v21, %v643_v22  ;;  %v270_v21 = vld [vmem:[#allocation2 + $0x38] sm:$0xff] }
  0xe7   : > { %v691_v27 = vadd.f32 %v672_v26, %v263_v25 }
  0xe9   : > { %700 = vst.msk [vmem:[#allocation2] sm:$0xff] %vm699_vm1, %v691_v27 }
  0xea   : > { %v644_v29 = vpop.f32.mrf.mxu2  ;;  %v589_v32 = vpop.f32.mrf.mxu0 }
  0xeb   : > { %v673_v30 = vpop.f32.mrf.mxu3  ;;  %v645_v31 = vadd.f32 %v644_v29, %v616_v28  ;;  %v618_v33 = vpop.f32.mrf.mxu1 }
  0xec   : > { %v619_v37 = vadd.f32 %v618_v33, %v589_v32 }
  0xed   : > { %v674_v35 = vadd.f32 %v673_v30, %v645_v31 }
  0xef   : > { %v692_v36 = vadd.f32 %v674_v35, %v264_v34 }
  0xf1   : > { %701 = vst.msk [vmem:[#allocation2 + $0x8] sm:$0xff] %vm699_vm1, %v692_v36 }
  0xf2   : > { %v647_v38 = vpop.f32.mrf.mxu2  ;;  %v591_v41 = vpop.f32.mrf.mxu0 }
  0xf3   : > { %v676_v39 = vpop.f32.mrf.mxu3  ;;  %v648_v40 = vadd.f32 %v647_v38, %v619_v37  ;;  %v620_v42 = vpop.f32.mrf.mxu1 }
  0xf4   : > { %v621_v46 = vadd.f32 %v620_v42, %v591_v41 }
  0xf5   : > { %v677_v44 = vadd.f32 %v676_v39, %v648_v40 }
  0xf7   : > { %v693_v45 = vadd.f32 %v677_v44, %v265_v43 }
  0xf9   : > { %702 = vst.msk [vmem:[#allocation2 + $0x10] sm:$0xff] %vm699_vm1, %v693_v45 }
  0xfa   : > { %v649_v47 = vpop.f32.mrf.mxu2  ;;  %v594_v50 = vpop.f32.mrf.mxu0 }
  0xfb   : > { %v678_v48 = vpop.f32.mrf.mxu3  ;;  %v650_v49 = vadd.f32 %v649_v47, %v621_v46  ;;  %v623_v51 = vpop.f32.mrf.mxu1 }
  0xfc   : > { %v624_v55 = vadd.f32 %v623_v51, %v594_v50 }
  0xfd   : > { %v679_v53 = vadd.f32 %v678_v48, %v650_v49 }
  0xff   : > { %v694_v54 = vadd.f32 %v679_v53, %v266_v52 }
 0x101   : > { %703 = vst.msk [vmem:[#allocation2 + $0x18] sm:$0xff] %vm699_vm1, %v694_v54 }
 0x102   : > { %v652_v56 = vpop.f32.mrf.mxu2  ;;  %v596_v59 = vpop.f32.mrf.mxu0 }
 0x103   : > { %v681_v57 = vpop.f32.mrf.mxu3  ;;  %v653_v58 = vadd.f32 %v652_v56, %v624_v55  ;;  %v625_v60 = vpop.f32.mrf.mxu1 }
 0x104   : > { %v626_v0 = vadd.f32 %v625_v60, %v596_v59 }
 0x105   : > { %v682_v62 = vadd.f32 %v681_v57, %v653_v58 }
 0x107   : > { %v695_v63 = vadd.f32 %v682_v62, %v267_v61 }
 0x109   : > { %704 = vst.msk [vmem:[#allocation2 + $0x20] sm:$0xff] %vm699_vm1, %v695_v63 }
 0x10a   : > { %v654_v1 = vpop.f32.mrf.mxu2  ;;  %v599_v5 = vpop.f32.mrf.mxu0 }
 0x10b   : > { %v683_v2 = vpop.f32.mrf.mxu3  ;;  %v655_v3 = vadd.f32 %v654_v1, %v626_v0  ;;  %v628_v6 = vpop.f32.mrf.mxu1 }
 0x10c   : > { %v629_v9 = vadd.f32 %v628_v6, %v599_v5 }
 0x10d   : > { %v684_v7 = vadd.f32 %v683_v2, %v655_v3 }
 0x10f   : > { %v696_v8 = vadd.f32 %v684_v7, %v268_v4 }
 0x111   : > { %705 = vst.msk [vmem:[#allocation2 + $0x28] sm:$0xff] %vm699_vm1, %v696_v8 }
 0x112   : > { %v657_v10 = vpop.f32.mrf.mxu2  ;;  %v601_v15 = vpop.f32.mrf.mxu0 }
 0x113   : > { %v686_v11 = vpop.f32.mrf.mxu3  ;;  %v658_v12 = vadd.f32 %v657_v10, %v629_v9  ;;  %v630_v16 = vpop.f32.mrf.mxu1 }
 0x114   : > { %v631_v18 = vadd.f32 %v630_v16, %v601_v15 }
 0x115   : > { %v687_v14 = vadd.f32 %v686_v11, %v658_v12 }
 0x117   : > { %v697_v17 = vadd.f32 %v687_v14, %v269_v13 }
 0x119   : > { %706 = vst.msk [vmem:[#allocation2 + $0x30] sm:$0xff] %vm699_vm1, %v697_v17 }
 0x11a   : > { %v659_v19 = vpop.f32.mrf.mxu2 }
 0x11b   : > { %v660_v20 = vadd.f32 %v659_v19, %v631_v18  ;;  %v688_v22 = vpop.f32.mrf.mxu3 }
 0x11d   : > { %v689_v23 = vadd.f32 %v688_v22, %v660_v20  ;;  %711 = sbr.rel (%p998_p5) target bundleno = 304 (0x130), region = 48 }
 0x11f   : > { %v698_v24 = vadd.f32 %v689_v23, %v270_v21 }
 0x121   : > { %707 = vst.msk [vmem:[#allocation2 + $0x38] sm:$0xff] %vm699_vm1, %v698_v24 }
 0x122   : > { %v712_v25 = vld [vmem:[#allocation2] sm:$0xff]  ;;  %v713_v27 = vld [vmem:[#allocation2 + $0x8] sm:$0xff]  ;;  %v714_v28 = vld [vmem:[#allocation2 + $0x10] sm:$0xff] }
 0x123   : > { %v1120_v26 = vld [vmem:[#allocation5] ss:$0 sm:$0xff]  ;;  %v715_v29 = vld [vmem:[#allocation2 + $0x18] sm:$0xff]  ;;  %v717_v35 = vld [vmem:[#allocation2 + $0x28] sm:$0xff] }
 0x124   : > { %v724_v30 = vadd.f32 %v1120_v26, %v712_v25  ;;  %v725_v31 = vadd.f32 %v1120_v26, %v713_v27  ;;  %v726_v32 = vadd.f32 %v1120_v26, %v714_v28  ;;  %v727_v33 = vadd.f32 %v1120_v26, %v715_v29  ;;  %v716_v34 = vld [vmem:[#allocation2 + $0x20] sm:$0xff]  ;;  %v718_v36 = vld [vmem:[#allocation2 + $0x30] sm:$0xff] }
 0x125   : > { %v728_v37 = vadd.f32 %v1120_v26, %v716_v34  ;;  %v729_v38 = vadd.f32 %v1120_v26, %v717_v35  ;;  %v730_v43 = vadd.f32 %v1120_v26, %v718_v36 }
 0x126   : > { %v732_v40 = vmax.f32 %v724_v30, 0.0  ;;  %v733_v41 = vmax.f32 %v725_v31, 0.0  ;;  %v734_v42 = vmax.f32 %v726_v32, 0.0  ;;  %v735_v44 = vmax.f32 %v727_v33, 0.0 }
 0x127   : > { %v736_v46 = vmax.f32 %v728_v37, 0.0  ;;  %v737_v47 = vmax.f32 %v729_v38, 0.0  ;;  %v738_v48 = vmax.f32 %v730_v43, 0.0 }
 0x128   : > { %v719_v39 = vld [vmem:[#allocation2 + $0x38] sm:$0xff]  ;;  %740 = vst.msk [vmem:[%s1403_s22] sm:$0xff] %vm699_vm1, %v732_v40 }
 0x129   : > { %v731_v45 = vadd.f32 %v1120_v26, %v719_v39  ;;  %741 = vst.msk [vmem:[%s1403_s22 + $0x8] sm:$0xff] %vm699_vm1, %v733_v41 }
 0x12a   : > { %742 = vst.msk [vmem:[%s1403_s22 + $0x10] sm:$0xff] %vm699_vm1, %v734_v42 }
 0x12b   : > { %743 = vst.msk [vmem:[%s1403_s22 + $0x18] sm:$0xff] %vm699_vm1, %v735_v44  ;;  %v739_v49 = vmax.f32 %v731_v45, 0.0 }
 0x12c   : > { %744 = vst.msk [vmem:[%s1403_s22 + $0x20] sm:$0xff] %vm699_vm1, %v736_v46 }
 0x12d   : > { %745 = vst.msk [vmem:[%s1403_s22 + $0x28] sm:$0xff] %vm699_vm1, %v737_v47 }
 0x12e   : > { %746 = vst.msk [vmem:[%s1403_s22 + $0x30] sm:$0xff] %vm699_vm1, %v738_v48 }
 0x12f   : > { %747 = vst.msk [vmem:[%s1403_s22 + $0x38] sm:$0xff] %vm699_vm1, %v739_v49 }
 0x130 PF: > { %s1539_s15 = sld [smem:[#allocation10_spill]]  ;;  %s1542_s12 = smov %s1227_s13 }
 0x131   : > { %s1541_s25 = sld [smem:[#allocation11_spill]]  ;;  %s1543_s13 = smov %s1231_s14 }
 0x132   : > { %s1544_s14 = smov %s1376_s17  ;;  %s1545_s16 = smov %s1247_s18 }
 0x133   : > { %s1547_s18 = smov %s1553_s6 }
 0x136   : > { %s17_s19 = sadd.s32 1, %s1539_s15   ;;  %s1540_s15 = sld [smem:[#allocation9_spill]] }
 0x137   : > { %p14_p6 = scmp.ge.s32.totalorder %s17_s19, 6   ;;  %s1546_s17 = smov %s1541_s25 }
 0x139   :  { %16 = sbr.rel (!%p14_p6) target bundleno = 9 (0x9), region = 87 }
 0x13e   :  { %770 = vsyncpa [#allocation4], 1 }
 0x13f   :  { %772 = vsyncpa [#allocation4 + $0x1], 1 }
 0x140   :  { %773 = vsyncpa [#allocation6], 1 }

// kernel: trans_att_forward.8
= control target key start
LH: loop header
LB: loop body
LE: loop exit
PB: predicated region body
PF: predicated region fallthrough
CT: control target
= control target key end

     0   :  { %s988_s24 = smov 0   ;;  %s1283_s0 = inlined_call_operand.vmem [shape: f32[128,32], index: 0, kind: input, shape index: {}]   ;;  %s1284_s1 = inlined_call_operand.vmem [shape: f32[1,32], index: 1, kind: input, shape index: {}]   ;;  %s1285_s2 = inlined_call_operand.vmem [shape: f32[1,32], index: 2, kind: input, shape index: {}]   ;;  %s1286_s3 = inlined_call_operand.vmem [shape: bf16[32,128], index: 3, kind: input, shape index: {}]   ;;  %s1287_s4 = inlined_call_operand.vmem [shape: f32[1,128], index: 4, kind: input, shape index: {}]   ;;  %s1288_s5 = inlined_call_operand.vmem [shape: bf16[128,32], index: 5, kind: input, shape index: {}]   ;;  %s1289_s6 = inlined_call_operand.vmem [shape: f32[1,32], index: 6, kind: input, shape index: {}]   ;;  %s1290_s7 = inlined_call_operand.vmem [shape: f32[128,32], index: 7, kind: output, shape index: {}]  }
   0x1 LB: > { %s809_s25 = sadd.s32 4294967295, %s945_s24   ;;  %p813_p0 = scmp.ge.s32.totalorder %s945_s24, 1  ;;  %s945_s24 = sphi %s988_s24, %s17_s24  }
   0x2   : > { %p238_p1 = scmp.lt.s32.totalorder %s945_s24, 3 }
   0x4   : > { %p239_p2 = pnand %p813_p0, %p238_p1 }
   0x5   : > { %s814_s26 = sshll.u32 (!%p239_p2), %s809_s25, 3 }
   0x6   : > { %242 = sbr.rel (%p239_p2) target bundleno = 637 (0x27d), region = 48  ;;  %p271_p3 = scmp.lt.s32.totalorder (!%p239_p2), %s814_s26, 15 }
   0xb   : > { %s1298_s26 = smov (!%p271_p3, %s814_s26), 15  ;;  %vm291_vm0 = vcmask 261120   ;;  %v947_v16 = vmov 32.0  }
   0xc   : > { %s815_s27 = sshll.u32 %s1298_s26, 3  ;;  %905 = vrcp.f32 %v947_v16 }
   0xd   : > { %s274_s30 = scalar_lea.vmem %s1283_s0, %s815_s27  ;;  %s280_s18 = scalar_lea.vmem %s1290_s7, %s815_s27 }
   0xe   : > { %v1004_v0 = vld [vmem:[%s274_s30 + $0x30] sm:$0xff]  ;;  %v1006_v1 = vld [vmem:[%s274_s30 + $0x20] sm:$0xff]  ;;  %v1016_v6 = vld [vmem:[%s274_s30 + $0x38] sm:$0xff] }
   0xf   : > { %v1008_v2 = vld [vmem:[%s274_s30 + $0x10] sm:$0xff]  ;;  %v310_v3 = vsel %vm291_vm0, %v1004_v0, 0.0  ;;  %v304_v4 = vsel %vm291_vm0, %v1006_v1, 0.0  ;;  %v1018_v7 = vld [vmem:[%s274_s30 + $0x28] sm:$0xff]  ;;  %v1020_v8 = vld [vmem:[%s274_s30 + $0x18] sm:$0xff]  ;;  %v313_v9 = vsel %vm291_vm0, %v1016_v6, 0.0 }
  0x10   : > { %v298_v5 = vsel %vm291_vm0, %v1008_v2, 0.0  ;;  %311 = vadd.xlane.f32.xlu2 %v310_v3  ;;  %305 = vadd.xlane.f32.xlu1 %v304_v4  ;;  %v307_v10 = vsel %vm291_vm0, %v1018_v7, 0.0  ;;  %v301_v11 = vsel %vm291_vm0, %v1020_v8, 0.0  ;;  %v1028_v12 = vld [vmem:[%s274_s30 + $0x8] sm:$0xff]  ;;  %v1030_v13 = vld [vmem:[%s274_s30] sm:$0xff] }
  0x11   : > { %299 = vadd.xlane.f32.xlu0 %v298_v5  ;;  %v295_v14 = vsel %vm291_vm0, %v1028_v12, 0.0  ;;  %v292_v15 = vsel %vm291_vm0, %v1030_v13, 0.0  ;;  %v865_v5 = vld [vmem:[%s1286_s3 + $0x8] sm:$0xff] }
  0x12   : > { %v906_v17 = vpop.eup %905  ;;  %874 = vmatpush.bf16.msra.mxu3 %v865_v5  ;;  %541 = vmatpush.bf16.msra.mxu0 %v865_v5 }
  0x13   : > { %v317_v18 = vmul.f32 32.0, %v906_v17  ;;  %vm321_vm1 = vweird.f32 %v906_v17 }
  0x15   : > { %v318_v19 = vsub.f32 1.0, %v317_v18 }
  0x17   : > { %v319_v20 = vmul.f32 %v906_v17, %v318_v19 }
  0x18   : > { %314 = vadd.xlane.f32.xlu2 %v313_v9  ;;  %308 = vadd.xlane.f32.xlu1 %v307_v10 }
  0x19   : > { %302 = vadd.xlane.f32.xlu0 %v301_v11  ;;  %v320_v21 = vadd.f32 %v906_v17, %v319_v20  ;;  %v864_v11 = vld [vmem:[%s1286_s3] sm:$0xff] }
  0x1a   : > { %875 = vmatpush.bf16.msra.mxu3 %v864_v11  ;;  %542 = vmatpush.bf16.msra.mxu0 %v864_v11 }
  0x1b   : > { %v1036_v22 = vsel %vm321_vm1, %v906_v17, %v320_v21 }
  0x20   : > { %296 = vadd.xlane.f32.xlu1 %v295_v14 }
  0x21   : > { %293 = vadd.xlane.f32.xlu0 %v292_v15 }
  0x83   : > { %v312_v23 = vpop.xlane.xlu2 %311  ;;  %v306_v24 = vpop.xlane.xlu1 %305 }
  0x84   : > { %v327_v25 = vmul.f32 %v1036_v22, %v306_v24  ;;  %v300_v26 = vpop.xlane.xlu0 %299  ;;  %v329_v39 = vmul.f32 %v1036_v22, %v312_v23 }
  0x85   : > { %v325_v27 = vmul.f32 %v1036_v22, %v300_v26 }
  0x86   : > { %v1041_v28 = vsub.f32 %v1006_v1, %v327_v25  ;;  %v1070_v46 = vsub.f32 %v1004_v0, %v329_v39 }
  0x87   : > { %v1044_v29 = vsub.f32 %v1008_v2, %v325_v27 }
  0x88   : > { %v343_v30 = vmul.f32 %v1041_v28, %v1041_v28  ;;  %v345_v55 = vmul.f32 %v1070_v46, %v1070_v46 }
  0x89   : > { %v341_v31 = vmul.f32 %v1044_v29, %v1044_v29 }
  0x8a   : > { %v359_v32 = vsel %vm291_vm0, %v343_v30, 0.0  ;;  %v365_v58 = vsel %vm291_vm0, %v345_v55, 0.0 }
  0x8b   : > { %v315_v33 = vpop.xlane.xlu2 %314  ;;  %v309_v34 = vpop.xlane.xlu1 %308  ;;  %v353_v35 = vsel %vm291_vm0, %v341_v31, 0.0  ;;  %360 = vadd.xlane.f32.xlu1 %v359_v32 }
  0x8c   : > { %v330_v36 = vmul.f32 %v1036_v22, %v315_v33  ;;  %v328_v37 = vmul.f32 %v1036_v22, %v309_v34  ;;  %354 = vadd.xlane.f32.xlu2 %v353_v35  ;;  %v303_v38 = vpop.xlane.xlu0 %302 }
  0x8d   : > { %v326_v40 = vmul.f32 %v1036_v22, %v303_v38 }
  0x8e   : > { %v1057_v41 = vsub.f32 %v1016_v6, %v330_v36  ;;  %v1060_v42 = vsub.f32 %v1018_v7, %v328_v37 }
  0x8f   : > { %v1063_v43 = vsub.f32 %v1020_v8, %v326_v40 }
  0x90   : > { %v344_v44 = vmul.f32 %v1060_v42, %v1060_v42  ;;  %v346_v45 = vmul.f32 %v1057_v41, %v1057_v41 }
  0x91   : > { %v342_v47 = vmul.f32 %v1063_v43, %v1063_v43 }
  0x92   : > { %v362_v48 = vsel %vm291_vm0, %v344_v44, 0.0  ;;  %v368_v49 = vsel %vm291_vm0, %v346_v45, 0.0 }
  0x93   : > { %369 = vadd.xlane.f32.xlu1 %v368_v49  ;;  %v356_v50 = vsel %vm291_vm0, %v342_v47, 0.0  ;;  %v297_v51 = vpop.xlane.xlu1 %296 }
  0x94   : > { %363 = vadd.xlane.f32.xlu2 %v362_v48  ;;  %357 = vadd.xlane.f32.xlu0 %v356_v50  ;;  %v294_v52 = vpop.xlane.xlu0 %293  ;;  %v324_v54 = vmul.f32 %v1036_v22, %v297_v51 }
  0x95   : > { %v323_v53 = vmul.f32 %v1036_v22, %v294_v52 }
  0x96   : > { %v1085_v57 = vsub.f32 %v1028_v12, %v324_v54 }
  0x97   : > { %v1082_v56 = vsub.f32 %v1030_v13, %v323_v53 }
  0x98   : > { %v340_v61 = vmul.f32 %v1085_v57, %v1085_v57 }
  0x99   : > { %v339_v59 = vmul.f32 %v1082_v56, %v1082_v56 }
  0x9a   : > { %v350_v62 = vsel %vm291_vm0, %v340_v61, 0.0 }
  0x9b   : > { %v347_v60 = vsel %vm291_vm0, %v339_v59, 0.0 }
  0x9c   : > { %366 = vadd.xlane.f32.xlu0 %v365_v58  ;;  %348 = vadd.xlane.f32.xlu2 %v347_v60 }
  0xa4   : > { %351 = vadd.xlane.f32.xlu0 %v350_v62 }
  0xfe   : > { %v361_v3 = vpop.xlane.xlu1 %360 }
  0xff   : > { %v355_v63 = vpop.xlane.xlu2 %354  ;;  %v375_v10 = vmul.f32 %v361_v3, %v1036_v22  ;;  %v1137_v3 = vld [vmem:[%s1284_s1] ss:$0 sm:$0xff] }
 0x100   : > { %v373_v4 = vmul.f32 %v355_v63, %v1036_v22 }
 0x101   : > { %v1102_v14 = vadd.f32 1e-05, %v375_v10 }
 0x102   : > { %v381_v9 = vadd.f32 1e-05, %v373_v4 }
 0x103   : > { %vm433_vm10 = vweird.f32 %v1102_v14 }
 0x104   : > { %907 = vrsqrt.f32 %v381_v9  ;;  %vm413_vm3 = vweird.f32 %v381_v9 }
 0x105   : > { %909 = vrsqrt.f32 %v1102_v14 }
 0x106   : > { %v370_v25 = vpop.xlane.xlu1 %369 }
 0x107   : > { %v364_v15 = vpop.xlane.xlu2 %363  ;;  %v358_v16 = vpop.xlane.xlu0 %357  ;;  %v378_v32 = vmul.f32 %v370_v25, %v1036_v22 }
 0x108   : > { %v376_v17 = vmul.f32 %v364_v15, %v1036_v22  ;;  %v374_v18 = vmul.f32 %v358_v16, %v1036_v22 }
 0x109   : > { %v1123_v45 = vadd.f32 1e-05, %v378_v32 }
 0x10a   : > { %v908_v19 = vpop.eup %907  ;;  %v1107_v20 = vadd.f32 1e-05, %v376_v17  ;;  %v382_v21 = vadd.f32 1e-05, %v374_v18  ;;  %v1149_v18 = vld [vmem:[%s1285_s2] ss:$0 sm:$0xff] }
 0x10b   : > { %v408_v23 = vmul.f32 %v908_v19, %v381_v9  ;;  %v1110_v31 = vpop.eup %909  ;;  %vm414_vm2 = vweird.f32 %v908_v19 }
 0x10c   : > { %911 = vrsqrt.f32 %v1107_v20  ;;  %v428_v39 = vmul.f32 %v1110_v31, %v1102_v14  ;;  %vm415_vm4 = vmor %vm413_vm3, %vm414_vm2  ;;  %vm423_vm6 = vweird.f32 %v382_v21  ;;  %vm443_vm8 = vweird.f32 %v1107_v20 }
 0x10d   : > { %v409_v24 = vmul.f32 %v908_v19, %v408_v23  ;;  %913 = vrsqrt.f32 %v382_v21  ;;  %vm434_vm11 = vweird.f32 %v1110_v31 }
 0x10e   : > { %v429_v51 = vmul.f32 %v1110_v31, %v428_v39  ;;  %vm1169_vm15 = vmor %vm433_vm10, %vm434_vm11 }
 0x10f   : > { %v410_v26 = vmul.f32 0.5, %v409_v24  ;;  %v349_v27 = vpop.xlane.xlu2 %348  ;;  %v367_v30 = vpop.xlane.xlu0 %366 }
 0x110   : > { %v371_v33 = vmul.f32 %v349_v27, %v1036_v22  ;;  %v377_v35 = vmul.f32 %v367_v30, %v1036_v22  ;;  %v430_v63 = vmul.f32 0.5, %v429_v51 }
 0x111   : > { %v411_v34 = vsub.f32 1.5, %v410_v26  ;;  %v866_v26 = vld [vmem:[%s1288_s5] sm:$0xff] }
 0x112   : > { %v1115_v36 = vpop.eup %911  ;;  %v1117_v37 = vadd.f32 1e-05, %v371_v33  ;;  %v1126_v48 = vadd.f32 1e-05, %v377_v35 }
 0x113   : > { %v914_v38 = vpop.eup %913  ;;  %v438_v40 = vmul.f32 %v1115_v36, %v1107_v20  ;;  %v412_v44 = vmul.f32 %v908_v19, %v411_v34  ;;  %vm444_vm9 = vweird.f32 %v1115_v36 }
 0x114   : > { %v418_v47 = vmul.f32 %v914_v38, %v382_v21  ;;  %915 = vrsqrt.f32 %v1117_v37  ;;  %vm424_vm5 = vweird.f32 %v914_v38  ;;  %vm393_vm12 = vweird.f32 %v1117_v37  ;;  %vm1161_vm14 = vmor %vm443_vm8, %vm444_vm9 }
 0x115   : > { %v439_v49 = vmul.f32 %v1115_v36, %v438_v40  ;;  %v416_v53 = vsel %vm415_vm4, %v908_v19, %v412_v44  ;;  %917 = vrsqrt.f32 %v1123_v45  ;;  %vm425_vm7 = vmor %vm423_vm6, %vm424_vm5  ;;  %vm453_vm5 = vweird.f32 %v1126_v48 }
 0x116   : > { %v419_v50 = vmul.f32 %v914_v38, %v418_v47  ;;  %919 = vrsqrt.f32 %v1126_v48  ;;  %v469_v62 = vmul.f32 %v416_v53, %v1044_v29  ;;  %v431_v29 = vsub.f32 1.5, %v430_v63 }
 0x117   : > { %v352_v52 = vpop.xlane.xlu0 %351  ;;  %v440_v58 = vmul.f32 0.5, %v439_v49 }
 0x118   : > { %v420_v54 = vmul.f32 0.5, %v419_v50  ;;  %v372_v55 = vmul.f32 %v352_v52, %v1036_v22  ;;  %v481_v17 = vmul.f32 %v1137_v3, %v469_v62  ;;  %v432_v20 = vmul.f32 %v1110_v31, %v431_v29 }
 0x119   : > { %v441_v9 = vsub.f32 1.5, %v440_v58 }
 0x11a   : > { %v421_v59 = vsub.f32 1.5, %v420_v54  ;;  %v380_v60 = vadd.f32 1e-05, %v372_v55  ;;  %v916_v61 = vpop.eup %915  ;;  %v493_v27 = vadd.f32 %v1149_v18, %v481_v17  ;;  %v436_v47 = vsel %vm1169_vm15, %v1110_v31, %v432_v20  ;;  %v1243_v20 = vld [vmem:[%s1287_s4] ss:$0 sm:$0xff] }
 0x11b   : > { %v388_v5 = vmul.f32 %v916_v61, %v1117_v37  ;;  %v1140_v22 = vpop.eup %917  ;;  %v442_v21 = vmul.f32 %v1115_v36, %v441_v9  ;;  %vm394_vm13 = vweird.f32 %v916_v61  ;;  %v471_v53 = vmul.f32 %v436_v47, %v1041_v28 }
 0x11c   : > { %v422_v4 = vmul.f32 %v914_v38, %v421_v59  ;;  %921 = vrsqrt.f32 %v380_v60  ;;  %v1142_v15 = vpop.eup %919  ;;  %v458_v14 = vmul.f32 %v1140_v22, %v1123_v45  ;;  %vm1175_vm1 = vmor %vm393_vm12, %vm394_vm13  ;;  %vm403_vm2 = vweird.f32 %v380_v60 }
 0x11d   : > { %v389_v11 = vmul.f32 %v916_v61, %v388_v5  ;;  %v448_v24 = vmul.f32 %v1142_v15, %v1126_v48  ;;  %v446_v39 = vsel %vm1161_vm14, %v1115_v36, %v442_v21  ;;  %v483_v63 = vmul.f32 %v1137_v3, %v471_v53 }
 0x11e   : > { %v426_v10 = vsel %vm425_vm7, %v914_v38, %v422_v4  ;;  %v459_v49 = vmul.f32 %v1140_v22, %v458_v14  ;;  %v472_v51 = vmul.f32 %v446_v39, %v1060_v42  ;;  %vm454_vm6 = vweird.f32 %v1142_v15 }
 0x11f   : > { %v470_v16 = vmul.f32 %v426_v10, %v1063_v43  ;;  %v390_v19 = vmul.f32 0.5, %v389_v11  ;;  %v449_v40 = vmul.f32 %v1142_v15, %v448_v24  ;;  %vm463_vm7 = vweird.f32 %v1123_v45  ;;  %vm455_vm9 = vmor %vm453_vm5, %vm454_vm6 }
 0x120   : > { %v460_v31 = vmul.f32 0.5, %v459_v49  ;;  %v484_v58 = vmul.f32 %v1137_v3, %v472_v51  ;;  %vm464_vm8 = vweird.f32 %v1140_v22  ;;  %v495_v9 = vadd.f32 %v1149_v18, %v483_v63 }
 0x121   : > { %v482_v43 = vmul.f32 %v1137_v3, %v470_v16  ;;  %v391_v23 = vsub.f32 1.5, %v390_v19  ;;  %v450_v36 = vmul.f32 0.5, %v449_v40  ;;  %vm465_vm10 = vmor %vm463_vm7, %vm464_vm8 }
 0x122   : > { %v922_v25 = vpop.eup %921  ;;  %v461_v42 = vsub.f32 1.5, %v460_v31 }
 0x123   : > { %v494_v30 = vadd.f32 %v1149_v18, %v482_v43  ;;  %v392_v33 = vmul.f32 %v916_v61, %v391_v23  ;;  %v398_v34 = vmul.f32 %v922_v25, %v380_v60  ;;  %vm404_vm3 = vweird.f32 %v922_v25 }
 0x124   : > { %vm405_vm4 = vmor %vm403_vm2, %vm404_vm3  ;;  %v451_v59 = vsub.f32 1.5, %v450_v36  ;;  %v462_v48 = vmul.f32 %v1140_v22, %v461_v42 }
 0x125   : > { %v500_v38 = vpack.c.bf16 %v494_v30, %v493_v27  ;;  %v399_v44 = vmul.f32 %v922_v25, %v398_v34  ;;  %v396_v37 = vsel %vm1175_vm1, %v916_v61, %v392_v33 }
 0x126   : > { %v467_v54 = vmul.f32 %v396_v37, %v1082_v56  ;;  %v496_v56 = vadd.f32 %v1149_v18, %v484_v58  ;;  %v452_v4 = vmul.f32 %v1142_v15, %v451_v59  ;;  %v466_v45 = vsel %vm465_vm10, %v1140_v22, %v462_v48  ;;  %v869_v22 = vld [vmem:[%s1288_s5 + $0x18] sm:$0xff] }
 0x127   : > { %827 = vmatmul.msk.bf16.vlgmr.msra.gmra.mxu3 %vm291_vm0, %v500_v38  ;;  %v400_v50 = vmul.f32 0.5, %v399_v44  ;;  %v474_v17 = vmul.f32 %v466_v45, %v1057_v41  ;;  %v872_v41 = vld [vmem:[%s1288_s5 + $0x30] sm:$0xff] }
 0x128   : > { %v479_v60 = vmul.f32 %v1137_v3, %v467_v54  ;;  %v501_v11 = vpack.c.bf16 %v496_v56, %v495_v9  ;;  %v456_v29 = vsel %vm455_vm9, %v1142_v15, %v452_v4  ;;  %v873_v15 = vld [vmem:[%s1288_s5 + $0x38] sm:$0xff] }
 0x129   : > { %v401_v52 = vsub.f32 1.5, %v400_v50  ;;  %v473_v16 = vmul.f32 %v456_v29, %v1070_v46  ;;  %v486_v43 = vmul.f32 %v1137_v3, %v474_v17  ;;  %876 = vmatpush.bf16.msra.mxu1 %v873_v15  ;;  %708 = vmatpush.bf16.msrb.mxu0 %v873_v15  ;;  %v871_v46 = vld [vmem:[%s1288_s5 + $0x28] sm:$0xff] }
 0x12a   : > { %877 = vmatpush.bf16.msra.mxu2 %v873_v15 }
 0x12b   : > { %v402_v55 = vmul.f32 %v922_v25, %v401_v52  ;;  %v485_v19 = vmul.f32 %v1137_v3, %v473_v16  ;;  %v498_v23 = vadd.f32 %v1149_v18, %v486_v43 }
 0x12d   : > { %v406_v62 = vsel %vm405_vm4, %v922_v25, %v402_v55  ;;  %v497_v21 = vadd.f32 %v1149_v18, %v485_v19  ;;  %878 = vmatpush.bf16.msra.mxu1 %v872_v41  ;;  %709 = vmatpush.bf16.msrb.mxu0 %v872_v41  ;;  %v867_v25 = vld [vmem:[%s1288_s5 + $0x8] sm:$0xff] }
 0x12e   : > { %v468_v61 = vmul.f32 %v406_v62, %v1085_v57  ;;  %v491_v57 = vadd.f32 %v1149_v18, %v479_v60  ;;  %879 = vmatpush.bf16.msra.mxu2 %v872_v41 }
 0x12f   : > { %v502_v24 = vpack.c.bf16 %v498_v23, %v497_v21 }
 0x130   : > { %v480_v28 = vmul.f32 %v1137_v3, %v468_v61  ;;  %v870_v3 = vld [vmem:[%s1288_s5 + $0x20] sm:$0xff] }
 0x131   : > { %880 = vmatpush.bf16.msra.mxu1 %v871_v46  ;;  %710 = vmatpush.bf16.msrb.mxu0 %v871_v46 }
 0x132   : > { %v492_v5 = vadd.f32 %v1149_v18, %v480_v28  ;;  %881 = vmatpush.bf16.msra.mxu2 %v871_v46  ;;  %v868_v18 = vld [vmem:[%s1288_s5 + $0x10] sm:$0xff] }
 0x134   : > { %v499_v10 = vpack.c.bf16 %v492_v5, %v491_v57 }
 0x135   : > { %882 = vmatpush.bf16.msra.mxu1 %v870_v3  ;;  %711 = vmatpush.bf16.msrb.mxu0 %v870_v3 }
 0x136   : > { %826 = vmatmul.msk.bf16.vlgmr.msra.gmra.mxu0 %vm291_vm0, %v499_v10  ;;  %883 = vmatpush.bf16.msra.mxu2 %v870_v3 }
 0x137   : > { %828 = vmatmul.msk.bf16.gmra.mxu3 %vm291_vm0, %v501_v11 }
 0x139   : > { %884 = vmatpush.bf16.msra.mxu1 %v869_v22  ;;  %712 = vmatpush.bf16.msrb.mxu0 %v869_v22 }
 0x13a   : > { %885 = vmatpush.bf16.msra.mxu2 %v869_v22 }
 0x13d   : > { %886 = vmatpush.bf16.msra.mxu1 %v868_v18  ;;  %713 = vmatpush.bf16.msrb.mxu0 %v868_v18 }
 0x13e   : > { %887 = vmatpush.bf16.msra.mxu2 %v868_v18 }
 0x141   : > { %888 = vmatpush.bf16.msra.mxu1 %v867_v25  ;;  %714 = vmatpush.bf16.msrb.mxu0 %v867_v25 }
 0x142   : > { %889 = vmatpush.bf16.msra.mxu2 %v867_v25 }
 0x145   : > { %890 = vmatpush.bf16.msra.mxu1 %v866_v26  ;;  %715 = vmatpush.bf16.msrb.mxu0 %v866_v26 }
 0x146   : > { %891 = vmatpush.bf16.msra.mxu2 %v866_v26 }
 0x147   : > { %829 = vmatmul.msk.bf16.gmra.mxu3 %vm291_vm0, %v502_v24 }
 0x1aa   : > { %v549_v14 = vpop.f32.mrf.mxu3 }
 0x1ab   : > { %v550_v27 = vadd.f32 %v1243_v20, %v549_v14 }
 0x1ad   : > { %v574_v30 = vmul.f32 0.044715, %v550_v27  ;;  %v566_v45 = vmul.f32 0.5, %v550_v27 }
 0x1af   : > { %v582_v32 = vmul.f32 %v574_v30, %v550_v27 }
 0x1b1   : > { %v590_v33 = vmul.f32 %v582_v32, %v550_v27 }
 0x1b2   : > { %v551_v34 = vpop.f32.mrf.mxu3 }
 0x1b3   : > { %v552_v35 = vadd.f32 %v1243_v20, %v551_v34  ;;  %v598_v38 = vadd.f32 %v590_v33, %v550_v27  ;;  %v544_v39 = vpop.f32.mrf.mxu0 }
 0x1b4   : > { %v545_v44 = vadd.f32 %v1243_v20, %v544_v39 }
 0x1b5   : > { %v575_v40 = vmul.f32 0.044715, %v552_v35  ;;  %v606_v37 = vmul.f32 0.7978846, %v598_v38  ;;  %v567_v16 = vmul.f32 0.5, %v552_v35 }
 0x1b6   : > { %v572_v47 = vmul.f32 0.044715, %v545_v44  ;;  %v564_v32 = vmul.f32 0.5, %v545_v44 }
 0x1b7   : > { %v583_v49 = vmul.f32 %v575_v40, %v552_v35  ;;  %923 = vtanh.f32 %v606_v37 }
 0x1b8   : > { %v580_v50 = vmul.f32 %v572_v47, %v545_v44 }
 0x1b9   : > { %v591_v51 = vmul.f32 %v583_v49, %v552_v35 }
 0x1ba   : > { %v554_v36 = vpop.f32.mrf.mxu3  ;;  %v588_v54 = vmul.f32 %v580_v50, %v545_v44 }
 0x1bb   : > { %v555_v52 = vadd.f32 %v1243_v20, %v554_v36  ;;  %v599_v53 = vadd.f32 %v591_v51, %v552_v35  ;;  %v546_v31 = vpop.f32.mrf.mxu0 }
 0x1bc   : > { %v547_v58 = vadd.f32 %v1243_v20, %v546_v31  ;;  %v596_v62 = vadd.f32 %v588_v54, %v545_v44 }
 0x1bd   : > { %v576_v55 = vmul.f32 0.044715, %v555_v52  ;;  %v607_v59 = vmul.f32 0.7978846, %v599_v53  ;;  %v924_v63 = vpop.eup %923  ;;  %v568_v54 = vmul.f32 0.5, %v555_v52 }
 0x1be   : > { %v573_v61 = vmul.f32 0.044715, %v547_v58  ;;  %v604_v28 = vmul.f32 0.7978846, %v596_v62  ;;  %v622_v9 = vadd.f32 1.0, %v924_v63  ;;  %v565_v33 = vmul.f32 0.5, %v547_v58 }
 0x1bf   : > { %925 = vtanh.f32 %v607_v59  ;;  %v584_v60 = vmul.f32 %v576_v55, %v555_v52 }
 0x1c0   : > { %v581_v42 = vmul.f32 %v573_v61, %v547_v58  ;;  %927 = vtanh.f32 %v604_v28  ;;  %v630_v23 = vmul.f32 %v622_v9, %v566_v45 }
 0x1c1   : > { %v592_v4 = vmul.f32 %v584_v60, %v555_v52 }
 0x1c2   : > { %v556_v56 = vpop.f32.mrf.mxu3  ;;  %v589_v5 = vmul.f32 %v581_v42, %v547_v58 }
 0x1c3   : > { %v557_v57 = vadd.f32 %v1243_v20, %v556_v56  ;;  %v600_v48 = vadd.f32 %v592_v4, %v555_v52 }
 0x1c4   : > { %v597_v29 = vadd.f32 %v589_v5, %v547_v58 }
 0x1c5   : > { %v926_v10 = vpop.eup %925  ;;  %v577_v11 = vmul.f32 0.044715, %v557_v57  ;;  %v608_v21 = vmul.f32 0.7978846, %v600_v48  ;;  %v569_v31 = vmul.f32 0.5, %v557_v57 }
 0x1c6   : > { %v623_v17 = vadd.f32 1.0, %v926_v10  ;;  %v605_v19 = vmul.f32 0.7978846, %v597_v29  ;;  %v928_v3 = vpop.eup %927  ;;  %v904_v10 = vld [vmem:[%s1289_s6] ss:$0 sm:$0xff] }
 0x1c7   : > { %v585_v43 = vmul.f32 %v577_v11, %v557_v57  ;;  %v620_v14 = vadd.f32 1.0, %v928_v3 }
 0x1c8   : > { %v631_v24 = vmul.f32 %v623_v17, %v567_v16  ;;  %929 = vtanh.f32 %v605_v19 }
 0x1c9   : > { %v593_v15 = vmul.f32 %v585_v43, %v557_v57  ;;  %931 = vtanh.f32 %v608_v21  ;;  %v628_v40 = vmul.f32 %v620_v14, %v564_v32 }
 0x1ca   : > { %v559_v41 = vpop.f32.mrf.mxu3  ;;  %v637_v46 = vpack.c.bf16 %v631_v24, %v630_v23 }
 0x1cb   : > { %v560_v22 = vadd.f32 %v1243_v20, %v559_v41  ;;  %v601_v18 = vadd.f32 %v593_v15, %v557_v57 }
 0x1cc   : > { %721 = vmatmul.bf16.vlgmr.msra.gmra.mxu1 %v637_v46 }
 0x1cd   : > { %v578_v25 = vmul.f32 0.044715, %v560_v22  ;;  %v609_v26 = vmul.f32 0.7978846, %v601_v18  ;;  %v570_v4 = vmul.f32 0.5, %v560_v22 }
 0x1ce   : > { %v930_v27 = vpop.eup %929 }
 0x1cf   : > { %933 = vtanh.f32 %v609_v26  ;;  %v586_v30 = vmul.f32 %v578_v25, %v560_v22  ;;  %v621_v34 = vadd.f32 1.0, %v930_v27  ;;  %v932_v35 = vpop.eup %931 }
 0x1d0   : > { %v624_v51 = vadd.f32 1.0, %v932_v35 }
 0x1d1   : > { %v594_v38 = vmul.f32 %v586_v30, %v560_v22  ;;  %v629_v47 = vmul.f32 %v621_v34, %v565_v33 }
 0x1d2   : > { %v561_v39 = vpop.f32.mrf.mxu3  ;;  %v632_v58 = vmul.f32 %v624_v51, %v568_v54 }
 0x1d3   : > { %v562_v49 = vadd.f32 %v1243_v20, %v561_v39  ;;  %v602_v37 = vadd.f32 %v594_v38, %v560_v22  ;;  %v636_v50 = vpack.c.bf16 %v629_v47, %v628_v40 }
 0x1d5   : > { %v934_v36 = vpop.eup %933  ;;  %v579_v53 = vmul.f32 0.044715, %v562_v49  ;;  %716 = vmatmul.bf16.vlgmr.msrb.gmra.mxu0 %v636_v50  ;;  %v610_v44 = vmul.f32 0.7978846, %v602_v37  ;;  %v571_v5 = vmul.f32 0.5, %v562_v49 }
 0x1d6   : > { %v625_v55 = vadd.f32 1.0, %v934_v36 }
 0x1d7   : > { %v587_v59 = vmul.f32 %v579_v53, %v562_v49  ;;  %935 = vtanh.f32 %v610_v44 }
 0x1d8   : > { %v633_v62 = vmul.f32 %v625_v55, %v569_v31 }
 0x1d9   : > { %v595_v61 = vmul.f32 %v587_v59, %v562_v49 }
 0x1da   : > { %v638_v60 = vpack.c.bf16 %v633_v62, %v632_v58 }
 0x1db   : > { %v603_v63 = vadd.f32 %v595_v61, %v562_v49 }
 0x1dc   : > { %726 = vmatmul.bf16.vlgmr.msra.gmra.mxu2 %v638_v60 }
 0x1dd   : > { %v611_v20 = vmul.f32 0.7978846, %v603_v63  ;;  %v936_v42 = vpop.eup %935 }
 0x1de   : > { %v626_v28 = vadd.f32 1.0, %v936_v42 }
 0x1df   : > { %937 = vtanh.f32 %v611_v20 }
 0x1e0   : > { %v634_v57 = vmul.f32 %v626_v28, %v570_v4 }
 0x1e5   : > { %v938_v56 = vpop.eup %937 }
 0x1e6   : > { %v627_v52 = vadd.f32 1.0, %v938_v56 }
 0x1e8   : > { %v635_v9 = vmul.f32 %v627_v52, %v571_v5 }
 0x1ea   : > { %v639_v48 = vpack.c.bf16 %v635_v9, %v634_v57 }
 0x1ec   : > { %731 = vmatmul.bf16.gmra.mxu2 %v639_v48 }
 0x249   : > { %v722_v11 = vpop.f32.mrf.mxu1 }
 0x24a   : > { %v723_v29 = vadd.f32 %v904_v10, %v722_v11 }
 0x24c   : > { %v739_v45 = vadd.f32 %v723_v29, %v1008_v2 }
 0x24e   : > { %747 = vst.msk [vmem:[%s280_s18 + $0x10] sm:$0xff] %vm291_vm0, %v739_v45 }
 0x251   : > { %v724_v16 = vpop.f32.mrf.mxu1 }
 0x252   : > { %v725_v17 = vadd.f32 %v904_v10, %v724_v16  ;;  %v717_v19 = vpop.f32.mrf.mxu0 }
 0x253   : > { %v718_v21 = vadd.f32 %v904_v10, %v717_v19 }
 0x254   : > { %v740_v43 = vadd.f32 %v725_v17, %v1020_v8 }
 0x255   : > { %v737_v23 = vadd.f32 %v718_v21, %v1030_v13 }
 0x256   : > { %748 = vst.msk [vmem:[%s280_s18 + $0x18] sm:$0xff] %vm291_vm0, %v740_v43 }
 0x257   : > { %745 = vst.msk [vmem:[%s280_s18] sm:$0xff] %vm291_vm0, %v737_v23 }
 0x25a   : > { %v719_v24 = vpop.f32.mrf.mxu0 }
 0x25b   : > { %v720_v15 = vadd.f32 %v904_v10, %v719_v24 }
 0x25d   : > { %v738_v41 = vadd.f32 %v720_v15, %v1028_v12 }
 0x25f   : > { %v727_v46 = vpop.f32.mrf.mxu2  ;;  %746 = vst.msk [vmem:[%s280_s18 + $0x8] sm:$0xff] %vm291_vm0, %v738_v41 }
 0x260   : > { %v728_v2 = vadd.f32 %v904_v10, %v727_v46 }
 0x262   : > { %v741_v3 = vadd.f32 %v728_v2, %v1006_v1 }
 0x264   : > { %749 = vst.msk [vmem:[%s280_s18 + $0x20] sm:$0xff] %vm291_vm0, %v741_v3 }
 0x267   : > { %v729_v8 = vpop.f32.mrf.mxu2 }
 0x268   : > { %v730_v22 = vadd.f32 %v904_v10, %v729_v8 }
 0x26a   : > { %v742_v18 = vadd.f32 %v730_v22, %v1018_v7 }
 0x26c   : > { %750 = vst.msk [vmem:[%s280_s18 + $0x28] sm:$0xff] %vm291_vm0, %v742_v18 }
 0x26f   : > { %v732_v13 = vpop.f32.mrf.mxu2 }
 0x270   : > { %v733_v25 = vadd.f32 %v904_v10, %v732_v13 }
 0x272   : > { %v743_v26 = vadd.f32 %v733_v25, %v1004_v0 }
 0x274   : > { %751 = vst.msk [vmem:[%s280_s18 + $0x30] sm:$0xff] %vm291_vm0, %v743_v26 }
 0x277   : > { %v734_v12 = vpop.f32.mrf.mxu2 }
 0x278   : > { %v735_v14 = vadd.f32 %v904_v10, %v734_v12 }
 0x27a   : > { %v744_v27 = vadd.f32 %v735_v14, %v1016_v6 }
 0x27c   : > { %752 = vst.msk [vmem:[%s280_s18 + $0x38] sm:$0xff] %vm291_vm0, %v744_v27 }
 0x27d PF: > { %s17_s24 = sadd.s32 1, %s945_s24  }
 0x27e   : > { %p14_p4 = scmp.ge.s32.totalorder %s17_s24, 4  }
 0x280   :  { %16 = sbr.rel (!%p14_p4) target bundleno = 1 (0x1), region = 78 }

// kernel: trans_att_forward.9
= control target key start
LH: loop header
LB: loop body
LE: loop exit
PB: predicated region body
PF: predicated region fallthrough
CT: control target
= control target key end

     0   :  { %s977_s0 = inlined_call_operand.vmem [shape: f32[2,64,32], index: 0, kind: input, shape index: {}]   ;;  %s978_s1 = inlined_call_operand.vmem [shape: f32[32,8], index: 1, kind: input, shape index: {}]   ;;  %s979_s2 = inlined_call_operand.vmem [shape: f32[1,8], index: 2, kind: input, shape index: {}]   ;;  %s980_s3 = inlined_call_operand.vmem [shape: f32[1,8], index: 3, kind: input, shape index: {}]   ;;  %s981_s4 = inlined_call_operand.<no memory space> [shape: f32[1,1], index: 4, kind: input, shape index: {}]   ;;  %s982_s5 = inlined_call_operand.vmem [shape: f32[32,3], index: 5, kind: input, shape index: {}]   ;;  %s983_s6 = inlined_call_operand.vmem [shape: f32[1,3], index: 6, kind: input, shape index: {}]   ;;  %s984_s7 = inlined_call_operand.hbm [shape: f32[2,1,64], index: 7, kind: output, shape index: {0}]   ;;  %s985_s8 = inlined_call_operand.vmem [shape: f32[2,1,3], index: 8, kind: output, shape index: {1}]  }
   0x1   :  { %986 = sst [smem:[#allocation6_spill]] %s977_s0  ;;  %v14_v0 = vstv %s981_s4 }
   0x2   :  { %987 = sst [smem:[#allocation7_spill]] %s978_s1  ;;  %15 = vst [vmem:[#allocation2] sm:$0x1] %v14_v0 }
   0x3   :  { %16 = vsyncpa [#allocation4], 0 }
   0x4   :  { %18 = vsyncpa [#allocation4 + $0x1], 0  ;;  %s831_s29 = smov 0   ;;  %s833_s30 = smov 0  }
   0x5   :  { %s835_s9 = smov 0   ;;  %s837_s10 = smov 0  }
   0x6 LB: > { %s852_s4 = sadd.s32 4294967295, %s780_s10   ;;  %s620_s11 = sadd.s32 4294967294, %s780_s10   ;;  %s780_s10 = sphi %s837_s10, %s995_s10   ;;  %s776_s9 = sphi %s835_s9, %s994_s9   ;;  %s772_s30 = sphi %s833_s30, %s993_s30   ;;  %s768_s29 = sphi %s831_s29, %s992_s29  }
   0x7   : > { %s856_s12 = sadd.s32 1, %s780_s10   ;;  %s183_s13 = sadd.s32 1, %s776_s9 }
   0x8   : > { %s180_s14 = ssub.s32 %s780_s10, %s856_s12  ;;  %p193_p0 = scmp.ne.s32.totalorder %s776_s9, %s772_s30 }
   0x9   : > { %p181_p1 = scmp.eq.s32.totalorder %s180_s14, 0  ;;  %p194_p2 = scmp.eq.s32.totalorder %s852_s4, 1 }
   0xa   : > { %p199_p3 = scmp.ne.s32.totalorder %s772_s30, %s768_s29  ;;  %p200_p4 = scmp.eq.s32.totalorder %s620_s11, 1 }
   0xb   : > { %s867_s15 = scalar_select %p181_p1, %s776_s9, %s183_s13  }
   0xc   : > { %p869_p5 = por %p194_p2, %p193_p0  ;;  %p873_p6 = por %p200_p4, %p199_p3 }
   0xd   : > { %p623_p7 = scmp.ge.s32.totalorder %s780_s10, 1  ;;  %p270_p8 = scmp.lt.s32.totalorder %s780_s10, 3 }
   0xf   : > { %p271_p9 = pnand %p623_p7, %p270_p8 }
  0x10   : > { %s990_s1 = sld [smem:[#allocation7_spill]] (!%p271_p9)  ;;  %p306_p10 = scmp.lt.s32.totalorder (!%p271_p9), %s852_s4, 1 }
  0x11   : > { %274 = sbr.rel (%p271_p9) target bundleno = 863 (0x35f), region = 48  ;;  %s991_s0 = sld [smem:[#allocation6_spill]] (!%p271_p9) }
  0x12   : > { %s539_s20 = scalar_lea.hbm (!%p271_p9), %s984_s7, %s852_s4  ;;  %s738_s11 = scalar_lea.hbm (!%p271_p9), %s984_s7, 2 }
  0x13   : > { %s543_s22 = sshll.u32 (!%p271_p9), %s539_s20, 4  ;;  %s544_s22 = int_to_ptr.hbm [resolvable:$true] %s543_s22 }
  0x14   : > { %s732_s25 = sshra.s32 (!%p271_p9), %s544_s22, 4  ;;  %s733_s25 = int_to_ptr.hbm [resolvable:$true] %s732_s25 }
  0x15   : > { %s734_s26 = scalar_lea.hbm (!%p271_p9), %s733_s25, 1  ;;  %p739_p0 = scmp.lt.s32.totalorder (!%p271_p9), %s733_s25, %s984_s7 }
  0x16   : > { %v325_v1 = vld [vmem:[%s990_s1 + $0x18] sm:$0xff]  ;;  %v324_v2 = vld [vmem:[%s990_s1 + $0x10] sm:$0xff]  ;;  %v323_v3 = vld [vmem:[%s990_s1 + $0x8] sm:$0xff]  ;;  %s890_s24 = scalar_select %p306_p10, %s852_s4, 1  ;;  %vm330_vm0 = vcmask 261120   ;;  %vm412_vm1 = vcmask 64512  }
  0x17   : > { %648 = vmatpush.msra.mxu2 %v325_v1  ;;  %367 = vmatpush.msra.mxu0 %v325_v1  ;;  %v322_v4 = vld [vmem:[%s990_s1] sm:$0xff]  ;;  %v782_v27 = vmov 0   ;;  %vm460_vm2 = vcmask 516096   ;;  %v500_v51 = vld [vmem:[%s982_s5 + $0x18] sm:$0xff]  ;;  %v499_v52 = vld [vmem:[%s982_s5 + $0x10] sm:$0xff]  ;;  %vm473_vm3 = vcmask 523264   ;;  %p735_p11 = scmp.ne.s32.totalorder %s733_s25, %s734_s26  ;;  %p740_p1 = scmp.lt.s32.totalorder %s738_s11, %s734_s26 }
  0x18   : > { %649 = vmatpush.msra.mxu3 %v325_v1  ;;  %s647_s27 = sshll.u32 %s890_s24, 6  ;;  %v697_v15 = vld [vmem:[%s979_s2] ss:$0 sm:$0xff]  ;;  %696 = vset.pattern.permute.xlu0 %v782_v27  ;;  %v498_v53 = vld [vmem:[%s982_s5 + $0x8] sm:$0xff] }
  0x19   : > { %650 = vmatpush.msra.mxu2 %v324_v2  ;;  %368 = vmatpush.msra.mxu0 %v324_v2  ;;  %s310_s13 = scalar_lea.vmem %s991_s0, %s647_s27  ;;  %v405_v25 = vld [vmem:[#allocation2] sm:$0x1]  ;;  %p736_p12 = pnand %p735_p11, %p869_p5 }
  0x1a   : > { %651 = vmatpush.msra.mxu3 %v324_v2  ;;  %v318_v5 = vld [vmem:[%s310_s13 + $0x20] sm:$0xff]  ;;  %v321_v7 = vld [vmem:[%s310_s13 + $0x38] sm:$0xff]  ;;  %v320_v8 = vld [vmem:[%s310_s13 + $0x30] sm:$0xff]  ;;  %408 = vperm.xlu0 %696, %v405_v25   ;;  %p741_p2 = por %p740_p1, %p739_p0 }
  0x1b   : > { %652 = vmatpush.msra.mxu2 %v323_v3  ;;  %369 = vmatpush.msra.mxu0 %v323_v3  ;;  %v314_v6 = vld [vmem:[%s310_s13] sm:$0xff]  ;;  %v319_v9 = vld [vmem:[%s310_s13 + $0x28] sm:$0xff]  ;;  %v317_v11 = vld [vmem:[%s310_s13 + $0x18] sm:$0xff]  ;;  %p737_p13 = pneg %p736_p12 }
  0x1c   : > { %653 = vmatpush.msra.mxu3 %v323_v3  ;;  %v315_v10 = vld [vmem:[%s310_s13 + $0x8] sm:$0xff]  ;;  %v316_v12 = vld [vmem:[%s310_s13 + $0x10] sm:$0xff]  ;;  %v404_v40 = vld [vmem:[%s980_s3] sm:$0x1]  ;;  %s299_s13 = sand.u32 1, %s772_s30  }
  0x1d   : > { %654 = vmatpush.msra.mxu2 %v322_v4  ;;  %370 = vmatpush.msra.mxu0 %v322_v4  ;;  %v497_v54 = vld [vmem:[%s982_s5] sm:$0xff]  ;;  %s300_s14 = scalar_lea.vmem [#allocation3], %s299_s13  ;;  %s528_s23 = scalar_lea.sflag [#allocation4], %s299_s13 }
  0x1e   : > { %630 = vmatmul.msk.f32.vlgmr.msra.gmra.mxu2 %vm330_vm0, %v318_v5  ;;  %626 = vmatmul.msk.f32.vlgmr.msra.gmra.mxu0 %vm330_vm0, %v314_v6  ;;  %s541_s21 = sshll.u32 %s300_s14, 4  ;;  %p742_p3 = pnand %p741_p2, %p737_p13  ;;  %s542_s21 = int_to_ptr.vmem [resolvable:$true] %s541_s21 }
  0x1f   : > { %655 = vmatpush.msra.mxu3 %v322_v4  ;;  %485 = vmatpush.msrb.mxu2 %v321_v7 }
  0x20   : > { %633 = vmatmul.msk.f32.vlgmr.msra.gmra.mxu3 %vm330_vm0, %v321_v7 }
  0x21   : > { %486 = vmatpush.msrb.mxu2 %v320_v8  ;;  %517 = vmatpush.msrb.mxu3 %v500_v51 }
  0x23   : > { %487 = vmatpush.msrb.mxu2 %v319_v9  ;;  %518 = vmatpush.msrb.mxu3 %v499_v52 }
  0x25   : > { %488 = vmatpush.msrb.mxu2 %v318_v5  ;;  %519 = vmatpush.msrb.mxu3 %v498_v53 }
  0x26   : > { %631 = vmatmul.msk.f32.gmra.mxu2 %vm330_vm0, %v319_v9  ;;  %627 = vmatmul.msk.f32.gmra.mxu0 %vm330_vm0, %v315_v10 }
  0x27   : > { %489 = vmatpush.msrb.mxu2 %v317_v11  ;;  %520 = vmatpush.msrb.mxu3 %v497_v54 }
  0x29   : > { %490 = vmatpush.msrb.mxu2 %v316_v12 }
  0x2b   : > { %491 = vmatpush.msrb.mxu2 %v315_v10 }
  0x2d   : > { %492 = vmatpush.msrb.mxu2 %v314_v6 }
  0x2e   : > { %632 = vmatmul.msk.f32.gmra.mxu2 %vm330_vm0, %v320_v8  ;;  %628 = vmatmul.msk.f32.gmra.mxu0 %vm330_vm0, %v316_v12 }
  0x36   : > { %629 = vmatmul.msk.f32.gmra.mxu0 %vm330_vm0, %v317_v11 }
  0x8c   : > { %v409_v41 = vpop.permute.xlu0 %408 }
  0x8d   : > { %v411_v42 = vperm.slane %v409_v41, 0 }
  0x9b   : > { %v372_v13 = vpop.f32.mrf.mxu0 }
  0x9c   : > { %v373_v36 = vadd.f32 %v697_v15, %v372_v13 }
  0xa1   : > { %v384_v14 = vpop.f32.mrf.mxu2 }
  0xa2   : > { %v385_v28 = vadd.f32 %v697_v15, %v384_v14 }
  0xa3   : > { %v375_v16 = vpop.f32.mrf.mxu0  ;;  %v393_v17 = vpop.f32.mrf.mxu3 }
  0xa4   : > { %v394_v18 = vadd.f32 %v697_v15, %v393_v17  ;;  %v376_v35 = vadd.f32 %v697_v15, %v375_v16 }
  0xa6   : > { %698 = vtanh.f32 %v394_v18 }
  0xa9   : > { %v387_v19 = vpop.f32.mrf.mxu2 }
  0xaa   : > { %v388_v24 = vadd.f32 %v697_v15, %v387_v19 }
  0xab   : > { %v378_v21 = vpop.f32.mrf.mxu0 }
  0xac   : > { %v699_v20 = vpop.eup %698  ;;  %v379_v32 = vadd.f32 %v697_v15, %v378_v21 }
  0xad   : > { %634 = vmatpush.xpose.msk.msra.mxu1 %vm412_vm1, %v699_v20 }
  0xb1   : > { %v390_v22 = vpop.f32.mrf.mxu2 }
  0xb2   : > { %v391_v23 = vadd.f32 %v697_v15, %v390_v22 }
  0xb3   : > { %v381_v26 = vpop.f32.mrf.mxu0 }
  0xb4   : > { %700 = vtanh.f32 %v391_v23  ;;  %v382_v30 = vadd.f32 %v697_v15, %v381_v26 }
  0xb5   : > { %702 = vtanh.f32 %v388_v24 }
  0xb6   : > { %704 = vtanh.f32 %v385_v28 }
  0xb7   : > { %706 = vtanh.f32 %v382_v30 }
  0xb8   : > { %708 = vtanh.f32 %v379_v32 }
  0xb9   : > { %710 = vtanh.f32 %v376_v35 }
  0xba   : > { %v701_v29 = vpop.eup %700  ;;  %712 = vtanh.f32 %v373_v36 }
  0xbb   : > { %635 = vmatpush.xpose.msk.msra.mxu1 %vm412_vm1, %v701_v29  ;;  %v703_v31 = vpop.eup %702 }
  0xbc   : > { %v705_v33 = vpop.eup %704 }
  0xbd   : > { %v707_v34 = vpop.eup %706 }
  0xbe   : > { %v709_v37 = vpop.eup %708 }
  0xbf   : > { %636 = vmatpush.xpose.msk.msra.mxu1 %vm412_vm1, %v703_v31  ;;  %v711_v38 = vpop.eup %710 }
  0xc0   : > { %v713_v39 = vpop.eup %712 }
  0xc3   : > { %637 = vmatpush.xpose.msk.msra.mxu1 %vm412_vm1, %v705_v33 }
  0xc7   : > { %638 = vmatpush.xpose.msk.msra.mxu1 %vm412_vm1, %v707_v34 }
  0xcb   : > { %639 = vmatpush.xpose.msk.msra.mxu1 %vm412_vm1, %v709_v37 }
  0xcf   : > { %640 = vmatpush.xpose.msk.msra.mxu1 %vm412_vm1, %v711_v38 }
  0xd3   : > { %641 = vmatpush.xpose.msk.msra.mxu1 %vm412_vm1, %v713_v39 }
  0xd6   : > { %642 = vmatmul.msk.f32.vlgmr.msra.gmra.mxu1 %vm412_vm1, %v404_v40 }
 0x153   : > { %v457_v43 = vpop.f32.mrf.mxu1 }
 0x154   : > { %v458_v44 = vadd.f32 %v457_v43, %v411_v42 }
 0x156   : > { %v461_v45 = vsel %vm460_vm2, %v458_v44, -inf }
 0x157   : > { %462 = vmax.xlane.f32.xlu0 %v461_v45 }
 0x1ca   : > { %v463_v46 = vpop.xlane.xlu0 %462 }
 0x1cb   : > { %v464_v47 = vsub.f32 %v458_v44, %v463_v46 }
 0x1cd   : > { %v465_v48 = vmul.f32 1.442695, %v464_v47 }
 0x1cf   : > { %714 = vpow2.f32 %v465_v48 }
 0x1d5   : > { %v715_v49 = vpop.eup %714 }
 0x1d6   : > { %v467_v50 = vsel %vm460_vm2, %v715_v49, 0.0 }
 0x1d7   : > { %468 = vadd.xlane.f32.xlu1 %v467_v50 }
 0x24a   : > { %v469_v55 = vpop.xlane.xlu1 %468 }
 0x24b   : > { %716 = vrcp.f32 %v469_v55 }
 0x251   : > { %v717_v56 = vpop.eup %716 }
 0x252   : > { %v471_v57 = vmul.f32 %v717_v56, %v715_v49 }
 0x254   : > { %643 = vmatmul.msk.f32.vlgmr.msrb.gmra.mxu2 %vm473_vm3, %v471_v57  ;;  %472 = vst.msk [vmem:[%s300_s14] sm:$0x1] %vm460_vm2, %v471_v57 }
 0x2d7   : > { %v494_v58 = vpop.f32.mrf.mxu2 }
 0x2d8   : > { %644 = vmatmul.msk.f32.vlgmr.msrb.gmra.mxu3 %vm330_vm0, %v494_v58 }
 0x2d9   : > { %745 = shalt.err (!%p742_p3)
}
 0x2da   : > { %656 = dma.vmem_to_hbm [thread:$0]  (%p869_p5), %s542_s21, 16, %s544_s22, %s528_s23   ;;  %v501_v59 = vld [vmem:[%s983_s6] sm:$0x1]  ;;  %vm525_vm4 = vcmask 16384  }
 0x2db   : > { %s313_s19 = scalar_lea.vmem %s985_s8, %s890_s24 }
 0x35b   : > { %v522_v60 = vpop.f32.mrf.mxu3 }
 0x35c   : > { %v523_v61 = vadd.f32 %v522_v60, %v501_v59 }
 0x35e   : > { %526 = vst.msk [vmem:[%s313_s19] sm:$0x1] %vm525_vm4, %v523_v61 }
 0x35f PF: > { %p662_p4 = scmp.ge.s32.totalorder %s780_s10, 2  ;;  %s558_s0 = sand.u32 1, %s768_s29  }
 0x360   : > { %s559_s1 = scalar_lea.sflag [#allocation4], %s558_s0 }
 0x361   : > { %p659_p5 = pnand %p662_p4, %p873_p6 }
 0x363   : > { %p660_p7 = pneg %p659_p5 }
 0x365   : > { %763 = dma.done.wait (%p660_p7), %s559_s1, 16  }
 0x366   : > { %765 = vsyncadd (%p660_p7), %s559_s1, 4294967280  ;;  %p21_p8 = scmp.ge.s32.totalorder %s856_s12, 4   ;;  %s992_s29 = smov %s772_s30 }
 0x367   : > { %s993_s30 = smov %s776_s9  ;;  %s994_s9 = smov %s867_s15 }
 0x368   : > { %s995_s10 = smov %s856_s12  ;;  %23 = sbr.rel (!%p21_p8) target bundleno = 6 (0x6), region = 95 }
 0x36d   :  { %570 = vsyncpa [#allocation4], 1 }
 0x36e   :  { %572 = vsyncpa [#allocation4 + $0x1], 1 }

// kernel: trans_att_forward.7
= control target key start
LH: loop header
LB: loop body
LE: loop exit
PB: predicated region body
PF: predicated region fallthrough
CT: control target
= control target key end

     0   :  { %s6813_s24 = smov 0   ;;  %s8659_s0 = inlined_call_operand.vmem [shape: f32[2,64,96], index: 0, kind: input, shape index: {}]   ;;  %s8660_s1 = inlined_call_operand.vmem [shape: f32[2,64,32], index: 1, kind: input, shape index: {}]   ;;  %s8661_s2 = inlined_call_operand.vmem [shape: f32[16,64], index: 2, kind: input, shape index: {}]   ;;  %s8662_s3 = inlined_call_operand.vmem [shape: f32[16,16], index: 3, kind: input, shape index: {}]   ;;  %s8663_s4 = inlined_call_operand.vmem [shape: f32[4,64,64], index: 4, kind: input, shape index: {}]   ;;  %s8664_s5 = inlined_call_operand.vmem [shape: bf16[32,32], index: 5, kind: input, shape index: {}]   ;;  %s8665_s6 = inlined_call_operand.vmem [shape: f32[1,32], index: 6, kind: input, shape index: {}]   ;;  %s8666_s7 = inlined_call_operand.vmem [shape: f32[2,64,32], index: 7, kind: output, shape index: {}]  }
   0x1 LB: > { %s5953_s25 = sadd.s32 4294967295, %s6760_s24   ;;  %p5957_p0 = scmp.ge.s32.totalorder %s6760_s24, 1  ;;  %s6760_s24 = sphi %s6813_s24, %s17_s24  }
   0x2   : > { %p247_p1 = scmp.lt.s32.totalorder %s6760_s24, 3 }
   0x4   : > { %p248_p2 = pnand %p5957_p0, %p247_p1 }
   0x6   : > { %251 = sbr.rel (%p248_p2) target bundleno = 16171 (0x3f2b), region = 48 }
   0xb   : > { %p284_p3 = scmp.lt.s32.totalorder %s5953_s25, 1  ;;  %s6762_s30 = smov 96   ;;  %v316_v16 = vld [vmem:[%s8661_s2] sm:$0xff]  ;;  %vm324_vm0 = vcmask 523264   ;;  %v317_v17 = vld [vmem:[%s8661_s2 + $0x8] sm:$0xff]  ;;  %vm429_vm1 = vcmask 64512  }
   0xc   : > { %vm501_vm2 = vcmask 130048   ;;  %s6763_s12 = smov 64   ;;  %s6764_s13 = smov 120   ;;  %vm1735_vm7 = vcmask 1043456  }
   0xd   : > { %s8670_s25 = smov (!%p284_p3, %s5953_s25), 1  ;;  %s6765_s18 = smov 88  }
   0xe   : > { %s6821_s26 = sshll.u32 %s8670_s25, 6  ;;  %s6766_s21 = smov 56  }
   0xf   : > { %s6827_s29 = scalar_lea.vmem %s8659_s0, %s6821_s26  ;;  %s6767_s22 = smov 112  }
  0x10   : > { %v6830_v0 = vld [vmem:[%s6827_s29 + $0x38] sm:$0xff]  ;;  %v6833_v1 = vld [vmem:[%s6827_s29 + $0x28] sm:$0xff]  ;;  %v6836_v2 = vld [vmem:[%s6827_s29 + $0x30] sm:$0xff]  ;;  %s6769_s27 = smov 104   ;;  %s6770_s8 = smov 48  }
  0x11   : > { %376 = vrot.lane.b32.xlu0 %v6830_v0, %s6762_s30  ;;  %372 = vrot.lane.b32.xlu1 %v6833_v1, %s6762_s30  ;;  %v6841_v3 = vmul.f32 0.35355338, %v6830_v0  ;;  %v6844_v4 = vmul.f32 0.35355338, %v6836_v2  ;;  %v6847_v5 = vld [vmem:[%s6827_s29 + $0x18] sm:$0xff]  ;;  %v6855_v7 = vld [vmem:[%s6827_s29 + $0x20] sm:$0xff]  ;;  %v6449_v62 = vpack.i.bf16 %v6836_v2, %v6830_v0 }
  0x12   : > { %368 = vrot.lane.b32.xlu2 %v6847_v5, %s6762_s30  ;;  %v6852_v6 = vmul.f32 0.35355338, %v6833_v1  ;;  %v6859_v8 = vmul.f32 0.35355338, %v6855_v7  ;;  %v6863_v9 = vld [vmem:[%s6827_s29 + $0x10] sm:$0xff]  ;;  %v6875_v12 = vld [vmem:[%s6827_s29 + $0x8] sm:$0xff] }
  0x13   : > { %339 = vmatpush.msra.mxu0 %v6841_v3  ;;  %v6866_v10 = vmul.f32 0.35355338, %v6847_v5  ;;  %v6872_v11 = vmul.f32 0.35355338, %v6863_v9  ;;  %v6880_v13 = vmul.f32 0.35355338, %v6875_v12  ;;  %v6459_v63 = vpack.i.bf16 %v6863_v9, %v6847_v5 }
  0x14   : > { %v6883_v14 = vld [vmem:[%s6827_s29] sm:$0xff]  ;;  %s6772_s10 = smov 40  }
  0x15   : > { %340 = vmatpush.msra.mxu0 %v6844_v4  ;;  %v6890_v15 = vmul.f32 0.35355338, %v6883_v14 }
  0x17   : > { %341 = vmatpush.msra.mxu0 %v6852_v6 }
  0x19   : > { %374 = vrot.lane.b32.xlu0 %v6836_v2, %s6762_s30  ;;  %370 = vrot.lane.b32.xlu1 %v6855_v7, %s6762_s30 }
  0x1a   : > { %342 = vmatpush.msra.mxu0 %v6859_v8  ;;  %366 = vrot.lane.b32.xlu2 %v6863_v9, %s6762_s30 }
  0x1c   : > { %343 = vmatpush.msra.mxu0 %v6866_v10 }
  0x1e   : > { %344 = vmatpush.msra.mxu0 %v6872_v11 }
  0x20   : > { %345 = vmatpush.msra.mxu0 %v6880_v13 }
  0x21   : > { %364 = vrot.lane.b32.xlu0 %v6875_v12, %s6762_s30  ;;  %362 = vrot.lane.b32.xlu1 %v6883_v14, %s6762_s30 }
  0x22   : > { %346 = vmatpush.msra.mxu0 %v6890_v15 }
  0x23   : > { %5964 = vmatmul.msk.f32.vlgmr.msra.gmra.mxu0 %vm324_vm0, %v316_v16 }
  0x2b   : > { %5965 = vmatmul.msk.f32.gmra.mxu0 %vm324_vm0, %v317_v17 }
  0x6c   : > { %v369_v20 = vpop.permute.xlu2 %368 }
  0x74   : > { %v367_v23 = vpop.permute.xlu2 %366 }
  0x83   : > { %v377_v18 = vpop.permute.xlu0 %376  ;;  %v373_v19 = vpop.permute.xlu1 %372 }
  0x84   : > { %394 = vmatpush.msrb.mxu0 %v377_v18  ;;  %6405 = vmatpush.msra.mxu1 %v377_v18 }
  0x8b   : > { %v375_v21 = vpop.permute.xlu0 %374  ;;  %v371_v22 = vpop.permute.xlu1 %370 }
  0x8c   : > { %395 = vmatpush.msrb.mxu0 %v375_v21  ;;  %6406 = vmatpush.msra.mxu1 %v375_v21 }
  0x8e   : > { %396 = vmatpush.msrb.mxu0 %v373_v19  ;;  %6407 = vmatpush.msra.mxu1 %v373_v19 }
  0x90   : > { %397 = vmatpush.msrb.mxu0 %v371_v22  ;;  %6408 = vmatpush.msra.mxu1 %v371_v22 }
  0x92   : > { %398 = vmatpush.msrb.mxu0 %v369_v20  ;;  %6409 = vmatpush.msra.mxu1 %v369_v20 }
  0x93   : > { %v365_v24 = vpop.permute.xlu0 %364  ;;  %v363_v25 = vpop.permute.xlu1 %362 }
  0x94   : > { %399 = vmatpush.msrb.mxu0 %v367_v23  ;;  %6410 = vmatpush.msra.mxu1 %v367_v23 }
  0x96   : > { %400 = vmatpush.msrb.mxu0 %v365_v24  ;;  %6411 = vmatpush.msra.mxu1 %v365_v24 }
  0x98   : > { %401 = vmatpush.msrb.mxu0 %v363_v25  ;;  %6412 = vmatpush.msra.mxu1 %v363_v25 }
  0x99   : > { %5967 = vmatmul.msk.f32.vlgmr.msra.gmra.mxu1 %vm324_vm0, %v317_v17  ;;  %5966 = vmatmul.msk.f32.vlgmr.msrb.gmra.mxu0 %vm324_vm0, %v316_v16  ;;  %v6454_v16 = vpack.i.bf16 %v6855_v7, %v6833_v1  ;;  %v6464_v17 = vpack.i.bf16 %v6883_v14, %v6875_v12 }
  0xa0   : > { %v6903_v26 = vpop.f32.mrf.mxu0 }
  0xa8   : > { %v6905_v27 = vpop.f32.mrf.mxu0 }
 0x116   : > { %v6907_v28 = vpop.f32.mrf.mxu1  ;;  %v6913_v29 = vpop.f32.mrf.mxu0 }
 0x117   : > { %5968 = vmatpush.xpose.msk.msra.mxu2 %vm429_vm1, %v6907_v28  ;;  %5978 = vmatpush.xpose.msk.msra.mxu3 %vm429_vm1, %v6907_v28 }
 0x11b   : > { %5969 = vmatpush.xpose.msk.msra.mxu2 %vm429_vm1, %v6913_v29  ;;  %5979 = vmatpush.xpose.msk.msra.mxu3 %vm429_vm1, %v6913_v29 }
 0x11e   : > { %5980 = vmatmul.msk.f32.vlgmr.msra.gmra.mxu3 %vm429_vm1, %v6903_v26  ;;  %5970 = vmatmul.msk.f32.vlgmr.msra.gmra.mxu2 %vm429_vm1, %v6890_v15 }
 0x11f   : > { %5982 = vmatpush.xpose.msk.msrb.mxu3 %vm429_vm1, %v377_v18 }
 0x123   : > { %5983 = vmatpush.xpose.msk.msrb.mxu3 %vm429_vm1, %v375_v21 }
 0x126   : > { %5981 = vmatmul.msk.f32.gmra.mxu3 %vm429_vm1, %v6905_v27  ;;  %5971 = vmatmul.msk.f32.gmra.mxu2 %vm429_vm1, %v6880_v13 }
 0x127   : > { %5984 = vmatpush.xpose.msk.msrb.mxu3 %vm429_vm1, %v373_v19 }
 0x12b   : > { %5985 = vmatpush.xpose.msk.msrb.mxu3 %vm429_vm1, %v371_v22 }
 0x12e   : > { %5972 = vmatmul.msk.f32.gmra.mxu2 %vm429_vm1, %v6872_v11 }
 0x12f   : > { %5986 = vmatpush.xpose.msk.msrb.mxu3 %vm429_vm1, %v369_v20 }
 0x133   : > { %5987 = vmatpush.xpose.msk.msrb.mxu3 %vm429_vm1, %v367_v23 }
 0x136   : > { %5973 = vmatmul.msk.f32.gmra.mxu2 %vm429_vm1, %v6866_v10 }
 0x137   : > { %5988 = vmatpush.xpose.msk.msrb.mxu3 %vm429_vm1, %v365_v24 }
 0x13b   : > { %5989 = vmatpush.xpose.msk.msrb.mxu3 %vm429_vm1, %v363_v25 }
 0x13e   : > { %5990 = vmatmul.msk.f32.vlgmr.msrb.gmra.mxu3 %vm429_vm1, %v6903_v26  ;;  %5974 = vmatmul.msk.f32.gmra.mxu2 %vm429_vm1, %v6859_v8 }
 0x146   : > { %5991 = vmatmul.msk.f32.gmra.mxu3 %vm429_vm1, %v6905_v27  ;;  %5975 = vmatmul.msk.f32.gmra.mxu2 %vm429_vm1, %v6852_v6 }
 0x14e   : > { %5976 = vmatmul.msk.f32.gmra.mxu2 %vm429_vm1, %v6844_v4 }
 0x156   : > { %5977 = vmatmul.msk.f32.gmra.mxu2 %vm429_vm1, %v6841_v3 }
 0x1a1   : > { %v613_v30 = vpop.f32.mrf.mxu3  ;;  %v6974_v18 = vpop.f32.mrf.mxu2 }
 0x1a2   : > { %v619_v31 = vsel %vm501_vm2, %v613_v30, -inf  ;;  %v502_v14 = vsel %vm501_vm2, %v6974_v18, -inf }
 0x1a3   : > { %620 = vmax.xlane.f32.xlu2 %v619_v31 }
 0x1a9   : > { %v616_v32 = vpop.f32.mrf.mxu3  ;;  %v6976_v0 = vpop.f32.mrf.mxu2 }
 0x1aa   : > { %v622_v33 = vsel %vm501_vm2, %v616_v32, -inf  ;;  %v505_v1 = vsel %vm501_vm2, %v6976_v0, -inf }
 0x1ab   : > { %623 = vmax.xlane.f32.xlu0 %v622_v33 }
 0x1b1   : > { %v6979_v9 = vpop.f32.mrf.mxu2 }
 0x1b2   : > { %v508_v19 = vsel %vm501_vm2, %v6979_v9, -inf }
 0x1b9   : > { %v6983_v7 = vpop.f32.mrf.mxu2 }
 0x1ba   : > { %v511_v12 = vsel %vm501_vm2, %v6983_v7, -inf }
 0x1c1   : > { %v674_v2 = vpop.f32.mrf.mxu3 }
 0x1c2   : > { %v680_v5 = vsel %vm324_vm0, %v674_v2, -inf }
 0x216   : > { %v621_v34 = vpop.xlane.xlu2 %620 }
 0x217   : > { %v625_v35 = vsub.f32 %v613_v30, %v621_v34  ;;  %v6997_v34 = vpop.f32.mrf.mxu2 }
 0x219   : > { %v627_v36 = vmul.f32 1.442695, %v625_v35  ;;  %v514_v35 = vsel %vm501_vm2, %v6997_v34, -inf }
 0x21b   : > { %6530 = vpow2.f32 %v627_v36  ;;  %v677_v36 = vpop.f32.mrf.mxu3 }
 0x21e   : > { %v624_v37 = vpop.xlane.xlu0 %623 }
 0x21f   : > { %v626_v38 = vsub.f32 %v616_v32, %v624_v37  ;;  %v683_v37 = vsel %vm324_vm0, %v677_v36, -inf }
 0x221   : > { %v6531_v39 = vpop.eup %6530  ;;  %v629_v40 = vmul.f32 1.442695, %v626_v38 }
 0x222   : > { %v631_v41 = vsel %vm501_vm2, %v6531_v39, 0.0 }
 0x223   : > { %6532 = vpow2.f32 %v629_v40  ;;  %632 = vadd.xlane.f32.xlu1 %v631_v41 }
 0x229   : > { %v6533_v42 = vpop.eup %6532 }
 0x22a   : > { %v634_v43 = vsel %vm501_vm2, %v6533_v42, 0.0 }
 0x22b   : > { %635 = vadd.xlane.f32.xlu2 %v634_v43 }
 0x296   : > { %v633_v44 = vpop.xlane.xlu1 %632 }
 0x297   : > { %6534 = vrcp.f32 %v633_v44 }
 0x29d   : > { %v6535_v45 = vpop.eup %6534 }
 0x29e   : > { %v6955_v46 = vmul.f32 %v6535_v45, %v6531_v39  ;;  %v636_v47 = vpop.xlane.xlu2 %635  ;;  %v7004_v39 = vpop.f32.mrf.mxu2 }
 0x29f   : > { %6536 = vrcp.f32 %v636_v47  ;;  %v517_v40 = vsel %vm501_vm2, %v7004_v39, -inf }
 0x2a0   : > { %v702_v48 = vand.u32 2147483647, %v6955_v46 }
 0x2a2   : > { %v704_v49 = vsel %vm501_vm2, %v702_v48, 0.0 }
 0x2a3   : > { %705 = vadd.xlane.f32.xlu2 %v704_v49 }
 0x2a5   : > { %v6537_v50 = vpop.eup %6536 }
 0x2a6   : > { %v6959_v51 = vmul.f32 %v6537_v50, %v6533_v42 }
 0x2a8   : > { %v703_v52 = vand.u32 2147483647, %v6959_v51 }
 0x2aa   : > { %v707_v53 = vsel %vm501_vm2, %v703_v52, 0.0 }
 0x2ab   : > { %708 = vadd.xlane.f32.xlu0 %v707_v53  ;;  %v718_v54 = vadd.f32 %v707_v53, %v704_v49 }
 0x2ad   : > { %v719_v55 = vrot.slane %v718_v54, 4 }
 0x2af   : > { %v720_v56 = vadd.f32 %v719_v55, %v718_v54 }
 0x2b1   : > { %v721_v57 = vrot.slane %v720_v56, 2 }
 0x2b3   : > { %v722_v58 = vadd.f32 %v721_v57, %v720_v56 }
 0x2b5   : > { %v723_v59 = vrot.slane %v722_v58, 1 }
 0x2b7   : > { %v724_v60 = vadd.f32 %v723_v59, %v722_v58 }
 0x2b9   : > { %v725_v61 = vsel %vm501_vm2, %v724_v60, -inf }
 0x2ba   : > { %726 = vmax.xlane.f32.xlu1 %v725_v61 }
 0x2bf   : > { %6450 = vrot.lane.b32.xlu0 %v6449_v62, %s6763_s12 }
 0x2c7   : > { %6460 = vrot.lane.b32.xlu0 %v6459_v63, %s6763_s12 }
 0x2cc   : > { %730 = vxpose.xlu2.b32.start [1/2] (short) (narrow) %v6955_v46, 16 }
 0x2d3   : > { %6455 = vrot.lane.b32.xlu1 %v6454_v16, %s6763_s12 }
 0x2d4   : > { %731 = vxpose.xlu2.b32.end [2/2] (short) (narrow) %v6959_v51, 16 }
 0x2db   : > { %6465 = vrot.lane.b32.xlu1 %v6464_v17, %s6763_s12 }
 0x2f1   : > { %681 = vmax.xlane.f32.xlu0 %v680_v5 }
 0x2f9   : > { %506 = vmax.xlane.f32.xlu0 %v505_v1 }
 0x301   : > { %512 = vmax.xlane.f32.xlu0 %v511_v12 }
 0x305   : > { %503 = vmax.xlane.f32.xlu1 %v502_v14  ;;  %v319_v14 = vld [vmem:[%s8662_s3 + $0x8] sm:$0xff] }
 0x30d   : > { %509 = vmax.xlane.f32.xlu1 %v508_v19  ;;  %v318_v19 = vld [vmem:[%s8662_s3] sm:$0xff] }
 0x315   : > { %1792 = vrot.lane.b32.xlu0 %v6913_v29, %s6764_s13 }
 0x316   : > { %v706_v20 = vpop.xlane.xlu2 %705 }
 0x31e   : > { %v709_v21 = vpop.xlane.xlu0 %708 }
 0x31f   : > { %v710_v22 = vmax.f32 %v706_v20, %v709_v21  ;;  %v7030_v20 = vmul.f32 7.0, %v319_v14  ;;  %v7032_v21 = vmul.f32 7.0, %v318_v19 }
 0x321   : > { %v711_v23 = vrot.slane %v710_v22, 4 }
 0x323   : > { %v712_v24 = vmax.f32 %v710_v22, %v711_v23 }
 0x325   : > { %v713_v25 = vrot.slane %v712_v24, 2 }
 0x326   : > { %1794 = vrot.lane.b32.xlu1 %v6907_v28, %s6764_s13 }
 0x327   : > { %v714_v30 = vmax.f32 %v712_v24, %v713_v25 }
 0x329   : > { %v715_v31 = vrot.slane %v714_v30, 1 }
 0x32b   : > { %v716_v32 = vmax.f32 %v714_v30, %v715_v31  ;;  %v7038_v30 = vmul.f32 15.0, %v319_v14  ;;  %v7040_v31 = vmul.f32 15.0, %v318_v19 }
 0x32d   : > { %v727_v33 = vpop.xlane.xlu1 %726  ;;  %6413 = vpush %v716_v32 }
 0x32e   : > { %6415 = vpush %v727_v33  ;;  %1945 = vrot.lane.b32.xlu1 %v6903_v26, %s6764_s13 }
 0x331   : > { %v7002_v38 = vpop.permute.xlu0 %6450 }
 0x339   : > { %v7010_v41 = vpop.permute.xlu0 %6460 }
 0x33f   : > { %515 = vmax.xlane.f32.xlu0 %v514_v35 }
 0x345   : > { %684 = vmax.xlane.f32.xlu2 %v683_v37  ;;  %v7046_v37 = vmul.f32 13.0, %v319_v14  ;;  %v495_v14 = vpop.f32.mrf.mxu2 }
 0x353   : > { %1947 = vrot.lane.b32.xlu0 %v6905_v27, %s6764_s13 }
 0x358   : > { %518 = vmax.xlane.f32.xlu1 %v517_v40  ;;  %v7048_v40 = vmul.f32 13.0, %v318_v19 }
 0x35e   : > { %s6414_s14 = spop %6413 }
 0x35f   : > { %s6416_s15 = spop %6415 }
 0x360   : > { %s729_s16 = smul.f32 %s6416_s15, %s6414_s14 }
 0x362   : > { %v762_v42 = vstv %s729_s16  ;;  %s8611_s16 = scalar_lea.vmem %s8666_s7, %s6821_s26 }
 0x363   : > { %6538 = vrcp.f32 %v762_v42  ;;  %v774_v52 = vand.u32 2147483648, %v762_v42  ;;  %v772_v54 = vand.u32 2147483647, %v762_v42  ;;  %vm768_vm4 = vweird.f32 %v762_v42 }
 0x364   : > { %v682_v43 = vpop.xlane.xlu0 %681 }
 0x365   : > { %v686_v44 = vsub.f32 %v674_v2, %v682_v43  ;;  %v746_v47 = vpop.trf.xlu2  ;;  %v775_v58 = vor.u32 1.1754944e-38, %v774_v52  ;;  %vm773_vm6 = vcmp.eq.f32.partialorder %v772_v54, 8.507059e+37 }
 0x367   : > { %v688_v45 = vmul.f32 1.442695, %v686_v44 }
 0x369   : > { %v6539_v48 = vpop.eup %6538  ;;  %6540 = vpow2.f32 %v688_v45 }
 0x36a   : > { %v764_v49 = vmul.f32 %v6539_v48, %v762_v42  ;;  %vm769_vm3 = vweird.f32 %v6539_v48 }
 0x36b   : > { %vm770_vm5 = vmor %vm768_vm4, %vm769_vm3 }
 0x36c   : > { %v765_v50 = vsub.f32 1.0, %v764_v49 }
 0x36d   : > { %v747_v59 = vpop.trf.xlu2 }
 0x36e   : > { %v766_v53 = vmul.f32 %v6539_v48, %v765_v50 }
 0x36f   : > { %v7012_v55 = vpop.eup %6540 }
 0x370   : > { %v767_v56 = vadd.f32 %v6539_v48, %v766_v53  ;;  %v692_v57 = vsel %vm324_vm0, %v7012_v55, 0.0 }
 0x371   : > { %693 = vadd.xlane.f32.xlu1 %v692_v57 }
 0x372   : > { %v771_v60 = vsel %vm770_vm5, %v6539_v48, %v767_v56  ;;  %v7068_v56 = vpop.permute.xlu1 %6455 }
 0x373   : > { %v776_v61 = vsel %vm773_vm6, %v775_v58, %v771_v60  ;;  %v507_v60 = vpop.xlane.xlu0 %506 }
 0x374   : > { %v778_v62 = vmul.f32 %v776_v61, %v747_v59  ;;  %v777_v63 = vmul.f32 %v776_v61, %v746_v47 }
 0x376   : > { %799 = vmatpush.msra.mxu0 %v778_v62 }
 0x378   : > { %800 = vmatpush.msra.mxu0 %v777_v63 }
 0x379   : > { %5992 = vmatmul.msk.f32.vlgmr.msra.gmra.mxu0 %vm501_vm2, %v6955_v46 }
 0x37a   : > { %v7070_v57 = vpop.permute.xlu1 %6465 }
 0x381   : > { %5993 = vmatmul.msk.f32.gmra.mxu0 %vm501_vm2, %v6959_v51 }
 0x382   : > { %v504_v58 = vpop.xlane.xlu1 %503 }
 0x383   : > { %v526_v59 = vsub.f32 %v6974_v18, %v504_v58 }
 0x385   : > { %v534_v61 = vmul.f32 1.442695, %v526_v59 }
 0x3b8   : > { %v685_v16 = vpop.xlane.xlu2 %684 }
 0x3b9   : > { %v687_v17 = vsub.f32 %v677_v36, %v685_v16  ;;  %v513_v16 = vpop.xlane.xlu0 %512 }
 0x3bb   : > { %v690_v2 = vmul.f32 1.442695, %v687_v17 }
 0x3bd   : > { %6542 = vpow2.f32 %v690_v2  ;;  %v529_v2 = vsub.f32 %v6983_v7, %v513_v16 }
 0x3be   : > { %6544 = vpow2.f32 %v534_v61 }
 0x3bf   : > { %v540_v18 = vmul.f32 1.442695, %v529_v2 }
 0x3c3   : > { %v7020_v5 = vpop.eup %6542 }
 0x3c4   : > { %v695_v1 = vsel %vm324_vm0, %v7020_v5, 0.0  ;;  %v7074_v17 = vpop.eup %6544 }
 0x3c5   : > { %696 = vadd.xlane.f32.xlu0 %v695_v1  ;;  %v510_v1 = vpop.xlane.xlu1 %509  ;;  %v550_v19 = vsel %vm501_vm2, %v7074_v17, 0.0 }
 0x3c6   : > { %551 = vadd.xlane.f32.xlu1 %v550_v19 }
 0x3f6   : > { %v802_v12 = vpop.f32.mrf.mxu0 }
 0x3f7   : > { %v810_v24 = vsub.f32 %v7032_v21, %v802_v12 }
 0x3fe   : > { %v805_v22 = vpop.f32.mrf.mxu0 }
 0x3ff   : > { %v811_v23 = vsub.f32 %v7030_v20, %v805_v22 }
 0x401   : > { %834 = vmatpush.msrb.mxu1 %v811_v23 }
 0x403   : > { %835 = vmatpush.msrb.mxu1 %v810_v24  ;;  %v498_v24 = vpop.f32.mrf.mxu2 }
 0x404   : > { %5994 = vmatmul.msk.f32.vlgmr.msrb.gmra.mxu1 %vm501_vm2, %v802_v12 }
 0x40c   : > { %5995 = vmatmul.msk.f32.gmra.mxu1 %vm501_vm2, %v805_v22 }
 0x481   : > { %v837_v25 = vpop.f32.mrf.mxu1 }
 0x482   : > { %v843_v35 = vsub.f32 %v7040_v31, %v837_v25 }
 0x489   : > { %v840_v32 = vpop.f32.mrf.mxu1 }
 0x48a   : > { %v844_v33 = vsub.f32 %v7038_v30, %v840_v32 }
 0x48c   : > { %861 = vmatpush.msrb.mxu0 %v844_v33 }
 0x48e   : > { %862 = vmatpush.msrb.mxu0 %v843_v35 }
 0x48f   : > { %5996 = vmatmul.msk.f32.vlgmr.msrb.gmra.mxu0 %vm501_vm2, %v802_v12  ;;  %v528_v12 = vsub.f32 %v6979_v9, %v510_v1  ;;  %v523_v9 = vsel %vm501_vm2, %v498_v24, -inf }
 0x497   : > { %5997 = vmatmul.msk.f32.gmra.mxu0 %vm501_vm2, %v805_v22  ;;  %v520_v22 = vsel %vm501_vm2, %v495_v14, -inf }
 0x498   : > { %521 = vmax.xlane.f32.xlu2 %v520_v22 }
 0x4a0   : > { %524 = vmax.xlane.f32.xlu2 %v523_v9 }
 0x50c   : > { %v864_v36 = vpop.f32.mrf.mxu0 }
 0x50d   : > { %v870_v44 = vsub.f32 %v7048_v40, %v864_v36 }
 0x514   : > { %v867_v42 = vpop.f32.mrf.mxu0 }
 0x515   : > { %v871_v43 = vsub.f32 %v7046_v37, %v867_v42 }
 0x517   : > { %892 = vmatpush.msra.mxu1 %v871_v43 }
 0x519   : > { %893 = vmatpush.msra.mxu1 %v870_v44 }
 0x51a   : > { %5998 = vmatmul.msk.f32.vlgmr.msra.gmra.mxu1 %vm501_vm2, %v777_v63 }
 0x522   : > { %5999 = vmatmul.msk.f32.gmra.mxu1 %vm501_vm2, %v778_v62  ;;  %v527_v62 = vsub.f32 %v6976_v0, %v507_v60  ;;  %v538_v0 = vmul.f32 1.442695, %v528_v12 }
 0x524   : > { %v536_v63 = vmul.f32 1.442695, %v527_v62 }
 0x526   : > { %6546 = vpow2.f32 %v536_v63 }
 0x527   : > { %6548 = vpow2.f32 %v540_v18 }
 0x528   : > { %6550 = vpow2.f32 %v538_v0 }
 0x52c   : > { %v7081_v23 = vpop.eup %6546 }
 0x52d   : > { %v553_v7 = vsel %vm501_vm2, %v7081_v23, 0.0  ;;  %v7086_v32 = vpop.eup %6548 }
 0x52e   : > { %554 = vadd.xlane.f32.xlu1 %v553_v7  ;;  %v7088_v33 = vpop.eup %6550  ;;  %v559_v35 = vsel %vm501_vm2, %v7086_v32, 0.0 }
 0x52f   : > { %v556_v36 = vsel %vm501_vm2, %v7088_v33, 0.0 }
 0x530   : > { %557 = vadd.xlane.f32.xlu2 %v556_v36 }
 0x536   : > { %560 = vadd.xlane.f32.xlu1 %v559_v35 }
 0x597   : > { %v895_v45 = vpop.f32.mrf.mxu1 }
 0x598   : > { %v7056_v49 = vmul.f32 0.25, %v895_v45  ;;  %v7098_v45 = vpop.permute.xlu1 %1794 }
 0x59f   : > { %v898_v47 = vpop.f32.mrf.mxu1 }
 0x5a0   : > { %v7054_v48 = vmul.f32 0.25, %v898_v47  ;;  %v7100_v47 = vpop.permute.xlu0 %1792 }
 0x5a2   : > { %917 = vmatpush.msra.mxu3 %v7054_v48 }
 0x5a4   : > { %918 = vmatpush.msra.mxu3 %v7056_v49 }
 0x5a5   : > { %6000 = vmatmul.msk.f32.vlgmr.msra.gmra.mxu3 %vm501_vm2, %v6955_v46 }
 0x5ad   : > { %6001 = vmatmul.msk.f32.gmra.mxu3 %vm501_vm2, %v6959_v51 }
 0x628   : > { %v920_v50 = vpop.f32.mrf.mxu3 }
 0x629   : > { %v926_v54 = vsub.f32 %v7032_v21, %v920_v50 }
 0x630   : > { %v923_v52 = vpop.f32.mrf.mxu3 }
 0x631   : > { %v927_v53 = vsub.f32 %v7030_v20, %v923_v52 }
 0x633   : > { %948 = vmatpush.msra.mxu0 %v927_v53  ;;  %v7102_v53 = vpop.permute.xlu1 %1945 }
 0x635   : > { %949 = vmatpush.msra.mxu0 %v926_v54  ;;  %v516_v54 = vpop.xlane.xlu0 %515 }
 0x636   : > { %6002 = vmatmul.msk.f32.vlgmr.msra.gmra.mxu0 %vm501_vm2, %v920_v50  ;;  %v530_v58 = vsub.f32 %v6997_v34, %v516_v54 }
 0x638   : > { %v542_v59 = vmul.f32 1.442695, %v530_v58 }
 0x63a   : > { %6552 = vpow2.f32 %v542_v59 }
 0x63b   : > { %v519_v60 = vpop.xlane.xlu1 %518 }
 0x63c   : > { %v531_v61 = vsub.f32 %v7004_v39, %v519_v60 }
 0x63e   : > { %6003 = vmatmul.msk.f32.gmra.mxu0 %vm501_vm2, %v923_v52  ;;  %v544_v62 = vmul.f32 1.442695, %v531_v61 }
 0x640   : > { %v7106_v63 = vpop.eup %6552  ;;  %6554 = vpow2.f32 %v544_v62 }
 0x646   : > { %v7110_v1 = vpop.eup %6554 }
 0x647   : > { %v565_v34 = vsel %vm501_vm2, %v7110_v1, 0.0 }
 0x648   : > { %566 = vadd.xlane.f32.xlu1 %v565_v34 }
 0x6b3   : > { %v951_v25 = vpop.f32.mrf.mxu0 }
 0x6b4   : > { %v957_v44 = vsub.f32 %v7040_v31, %v951_v25 }
 0x6bb   : > { %v954_v42 = vpop.f32.mrf.mxu0 }
 0x6bc   : > { %v958_v43 = vsub.f32 %v7038_v30, %v954_v42 }
 0x6be   : > { %973 = vmatpush.msrb.mxu1 %v958_v43 }
 0x6c0   : > { %974 = vmatpush.msrb.mxu1 %v957_v44 }
 0x6c1   : > { %6004 = vmatmul.msk.f32.vlgmr.msrb.gmra.mxu1 %vm501_vm2, %v920_v50  ;;  %v562_v50 = vsel %vm501_vm2, %v7106_v63, 0.0 }
 0x6c2   : > { %563 = vadd.xlane.f32.xlu2 %v562_v50 }
 0x6c9   : > { %6005 = vmatmul.msk.f32.gmra.mxu1 %vm501_vm2, %v923_v52  ;;  %v522_v52 = vpop.xlane.xlu2 %521 }
 0x6ca   : > { %v532_v16 = vsub.f32 %v495_v14, %v522_v52 }
 0x6cc   : > { %v546_v2 = vmul.f32 1.442695, %v532_v16 }
 0x6ce   : > { %6556 = vpow2.f32 %v546_v2 }
 0x6d1   : > { %v525_v39 = vpop.xlane.xlu2 %524 }
 0x6d2   : > { %v533_v19 = vsub.f32 %v498_v24, %v525_v39 }
 0x6d4   : > { %v7114_v12 = vpop.eup %6556  ;;  %v548_v22 = vmul.f32 1.442695, %v533_v19 }
 0x6d5   : > { %v568_v18 = vsel %vm501_vm2, %v7114_v12, 0.0 }
 0x6d6   : > { %569 = vadd.xlane.f32.xlu2 %v568_v18  ;;  %6558 = vpow2.f32 %v548_v22 }
 0x6dc   : > { %v7118_v0 = vpop.eup %6558 }
 0x6dd   : > { %v571_v14 = vsel %vm501_vm2, %v7118_v0, 0.0 }
 0x6de   : > { %572 = vadd.xlane.f32.xlu1 %v571_v14 }
 0x73e   : > { %v976_v7 = vpop.f32.mrf.mxu1 }
 0x73f   : > { %v982_v35 = vsub.f32 %v7048_v40, %v976_v7 }
 0x746   : > { %v979_v9 = vpop.f32.mrf.mxu1 }
 0x747   : > { %v983_v25 = vsub.f32 %v7046_v37, %v979_v9 }
 0x749   : > { %1004 = vmatpush.msrb.mxu2 %v983_v25 }
 0x74b   : > { %1005 = vmatpush.msrb.mxu2 %v982_v35 }
 0x74c   : > { %6006 = vmatmul.msk.f32.vlgmr.msrb.gmra.mxu2 %vm501_vm2, %v7056_v49 }
 0x754   : > { %6007 = vmatmul.msk.f32.gmra.mxu2 %vm501_vm2, %v7054_v48 }
 0x7cf   : > { %v1007_v24 = vpop.f32.mrf.mxu2 }
 0x7d0   : > { %v1013_v43 = vmul.f32 0.25, %v1007_v24 }
 0x7d7   : > { %v1010_v36 = vpop.f32.mrf.mxu2 }
 0x7d8   : > { %v1014_v42 = vmul.f32 0.25, %v1010_v36 }
 0x7da   : > { %1029 = vmatpush.msrb.mxu3 %v1014_v42 }
 0x7dc   : > { %1030 = vmatpush.msrb.mxu3 %v1013_v43 }
 0x7dd   : > { %6008 = vmatmul.msk.f32.vlgmr.msrb.gmra.mxu3 %vm501_vm2, %v6955_v46 }
 0x7e5   : > { %6009 = vmatmul.msk.f32.gmra.mxu3 %vm501_vm2, %v6959_v51 }
 0x860   : > { %v1032_v44 = vpop.f32.mrf.mxu3 }
 0x861   : > { %v1038_v49 = vsub.f32 %v7032_v21, %v1032_v44 }
 0x868   : > { %v1035_v54 = vpop.f32.mrf.mxu3 }
 0x869   : > { %v1039_v58 = vsub.f32 %v7030_v20, %v1035_v54 }
 0x86b   : > { %1060 = vmatpush.msrb.mxu0 %v1039_v58 }
 0x86d   : > { %1061 = vmatpush.msrb.mxu0 %v1038_v49 }
 0x86e   : > { %6010 = vmatmul.msk.f32.vlgmr.msrb.gmra.mxu0 %vm501_vm2, %v1032_v44 }
 0x876   : > { %6011 = vmatmul.msk.f32.gmra.mxu0 %vm501_vm2, %v1035_v54 }
 0x8eb   : > { %v1063_v48 = vpop.f32.mrf.mxu0 }
 0x8ec   : > { %v1069_v61 = vsub.f32 %v7040_v31, %v1063_v48 }
 0x8f3   : > { %v1066_v59 = vpop.f32.mrf.mxu0 }
 0x8f4   : > { %v1070_v60 = vsub.f32 %v7038_v30, %v1066_v59 }
 0x8f6   : > { %1085 = vmatpush.msra.mxu1 %v1070_v60 }
 0x8f8   : > { %1086 = vmatpush.msra.mxu1 %v1069_v61 }
 0x8f9   : > { %6012 = vmatmul.msk.f32.vlgmr.msra.gmra.mxu1 %vm501_vm2, %v1032_v44 }
 0x901   : > { %6013 = vmatmul.msk.f32.gmra.mxu1 %vm501_vm2, %v1035_v54 }
 0x976   : > { %v1088_v62 = vpop.f32.mrf.mxu1 }
 0x977   : > { %v1094_v16 = vsub.f32 %v7048_v40, %v1088_v62 }
 0x97e   : > { %v1091_v50 = vpop.f32.mrf.mxu1 }
 0x97f   : > { %v1095_v52 = vsub.f32 %v7046_v37, %v1091_v50 }
 0x981   : > { %1116 = vmatpush.msra.mxu2 %v1095_v52 }
 0x983   : > { %1117 = vmatpush.msra.mxu2 %v1094_v16 }
 0x984   : > { %6014 = vmatmul.msk.f32.vlgmr.msra.gmra.mxu2 %vm501_vm2, %v1013_v43 }
 0x98c   : > { %6015 = vmatmul.msk.f32.gmra.mxu2 %vm501_vm2, %v1014_v42 }
 0xa07   : > { %v1119_v2 = vpop.f32.mrf.mxu2 }
 0xa08   : > { %v1125_v19 = vmul.f32 0.25, %v1119_v2 }
 0xa0f   : > { %v1122_v34 = vpop.f32.mrf.mxu2 }
 0xa10   : > { %v1126_v39 = vmul.f32 0.25, %v1122_v34 }
 0xa12   : > { %1141 = vmatpush.msra.mxu3 %v1126_v39 }
 0xa14   : > { %1142 = vmatpush.msra.mxu3 %v1125_v19 }
 0xa15   : > { %6016 = vmatmul.msk.f32.vlgmr.msra.gmra.mxu3 %vm501_vm2, %v6955_v46 }
 0xa1d   : > { %6017 = vmatmul.msk.f32.gmra.mxu3 %vm501_vm2, %v6959_v51 }
 0xa98   : > { %v1144_v18 = vpop.f32.mrf.mxu3 }
 0xa99   : > { %v1150_v7 = vsub.f32 %v7032_v21, %v1144_v18 }
 0xaa0   : > { %v1147_v22 = vpop.f32.mrf.mxu3 }
 0xaa1   : > { %v1151_v14 = vsub.f32 %v7030_v20, %v1147_v22 }
 0xaa3   : > { %1172 = vmatpush.msra.mxu0 %v1151_v14 }
 0xaa5   : > { %1173 = vmatpush.msra.mxu0 %v1150_v7 }
 0xaa6   : > { %6018 = vmatmul.msk.f32.vlgmr.msra.gmra.mxu0 %vm501_vm2, %v1144_v18 }
 0xaae   : > { %6019 = vmatmul.msk.f32.gmra.mxu0 %vm501_vm2, %v1147_v22 }
 0xb23   : > { %v1175_v9 = vpop.f32.mrf.mxu0 }
 0xb24   : > { %v1181_v24 = vsub.f32 %v7040_v31, %v1175_v9 }
 0xb2b   : > { %v1178_v25 = vpop.f32.mrf.mxu0 }
 0xb2c   : > { %v1182_v35 = vsub.f32 %v7038_v30, %v1178_v25 }
 0xb2e   : > { %1197 = vmatpush.msrb.mxu1 %v1182_v35 }
 0xb30   : > { %1198 = vmatpush.msrb.mxu1 %v1181_v24 }
 0xb31   : > { %6020 = vmatmul.msk.f32.vlgmr.msrb.gmra.mxu1 %vm501_vm2, %v1144_v18 }
 0xb39   : > { %6021 = vmatmul.msk.f32.gmra.mxu1 %vm501_vm2, %v1147_v22 }
 0xbae   : > { %v1200_v36 = vpop.f32.mrf.mxu1 }
 0xbaf   : > { %v1206_v44 = vsub.f32 %v7048_v40, %v1200_v36  ;;  %v6452_v36 = vunpack.i.l.bf16 %v7002_v38 }
 0xbb6   : > { %v1203_v42 = vpop.f32.mrf.mxu1 }
 0xbb7   : > { %v1207_v43 = vsub.f32 %v7046_v37, %v1203_v42 }
 0xbb9   : > { %1228 = vmatpush.msrb.mxu2 %v1207_v43  ;;  %v6453_v43 = vunpack.i.h.bf16 %v7002_v38  ;;  %v6467_v38 = vunpack.i.l.bf16 %v7070_v57 }
 0xbbb   : > { %1229 = vmatpush.msrb.mxu2 %v1206_v44  ;;  %v6457_v44 = vunpack.i.l.bf16 %v7068_v56 }
 0xbbc   : > { %6022 = vmatmul.msk.f32.vlgmr.msrb.gmra.mxu2 %vm501_vm2, %v1125_v19 }
 0xbc4   : > { %6023 = vmatmul.msk.f32.gmra.mxu2 %vm501_vm2, %v1126_v39 }
 0xc3f   : > { %v1231_v54 = vpop.f32.mrf.mxu2 }
 0xc40   : > { %v1237_v48 = vmul.f32 0.25, %v1231_v54  ;;  %v6458_v54 = vunpack.i.h.bf16 %v7068_v56 }
 0xc47   : > { %v1234_v58 = vpop.f32.mrf.mxu2 }
 0xc48   : > { %v1238_v49 = vmul.f32 0.25, %v1234_v58  ;;  %v6462_v58 = vunpack.i.l.bf16 %v7010_v41 }
 0xc4a   : > { %1253 = vmatpush.msrb.mxu3 %v1238_v49 }
 0xc4c   : > { %1254 = vmatpush.msrb.mxu3 %v1237_v48 }
 0xc4d   : > { %6024 = vmatmul.msk.f32.vlgmr.msrb.gmra.mxu3 %vm501_vm2, %v6955_v46 }
 0xc55   : > { %6025 = vmatmul.msk.f32.gmra.mxu3 %vm501_vm2, %v6959_v51 }
 0xcd0   : > { %v1256_v59 = vpop.f32.mrf.mxu3 }
 0xcd1   : > { %v1262_v62 = vsub.f32 %v7032_v21, %v1256_v59 }
 0xcd8   : > { %v1259_v60 = vpop.f32.mrf.mxu3 }
 0xcd9   : > { %v1263_v61 = vsub.f32 %v7030_v20, %v1259_v60 }
 0xcdb   : > { %1284 = vmatpush.msrb.mxu0 %v1263_v61 }
 0xcdd   : > { %1285 = vmatpush.msrb.mxu0 %v1262_v62 }
 0xcde   : > { %6026 = vmatmul.msk.f32.vlgmr.msrb.gmra.mxu0 %vm501_vm2, %v1256_v59 }
 0xce6   : > { %6027 = vmatmul.msk.f32.gmra.mxu0 %vm501_vm2, %v1259_v60 }
 0xd5b   : > { %v1287_v50 = vpop.f32.mrf.mxu0 }
 0xd5c   : > { %v1293_v2 = vsub.f32 %v7040_v31, %v1287_v50 }
 0xd63   : > { %v1290_v52 = vpop.f32.mrf.mxu0 }
 0xd64   : > { %v1294_v16 = vsub.f32 %v7038_v30, %v1290_v52 }
 0xd66   : > { %1309 = vmatpush.msra.mxu1 %v1294_v16 }
 0xd68   : > { %1310 = vmatpush.msra.mxu1 %v1293_v2  ;;  %v1584_v2 = vld [vmem:[%s8663_s4 + $0x18] sm:$0xff] }
 0xd69   : > { %6028 = vmatmul.msk.f32.vlgmr.msra.gmra.mxu1 %vm501_vm2, %v1256_v59 }
 0xd71   : > { %6029 = vmatmul.msk.f32.gmra.mxu1 %vm501_vm2, %v1259_v60  ;;  %v6468_v60 = vunpack.i.h.bf16 %v7070_v57  ;;  %v1583_v57 = vld [vmem:[%s8663_s4 + $0x10] sm:$0xff] }
 0xde6   : > { %v1312_v34 = vpop.f32.mrf.mxu1 }
 0xde7   : > { %v1318_v18 = vsub.f32 %v7048_v40, %v1312_v34  ;;  %v1585_v34 = vld [vmem:[%s8663_s4 + $0x20] sm:$0xff] }
 0xdee   : > { %v1315_v39 = vpop.f32.mrf.mxu1 }
 0xdef   : > { %v1319_v19 = vsub.f32 %v7046_v37, %v1315_v39  ;;  %v1586_v39 = vld [vmem:[%s8663_s4 + $0x28] sm:$0xff] }
 0xdf1   : > { %1340 = vmatpush.msra.mxu2 %v1319_v19  ;;  %v1587_v19 = vld [vmem:[%s8663_s4 + $0x30] sm:$0xff] }
 0xdf3   : > { %1341 = vmatpush.msra.mxu2 %v1318_v18  ;;  %v1588_v18 = vld [vmem:[%s8663_s4 + $0x38] sm:$0xff] }
 0xdf4   : > { %6030 = vmatmul.msk.f32.vlgmr.msra.gmra.mxu2 %vm501_vm2, %v1237_v48 }
 0xdfc   : > { %6031 = vmatmul.msk.f32.gmra.mxu2 %vm501_vm2, %v1238_v49  ;;  %v6463_v49 = vunpack.i.h.bf16 %v7010_v41 }
 0xe77   : > { %v1343_v22 = vpop.f32.mrf.mxu2 }
 0xe78   : > { %v7178_v9 = vmul.f32 0.25, %v1343_v22 }
 0xe7f   : > { %v1346_v14 = vpop.f32.mrf.mxu2 }
 0xe80   : > { %v7176_v7 = vmul.f32 0.25, %v1346_v14 }
 0xe82   : > { %1365 = vmatpush.msra.mxu3 %v7176_v7 }
 0xe84   : > { %1366 = vmatpush.msra.mxu3 %v7178_v9 }
 0xe85   : > { %6032 = vmatmul.msk.f32.vlgmr.msra.gmra.mxu3 %vm501_vm2, %v6955_v46  ;;  %v7192_v46 = vpop.permute.xlu0 %1947 }
 0xe8d   : > { %6033 = vmatmul.msk.f32.gmra.mxu3 %vm501_vm2, %v6959_v51  ;;  %v694_v51 = vpop.xlane.xlu1 %693  ;;  %v697_v48 = vpop.xlane.xlu0 %696 }
 0xe8e   : > { %6560 = vrcp.f32 %v694_v51 }
 0xe8f   : > { %6562 = vrcp.f32 %v697_v48 }
 0xe94   : > { %v6561_v59 = vpop.eup %6560 }
 0xe95   : > { %v700_v56 = vmul.f32 %v6561_v59, %v7012_v55  ;;  %v6563_v61 = vpop.eup %6562  ;;  %v1581_v55 = vld [vmem:[%s8663_s4] sm:$0xff] }
 0xe96   : > { %v701_v41 = vmul.f32 %v6563_v61, %v7020_v5  ;;  %v1582_v5 = vld [vmem:[%s8663_s4 + $0x8] sm:$0xff] }
 0xf08   : > { %v1368_v25 = vpop.f32.mrf.mxu3 }
 0xf09   : > { %v1374_v42 = vsub.f32 %v7032_v21, %v1368_v25 }
 0xf10   : > { %v1371_v35 = vpop.f32.mrf.mxu3 }
 0xf11   : > { %v1375_v24 = vsub.f32 %v7030_v20, %v1371_v35 }
 0xf13   : > { %1396 = vmatpush.msra.mxu0 %v1375_v24 }
 0xf15   : > { %1397 = vmatpush.msra.mxu0 %v1374_v42 }
 0xf16   : > { %6034 = vmatmul.msk.f32.vlgmr.msra.gmra.mxu0 %vm501_vm2, %v1368_v25 }
 0xf17   : > { %1566 = vmatpush.msrb.mxu0 %v6452_v36 }
 0xf19   : > { %1567 = vmatpush.msrb.mxu0 %v6453_v43 }
 0xf1b   : > { %1568 = vmatpush.msrb.mxu0 %v6457_v44 }
 0xf1d   : > { %1569 = vmatpush.msrb.mxu0 %v6458_v54 }
 0xf1e   : > { %6035 = vmatmul.msk.f32.gmra.mxu0 %vm501_vm2, %v1371_v35 }
 0xf1f   : > { %1570 = vmatpush.msrb.mxu0 %v6462_v58 }
 0xf21   : > { %1571 = vmatpush.msrb.mxu0 %v6463_v49 }
 0xf23   : > { %1572 = vmatpush.msrb.mxu0 %v6467_v38 }
 0xf25   : > { %1573 = vmatpush.msrb.mxu0 %v6468_v60 }
 0xf26   : > { %6048 = vmatmul.msk.f32.vlgmr.msrb.gmra.mxu0 %vm324_vm0, %v700_v56 }
 0xf2e   : > { %6049 = vmatmul.msk.f32.gmra.mxu0 %vm324_vm0, %v701_v41 }
 0xf93   : > { %v1399_v62 = vpop.f32.mrf.mxu0 }
 0xf94   : > { %v1405_v16 = vsub.f32 %v7040_v31, %v1399_v62 }
 0xf9b   : > { %v1402_v50 = vpop.f32.mrf.mxu0 }
 0xf9c   : > { %v1406_v52 = vsub.f32 %v7038_v30, %v1402_v50 }
 0xf9e   : > { %1421 = vmatpush.msrb.mxu1 %v1406_v52 }
 0xfa0   : > { %1422 = vmatpush.msrb.mxu1 %v1405_v16 }
 0xfa1   : > { %6036 = vmatmul.msk.f32.vlgmr.msrb.gmra.mxu1 %vm501_vm2, %v1368_v25 }
 0xfa2   : > { %1621 = vmatpush.msra.mxu1 %v6452_v36 }
 0xfa3   : > { %v1575_v14 = vpop.f32.mrf.mxu0 }
 0xfa4   : > { %1622 = vmatpush.msra.mxu1 %v6453_v43 }
 0xfa6   : > { %1623 = vmatpush.msra.mxu1 %v6457_v44 }
 0xfa8   : > { %1624 = vmatpush.msra.mxu1 %v6458_v54 }
 0xfa9   : > { %6037 = vmatmul.msk.f32.gmra.mxu1 %vm501_vm2, %v1371_v35 }
 0xfaa   : > { %1625 = vmatpush.msra.mxu1 %v6462_v58 }
 0xfab   : > { %v1578_v36 = vpop.f32.mrf.mxu0 }
 0xfac   : > { %1626 = vmatpush.msra.mxu1 %v6463_v49 }
 0xfae   : > { %1627 = vmatpush.msra.mxu1 %v6467_v38 }
 0xfb0   : > { %1628 = vmatpush.msra.mxu1 %v6468_v60  ;;  %v552_v60 = vpop.xlane.xlu1 %551 }
 0xfb1   : > { %6050 = vmatmul.msk.f32.vlgmr.msra.gmra.mxu1 %vm324_vm0, %v1581_v55  ;;  %6564 = vrcp.f32 %v552_v60  ;;  %v558_v55 = vpop.xlane.xlu2 %557 }
 0xfb2   : > { %6080 = vmatpush.xpose.msk.msrb.mxu1 %vm429_vm1, %v7098_v45 }
 0xfb6   : > { %6081 = vmatpush.xpose.msk.msrb.mxu1 %vm429_vm1, %v7100_v47 }
 0xfb7   : > { %v6565_v62 = vpop.eup %6564 }
 0xfb8   : > { %v555_v61 = vpop.xlane.xlu1 %554  ;;  %v582_v16 = vmul.f32 %v6565_v62, %v7074_v17 }
 0xfb9   : > { %6051 = vmatmul.msk.f32.gmra.mxu1 %vm324_vm0, %v1582_v5  ;;  %6566 = vrcp.f32 %v555_v61 }
 0xfba   : > { %6568 = vrcp.f32 %v558_v55 }
 0xfbf   : > { %v6567_v5 = vpop.eup %6566 }
 0xfc1   : > { %6052 = vmatmul.msk.f32.gmra.mxu1 %vm324_vm0, %v1583_v57  ;;  %v583_v57 = vmul.f32 %v6567_v5, %v7081_v23 }
 0xfc9   : > { %6053 = vmatmul.msk.f32.gmra.mxu1 %vm324_vm0, %v1584_v2  ;;  %v561_v2 = vpop.xlane.xlu1 %560 }
 0xfca   : > { %6570 = vrcp.f32 %v561_v2 }
 0xfd1   : > { %6054 = vmatmul.msk.f32.gmra.mxu1 %vm324_vm0, %v1585_v34  ;;  %v6569_v34 = vpop.eup %6568 }
 0xfd2   : > { %v584_v17 = vmul.f32 %v6569_v34, %v7088_v33 }
 0xfd9   : > { %6055 = vmatmul.msk.f32.gmra.mxu1 %vm324_vm0, %v1586_v39  ;;  %v564_v39 = vpop.xlane.xlu2 %563 }
 0xfda   : > { %6572 = vrcp.f32 %v564_v39 }
 0xfe1   : > { %6056 = vmatmul.msk.f32.gmra.mxu1 %vm324_vm0, %v1587_v19  ;;  %v6571_v19 = vpop.eup %6570 }
 0xfe9   : > { %6057 = vmatmul.msk.f32.gmra.mxu1 %vm324_vm0, %v1588_v18  ;;  %v567_v18 = vpop.xlane.xlu1 %566 }
 0xfea   : > { %6574 = vrcp.f32 %v567_v18 }
 0xff1   : > { %6082 = vmatmul.msk.f32.vlgmr.msrb.gmra.mxu1 %vm429_vm1, %v7102_v53 }
 0xff9   : > { %6083 = vmatmul.msk.f32.gmra.mxu1 %vm429_vm1, %v7192_v46 }
0x101e   : > { %v1424_v22 = vpop.f32.mrf.mxu1 }
0x101f   : > { %v1430_v24 = vsub.f32 %v7048_v40, %v1424_v22  ;;  %v570_v22 = vpop.xlane.xlu2 %569 }
0x1020   : > { %6576 = vrcp.f32 %v570_v22 }
0x1026   : > { %v1427_v25 = vpop.f32.mrf.mxu1 }
0x1027   : > { %v1431_v35 = vsub.f32 %v7046_v37, %v1427_v25  ;;  %v573_v25 = vpop.xlane.xlu1 %572 }
0x1029   : > { %1452 = vmatpush.msrb.mxu2 %v1431_v35 }
0x102b   : > { %1453 = vmatpush.msrb.mxu2 %v1430_v24 }
0x102c   : > { %6038 = vmatmul.msk.f32.vlgmr.msrb.gmra.mxu2 %vm501_vm2, %v7178_v9 }
0x102d   : > { %1692 = vmatpush.msra.mxu2 %v1578_v36 }
0x102e   : > { %v7252_v42 = vpop.f32.mrf.mxu1 }
0x102f   : > { %1693 = vmatpush.msra.mxu2 %v1575_v14 }
0x1034   : > { %6039 = vmatmul.msk.f32.gmra.mxu2 %vm501_vm2, %v7176_v7 }
0x1036   : > { %v7256_v43 = vpop.f32.mrf.mxu1 }
0x103e   : > { %v7258_v44 = vpop.f32.mrf.mxu1 }
0x1046   : > { %v7260_v51 = vpop.f32.mrf.mxu1 }
0x104e   : > { %v7262_v54 = vpop.f32.mrf.mxu1 }
0x1056   : > { %v7264_v58 = vpop.f32.mrf.mxu1 }
0x105e   : > { %v7266_v49 = vpop.f32.mrf.mxu1 }
0x1066   : > { %v7268_v9 = vpop.f32.mrf.mxu1 }
0x106e   : > { %v1970_v38 = vpop.f32.mrf.mxu1 }
0x106f   : > { %v1976_v48 = vsel %vm501_vm2, %v1970_v38, -inf }
0x1070   : > { %1977 = vmax.xlane.f32.xlu2 %v1976_v48 }
0x1076   : > { %v1973_v59 = vpop.f32.mrf.mxu1 }
0x1077   : > { %v1979_v7 = vsel %vm501_vm2, %v1973_v59, -inf }
0x1078   : > { %1980 = vmax.xlane.f32.xlu1 %v1979_v7 }
0x10af   : > { %v1455_v56 = vpop.f32.mrf.mxu2 }
0x10b0   : > { %v1461_v52 = vmul.f32 0.25, %v1455_v56 }
0x10b7   : > { %v1458_v41 = vpop.f32.mrf.mxu2 }
0x10b8   : > { %v1462_v50 = vmul.f32 0.25, %v1458_v41 }
0x10ba   : > { %1501 = vmatpush.msrb.mxu3 %v1462_v50 }
0x10bc   : > { %1502 = vmatpush.msrb.mxu3 %v1461_v52 }
0x10bd   : > { %6040 = vmatmul.msk.f32.vlgmr.msrb.gmra.mxu3 %vm501_vm2, %v582_v16 }
0x10be   : > { %6070 = vmatpush.xpose.msk.msra.mxu3 %vm429_vm1, %v7098_v45  ;;  %v585_v45 = vmul.f32 %v6571_v19, %v7086_v32 }
0x10c2   : > { %6071 = vmatpush.xpose.msk.msra.mxu3 %vm429_vm1, %v7100_v47  ;;  %v6573_v47 = vpop.eup %6572 }
0x10c3   : > { %v586_v23 = vmul.f32 %v6573_v47, %v7106_v63  ;;  %v6575_v14 = vpop.eup %6574 }
0x10c4   : > { %v587_v33 = vmul.f32 %v6575_v14, %v7110_v1  ;;  %v6577_v36 = vpop.eup %6576 }
0x10c5   : > { %6041 = vmatmul.msk.f32.gmra.mxu3 %vm501_vm2, %v583_v57  ;;  %v588_v48 = vmul.f32 %v6577_v36, %v7114_v12 }
0x10cd   : > { %6042 = vmatmul.msk.f32.gmra.mxu3 %vm501_vm2, %v584_v17 }
0x10d5   : > { %6043 = vmatmul.msk.f32.gmra.mxu3 %vm501_vm2, %v585_v45 }
0x10dd   : > { %6044 = vmatmul.msk.f32.gmra.mxu3 %vm501_vm2, %v586_v23 }
0x10e3   : > { %v1978_v35 = vpop.xlane.xlu2 %1977 }
0x10e4   : > { %v1982_v24 = vsub.f32 %v1970_v38, %v1978_v35 }
0x10e5   : > { %6045 = vmatmul.msk.f32.gmra.mxu3 %vm501_vm2, %v587_v33 }
0x10e6   : > { %v1984_v32 = vmul.f32 1.442695, %v1982_v24 }
0x10e8   : > { %6578 = vpow2.f32 %v1984_v32 }
0x10e9   : > { %6580 = vrcp.f32 %v573_v25 }
0x10eb   : > { %v1981_v7 = vpop.xlane.xlu1 %1980 }
0x10ec   : > { %v1983_v63 = vsub.f32 %v1973_v59, %v1981_v7  ;;  %v6731_v7 = vld [vmem:[%s6827_s29 + $0x20] sm:$0xff] }
0x10ed   : > { %6046 = vmatmul.msk.f32.gmra.mxu3 %vm501_vm2, %v588_v48  ;;  %v7312_v48 = vld [vmem:[%s6827_s29 + $0x38] sm:$0xff] }
0x10ee   : > { %v6579_v60 = vpop.eup %6578  ;;  %v1986_v56 = vmul.f32 1.442695, %v1983_v63  ;;  %v7317_v63 = vld [vmem:[%s6827_s29 + $0x30] sm:$0xff] }
0x10ef   : > { %v6581_v61 = vpop.eup %6580  ;;  %v1988_v1 = vsel %vm501_vm2, %v6579_v60, 0.0 }
0x10f0   : > { %6582 = vpow2.f32 %v1986_v56  ;;  %1989 = vadd.xlane.f32.xlu2 %v1988_v1  ;;  %v589_v38 = vmul.f32 %v6581_v61, %v7118_v0  ;;  %v6734_v56 = vld [vmem:[%s6827_s29 + $0x28] sm:$0xff]  ;;  %v6735_v61 = vld [vmem:[%s6827_s29] sm:$0xff]  ;;  %v7328_v1 = vld [vmem:[%s6827_s29 + $0x18] sm:$0xff] }
0x10f5   : > { %6047 = vmatmul.msk.f32.gmra.mxu3 %vm501_vm2, %v589_v38  ;;  %v320_v38 = vld [vmem:[%s8664_s5] sm:$0xf] }
0x10f6   : > { %v6583_v41 = vpop.eup %6582 }
0x10f7   : > { %v1991_v62 = vsel %vm501_vm2, %v6583_v41, 0.0 }
0x10f8   : > { %1992 = vadd.xlane.f32.xlu0 %v1991_v62  ;;  %v6737_v62 = vld [vmem:[%s6827_s29 + $0x8] sm:$0xff] }
0x1140   : > { %v1504_v12 = vpop.f32.mrf.mxu3 }
0x1141   : > { %6058 = vmatmul.msk.f32.vlgmr.msra.gmra.mxu2 %vm501_vm2, %v1504_v12 }
0x1148   : > { %v1507_v59 = vpop.f32.mrf.mxu3 }
0x1149   : > { %6059 = vmatmul.msk.f32.gmra.mxu2 %vm501_vm2, %v1507_v59 }
0x1150   : > { %v1510_v50 = vpop.f32.mrf.mxu3 }
0x1151   : > { %6060 = vmatmul.msk.f32.gmra.mxu2 %vm501_vm2, %v1510_v50 }
0x1158   : > { %v1513_v52 = vpop.f32.mrf.mxu3 }
0x1159   : > { %6061 = vmatmul.msk.f32.gmra.mxu2 %vm501_vm2, %v1513_v52 }
0x1160   : > { %v1516_v16 = vpop.f32.mrf.mxu3 }
0x1161   : > { %6062 = vmatmul.msk.f32.gmra.mxu2 %vm501_vm2, %v1516_v16 }
0x1163   : > { %v1990_v0 = vpop.xlane.xlu2 %1989 }
0x1164   : > { %6584 = vrcp.f32 %v1990_v0 }
0x1168   : > { %v1519_v55 = vpop.f32.mrf.mxu3 }
0x1169   : > { %6063 = vmatmul.msk.f32.gmra.mxu2 %vm501_vm2, %v1519_v55  ;;  %v6474_v55 = vpack.i.bf16 %v6731_v7, %v6734_v56 }
0x116a   : > { %v6585_v5 = vpop.eup %6584 }
0x116b   : > { %v7300_v57 = vmul.f32 %v6585_v5, %v6579_v60  ;;  %v1993_v2 = vpop.xlane.xlu0 %1992  ;;  %v7321_v60 = vld [vmem:[%s6827_s29 + $0x10] sm:$0xff] }
0x116c   : > { %6586 = vrcp.f32 %v1993_v2 }
0x116d   : > { %v2075_v34 = vand.u32 2147483647, %v7300_v57 }
0x116f   : > { %v2077_v39 = vsel %vm501_vm2, %v2075_v34, 0.0 }
0x1170   : > { %v1522_v17 = vpop.f32.mrf.mxu3  ;;  %2078 = vadd.xlane.f32.xlu1 %v2077_v39 }
0x1171   : > { %6064 = vmatmul.msk.f32.gmra.mxu2 %vm501_vm2, %v1522_v17 }
0x1172   : > { %v6587_v19 = vpop.eup %6586 }
0x1173   : > { %v7305_v45 = vmul.f32 %v6587_v19, %v6583_v41  ;;  %v1737_v41 = vsel %vm1735_vm7, %v320_v38, 0 }
0x1174   : > { %1746 = vmatpush.bf16.msra.mxu0 %v1737_v41 }
0x1175   : > { %v2076_v18 = vand.u32 2147483647, %v7305_v45 }
0x1177   : > { %v2080_v23 = vsel %vm501_vm2, %v2076_v18, 0.0 }
0x1178   : > { %v1525_v47 = vpop.f32.mrf.mxu3  ;;  %2081 = vadd.xlane.f32.xlu2 %v2080_v23  ;;  %v2091_v22 = vadd.f32 %v2080_v23, %v2077_v39 }
0x1179   : > { %6065 = vmatmul.msk.f32.gmra.mxu2 %vm501_vm2, %v1525_v47 }
0x117a   : > { %v2092_v14 = vrot.slane %v2091_v22, 4 }
0x117c   : > { %v2093_v33 = vadd.f32 %v2092_v14, %v2091_v22 }
0x117e   : > { %v2094_v25 = vrot.slane %v2093_v33, 2 }
0x1180   : > { %v2095_v35 = vadd.f32 %v2094_v25, %v2093_v33 }
0x1182   : > { %v2096_v24 = vrot.slane %v2095_v35, 1 }
0x1184   : > { %v2097_v32 = vadd.f32 %v2096_v24, %v2095_v35 }
0x1186   : > { %v2098_v36 = vsel %vm501_vm2, %v2097_v32, -inf }
0x1187   : > { %2099 = vmax.xlane.f32.xlu0 %v2098_v36 }
0x1190   : > { %2012 = vrot.lane.b32.xlu2 %v7312_v48, %s6765_s18 }
0x1198   : > { %2006 = vrot.lane.b32.xlu2 %v6731_v7, %s6765_s18 }
0x119b   : > { %2010 = vrot.lane.b32.xlu0 %v7317_v63, %s6765_s18 }
0x11a0   : > { %2002 = vrot.lane.b32.xlu2 %v7321_v60, %s6765_s18 }
0x11a3   : > { %2008 = vrot.lane.b32.xlu0 %v6734_v56, %s6765_s18 }
0x11a8   : > { %1998 = vrot.lane.b32.xlu2 %v6735_v61, %s6765_s18 }
0x11aa   : > { %2103 = vxpose.xlu1.b32.start [1/2] (short) (narrow) %v7300_v57, 16 }
0x11ab   : > { %2004 = vrot.lane.b32.xlu0 %v7328_v1, %s6765_s18 }
0x11b0   : > { %1778 = vrot.lane.b32.xlu2 %v6880_v13, %s6764_s13 }
0x11b2   : > { %2104 = vxpose.xlu1.b32.end [2/2] (short) (narrow) %v7305_v45, 16 }
0x11b3   : > { %2000 = vrot.lane.b32.xlu0 %v6737_v62, %s6765_s18 }
0x11b8   : > { %1782 = vrot.lane.b32.xlu2 %v6866_v10, %s6764_s13 }
0x11bb   : > { %1776 = vrot.lane.b32.xlu0 %v6890_v15, %s6764_s13 }
0x11c0   : > { %1788 = vrot.lane.b32.xlu2 %v6844_v4, %s6764_s13 }
0x11c3   : > { %1780 = vrot.lane.b32.xlu0 %v6872_v11, %s6764_s13 }
0x11c4   : > { %v1695_v12 = vpop.f32.mrf.mxu2 }
0x11c5   : > { %v1696_v50 = vadd.f32 %v1695_v12, %v7252_v42  ;;  %v6484_v42 = vpack.i.bf16 %v6735_v61, %v6737_v62 }
0x11cb   : > { %1784 = vrot.lane.b32.xlu0 %v6859_v8, %s6764_s13 }
0x11cc   : > { %v1698_v59 = vpop.f32.mrf.mxu2 }
0x11cd   : > { %v1699_v52 = vadd.f32 %v1698_v59, %v7256_v43 }
0x11cf   : > { %v1719_v16 = vpack.c.bf16 %v1699_v52, %v1696_v50 }
0x11d1   : > { %6066 = vmatmul.msk.bf16.vlgmr.msra.gmra.mxu0 %vm429_vm1, %v1719_v16 }
0x11d3   : > { %1790 = vrot.lane.b32.xlu0 %v6841_v3, %s6764_s13 }
0x11d4   : > { %v1701_v0 = vpop.f32.mrf.mxu2 }
0x11d5   : > { %v1702_v2 = vadd.f32 %v1701_v0, %v7258_v44 }
0x11db   : > { %6475 = vrot.lane.b32.xlu0 %v6474_v55, %s6766_s21 }
0x11dc   : > { %v1704_v5 = vpop.f32.mrf.mxu2 }
0x11dd   : > { %v1705_v34 = vadd.f32 %v1704_v5, %v7260_v51 }
0x11df   : > { %v1720_v17 = vpack.c.bf16 %v1705_v34, %v1702_v2 }
0x11e1   : > { %6067 = vmatmul.msk.bf16.gmra.mxu0 %vm429_vm1, %v1720_v17 }
0x11e3   : > { %6485 = vrot.lane.b32.xlu0 %v6484_v42, %s6766_s21  ;;  %v2079_v39 = vpop.xlane.xlu1 %2078 }
0x11e4   : > { %v1707_v43 = vpop.f32.mrf.mxu2 }
0x11e5   : > { %v1708_v47 = vadd.f32 %v1707_v43, %v7262_v54 }
0x11eb   : > { %3161 = vrot.lane.b32.xlu0 %v6907_v28, %s6767_s22  ;;  %v2082_v19 = vpop.xlane.xlu2 %2081 }
0x11ec   : > { %v1710_v18 = vpop.f32.mrf.mxu2  ;;  %v2083_v23 = vmax.f32 %v2079_v39, %v2082_v19 }
0x11ed   : > { %v1711_v44 = vadd.f32 %v1710_v18, %v7264_v58 }
0x11ee   : > { %v2084_v51 = vrot.slane %v2083_v23, 4 }
0x11ef   : > { %v1721_v22 = vpack.c.bf16 %v1711_v44, %v1708_v47 }
0x11f0   : > { %v2085_v14 = vmax.f32 %v2083_v23, %v2084_v51 }
0x11f1   : > { %6068 = vmatmul.msk.bf16.gmra.mxu0 %vm429_vm1, %v1721_v22  ;;  %v6469_v22 = vpack.i.bf16 %v7317_v63, %v7312_v48 }
0x11f2   : > { %v2086_v33 = vrot.slane %v2085_v14, 2 }
0x11f3   : > { %v2013_v35 = vpop.permute.xlu2 %2012  ;;  %6470 = vrot.lane.b32.xlu2 %v6469_v22, %s6766_s21 }
0x11f4   : > { %v1713_v25 = vpop.f32.mrf.mxu2  ;;  %v2087_v24 = vmax.f32 %v2085_v14, %v2086_v33  ;;  %6084 = vmatpush.xpose.msk.msrb.mxu2 %vm429_vm1, %v2013_v35  ;;  %v6479_v14 = vpack.i.bf16 %v7321_v60, %v7328_v1 }
0x11f5   : > { %v1714_v56 = vadd.f32 %v1713_v25, %v7266_v49 }
0x11f6   : > { %v2088_v32 = vrot.slane %v2087_v24, 1 }
0x11f8   : > { %v2089_v36 = vmax.f32 %v2087_v24, %v2088_v32 }
0x11fa   : > { %v2100_v7 = vpop.xlane.xlu0 %2099  ;;  %6417 = vpush %v2089_v36 }
0x11fb   : > { %6419 = vpush %v2100_v7  ;;  %v2007_v41 = vpop.permute.xlu2 %2006  ;;  %6480 = vrot.lane.b32.xlu2 %v6479_v14, %s6766_s21 }
0x11fc   : > { %v1716_v54 = vpop.f32.mrf.mxu2 }
0x11fd   : > { %v1717_v58 = vadd.f32 %v1716_v54, %v7268_v9 }
0x11ff   : > { %v1722_v61 = vpack.c.bf16 %v1717_v58, %v1714_v56 }
0x1201   : > { %6069 = vmatmul.msk.bf16.gmra.mxu0 %vm429_vm1, %v1722_v61 }
0x1203   : > { %v2003_v9 = vpop.permute.xlu2 %2002 }
0x120b   : > { %v1999_v59 = vpop.permute.xlu2 %1998 }
0x120c   : > { %1786 = vrot.lane.b32.xlu1 %v6852_v6, %s6764_s13 }
0x120d   : > { %v2011_v38 = vpop.permute.xlu0 %2010 }
0x120e   : > { %6085 = vmatpush.xpose.msk.msrb.mxu2 %vm429_vm1, %v2011_v38 }
0x1213   : > { %v1779_v52 = vpop.permute.xlu2 %1778 }
0x1214   : > { %3159 = vrot.lane.b32.xlu1 %v6913_v29, %s6767_s22 }
0x1215   : > { %v2009_v62 = vpop.permute.xlu0 %2008 }
0x1216   : > { %6086 = vmatpush.xpose.msk.msrb.mxu2 %vm429_vm1, %v2009_v62 }
0x121a   : > { %6087 = vmatpush.xpose.msk.msrb.mxu2 %vm429_vm1, %v2007_v41 }
0x121b   : > { %v1783_v2 = vpop.permute.xlu2 %1782 }
0x121d   : > { %v2005_v49 = vpop.permute.xlu0 %2004 }
0x121e   : > { %6088 = vmatpush.xpose.msk.msrb.mxu2 %vm429_vm1, %v2005_v49 }
0x1222   : > { %6089 = vmatpush.xpose.msk.msrb.mxu2 %vm429_vm1, %v2003_v9 }
0x1223   : > { %v1789_v35 = vpop.permute.xlu2 %1788 }
0x1225   : > { %v2001_v12 = vpop.permute.xlu0 %2000 }
0x1226   : > { %6090 = vmatpush.xpose.msk.msrb.mxu2 %vm429_vm1, %v2001_v12 }
0x122a   : > { %6091 = vmatpush.xpose.msk.msrb.mxu2 %vm429_vm1, %v1999_v59 }
0x122b   : > { %s6418_s13 = spop %6417 }
0x122c   : > { %s6420_s23 = spop %6419 }
0x122d   : > { %v1777_v50 = vpop.permute.xlu0 %1776  ;;  %6092 = vmatmul.msk.f32.vlgmr.msrb.gmra.mxu2 %vm429_vm1, %v7102_v53  ;;  %s2102_s25 = smul.f32 %s6420_s23, %s6418_s13  ;;  %s6768_s13 = smov 80  }
0x122e   : > { %6072 = vmatmul.msk.f32.vlgmr.msra.gmra.mxu3 %vm429_vm1, %v1777_v50 }
0x122f   : > { %v2135_v16 = vstv %s2102_s25 }
0x1230   : > { %6588 = vrcp.f32 %v2135_v16  ;;  %vm2141_vm9 = vweird.f32 %v2135_v16  ;;  %v2145_v39 = vand.u32 2147483647, %v2135_v16 }
0x1232   : > { %vm2146_vm11 = vcmp.eq.f32.partialorder %v2145_v39, 8.507059e+37 }
0x1235   : > { %6093 = vmatmul.msk.f32.gmra.mxu2 %vm429_vm1, %v7192_v46  ;;  %v1781_v0 = vpop.permute.xlu0 %1780  ;;  %v2147_v46 = vand.u32 2147483648, %v2135_v16 }
0x1236   : > { %6073 = vmatmul.msk.f32.gmra.mxu3 %vm429_vm1, %v1779_v52  ;;  %v6589_v55 = vpop.eup %6588 }
0x1237   : > { %v2137_v5 = vmul.f32 %v6589_v55, %v2135_v16  ;;  %vm2142_vm8 = vweird.f32 %v6589_v55  ;;  %v2148_v18 = vor.u32 1.1754944e-38, %v2147_v46 }
0x1238   : > { %vm2143_vm10 = vmor %vm2141_vm9, %vm2142_vm8 }
0x1239   : > { %v2138_v53 = vsub.f32 1.0, %v2137_v5 }
0x123b   : > { %v2139_v34 = vmul.f32 %v6589_v55, %v2138_v53 }
0x123d   : > { %v1785_v17 = vpop.permute.xlu0 %1784  ;;  %v2140_v43 = vadd.f32 %v6589_v55, %v2139_v34 }
0x123e   : > { %6074 = vmatmul.msk.f32.gmra.mxu3 %vm429_vm1, %v1781_v0 }
0x123f   : > { %v2144_v19 = vsel %vm2143_vm10, %v6589_v55, %v2140_v43 }
0x1240   : > { %v2149_v47 = vsel %vm2146_vm11, %v2148_v18, %v2144_v19 }
0x1245   : > { %v1791_v32 = vpop.permute.xlu0 %1790 }
0x1246   : > { %6075 = vmatmul.msk.f32.gmra.mxu3 %vm429_vm1, %v1783_v2 }
0x124d   : > { %v7453_v53 = vpop.permute.xlu0 %6475 }
0x124e   : > { %v2119_v42 = vpop.trf.xlu1  ;;  %6076 = vmatmul.msk.f32.gmra.mxu3 %vm429_vm1, %v1785_v17  ;;  %v7405_v25 = vpop.f32.mrf.mxu0 }
0x124f   : > { %v7390_v51 = vmul.f32 %v2149_v47, %v2119_v42  ;;  %v7457_v17 = vpop.permute.xlu2 %6470 }
0x1255   : > { %v7463_v46 = vpop.permute.xlu0 %6485 }
0x1256   : > { %v2120_v23 = vpop.trf.xlu1  ;;  %v7408_v24 = vpop.f32.mrf.mxu0 }
0x1257   : > { %v7388_v44 = vmul.f32 %v2149_v47, %v2120_v23  ;;  %v7465_v39 = vpop.permute.xlu2 %6480 }
0x1259   : > { %2172 = vmatpush.msrb.mxu0 %v7388_v44 }
0x125b   : > { %2173 = vmatpush.msrb.mxu0 %v7390_v51 }
0x125c   : > { %6094 = vmatmul.msk.f32.vlgmr.msrb.gmra.mxu0 %vm501_vm2, %v7300_v57 }
0x125d   : > { %v7467_v19 = vpop.permute.xlu0 %3161 }
0x125e   : > { %v7411_v48 = vpop.f32.mrf.mxu0 }
0x1264   : > { %6095 = vmatmul.msk.f32.gmra.mxu0 %vm501_vm2, %v7305_v45 }
0x1266   : > { %v7413_v63 = vpop.f32.mrf.mxu0 }
0x126e   : > { %v7419_v36 = vpop.f32.mrf.mxu0 }
0x1276   : > { %v7425_v58 = vpop.f32.mrf.mxu0 }
0x127e   : > { %v1787_v33 = vpop.permute.xlu1 %1786  ;;  %v7432_v49 = vpop.f32.mrf.mxu0 }
0x127f   : > { %6077 = vmatmul.msk.f32.gmra.mxu3 %vm429_vm1, %v1787_v33 }
0x1286   : > { %v7438_v59 = vpop.f32.mrf.mxu0 }
0x1287   : > { %6078 = vmatmul.msk.f32.gmra.mxu3 %vm429_vm1, %v1789_v35 }
0x128f   : > { %6079 = vmatmul.msk.f32.gmra.mxu3 %vm429_vm1, %v1791_v32 }
0x12b0   : > { %v2047_v7 = vpop.f32.mrf.mxu2 }
0x12b1   : > { %v7415_v60 = vpop.f32.mrf.mxu3  ;;  %v2053_v50 = vsel %vm324_vm0, %v2047_v7, -inf }
0x12b2   : > { %v1857_v1 = vsel %vm501_vm2, %v7415_v60, -inf }
0x12b3   : > { %1858 = vmax.xlane.f32.xlu2 %v1857_v1 }
0x12b8   : > { %v2050_v61 = vpop.f32.mrf.mxu2 }
0x12b9   : > { %v7421_v54 = vpop.f32.mrf.mxu3  ;;  %v2056_v41 = vsel %vm324_vm0, %v2050_v61, -inf }
0x12ba   : > { %v1860_v56 = vsel %vm501_vm2, %v7421_v54, -inf }
0x12bb   : > { %1861 = vmax.xlane.f32.xlu0 %v1860_v56 }
0x12c1   : > { %v7427_v38 = vpop.f32.mrf.mxu3 }
0x12c2   : > { %v1863_v62 = vsel %vm501_vm2, %v7427_v38, -inf }
0x12c3   : > { %2057 = vmax.xlane.f32.xlu0 %v2056_v41  ;;  %1864 = vmax.xlane.f32.xlu2 %v1863_v62 }
0x12c9   : > { %v7434_v9 = vpop.f32.mrf.mxu3 }
0x12ca   : > { %v1866_v12 = vsel %vm501_vm2, %v7434_v9, -inf }
0x12cb   : > { %1867 = vmax.xlane.f32.xlu2 %v1866_v12 }
0x12d1   : > { %v7449_v5 = vpop.f32.mrf.mxu3 }
0x12d2   : > { %v1869_v34 = vsel %vm501_vm2, %v7449_v5, -inf }
0x12d3   : > { %2054 = vmax.xlane.f32.xlu2 %v2053_v50  ;;  %1870 = vmax.xlane.f32.xlu1 %v1869_v34 }
0x12d7   : > { %3314 = vrot.lane.b32.xlu0 %v6905_v27, %s6767_s22 }
0x12d9   : > { %v2175_v52 = vpop.f32.mrf.mxu0 }
0x12da   : > { %v2181_v55 = vsub.f32 %v7032_v21, %v2175_v52 }
0x12e1   : > { %v2178_v16 = vpop.f32.mrf.mxu0 }
0x12e2   : > { %v2182_v0 = vsub.f32 %v7030_v20, %v2178_v16 }
0x12e4   : > { %2203 = vmatpush.msra.mxu1 %v2182_v0 }
0x12e6   : > { %2204 = vmatpush.msra.mxu1 %v2181_v55 }
0x12e7   : > { %6096 = vmatmul.msk.f32.vlgmr.msra.gmra.mxu1 %vm501_vm2, %v2175_v52 }
0x12eb   : > { %3312 = vrot.lane.b32.xlu2 %v6903_v26, %s6767_s22 }
0x12ef   : > { %6097 = vmatmul.msk.f32.gmra.mxu1 %vm501_vm2, %v2178_v16 }
0x1302   : > { %v7451_v2 = vpop.f32.mrf.mxu3 }
0x130a   : > { %v7459_v42 = vpop.f32.mrf.mxu3 }
0x130b   : > { %v1875_v43 = vsel %vm501_vm2, %v7459_v42, -inf }
0x130c   : > { %1876 = vmax.xlane.f32.xlu1 %v1875_v43 }
0x1326   : > { %v7469_v18 = vpop.xlane.xlu2 %1858 }
0x132e   : > { %v7471_v47 = vpop.xlane.xlu0 %1861 }
0x1336   : > { %v2058_v23 = vpop.xlane.xlu0 %2057  ;;  %v7473_v22 = vpop.xlane.xlu2 %1864 }
0x1337   : > { %v2060_v14 = vsub.f32 %v2050_v61, %v2058_v23 }
0x1339   : > { %v2063_v33 = vmul.f32 1.442695, %v2060_v14 }
0x133b   : > { %6590 = vpow2.f32 %v2063_v33 }
0x133e   : > { %v7475_v35 = vpop.xlane.xlu2 %1867 }
0x1341   : > { %v7477_v32 = vpop.eup %6590 }
0x1342   : > { %v2068_v1 = vsel %vm324_vm0, %v7477_v32, 0.0 }
0x1343   : > { %2069 = vadd.xlane.f32.xlu1 %v2068_v1 }
0x1346   : > { %v2055_v56 = vpop.xlane.xlu2 %2054 }
0x1347   : > { %v2059_v41 = vsub.f32 %v2047_v7, %v2055_v56 }
0x1349   : > { %v2061_v62 = vmul.f32 1.442695, %v2059_v41 }
0x134b   : > { %6592 = vpow2.f32 %v2061_v62 }
0x1351   : > { %v7481_v12 = vpop.eup %6592 }
0x1352   : > { %v2065_v50 = vsel %vm324_vm0, %v7481_v12, 0.0 }
0x1353   : > { %2066 = vadd.xlane.f32.xlu2 %v2065_v50 }
0x1364   : > { %v2206_v61 = vpop.f32.mrf.mxu1 }
0x1365   : > { %v2212_v34 = vsub.f32 %v7040_v31, %v2206_v61 }
0x136c   : > { %v2209_v0 = vpop.f32.mrf.mxu1 }
0x136d   : > { %v2213_v55 = vsub.f32 %v7038_v30, %v2209_v0 }
0x136f   : > { %2228 = vmatpush.msra.mxu2 %v2213_v55 }
0x1371   : > { %2229 = vmatpush.msra.mxu2 %v2212_v34 }
0x1372   : > { %6098 = vmatmul.msk.f32.vlgmr.msra.gmra.mxu2 %vm501_vm2, %v2175_v52 }
0x137a   : > { %6099 = vmatmul.msk.f32.gmra.mxu2 %vm501_vm2, %v2178_v16 }
0x13f5   : > { %v2231_v7 = vpop.f32.mrf.mxu2 }
0x13f6   : > { %v2237_v14 = vsub.f32 %v7048_v40, %v2231_v7 }
0x13fd   : > { %v2234_v43 = vpop.f32.mrf.mxu2 }
0x13fe   : > { %v2238_v23 = vsub.f32 %v7046_v37, %v2234_v43 }
0x1400   : > { %2259 = vmatpush.msra.mxu0 %v2238_v23  ;;  %v1882_v23 = vsub.f32 %v7421_v54, %v7471_v47  ;;  %v1872_v54 = vsel %vm501_vm2, %v7451_v2, -inf  ;;  %v1854_v47 = vpop.f32.mrf.mxu3 }
0x1401   : > { %1873 = vmax.xlane.f32.xlu0 %v1872_v54  ;;  %v7550_v54 = vpop.permute.xlu2 %3312 }
0x1402   : > { %2260 = vmatpush.msra.mxu0 %v2237_v14  ;;  %v1891_v14 = vmul.f32 1.442695, %v1882_v23  ;;  %v7545_v23 = vpop.permute.xlu0 %3314 }
0x1403   : > { %6100 = vmatmul.msk.f32.vlgmr.msra.gmra.mxu0 %vm501_vm2, %v7390_v51 }
0x1404   : > { %6594 = vpow2.f32 %v1891_v14 }
0x140b   : > { %6101 = vmatmul.msk.f32.gmra.mxu0 %vm501_vm2, %v7388_v44 }
0x1480   : > { %v2262_v33 = vpop.f32.mrf.mxu0 }
0x1481   : > { %v2268_v52 = vmul.f32 0.25, %v2262_v33  ;;  %v1881_v33 = vsub.f32 %v7415_v60, %v7469_v18 }
0x1488   : > { %v2265_v1 = vpop.f32.mrf.mxu0 }
0x1489   : > { %v2269_v56 = vmul.f32 0.25, %v2265_v1  ;;  %v1884_v1 = vsub.f32 %v7434_v9, %v7475_v35  ;;  %v1878_v9 = vsel %vm501_vm2, %v1854_v47, -inf }
0x148a   : > { %1879 = vmax.xlane.f32.xlu2 %v1878_v9  ;;  %v7555_v9 = vpop.xlane.xlu2 %2066 }
0x148b   : > { %2284 = vmatpush.msrb.mxu1 %v2269_v56 }
0x148d   : > { %2285 = vmatpush.msrb.mxu1 %v2268_v52 }
0x148e   : > { %6102 = vmatmul.msk.f32.vlgmr.msrb.gmra.mxu1 %vm501_vm2, %v7300_v57 }
0x1496   : > { %6103 = vmatmul.msk.f32.gmra.mxu1 %vm501_vm2, %v7305_v45 }
0x150b   : > { %v2287_v16 = vpop.f32.mrf.mxu1 }
0x150c   : > { %v2293_v51 = vsub.f32 %v7032_v21, %v2287_v16 }
0x1513   : > { %v2290_v41 = vpop.f32.mrf.mxu1 }
0x1514   : > { %v2294_v62 = vsub.f32 %v7030_v20, %v2290_v41 }
0x1516   : > { %2315 = vmatpush.msrb.mxu2 %v2294_v62  ;;  %v7517_v62 = vpop.eup %6594 }
0x1517   : > { %v1908_v60 = vsel %vm501_vm2, %v7517_v62, 0.0 }
0x1518   : > { %2316 = vmatpush.msrb.mxu2 %v2293_v51  ;;  %1909 = vadd.xlane.f32.xlu1 %v1908_v60 }
0x1519   : > { %6104 = vmatmul.msk.f32.vlgmr.msrb.gmra.mxu2 %vm501_vm2, %v2287_v16 }
0x1521   : > { %6105 = vmatmul.msk.f32.gmra.mxu2 %vm501_vm2, %v2290_v41 }
0x159c   : > { %v2318_v44 = vpop.f32.mrf.mxu2 }
0x159d   : > { %v2324_v0 = vsub.f32 %v7040_v31, %v2318_v44 }
0x15a4   : > { %v2321_v50 = vpop.f32.mrf.mxu2 }
0x15a5   : > { %v2325_v61 = vsub.f32 %v7038_v30, %v2321_v50 }
0x15a7   : > { %2340 = vmatpush.msrb.mxu0 %v2325_v61 }
0x15a9   : > { %2341 = vmatpush.msrb.mxu0 %v2324_v0 }
0x15aa   : > { %6106 = vmatmul.msk.f32.vlgmr.msrb.gmra.mxu0 %vm501_vm2, %v2287_v16  ;;  %v1889_v16 = vmul.f32 1.442695, %v1881_v33  ;;  %v1874_v33 = vpop.xlane.xlu0 %1873 }
0x15ac   : > { %6596 = vpow2.f32 %v1889_v16 }
0x15b2   : > { %6107 = vmatmul.msk.f32.gmra.mxu0 %vm501_vm2, %v2290_v41  ;;  %v1895_v41 = vmul.f32 1.442695, %v1884_v1  ;;  %v7526_v35 = vpop.eup %6596  ;;  %v1886_v1 = vsub.f32 %v7451_v2, %v1874_v33 }
0x15b4   : > { %6598 = vpow2.f32 %v1895_v41  ;;  %v1899_v41 = vmul.f32 1.442695, %v1886_v1 }
0x1627   : > { %v2343_v55 = vpop.f32.mrf.mxu0 }
0x1628   : > { %v2349_v43 = vsub.f32 %v7048_v40, %v2343_v55 }
0x162f   : > { %v2346_v34 = vpop.f32.mrf.mxu0 }
0x1630   : > { %v2350_v7 = vsub.f32 %v7046_v37, %v2346_v34  ;;  %v7542_v34 = vpop.permute.xlu1 %3159 }
0x1632   : > { %2371 = vmatpush.msra.mxu1 %v2350_v7 }
0x1634   : > { %2372 = vmatpush.msra.mxu1 %v2349_v43 }
0x1635   : > { %6108 = vmatmul.msk.f32.vlgmr.msra.gmra.mxu1 %vm501_vm2, %v2268_v52  ;;  %v1883_v52 = vsub.f32 %v7427_v38, %v7473_v22  ;;  %v1905_v38 = vsel %vm501_vm2, %v7526_v35, 0.0 }
0x1636   : > { %1906 = vadd.xlane.f32.xlu0 %v1905_v38 }
0x1637   : > { %v1893_v18 = vmul.f32 1.442695, %v1883_v52 }
0x1638   : > { %v1871_v7 = vpop.xlane.xlu1 %1870 }
0x1639   : > { %6600 = vpow2.f32 %v1893_v18  ;;  %v1885_v43 = vsub.f32 %v7449_v5, %v1871_v7 }
0x163b   : > { %v1897_v14 = vmul.f32 1.442695, %v1885_v43 }
0x163d   : > { %6109 = vmatmul.msk.f32.gmra.mxu1 %vm501_vm2, %v2269_v56  ;;  %v7528_v56 = vpop.eup %6598  ;;  %6602 = vpow2.f32 %v1897_v14 }
0x163e   : > { %v1914_v22 = vsel %vm501_vm2, %v7528_v56, 0.0  ;;  %6604 = vpow2.f32 %v1899_v41 }
0x163f   : > { %1915 = vadd.xlane.f32.xlu2 %v1914_v22  ;;  %v7534_v44 = vpop.eup %6600 }
0x1640   : > { %v1911_v50 = vsel %vm501_vm2, %v7534_v44, 0.0  ;;  %v1877_v16 = vpop.xlane.xlu1 %1876 }
0x1641   : > { %1912 = vadd.xlane.f32.xlu0 %v1911_v50  ;;  %v1887_v60 = vsub.f32 %v7459_v42, %v1877_v16 }
0x1643   : > { %v7548_v52 = vpop.eup %6602  ;;  %v1901_v5 = vmul.f32 1.442695, %v1887_v60 }
0x1644   : > { %v1917_v18 = vsel %vm501_vm2, %v7548_v52, 0.0  ;;  %v7557_v38 = vpop.eup %6604 }
0x1645   : > { %1918 = vadd.xlane.f32.xlu1 %v1917_v18  ;;  %6606 = vpow2.f32 %v1901_v5  ;;  %v1920_v2 = vsel %vm501_vm2, %v7557_v38, 0.0 }
0x1649   : > { %1921 = vadd.xlane.f32.xlu0 %v1920_v2 }
0x164b   : > { %v7561_v22 = vpop.eup %6606 }
0x164c   : > { %v1923_v42 = vsel %vm501_vm2, %v7561_v22, 0.0 }
0x164d   : > { %1924 = vadd.xlane.f32.xlu2 %v1923_v42 }
0x16b2   : > { %v2374_v51 = vpop.f32.mrf.mxu1 }
0x16b3   : > { %v2380_v55 = vmul.f32 0.25, %v2374_v51  ;;  %v1880_v51 = vpop.xlane.xlu2 %1879 }
0x16b4   : > { %v1888_v50 = vsub.f32 %v1854_v47, %v1880_v51 }
0x16ba   : > { %v2377_v61 = vpop.f32.mrf.mxu1 }
0x16bb   : > { %v2381_v0 = vmul.f32 0.25, %v2377_v61  ;;  %v1903_v61 = vmul.f32 1.442695, %v1888_v50 }
0x16bd   : > { %2396 = vmatpush.msra.mxu2 %v2381_v0  ;;  %6608 = vpow2.f32 %v1903_v61 }
0x16be   : > { %6610 = vrcp.f32 %v7555_v9 }
0x16bf   : > { %2397 = vmatpush.msra.mxu2 %v2380_v55 }
0x16c0   : > { %6110 = vmatmul.msk.f32.vlgmr.msra.gmra.mxu2 %vm501_vm2, %v7300_v57 }
0x16c3   : > { %v7565_v7 = vpop.eup %6608 }
0x16c4   : > { %v1926_v43 = vsel %vm501_vm2, %v7565_v7, 0.0 }
0x16c5   : > { %1927 = vadd.xlane.f32.xlu1 %v1926_v43 }
0x16c8   : > { %6111 = vmatmul.msk.f32.gmra.mxu2 %vm501_vm2, %v7305_v45 }
0x1743   : > { %v2399_v14 = vpop.f32.mrf.mxu2 }
0x1744   : > { %v2405_v16 = vsub.f32 %v7032_v21, %v2399_v14 }
0x174b   : > { %v2402_v33 = vpop.f32.mrf.mxu2 }
0x174c   : > { %v2406_v1 = vsub.f32 %v7030_v20, %v2402_v33 }
0x174e   : > { %2427 = vmatpush.msrb.mxu3 %v2406_v1 }
0x1750   : > { %2428 = vmatpush.msrb.mxu3 %v2405_v16 }
0x1751   : > { %6112 = vmatmul.msk.f32.vlgmr.msrb.gmra.mxu3 %vm501_vm2, %v2399_v14 }
0x1759   : > { %6113 = vmatmul.msk.f32.gmra.mxu3 %vm501_vm2, %v2402_v33 }
0x17d4   : > { %v2430_v47 = vpop.f32.mrf.mxu3 }
0x17d5   : > { %v2436_v18 = vsub.f32 %v7040_v31, %v2430_v47 }
0x17dc   : > { %v2433_v41 = vpop.f32.mrf.mxu3 }
0x17dd   : > { %v2437_v60 = vsub.f32 %v7038_v30, %v2433_v41 }
0x17df   : > { %2452 = vmatpush.msra.mxu0 %v2437_v60 }
0x17e1   : > { %2453 = vmatpush.msra.mxu0 %v2436_v18 }
0x17e2   : > { %6114 = vmatmul.msk.f32.vlgmr.msra.gmra.mxu0 %vm501_vm2, %v2399_v14 }
0x17ea   : > { %6115 = vmatmul.msk.f32.gmra.mxu0 %vm501_vm2, %v2402_v33 }
0x185f   : > { %v2455_v5 = vpop.f32.mrf.mxu0 }
0x1860   : > { %v2461_v50 = vsub.f32 %v7048_v40, %v2455_v5 }
0x1867   : > { %v2458_v2 = vpop.f32.mrf.mxu0 }
0x1868   : > { %v2462_v51 = vsub.f32 %v7046_v37, %v2458_v2 }
0x186a   : > { %2483 = vmatpush.msrb.mxu1 %v2462_v51 }
0x186c   : > { %2484 = vmatpush.msrb.mxu1 %v2461_v50 }
0x186d   : > { %6116 = vmatmul.msk.f32.vlgmr.msrb.gmra.mxu1 %vm501_vm2, %v2380_v55 }
0x1875   : > { %6117 = vmatmul.msk.f32.gmra.mxu1 %vm501_vm2, %v2381_v0 }
0x18ea   : > { %v2486_v42 = vpop.f32.mrf.mxu1 }
0x18eb   : > { %v2492_v1 = vmul.f32 0.25, %v2486_v42 }
0x18f2   : > { %v2489_v61 = vpop.f32.mrf.mxu1 }
0x18f3   : > { %v2493_v43 = vmul.f32 0.25, %v2489_v61 }
0x18f5   : > { %2508 = vmatpush.msrb.mxu2 %v2493_v43 }
0x18f7   : > { %2509 = vmatpush.msrb.mxu2 %v2492_v1 }
0x18f8   : > { %6118 = vmatmul.msk.f32.vlgmr.msrb.gmra.mxu2 %vm501_vm2, %v7300_v57 }
0x1900   : > { %6119 = vmatmul.msk.f32.gmra.mxu2 %vm501_vm2, %v7305_v45 }
0x197b   : > { %v2511_v14 = vpop.f32.mrf.mxu2 }
0x197c   : > { %v2517_v55 = vsub.f32 %v7032_v21, %v2511_v14 }
0x1983   : > { %v2514_v33 = vpop.f32.mrf.mxu2 }
0x1984   : > { %v2518_v16 = vsub.f32 %v7030_v20, %v2514_v33 }
0x1986   : > { %2539 = vmatpush.msra.mxu3 %v2518_v16 }
0x1988   : > { %2540 = vmatpush.msra.mxu3 %v2517_v55 }
0x1989   : > { %6120 = vmatmul.msk.f32.vlgmr.msra.gmra.mxu3 %vm501_vm2, %v2511_v14 }
0x1991   : > { %6121 = vmatmul.msk.f32.gmra.mxu3 %vm501_vm2, %v2514_v33 }
0x1a0c   : > { %v2542_v0 = vpop.f32.mrf.mxu3 }
0x1a0d   : > { %v2548_v60 = vsub.f32 %v7040_v31, %v2542_v0 }
0x1a14   : > { %v2545_v47 = vpop.f32.mrf.mxu3 }
0x1a15   : > { %v2549_v41 = vsub.f32 %v7038_v30, %v2545_v47 }
0x1a17   : > { %2564 = vmatpush.msrb.mxu0 %v2549_v41 }
0x1a19   : > { %2565 = vmatpush.msrb.mxu0 %v2548_v60 }
0x1a1a   : > { %6122 = vmatmul.msk.f32.vlgmr.msrb.gmra.mxu0 %vm501_vm2, %v2511_v14 }
0x1a22   : > { %6123 = vmatmul.msk.f32.gmra.mxu0 %vm501_vm2, %v2514_v33 }
0x1a97   : > { %v2567_v18 = vpop.f32.mrf.mxu0 }
0x1a98   : > { %v2573_v51 = vsub.f32 %v7048_v40, %v2567_v18 }
0x1a9f   : > { %v2570_v5 = vpop.f32.mrf.mxu0 }
0x1aa0   : > { %v2574_v2 = vsub.f32 %v7046_v37, %v2570_v5 }
0x1aa2   : > { %2595 = vmatpush.msra.mxu1 %v2574_v2 }
0x1aa4   : > { %2596 = vmatpush.msra.mxu1 %v2573_v51 }
0x1aa5   : > { %6124 = vmatmul.msk.f32.vlgmr.msra.gmra.mxu1 %vm501_vm2, %v2492_v1 }
0x1aad   : > { %6125 = vmatmul.msk.f32.gmra.mxu1 %vm501_vm2, %v2493_v43 }
0x1b22   : > { %v2598_v50 = vpop.f32.mrf.mxu1 }
0x1b23   : > { %v2604_v16 = vmul.f32 0.25, %v2598_v50 }
0x1b2a   : > { %v2601_v42 = vpop.f32.mrf.mxu1 }
0x1b2b   : > { %v2605_v61 = vmul.f32 0.25, %v2601_v42 }
0x1b2d   : > { %2620 = vmatpush.msra.mxu2 %v2605_v61 }
0x1b2f   : > { %2621 = vmatpush.msra.mxu2 %v2604_v16 }
0x1b30   : > { %6126 = vmatmul.msk.f32.vlgmr.msra.gmra.mxu2 %vm501_vm2, %v7300_v57 }
0x1b38   : > { %6127 = vmatmul.msk.f32.gmra.mxu2 %vm501_vm2, %v7305_v45 }
0x1bb3   : > { %v2623_v14 = vpop.f32.mrf.mxu2 }
0x1bb4   : > { %v2629_v1 = vsub.f32 %v7032_v21, %v2623_v14 }
0x1bbb   : > { %v2626_v33 = vpop.f32.mrf.mxu2 }
0x1bbc   : > { %v2630_v55 = vsub.f32 %v7030_v20, %v2626_v33 }
0x1bbe   : > { %2651 = vmatpush.msrb.mxu3 %v2630_v55 }
0x1bc0   : > { %2652 = vmatpush.msrb.mxu3 %v2629_v1 }
0x1bc1   : > { %6128 = vmatmul.msk.f32.vlgmr.msrb.gmra.mxu3 %vm501_vm2, %v2623_v14 }
0x1bc9   : > { %6129 = vmatmul.msk.f32.gmra.mxu3 %vm501_vm2, %v2626_v33 }
0x1c44   : > { %v2654_v43 = vpop.f32.mrf.mxu3 }
0x1c45   : > { %v2660_v41 = vsub.f32 %v7040_v31, %v2654_v43  ;;  %v6473_v43 = vunpack.i.h.bf16 %v7457_v17 }
0x1c4c   : > { %v2657_v0 = vpop.f32.mrf.mxu3 }
0x1c4d   : > { %v2661_v47 = vsub.f32 %v7038_v30, %v2657_v0  ;;  %v6477_v0 = vunpack.i.l.bf16 %v7453_v53 }
0x1c4f   : > { %2676 = vmatpush.msra.mxu0 %v2661_v47  ;;  %v6483_v47 = vunpack.i.h.bf16 %v7465_v39 }
0x1c51   : > { %2677 = vmatpush.msra.mxu0 %v2660_v41  ;;  %v2070_v41 = vpop.xlane.xlu1 %2069 }
0x1c52   : > { %6130 = vmatmul.msk.f32.vlgmr.msra.gmra.mxu0 %vm501_vm2, %v2623_v14  ;;  %6612 = vrcp.f32 %v2070_v41 }
0x1c5a   : > { %6131 = vmatmul.msk.f32.gmra.mxu0 %vm501_vm2, %v2626_v33  ;;  %v6472_v33 = vunpack.i.l.bf16 %v7457_v17  ;;  %v6487_v17 = vunpack.i.l.bf16 %v7463_v46 }
0x1ccf   : > { %v2679_v60 = vpop.f32.mrf.mxu0 }
0x1cd0   : > { %v2685_v2 = vsub.f32 %v7048_v40, %v2679_v60  ;;  %v6611_v60 = vpop.eup %6610 }
0x1cd1   : > { %v6613_v9 = vpop.eup %6612 }
0x1cd7   : > { %v2682_v18 = vpop.f32.mrf.mxu0 }
0x1cd8   : > { %v2686_v5 = vsub.f32 %v7046_v37, %v2682_v18  ;;  %v6488_v18 = vunpack.i.h.bf16 %v7463_v46  ;;  %v6152_v46 = vld [vmem:[%s8663_s4 + $0x40] sm:$0xff] }
0x1cda   : > { %2707 = vmatpush.msrb.mxu1 %v2686_v5 }
0x1cdc   : > { %2708 = vmatpush.msrb.mxu1 %v2685_v2 }
0x1cdd   : > { %6132 = vmatmul.msk.f32.vlgmr.msrb.gmra.mxu1 %vm501_vm2, %v2604_v16 }
0x1ce5   : > { %6133 = vmatmul.msk.f32.gmra.mxu1 %vm501_vm2, %v2605_v61 }
0x1d5a   : > { %v2710_v51 = vpop.f32.mrf.mxu1 }
0x1d5b   : > { %v7615_v55 = vmul.f32 0.25, %v2710_v51 }
0x1d62   : > { %v2713_v50 = vpop.f32.mrf.mxu1 }
0x1d63   : > { %v7613_v42 = vmul.f32 0.25, %v2713_v50 }
0x1d65   : > { %2732 = vmatpush.msrb.mxu2 %v7613_v42 }
0x1d67   : > { %2733 = vmatpush.msrb.mxu2 %v7615_v55 }
0x1d68   : > { %6134 = vmatmul.msk.f32.vlgmr.msrb.gmra.mxu2 %vm501_vm2, %v7300_v57  ;;  %v6478_v57 = vunpack.i.h.bf16 %v7453_v53  ;;  %v2073_v53 = vmul.f32 %v6611_v60, %v7481_v12  ;;  %v6154_v12 = vld [vmem:[%s8663_s4 + $0x50] sm:$0xff] }
0x1d70   : > { %6135 = vmatmul.msk.f32.gmra.mxu2 %vm501_vm2, %v7305_v45  ;;  %v6482_v45 = vunpack.i.l.bf16 %v7465_v39  ;;  %v2074_v39 = vmul.f32 %v6613_v9, %v7477_v32  ;;  %v6153_v32 = vld [vmem:[%s8663_s4 + $0x48] sm:$0xff] }
0x1deb   : > { %v2735_v14 = vpop.f32.mrf.mxu2 }
0x1dec   : > { %v2741_v1 = vsub.f32 %v7032_v21, %v2735_v14 }
0x1df3   : > { %v2738_v16 = vpop.f32.mrf.mxu2 }
0x1df4   : > { %v2742_v61 = vsub.f32 %v7030_v20, %v2738_v16 }
0x1df6   : > { %2763 = vmatpush.msra.mxu3 %v2742_v61  ;;  %v6157_v61 = vld [vmem:[%s8663_s4 + $0x68] sm:$0xff] }
0x1df8   : > { %2764 = vmatpush.msra.mxu3 %v2741_v1  ;;  %v6159_v1 = vld [vmem:[%s8663_s4 + $0x78] sm:$0xff] }
0x1df9   : > { %6136 = vmatmul.msk.f32.vlgmr.msra.gmra.mxu3 %vm501_vm2, %v2735_v14 }
0x1dfa   : > { %2933 = vmatpush.msrb.mxu3 %v6472_v33 }
0x1dfc   : > { %2934 = vmatpush.msrb.mxu3 %v6473_v43 }
0x1dfe   : > { %2935 = vmatpush.msrb.mxu3 %v6477_v0 }
0x1e00   : > { %2936 = vmatpush.msrb.mxu3 %v6478_v57 }
0x1e01   : > { %6137 = vmatmul.msk.f32.gmra.mxu3 %vm501_vm2, %v2738_v16 }
0x1e02   : > { %2937 = vmatpush.msrb.mxu3 %v6482_v45 }
0x1e04   : > { %2938 = vmatpush.msrb.mxu3 %v6483_v47 }
0x1e06   : > { %2939 = vmatpush.msrb.mxu3 %v6487_v17 }
0x1e08   : > { %2940 = vmatpush.msrb.mxu3 %v6488_v18 }
0x1e09   : > { %6150 = vmatmul.msk.f32.vlgmr.msrb.gmra.mxu3 %vm324_vm0, %v2073_v53 }
0x1e11   : > { %6151 = vmatmul.msk.f32.gmra.mxu3 %vm324_vm0, %v2074_v39 }
0x1e7c   : > { %v2766_v5 = vpop.f32.mrf.mxu3 }
0x1e7d   : > { %v2772_v50 = vsub.f32 %v7040_v31, %v2766_v5 }
0x1e84   : > { %v2769_v2 = vpop.f32.mrf.mxu3 }
0x1e85   : > { %v2773_v51 = vsub.f32 %v7038_v30, %v2769_v2 }
0x1e87   : > { %2788 = vmatpush.msrb.mxu0 %v2773_v51 }
0x1e89   : > { %2789 = vmatpush.msrb.mxu0 %v2772_v50 }
0x1e8a   : > { %6138 = vmatmul.msk.f32.vlgmr.msrb.gmra.mxu0 %vm501_vm2, %v2735_v14  ;;  %v6155_v14 = vld [vmem:[%s8663_s4 + $0x58] sm:$0xff] }
0x1e8b   : > { %2989 = vmatpush.msra.mxu0 %v6472_v33  ;;  %v6158_v33 = vld [vmem:[%s8663_s4 + $0x70] sm:$0xff] }
0x1e8d   : > { %2990 = vmatpush.msra.mxu0 %v6473_v43 }
0x1e8f   : > { %2991 = vmatpush.msra.mxu0 %v6477_v0  ;;  %v2942_v0 = vpop.f32.mrf.mxu3 }
0x1e91   : > { %2992 = vmatpush.msra.mxu0 %v6478_v57 }
0x1e92   : > { %6139 = vmatmul.msk.f32.gmra.mxu0 %vm501_vm2, %v2738_v16  ;;  %v6156_v16 = vld [vmem:[%s8663_s4 + $0x60] sm:$0xff] }
0x1e93   : > { %2993 = vmatpush.msra.mxu0 %v6482_v45 }
0x1e95   : > { %2994 = vmatpush.msra.mxu0 %v6483_v47 }
0x1e97   : > { %2995 = vmatpush.msra.mxu0 %v6487_v17  ;;  %v2945_v17 = vpop.f32.mrf.mxu3 }
0x1e99   : > { %2996 = vmatpush.msra.mxu0 %v6488_v18 }
0x1e9a   : > { %6160 = vmatmul.msk.f32.vlgmr.msra.gmra.mxu0 %vm324_vm0, %v6152_v46  ;;  %v1907_v46 = vpop.xlane.xlu0 %1906 }
0x1e9b   : > { %6190 = vmatpush.xpose.msk.msrb.mxu0 %vm429_vm1, %v7467_v19  ;;  %6614 = vrcp.f32 %v1907_v46 }
0x1e9f   : > { %6191 = vmatpush.xpose.msk.msrb.mxu0 %vm429_vm1, %v7542_v34 }
0x1ea2   : > { %6161 = vmatmul.msk.f32.gmra.mxu0 %vm324_vm0, %v6153_v32 }
0x1eaa   : > { %6162 = vmatmul.msk.f32.gmra.mxu0 %vm324_vm0, %v6154_v12  ;;  %v1910_v12 = vpop.xlane.xlu1 %1909 }
0x1eab   : > { %6616 = vrcp.f32 %v1910_v12 }
0x1eb2   : > { %6163 = vmatmul.msk.f32.gmra.mxu0 %vm324_vm0, %v6155_v14 }
0x1eba   : > { %6164 = vmatmul.msk.f32.gmra.mxu0 %vm324_vm0, %v6156_v16  ;;  %v6615_v16 = vpop.eup %6614 }
0x1ec2   : > { %6165 = vmatmul.msk.f32.gmra.mxu0 %vm324_vm0, %v6157_v61 }
0x1eca   : > { %6166 = vmatmul.msk.f32.gmra.mxu0 %vm324_vm0, %v6158_v33 }
0x1ed2   : > { %6167 = vmatmul.msk.f32.gmra.mxu0 %vm324_vm0, %v6159_v1  ;;  %v1937_v1 = vmul.f32 %v6615_v16, %v7526_v35 }
0x1eda   : > { %6192 = vmatmul.msk.f32.vlgmr.msrb.gmra.mxu0 %vm429_vm1, %v7550_v54 }
0x1ee2   : > { %6193 = vmatmul.msk.f32.gmra.mxu0 %vm429_vm1, %v7545_v23 }
0x1f07   : > { %v2791_v43 = vpop.f32.mrf.mxu0 }
0x1f08   : > { %v2797_v47 = vsub.f32 %v7048_v40, %v2791_v43  ;;  %v1913_v43 = vpop.xlane.xlu0 %1912 }
0x1f09   : > { %6618 = vrcp.f32 %v1913_v43 }
0x1f0f   : > { %v2794_v57 = vpop.f32.mrf.mxu0 }
0x1f10   : > { %v2798_v45 = vsub.f32 %v7046_v37, %v2794_v57 }
0x1f12   : > { %2819 = vmatpush.msra.mxu1 %v2798_v45  ;;  %v1916_v45 = vpop.xlane.xlu2 %1915 }
0x1f13   : > { %6620 = vrcp.f32 %v1916_v45 }
0x1f14   : > { %2820 = vmatpush.msra.mxu1 %v2797_v47 }
0x1f15   : > { %6140 = vmatmul.msk.f32.vlgmr.msra.gmra.mxu1 %vm501_vm2, %v7615_v55 }
0x1f16   : > { %3060 = vmatpush.msrb.mxu1 %v2945_v17  ;;  %v1919_v17 = vpop.xlane.xlu1 %1918 }
0x1f17   : > { %v7688_v41 = vpop.f32.mrf.mxu0  ;;  %6622 = vrcp.f32 %v1919_v17 }
0x1f18   : > { %3061 = vmatpush.msrb.mxu1 %v2942_v0  ;;  %v6617_v0 = vpop.eup %6616 }
0x1f19   : > { %v1938_v57 = vmul.f32 %v6617_v0, %v7517_v62  ;;  %v6619_v47 = vpop.eup %6618 }
0x1f1a   : > { %v1939_v35 = vmul.f32 %v6619_v47, %v7534_v44  ;;  %v1925_v46 = vpop.xlane.xlu2 %1924 }
0x1f1d   : > { %6141 = vmatmul.msk.f32.gmra.mxu1 %vm501_vm2, %v7613_v42 }
0x1f1e   : > { %v1928_v12 = vpop.xlane.xlu1 %1927 }
0x1f1f   : > { %v7692_v60 = vpop.f32.mrf.mxu0 }
0x1f27   : > { %v7694_v18 = vpop.f32.mrf.mxu0 }
0x1f2f   : > { %v7696_v53 = vpop.f32.mrf.mxu0 }
0x1f37   : > { %v7698_v9 = vpop.f32.mrf.mxu0 }
0x1f3f   : > { %v7700_v39 = vpop.f32.mrf.mxu0 }
0x1f47   : > { %v7702_v5 = vpop.f32.mrf.mxu0 }
0x1f4f   : > { %v7704_v55 = vpop.f32.mrf.mxu0 }
0x1f57   : > { %v3337_v2 = vpop.f32.mrf.mxu0 }
0x1f58   : > { %v3343_v51 = vsel %vm501_vm2, %v3337_v2, -inf }
0x1f59   : > { %3344 = vmax.xlane.f32.xlu0 %v3343_v51  ;;  %v6621_v51 = vpop.eup %6620 }
0x1f5f   : > { %v3340_v50 = vpop.f32.mrf.mxu0 }
0x1f60   : > { %v3346_v42 = vsel %vm501_vm2, %v3340_v50, -inf }
0x1f61   : > { %3347 = vmax.xlane.f32.xlu2 %v3346_v42  ;;  %v1922_v42 = vpop.xlane.xlu0 %1921 }
0x1f62   : > { %6624 = vrcp.f32 %v1922_v42 }
0x1f63   : > { %6626 = vrcp.f32 %v1925_v46 }
0x1f64   : > { %6628 = vrcp.f32 %v1928_v12 }
0x1f92   : > { %v2822_v32 = vpop.f32.mrf.mxu1 }
0x1f93   : > { %v2828_v33 = vmul.f32 0.25, %v2822_v32 }
0x1f9a   : > { %v2825_v14 = vpop.f32.mrf.mxu1 }
0x1f9b   : > { %v2829_v61 = vmul.f32 0.25, %v2825_v14 }
0x1f9d   : > { %2868 = vmatpush.msra.mxu2 %v2829_v61 }
0x1f9f   : > { %2869 = vmatpush.msra.mxu2 %v2828_v33 }
0x1fa0   : > { %6142 = vmatmul.msk.f32.vlgmr.msra.gmra.mxu2 %vm501_vm2, %v1937_v1 }
0x1fa1   : > { %6180 = vmatpush.xpose.msk.msrb.mxu2 %vm429_vm1, %v7467_v19  ;;  %v1940_v19 = vmul.f32 %v6621_v51, %v7528_v56 }
0x1fa5   : > { %6181 = vmatpush.xpose.msk.msrb.mxu2 %vm429_vm1, %v7542_v34  ;;  %v6623_v34 = vpop.eup %6622 }
0x1fa6   : > { %v1941_v62 = vmul.f32 %v6623_v34, %v7548_v52  ;;  %v6625_v32 = vpop.eup %6624 }
0x1fa7   : > { %v1942_v44 = vmul.f32 %v6625_v32, %v7557_v38  ;;  %v6627_v14 = vpop.eup %6626 }
0x1fa8   : > { %6143 = vmatmul.msk.f32.gmra.mxu2 %vm501_vm2, %v1938_v57  ;;  %v1943_v61 = vmul.f32 %v6627_v14, %v7561_v22  ;;  %v6629_v52 = vpop.eup %6628 }
0x1fa9   : > { %v1944_v0 = vmul.f32 %v6629_v52, %v7565_v7 }
0x1fb0   : > { %6144 = vmatmul.msk.f32.gmra.mxu2 %vm501_vm2, %v1939_v35 }
0x1fb8   : > { %6145 = vmatmul.msk.f32.gmra.mxu2 %vm501_vm2, %v1940_v19 }
0x1fc0   : > { %6146 = vmatmul.msk.f32.gmra.mxu2 %vm501_vm2, %v1941_v62 }
0x1fc8   : > { %6147 = vmatmul.msk.f32.gmra.mxu2 %vm501_vm2, %v1942_v44 }
0x1fcc   : > { %v3345_v56 = vpop.xlane.xlu0 %3344 }
0x1fcd   : > { %v3349_v16 = vsub.f32 %v3337_v2, %v3345_v56 }
0x1fcf   : > { %v3351_v33 = vmul.f32 1.442695, %v3349_v16 }
0x1fd0   : > { %6148 = vmatmul.msk.f32.gmra.mxu2 %vm501_vm2, %v1943_v61 }
0x1fd1   : > { %6630 = vpow2.f32 %v3351_v33 }
0x1fd4   : > { %v3348_v1 = vpop.xlane.xlu2 %3347 }
0x1fd5   : > { %v3350_v43 = vsub.f32 %v3340_v50, %v3348_v1 }
0x1fd7   : > { %v6631_v57 = vpop.eup %6630  ;;  %v3353_v38 = vmul.f32 1.442695, %v3350_v43 }
0x1fd8   : > { %6149 = vmatmul.msk.f32.gmra.mxu2 %vm501_vm2, %v1944_v0  ;;  %v3355_v45 = vsel %vm501_vm2, %v6631_v57, 0.0 }
0x1fd9   : > { %6632 = vpow2.f32 %v3353_v38  ;;  %3356 = vadd.xlane.f32.xlu1 %v3355_v45 }
0x1fdf   : > { %v6633_v2 = vpop.eup %6632 }
0x1fe0   : > { %v3358_v22 = vsel %vm501_vm2, %v6633_v2, 0.0 }
0x1fe1   : > { %3359 = vadd.xlane.f32.xlu0 %v3358_v22  ;;  %v7753_v22 = vld [vmem:[%s6827_s29 + $0x20] sm:$0xff] }
0x2023   : > { %v2871_v47 = vpop.f32.mrf.mxu2 }
0x2024   : > { %6168 = vmatmul.msk.f32.vlgmr.msrb.gmra.mxu1 %vm501_vm2, %v2871_v47  ;;  %v7757_v47 = vld [vmem:[%s6827_s29 + $0x30] sm:$0xff] }
0x202b   : > { %v2874_v35 = vpop.f32.mrf.mxu2 }
0x202c   : > { %6169 = vmatmul.msk.f32.gmra.mxu1 %vm501_vm2, %v2874_v35  ;;  %v321_v35 = vld [vmem:[%s8664_s5 + $0x4] sm:$0xf] }
0x2033   : > { %v2877_v50 = vpop.f32.mrf.mxu2 }
0x2034   : > { %6170 = vmatmul.msk.f32.gmra.mxu1 %vm501_vm2, %v2877_v50  ;;  %v7765_v50 = vld [vmem:[%s6827_s29 + $0x10] sm:$0xff] }
0x203b   : > { %v2880_v7 = vpop.f32.mrf.mxu2 }
0x203c   : > { %6171 = vmatmul.msk.f32.gmra.mxu1 %vm501_vm2, %v2880_v7  ;;  %v3104_v7 = vsel %vm1735_vm7, %v321_v35, 0 }
0x203d   : > { %3113 = vmatpush.bf16.msra.mxu3 %v3104_v7 }
0x2043   : > { %v2883_v17 = vpop.f32.mrf.mxu2 }
0x2044   : > { %6172 = vmatmul.msk.f32.gmra.mxu1 %vm501_vm2, %v2883_v17  ;;  %v7770_v17 = vld [vmem:[%s6827_s29 + $0x28] sm:$0xff] }
0x204b   : > { %v2886_v51 = vpop.f32.mrf.mxu2 }
0x204c   : > { %6173 = vmatmul.msk.f32.gmra.mxu1 %vm501_vm2, %v2886_v51  ;;  %v3357_v19 = vpop.xlane.xlu1 %3356  ;;  %v7774_v51 = vld [vmem:[%s6827_s29] sm:$0xff] }
0x204d   : > { %6634 = vrcp.f32 %v3357_v19  ;;  %v7778_v19 = vld [vmem:[%s6827_s29 + $0x18] sm:$0xff] }
0x2053   : > { %v2889_v42 = vpop.f32.mrf.mxu2  ;;  %v6635_v34 = vpop.eup %6634 }
0x2054   : > { %6174 = vmatmul.msk.f32.gmra.mxu1 %vm501_vm2, %v2889_v42  ;;  %v7737_v62 = vmul.f32 %v6635_v34, %v6631_v57  ;;  %v3360_v46 = vpop.xlane.xlu0 %3359  ;;  %v7784_v42 = vld [vmem:[%s6827_s29 + $0x8] sm:$0xff] }
0x2055   : > { %6636 = vrcp.f32 %v3360_v46 }
0x2056   : > { %v3442_v32 = vand.u32 2147483647, %v7737_v62 }
0x2058   : > { %v3444_v44 = vsel %vm501_vm2, %v3442_v32, 0.0 }
0x2059   : > { %3445 = vadd.xlane.f32.xlu2 %v3444_v44 }
0x205b   : > { %v2892_v12 = vpop.f32.mrf.mxu2  ;;  %v6637_v14 = vpop.eup %6636 }
0x205c   : > { %6175 = vmatmul.msk.f32.gmra.mxu1 %vm501_vm2, %v2892_v12  ;;  %v7742_v56 = vmul.f32 %v6637_v14, %v6633_v2  ;;  %v7748_v2 = vld [vmem:[%s6827_s29 + $0x38] sm:$0xff] }
0x205e   : > { %v3443_v16 = vand.u32 2147483647, %v7742_v56 }
0x2060   : > { %v3447_v61 = vsel %vm501_vm2, %v3443_v16, 0.0 }
0x2061   : > { %3448 = vadd.xlane.f32.xlu1 %v3447_v61  ;;  %v3458_v33 = vadd.f32 %v3447_v61, %v3444_v44 }
0x2063   : > { %v3459_v52 = vrot.slane %v3458_v33, 4 }
0x2065   : > { %v3460_v1 = vadd.f32 %v3459_v52, %v3458_v33 }
0x2067   : > { %v3461_v43 = vrot.slane %v3460_v1, 2 }
0x2069   : > { %v3462_v0 = vadd.f32 %v3461_v43, %v3460_v1 }
0x206b   : > { %v3463_v57 = vrot.slane %v3462_v0, 1 }
0x206d   : > { %v3464_v38 = vadd.f32 %v3463_v57, %v3462_v0 }
0x206f   : > { %v3465_v45 = vsel %vm501_vm2, %v3464_v38, -inf }
0x2070   : > { %3466 = vmax.xlane.f32.xlu0 %v3465_v45 }
0x207a   : > { %3379 = vrot.lane.b32.xlu1 %v7748_v2, %s6768_s13 }
0x2082   : > { %3470 = vxpose.xlu2.b32.start [1/2] (short) (narrow) %v7737_v62, 16  ;;  %3373 = vrot.lane.b32.xlu1 %v7753_v22, %s6768_s13 }
0x2084   : > { %3377 = vrot.lane.b32.xlu0 %v7757_v47, %s6768_s13 }
0x208a   : > { %3471 = vxpose.xlu2.b32.end [2/2] (short) (narrow) %v7742_v56, 16  ;;  %3369 = vrot.lane.b32.xlu1 %v7765_v50, %s6768_s13 }
0x208c   : > { %3375 = vrot.lane.b32.xlu0 %v7770_v17, %s6768_s13 }
0x2092   : > { %3365 = vrot.lane.b32.xlu1 %v7774_v51, %s6768_s13 }
0x2094   : > { %3371 = vrot.lane.b32.xlu0 %v7778_v19, %s6768_s13 }
0x209a   : > { %3147 = vrot.lane.b32.xlu1 %v6872_v11, %s6767_s22 }
0x209c   : > { %3367 = vrot.lane.b32.xlu0 %v7784_v42, %s6768_s13 }
0x20a1   : > { %v3063_v34 = vpop.f32.mrf.mxu1 }
0x20a2   : > { %3151 = vrot.lane.b32.xlu1 %v6859_v8, %s6767_s22  ;;  %v3064_v32 = vadd.f32 %v3063_v34, %v7688_v41 }
0x20a4   : > { %3143 = vrot.lane.b32.xlu0 %v6890_v15, %s6767_s22 }
0x20a9   : > { %v3066_v46 = vpop.f32.mrf.mxu1 }
0x20aa   : > { %v3067_v44 = vadd.f32 %v3066_v46, %v7692_v60  ;;  %3155 = vrot.lane.b32.xlu1 %v6844_v4, %s6767_s22 }
0x20ac   : > { %v3087_v12 = vpack.c.bf16 %v3067_v44, %v3064_v32  ;;  %3149 = vrot.lane.b32.xlu0 %v6866_v10, %s6767_s22 }
0x20ae   : > { %6176 = vmatmul.msk.bf16.vlgmr.msra.gmra.mxu3 %vm429_vm1, %v3087_v12 }
0x20b1   : > { %v3069_v14 = vpop.f32.mrf.mxu1 }
0x20b2   : > { %v3070_v61 = vadd.f32 %v3069_v14, %v7694_v18 }
0x20b4   : > { %3153 = vrot.lane.b32.xlu0 %v6852_v6, %s6767_s22 }
0x20b9   : > { %v3072_v16 = vpop.f32.mrf.mxu1 }
0x20ba   : > { %v3073_v41 = vadd.f32 %v3072_v16, %v7696_v53 }
0x20bc   : > { %v3088_v33 = vpack.c.bf16 %v3073_v41, %v3070_v61  ;;  %3157 = vrot.lane.b32.xlu0 %v6841_v3, %s6767_s22 }
0x20be   : > { %6177 = vmatmul.msk.bf16.gmra.mxu3 %vm429_vm1, %v3088_v33 }
0x20c1   : > { %v3075_v60 = vpop.f32.mrf.mxu1 }
0x20c2   : > { %v3076_v1 = vadd.f32 %v3075_v60, %v7698_v9 }
0x20c9   : > { %v3078_v52 = vpop.f32.mrf.mxu1 }
0x20ca   : > { %v3079_v43 = vadd.f32 %v3078_v52, %v7700_v39 }
0x20cc   : > { %v3089_v0 = vpack.c.bf16 %v3079_v43, %v3076_v1  ;;  %v3446_v38 = vpop.xlane.xlu2 %3445 }
0x20ce   : > { %6178 = vmatmul.msk.bf16.gmra.mxu3 %vm429_vm1, %v3089_v0 }
0x20d1   : > { %v3081_v57 = vpop.f32.mrf.mxu1 }
0x20d2   : > { %v3082_v7 = vadd.f32 %v3081_v57, %v7702_v5 }
0x20d4   : > { %v3449_v18 = vpop.xlane.xlu1 %3448 }
0x20d5   : > { %v3450_v45 = vmax.f32 %v3446_v38, %v3449_v18 }
0x20d7   : > { %v3451_v53 = vrot.slane %v3450_v45, 4 }
0x20d9   : > { %v3084_v35 = vpop.f32.mrf.mxu1  ;;  %v3452_v34 = vmax.f32 %v3450_v45, %v3451_v53 }
0x20da   : > { %v3085_v46 = vadd.f32 %v3084_v35, %v7704_v55 }
0x20db   : > { %v3453_v32 = vrot.slane %v3452_v34, 2 }
0x20dc   : > { %v3090_v44 = vpack.c.bf16 %v3085_v46, %v3082_v7 }
0x20dd   : > { %v3454_v9 = vmax.f32 %v3452_v34, %v3453_v32 }
0x20de   : > { %6179 = vmatmul.msk.bf16.gmra.mxu3 %vm429_vm1, %v3090_v44 }
0x20df   : > { %v3455_v39 = vrot.slane %v3454_v9, 1 }
0x20e1   : > { %v3456_v12 = vmax.f32 %v3454_v9, %v3455_v39  ;;  %v6499_v39 = vpack.i.bf16 %v7765_v50, %v7778_v19 }
0x20e3   : > { %v3467_v14 = vpop.xlane.xlu0 %3466  ;;  %6421 = vpush %v3456_v12 }
0x20e4   : > { %6423 = vpush %v3467_v14 }
0x20ec   : > { %v3380_v16 = vpop.permute.xlu1 %3379 }
0x20ed   : > { %6194 = vmatpush.xpose.msk.msra.mxu1 %vm429_vm1, %v3380_v16 }
0x20f3   : > { %3145 = vrot.lane.b32.xlu2 %v6880_v13, %s6767_s22 }
0x20f4   : > { %v3374_v55 = vpop.permute.xlu1 %3373 }
0x20f6   : > { %v3378_v5 = vpop.permute.xlu0 %3377 }
0x20f7   : > { %6195 = vmatpush.xpose.msk.msra.mxu1 %vm429_vm1, %v3378_v5 }
0x20fb   : > { %4679 = vrot.lane.b32.xlu2 %v6903_v26, %s6769_s27 }
0x20fc   : > { %v3370_v33 = vpop.permute.xlu1 %3369 }
0x20fe   : > { %v3376_v61 = vpop.permute.xlu0 %3375 }
0x20ff   : > { %6196 = vmatpush.xpose.msk.msra.mxu1 %vm429_vm1, %v3376_v61 }
0x2103   : > { %6197 = vmatpush.xpose.msk.msra.mxu1 %vm429_vm1, %v3374_v55  ;;  %v6504_v55 = vpack.i.bf16 %v7774_v51, %v7784_v42 }
0x2104   : > { %v3366_v52 = vpop.permute.xlu1 %3365 }
0x2106   : > { %v3372_v41 = vpop.permute.xlu0 %3371 }
0x2107   : > { %6198 = vmatpush.xpose.msk.msra.mxu1 %vm429_vm1, %v3372_v41 }
0x210b   : > { %6199 = vmatpush.xpose.msk.msra.mxu1 %vm429_vm1, %v3370_v33 }
0x210c   : > { %v3148_v16 = vpop.permute.xlu1 %3147 }
0x210e   : > { %v3368_v60 = vpop.permute.xlu0 %3367 }
0x210f   : > { %6200 = vmatpush.xpose.msk.msra.mxu1 %vm429_vm1, %v3368_v60 }
0x2113   : > { %6201 = vmatpush.xpose.msk.msra.mxu1 %vm429_vm1, %v3366_v52 }
0x2114   : > { %s6422_s22 = spop %6421 }
0x2115   : > { %s6424_s28 = spop %6423 }
0x2116   : > { %s3469_s30 = smul.f32 %s6424_s28, %s6422_s22  ;;  %v3144_v26 = vpop.permute.xlu0 %3143  ;;  %6202 = vmatmul.msk.f32.vlgmr.msra.gmra.mxu1 %vm429_vm1, %v7550_v54  ;;  %s6771_s28 = smov 72  }
0x2117   : > { %6182 = vmatmul.msk.f32.vlgmr.msrb.gmra.mxu2 %vm429_vm1, %v3144_v26 }
0x2118   : > { %v3502_v1 = vstv %s3469_s30 }
0x2119   : > { %6638 = vrcp.f32 %v3502_v1  ;;  %v3514_v18 = vand.u32 2147483648, %v3502_v1  ;;  %v3512_v53 = vand.u32 2147483647, %v3502_v1  ;;  %vm3508_vm13 = vweird.f32 %v3502_v1 }
0x211b   : > { %v3486_v43 = vpop.trf.xlu2  ;;  %v3515_v7 = vor.u32 1.1754944e-38, %v3514_v18  ;;  %vm3513_vm15 = vcmp.eq.f32.partialorder %v3512_v53, 8.507059e+37 }
0x211e   : > { %6203 = vmatmul.msk.f32.gmra.mxu1 %vm429_vm1, %v7545_v23  ;;  %v6489_v23 = vpack.i.bf16 %v7757_v47, %v7748_v2  ;;  %v6494_v2 = vpack.i.bf16 %v7753_v22, %v7770_v17  ;;  %v3150_v53 = vpop.permute.xlu0 %3149 }
0x211f   : > { %v6639_v0 = vpop.eup %6638 }
0x2120   : > { %v3504_v57 = vmul.f32 %v6639_v0, %v3502_v1  ;;  %vm3509_vm12 = vweird.f32 %v6639_v0  ;;  %6490 = vrot.lane.b32.xlu1 %v6489_v23, %s6770_s8  ;;  %6495 = vrot.lane.b32.xlu0 %v6494_v2, %s6770_s8 }
0x2121   : > { %vm3510_vm14 = vmor %vm3508_vm13, %vm3509_vm12 }
0x2122   : > { %v3505_v38 = vsub.f32 1.0, %v3504_v57 }
0x2123   : > { %v3487_v54 = vpop.trf.xlu2 }
0x2124   : > { %v3506_v45 = vmul.f32 %v6639_v0, %v3505_v38 }
0x2126   : > { %v3507_v35 = vadd.f32 %v6639_v0, %v3506_v45 }
0x2128   : > { %v3511_v34 = vsel %vm3510_vm14, %v6639_v0, %v3507_v35  ;;  %6500 = vrot.lane.b32.xlu1 %v6499_v39, %s6770_s8  ;;  %6505 = vrot.lane.b32.xlu0 %v6504_v55, %s6770_s8  ;;  %v3152_v0 = vpop.permute.xlu1 %3151 }
0x2129   : > { %v3516_v46 = vsel %vm3513_vm15, %v3515_v7, %v3511_v34 }
0x212a   : > { %v7828_v32 = vmul.f32 %v3516_v46, %v3487_v54  ;;  %v7830_v44 = vmul.f32 %v3516_v46, %v3486_v43  ;;  %v3154_v54 = vpop.permute.xlu0 %3153 }
0x212c   : > { %3539 = vmatpush.msrb.mxu3 %v7828_v32 }
0x212e   : > { %3540 = vmatpush.msrb.mxu3 %v7830_v44 }
0x212f   : > { %6204 = vmatmul.msk.f32.vlgmr.msrb.gmra.mxu3 %vm501_vm2, %v7737_v62 }
0x2130   : > { %v3156_v57 = vpop.permute.xlu1 %3155 }
0x2131   : > { %v7843_v12 = vpop.f32.mrf.mxu3 }
0x2137   : > { %6205 = vmatmul.msk.f32.gmra.mxu3 %vm501_vm2, %v7742_v56 }
0x2139   : > { %v7845_v14 = vpop.f32.mrf.mxu3 }
0x2141   : > { %v7848_v5 = vpop.f32.mrf.mxu3 }
0x2149   : > { %v7852_v47 = vpop.f32.mrf.mxu3 }
0x214d   : > { %v3146_v9 = vpop.permute.xlu2 %3145 }
0x214e   : > { %6183 = vmatmul.msk.f32.gmra.mxu2 %vm429_vm1, %v3146_v9 }
0x2151   : > { %v7856_v50 = vpop.f32.mrf.mxu3 }
0x2156   : > { %6184 = vmatmul.msk.f32.gmra.mxu2 %vm429_vm1, %v3148_v16  ;;  %v3158_v16 = vpop.permute.xlu0 %3157 }
0x2159   : > { %v7858_v19 = vpop.f32.mrf.mxu3 }
0x215e   : > { %6185 = vmatmul.msk.f32.gmra.mxu2 %vm429_vm1, %v3150_v53 }
0x2161   : > { %v7864_v33 = vpop.f32.mrf.mxu3 }
0x2166   : > { %6186 = vmatmul.msk.f32.gmra.mxu2 %vm429_vm1, %v3152_v0 }
0x2169   : > { %v7867_v60 = vpop.f32.mrf.mxu3 }
0x216a   : > { %8667 = vst [vmem:[#allocation2_spill] sm:$0xff] %v7867_v60 }
0x216e   : > { %6187 = vmatmul.msk.f32.gmra.mxu2 %vm429_vm1, %v3154_v54 }
0x2176   : > { %6188 = vmatmul.msk.f32.gmra.mxu2 %vm429_vm1, %v3156_v57 }
0x217e   : > { %6189 = vmatmul.msk.f32.gmra.mxu2 %vm429_vm1, %v3158_v16 }
0x2192   : > { %v7883_v38 = vpop.permute.xlu1 %6490 }
0x2193   : > { %v3414_v22 = vpop.f32.mrf.mxu1 }
0x2194   : > { %v3420_v17 = vsel %vm324_vm0, %v3414_v22, -inf }
0x219a   : > { %v7860_v61 = vpop.f32.mrf.mxu2  ;;  %v7887_v45 = vpop.permute.xlu1 %6500 }
0x219b   : > { %v3224_v41 = vsel %vm501_vm2, %v7860_v61, -inf  ;;  %v3417_v35 = vpop.f32.mrf.mxu1 }
0x219c   : > { %3225 = vmax.xlane.f32.xlu1 %v3224_v41 }
0x21a4   : > { %3421 = vmax.xlane.f32.xlu1 %v3420_v17  ;;  %v7907_v17 = vpop.permute.xlu0 %6495 }
0x21b2   : > { %v3542_v51 = vpop.f32.mrf.mxu3 }
0x21b3   : > { %v3548_v26 = vsub.f32 %v7032_v21, %v3542_v51 }
0x21ba   : > { %v3545_v42 = vpop.f32.mrf.mxu3 }
0x21bb   : > { %v3549_v52 = vsub.f32 %v7030_v20, %v3545_v42 }
0x21bd   : > { %4528 = vrot.lane.b32.xlu1 %v6907_v28, %s6769_s27  ;;  %3570 = vmatpush.msra.mxu0 %v3549_v52  ;;  %v7909_v52 = vpop.permute.xlu0 %6505 }
0x21bf   : > { %3571 = vmatpush.msra.mxu0 %v3548_v26 }
0x21c0   : > { %6206 = vmatmul.msk.f32.vlgmr.msra.gmra.mxu0 %vm501_vm2, %v3542_v51 }
0x21c8   : > { %6207 = vmatmul.msk.f32.gmra.mxu0 %vm501_vm2, %v3545_v42 }
0x21d1   : > { %v7875_v1 = vpop.f32.mrf.mxu2 }
0x21d2   : > { %v3227_v43 = vsel %vm501_vm2, %v7875_v1, -inf }
0x21d3   : > { %3228 = vmax.xlane.f32.xlu0 %v3227_v43 }
0x21d9   : > { %v7881_v28 = vpop.f32.mrf.mxu2 }
0x21da   : > { %v3230_v18 = vsel %vm501_vm2, %v7881_v28, -inf }
0x21db   : > { %3231 = vmax.xlane.f32.xlu2 %v3230_v18 }
0x21e7   : > { %4526 = vrot.lane.b32.xlu0 %v6913_v29, %s6769_s27  ;;  %v3423_v29 = vsel %vm324_vm0, %v3417_v35, -inf }
0x220f   : > { %v7891_v7 = vpop.xlane.xlu1 %3225 }
0x2211   : > { %3424 = vmax.xlane.f32.xlu0 %v3423_v29 }
0x2217   : > { %v3422_v34 = vpop.xlane.xlu1 %3421 }
0x2218   : > { %v3426_v46 = vsub.f32 %v3414_v22, %v3422_v34 }
0x221a   : > { %v3428_v23 = vmul.f32 1.442695, %v3426_v46 }
0x221c   : > { %6640 = vpow2.f32 %v3428_v23 }
0x2222   : > { %v7896_v9 = vpop.eup %6640 }
0x2223   : > { %v3432_v39 = vsel %vm324_vm0, %v7896_v9, 0.0 }
0x2224   : > { %3433 = vadd.xlane.f32.xlu2 %v3432_v39 }
0x2225   : > { %4681 = vrot.lane.b32.xlu0 %v6905_v27, %s6769_s27 }
0x223d   : > { %v3573_v2 = vpop.f32.mrf.mxu0 }
0x223e   : > { %v3579_v22 = vsub.f32 %v7040_v31, %v3573_v2 }
0x2245   : > { %v3576_v55 = vpop.f32.mrf.mxu0 }
0x2246   : > { %v3580_v41 = vsub.f32 %v7038_v30, %v3576_v55  ;;  %v3229_v27 = vpop.xlane.xlu0 %3228 }
0x2248   : > { %3595 = vmatpush.msrb.mxu1 %v3580_v41 }
0x224a   : > { %3596 = vmatpush.msrb.mxu1 %v3579_v22 }
0x224b   : > { %6208 = vmatmul.msk.f32.vlgmr.msrb.gmra.mxu1 %vm501_vm2, %v3542_v51 }
0x2253   : > { %6209 = vmatmul.msk.f32.gmra.mxu1 %vm501_vm2, %v3545_v42 }
0x2259   : > { %v7911_v26 = vpop.permute.xlu0 %4526 }
0x2284   : > { %v3425_v43 = vpop.xlane.xlu0 %3424 }
0x2285   : > { %v3427_v0 = vsub.f32 %v3417_v35, %v3425_v43 }
0x2287   : > { %v3430_v57 = vmul.f32 1.442695, %v3427_v0 }
0x2289   : > { %6642 = vpow2.f32 %v3430_v57 }
0x228f   : > { %v7913_v18 = vpop.eup %6642 }
0x2290   : > { %v3435_v53 = vsel %vm324_vm0, %v7913_v18, 0.0 }
0x2291   : > { %3436 = vadd.xlane.f32.xlu2 %v3435_v53 }
0x22c8   : > { %v3598_v51 = vpop.f32.mrf.mxu1 }
0x22c9   : > { %v3604_v54 = vsub.f32 %v7048_v40, %v3598_v51  ;;  %v3209_v51 = vpop.f32.mrf.mxu2 }
0x22d0   : > { %v3601_v29 = vpop.f32.mrf.mxu1 }
0x22d1   : > { %v3605_v42 = vsub.f32 %v7046_v37, %v3601_v29  ;;  %v3233_v29 = vsel %vm501_vm2, %v3209_v51, -inf }
0x22d2   : > { %3234 = vmax.xlane.f32.xlu1 %v3233_v29 }
0x22d3   : > { %3626 = vmatpush.msra.mxu3 %v3605_v42  ;;  %v3248_v42 = vsub.f32 %v7860_v61, %v7891_v7 }
0x22d5   : > { %3627 = vmatpush.msra.mxu3 %v3604_v54  ;;  %v3212_v54 = vpop.f32.mrf.mxu2 }
0x22d6   : > { %6210 = vmatmul.msk.f32.vlgmr.msra.gmra.mxu3 %vm501_vm2, %v7830_v44 }
0x22de   : > { %6211 = vmatmul.msk.f32.gmra.mxu3 %vm501_vm2, %v7828_v32 }
0x2359   : > { %v3629_v35 = vpop.f32.mrf.mxu3 }
0x235a   : > { %v3635_v23 = vmul.f32 0.25, %v3629_v35  ;;  %v3256_v35 = vmul.f32 1.442695, %v3248_v42 }
0x235c   : > { %6644 = vpow2.f32 %v3256_v35 }
0x2361   : > { %v3632_v34 = vpop.f32.mrf.mxu3 }
0x2362   : > { %v3636_v46 = vmul.f32 0.25, %v3632_v34  ;;  %v3236_v34 = vsel %vm501_vm2, %v3212_v54, -inf }
0x2363   : > { %3237 = vmax.xlane.f32.xlu0 %v3236_v34 }
0x2364   : > { %3651 = vmatpush.msrb.mxu0 %v3636_v46 }
0x2366   : > { %3652 = vmatpush.msrb.mxu0 %v3635_v23 }
0x2367   : > { %6212 = vmatmul.msk.f32.vlgmr.msrb.gmra.mxu0 %vm501_vm2, %v7737_v62 }
0x236f   : > { %6213 = vmatmul.msk.f32.gmra.mxu0 %vm501_vm2, %v7742_v56 }
0x23e4   : > { %v3654_v39 = vpop.f32.mrf.mxu0 }
0x23e5   : > { %v3660_v44 = vsub.f32 %v7032_v21, %v3654_v39 }
0x23ec   : > { %v3657_v16 = vpop.f32.mrf.mxu0 }
0x23ed   : > { %v3661_v2 = vsub.f32 %v7030_v20, %v3657_v16 }
0x23ef   : > { %3682 = vmatpush.msra.mxu1 %v3661_v2 }
0x23f1   : > { %3683 = vmatpush.msra.mxu1 %v3660_v44 }
0x23f2   : > { %6214 = vmatmul.msk.f32.vlgmr.msra.gmra.mxu1 %vm501_vm2, %v3654_v39 }
0x23fa   : > { %6215 = vmatmul.msk.f32.gmra.mxu1 %vm501_vm2, %v3657_v16 }
0x246f   : > { %v3685_v32 = vpop.f32.mrf.mxu1 }
0x2470   : > { %v3691_v22 = vsub.f32 %v7040_v31, %v3685_v32 }
0x2477   : > { %v3688_v55 = vpop.f32.mrf.mxu1 }
0x2478   : > { %v3692_v41 = vsub.f32 %v7038_v30, %v3688_v55 }
0x247a   : > { %3707 = vmatpush.msrb.mxu3 %v3692_v41 }
0x247c   : > { %3708 = vmatpush.msrb.mxu3 %v3691_v22 }
0x247d   : > { %6216 = vmatmul.msk.f32.vlgmr.msrb.gmra.mxu3 %vm501_vm2, %v3654_v39  ;;  %v3249_v39 = vsub.f32 %v7875_v1, %v3229_v27 }
0x247f   : > { %v3258_v2 = vmul.f32 1.442695, %v3249_v39  ;;  %v7972_v39 = vpop.permute.xlu1 %4528 }
0x2481   : > { %6646 = vpow2.f32 %v3258_v2  ;;  %v7974_v2 = vpop.permute.xlu0 %4681 }
0x2485   : > { %6217 = vmatmul.msk.f32.gmra.mxu3 %vm501_vm2, %v3657_v16  ;;  %v3215_v16 = vpop.f32.mrf.mxu2 }
0x248d   : > { %v3218_v61 = vpop.f32.mrf.mxu2 }
0x248e   : > { %v3242_v7 = vsel %vm501_vm2, %v3218_v61, -inf }
0x248f   : > { %3243 = vmax.xlane.f32.xlu0 %v3242_v7 }
0x2495   : > { %v3221_v27 = vpop.f32.mrf.mxu2 }
0x2496   : > { %v3245_v41 = vsel %vm501_vm2, %v3221_v27, -inf }
0x2497   : > { %3246 = vmax.xlane.f32.xlu2 %v3245_v41 }
0x2500   : > { %v3710_v43 = vpop.f32.mrf.mxu3 }
0x2501   : > { %v3716_v53 = vsub.f32 %v7048_v40, %v3710_v43 }
0x2508   : > { %v3713_v0 = vpop.f32.mrf.mxu3 }
0x2509   : > { %v3717_v57 = vsub.f32 %v7046_v37, %v3713_v0 }
0x250b   : > { %3738 = vmatpush.msra.mxu0 %v3717_v57  ;;  %v7965_v57 = vpop.permute.xlu2 %4679 }
0x250d   : > { %3739 = vmatpush.msra.mxu0 %v3716_v53 }
0x250e   : > { %6218 = vmatmul.msk.f32.vlgmr.msra.gmra.mxu0 %vm501_vm2, %v3635_v23  ;;  %v3239_v23 = vsel %vm501_vm2, %v3215_v16, -inf }
0x250f   : > { %3240 = vmax.xlane.f32.xlu1 %v3239_v23  ;;  %v3235_v23 = vpop.xlane.xlu1 %3234 }
0x2513   : > { %v3232_v53 = vpop.xlane.xlu2 %3231 }
0x2514   : > { %v3250_v29 = vsub.f32 %v7881_v28, %v3232_v53 }
0x2516   : > { %6219 = vmatmul.msk.f32.gmra.mxu0 %vm501_vm2, %v3636_v46  ;;  %v7945_v46 = vpop.eup %6644  ;;  %v3260_v42 = vmul.f32 1.442695, %v3250_v29 }
0x2517   : > { %v3272_v44 = vsel %vm501_vm2, %v7945_v46, 0.0  ;;  %v7950_v32 = vpop.eup %6646 }
0x2518   : > { %3273 = vadd.xlane.f32.xlu1 %v3272_v44  ;;  %v3275_v1 = vsel %vm501_vm2, %v7950_v32, 0.0  ;;  %6648 = vpow2.f32 %v3260_v42  ;;  %v3251_v44 = vsub.f32 %v3209_v51, %v3235_v23 }
0x2519   : > { %3276 = vadd.xlane.f32.xlu0 %v3275_v1 }
0x251a   : > { %v3262_v7 = vmul.f32 1.442695, %v3251_v44 }
0x251b   : > { %v7980_v53 = vpop.xlane.xlu2 %3433 }
0x251c   : > { %6650 = vpow2.f32 %v3262_v7 }
0x251e   : > { %v7968_v35 = vpop.eup %6648 }
0x251f   : > { %v3278_v34 = vsel %vm501_vm2, %v7968_v35, 0.0 }
0x2520   : > { %3279 = vadd.xlane.f32.xlu1 %v3278_v34 }
0x2522   : > { %v7976_v41 = vpop.eup %6650 }
0x2582   : > { %v3241_v29 = vpop.xlane.xlu1 %3240 }
0x2583   : > { %v3253_v42 = vsub.f32 %v3215_v16, %v3241_v29 }
0x2585   : > { %v3266_v34 = vmul.f32 1.442695, %v3253_v42 }
0x258b   : > { %v3741_v55 = vpop.f32.mrf.mxu0 }
0x258c   : > { %v7957_v0 = vmul.f32 0.25, %v3741_v55  ;;  %v3238_v55 = vpop.xlane.xlu0 %3237 }
0x258d   : > { %v3252_v1 = vsub.f32 %v3212_v54, %v3238_v55  ;;  %v7986_v54 = vpop.xlane.xlu2 %3436 }
0x258f   : > { %v3264_v28 = vmul.f32 1.442695, %v3252_v1 }
0x2591   : > { %6652 = vpow2.f32 %v3264_v28 }
0x2592   : > { %6654 = vpow2.f32 %v3266_v34 }
0x2593   : > { %v3744_v22 = vpop.f32.mrf.mxu0 }
0x2594   : > { %v7955_v43 = vmul.f32 0.25, %v3744_v22  ;;  %v3281_v22 = vsel %vm501_vm2, %v7976_v41, 0.0  ;;  %v3244_v23 = vpop.xlane.xlu0 %3243 }
0x2595   : > { %3282 = vadd.xlane.f32.xlu2 %v3281_v22  ;;  %v3254_v44 = vsub.f32 %v3218_v61, %v3244_v23  ;;  %v3247_v16 = vpop.xlane.xlu2 %3246 }
0x2596   : > { %3763 = vmatpush.msrb.mxu1 %v7955_v43  ;;  %v3255_v28 = vsub.f32 %v3221_v27, %v3247_v16 }
0x2597   : > { %v7982_v60 = vpop.eup %6652  ;;  %v3268_v55 = vmul.f32 1.442695, %v3254_v44 }
0x2598   : > { %3764 = vmatpush.msrb.mxu1 %v7957_v0  ;;  %v3284_v51 = vsel %vm501_vm2, %v7982_v60, 0.0  ;;  %v7988_v7 = vpop.eup %6654  ;;  %v3270_v29 = vmul.f32 1.442695, %v3255_v28 }
0x2599   : > { %6220 = vmatmul.msk.f32.vlgmr.msrb.gmra.mxu1 %vm501_vm2, %v7737_v62  ;;  %3285 = vadd.xlane.f32.xlu0 %v3284_v51  ;;  %6656 = vpow2.f32 %v3268_v55  ;;  %v3287_v1 = vsel %vm501_vm2, %v7988_v7, 0.0 }
0x259a   : > { %3288 = vadd.xlane.f32.xlu1 %v3287_v1  ;;  %6658 = vpow2.f32 %v3270_v29 }
0x259b   : > { %6660 = vrcp.f32 %v7980_v53 }
0x259c   : > { %6662 = vrcp.f32 %v7986_v54  ;;  %v6264_v54 = vld [vmem:[%s8663_s4 + $0x90] sm:$0xff] }
0x259f   : > { %v7992_v22 = vpop.eup %6656 }
0x25a0   : > { %v3290_v42 = vsel %vm501_vm2, %v7992_v22, 0.0  ;;  %v7996_v34 = vpop.eup %6658 }
0x25a1   : > { %6221 = vmatmul.msk.f32.gmra.mxu1 %vm501_vm2, %v7742_v56  ;;  %3291 = vadd.xlane.f32.xlu2 %v3290_v42  ;;  %v3293_v61 = vsel %vm501_vm2, %v7996_v34, 0.0 }
0x25a2   : > { %3294 = vadd.xlane.f32.xlu0 %v3293_v61 }
0x2616   : > { %v3766_v51 = vpop.f32.mrf.mxu1 }
0x2617   : > { %v3772_v27 = vsub.f32 %v7032_v21, %v3766_v51 }
0x261e   : > { %v3769_v23 = vpop.f32.mrf.mxu1 }
0x261f   : > { %v3773_v44 = vsub.f32 %v7030_v20, %v3769_v23 }
0x2621   : > { %3794 = vmatpush.msra.mxu2 %v3773_v44 }
0x2623   : > { %3795 = vmatpush.msra.mxu2 %v3772_v27 }
0x2624   : > { %6222 = vmatmul.msk.f32.vlgmr.msra.gmra.mxu2 %vm501_vm2, %v3766_v51 }
0x262c   : > { %6223 = vmatmul.msk.f32.gmra.mxu2 %vm501_vm2, %v3769_v23 }
0x26a7   : > { %v3797_v55 = vpop.f32.mrf.mxu2 }
0x26a8   : > { %v3803_v28 = vsub.f32 %v7040_v31, %v3797_v55 }
0x26af   : > { %v3800_v1 = vpop.f32.mrf.mxu2 }
0x26b0   : > { %v3804_v16 = vsub.f32 %v7038_v30, %v3800_v1 }
0x26b2   : > { %3819 = vmatpush.msra.mxu3 %v3804_v16 }
0x26b4   : > { %3820 = vmatpush.msra.mxu3 %v3803_v28 }
0x26b5   : > { %6224 = vmatmul.msk.f32.vlgmr.msra.gmra.mxu3 %vm501_vm2, %v3766_v51 }
0x26bd   : > { %6225 = vmatmul.msk.f32.gmra.mxu3 %vm501_vm2, %v3769_v23 }
0x2738   : > { %v3822_v29 = vpop.f32.mrf.mxu3 }
0x2739   : > { %v3828_v44 = vsub.f32 %v7048_v40, %v3822_v29 }
0x2740   : > { %v3825_v42 = vpop.f32.mrf.mxu3 }
0x2741   : > { %v3829_v61 = vsub.f32 %v7046_v37, %v3825_v42 }
0x2743   : > { %3850 = vmatpush.msrb.mxu0 %v3829_v61 }
0x2745   : > { %3851 = vmatpush.msrb.mxu0 %v3828_v44 }
0x2746   : > { %6226 = vmatmul.msk.f32.vlgmr.msrb.gmra.mxu0 %vm501_vm2, %v7957_v0 }
0x274e   : > { %6227 = vmatmul.msk.f32.gmra.mxu0 %vm501_vm2, %v7955_v43 }
0x27c3   : > { %v3853_v27 = vpop.f32.mrf.mxu0 }
0x27c4   : > { %v3859_v51 = vmul.f32 0.25, %v3853_v27 }
0x27cb   : > { %v3856_v55 = vpop.f32.mrf.mxu0 }
0x27cc   : > { %v3860_v1 = vmul.f32 0.25, %v3856_v55 }
0x27ce   : > { %3875 = vmatpush.msra.mxu1 %v3860_v1 }
0x27d0   : > { %3876 = vmatpush.msra.mxu1 %v3859_v51 }
0x27d1   : > { %6228 = vmatmul.msk.f32.vlgmr.msra.gmra.mxu1 %vm501_vm2, %v7737_v62 }
0x27d9   : > { %6229 = vmatmul.msk.f32.gmra.mxu1 %vm501_vm2, %v7742_v56 }
0x284e   : > { %v3878_v23 = vpop.f32.mrf.mxu1 }
0x284f   : > { %v3884_v0 = vsub.f32 %v7032_v21, %v3878_v23 }
0x2856   : > { %v3881_v16 = vpop.f32.mrf.mxu1 }
0x2857   : > { %v3885_v28 = vsub.f32 %v7030_v20, %v3881_v16 }
0x2859   : > { %3906 = vmatpush.msrb.mxu2 %v3885_v28 }
0x285b   : > { %3907 = vmatpush.msrb.mxu2 %v3884_v0 }
0x285c   : > { %6230 = vmatmul.msk.f32.vlgmr.msrb.gmra.mxu2 %vm501_vm2, %v3878_v23 }
0x2864   : > { %6231 = vmatmul.msk.f32.gmra.mxu2 %vm501_vm2, %v3881_v16 }
0x28df   : > { %v3909_v43 = vpop.f32.mrf.mxu2 }
0x28e0   : > { %v3915_v61 = vsub.f32 %v7040_v31, %v3909_v43 }
0x28e7   : > { %v3912_v29 = vpop.f32.mrf.mxu2 }
0x28e8   : > { %v3916_v42 = vsub.f32 %v7038_v30, %v3912_v29 }
0x28ea   : > { %3931 = vmatpush.msrb.mxu3 %v3916_v42 }
0x28ec   : > { %3932 = vmatpush.msrb.mxu3 %v3915_v61 }
0x28ed   : > { %6232 = vmatmul.msk.f32.vlgmr.msrb.gmra.mxu3 %vm501_vm2, %v3878_v23 }
0x28f5   : > { %6233 = vmatmul.msk.f32.gmra.mxu3 %vm501_vm2, %v3881_v16 }
0x2970   : > { %v3934_v44 = vpop.f32.mrf.mxu3 }
0x2971   : > { %v3940_v28 = vsub.f32 %v7048_v40, %v3934_v44 }
0x2978   : > { %v3937_v27 = vpop.f32.mrf.mxu3 }
0x2979   : > { %v3941_v55 = vsub.f32 %v7046_v37, %v3937_v27 }
0x297b   : > { %3962 = vmatpush.msra.mxu0 %v3941_v55 }
0x297d   : > { %3963 = vmatpush.msra.mxu0 %v3940_v28 }
0x297e   : > { %6234 = vmatmul.msk.f32.vlgmr.msra.gmra.mxu0 %vm501_vm2, %v3859_v51 }
0x2986   : > { %6235 = vmatmul.msk.f32.gmra.mxu0 %vm501_vm2, %v3860_v1 }
0x29fb   : > { %v3965_v0 = vpop.f32.mrf.mxu0 }
0x29fc   : > { %v3971_v42 = vmul.f32 0.25, %v3965_v0 }
0x2a03   : > { %v3968_v43 = vpop.f32.mrf.mxu0 }
0x2a04   : > { %v3972_v29 = vmul.f32 0.25, %v3968_v43 }
0x2a06   : > { %3987 = vmatpush.msrb.mxu1 %v3972_v29 }
0x2a08   : > { %3988 = vmatpush.msrb.mxu1 %v3971_v42 }
0x2a09   : > { %6236 = vmatmul.msk.f32.vlgmr.msrb.gmra.mxu1 %vm501_vm2, %v7737_v62 }
0x2a11   : > { %6237 = vmatmul.msk.f32.gmra.mxu1 %vm501_vm2, %v7742_v56 }
0x2a86   : > { %v3990_v23 = vpop.f32.mrf.mxu1 }
0x2a87   : > { %v3996_v51 = vsub.f32 %v7032_v21, %v3990_v23 }
0x2a8e   : > { %v3993_v16 = vpop.f32.mrf.mxu1 }
0x2a8f   : > { %v3997_v61 = vsub.f32 %v7030_v20, %v3993_v16 }
0x2a91   : > { %4018 = vmatpush.msra.mxu2 %v3997_v61 }
0x2a93   : > { %4019 = vmatpush.msra.mxu2 %v3996_v51 }
0x2a94   : > { %6238 = vmatmul.msk.f32.vlgmr.msra.gmra.mxu2 %vm501_vm2, %v3990_v23 }
0x2a9c   : > { %6239 = vmatmul.msk.f32.gmra.mxu2 %vm501_vm2, %v3993_v16 }
0x2b17   : > { %v4021_v1 = vpop.f32.mrf.mxu2 }
0x2b18   : > { %v4027_v55 = vsub.f32 %v7040_v31, %v4021_v1 }
0x2b1f   : > { %v4024_v44 = vpop.f32.mrf.mxu2 }
0x2b20   : > { %v4028_v27 = vsub.f32 %v7038_v30, %v4024_v44 }
0x2b22   : > { %4043 = vmatpush.msra.mxu3 %v4028_v27 }
0x2b24   : > { %4044 = vmatpush.msra.mxu3 %v4027_v55 }
0x2b25   : > { %6240 = vmatmul.msk.f32.vlgmr.msra.gmra.mxu3 %vm501_vm2, %v3990_v23 }
0x2b2d   : > { %6241 = vmatmul.msk.f32.gmra.mxu3 %vm501_vm2, %v3993_v16  ;;  %v6492_v16 = vunpack.i.l.bf16 %v7883_v38 }
0x2ba8   : > { %v4046_v28 = vpop.f32.mrf.mxu3 }
0x2ba9   : > { %v4052_v61 = vsub.f32 %v7048_v40, %v4046_v28  ;;  %v6493_v28 = vunpack.i.h.bf16 %v7883_v38  ;;  %v6507_v38 = vunpack.i.l.bf16 %v7909_v52 }
0x2bb0   : > { %v4049_v0 = vpop.f32.mrf.mxu3 }
0x2bb1   : > { %v4053_v43 = vsub.f32 %v7046_v37, %v4049_v0  ;;  %v6497_v0 = vunpack.i.l.bf16 %v7907_v17 }
0x2bb3   : > { %4074 = vmatpush.msrb.mxu0 %v4053_v43  ;;  %v6503_v43 = vunpack.i.h.bf16 %v7887_v45 }
0x2bb5   : > { %4075 = vmatpush.msrb.mxu0 %v4052_v61  ;;  %v6661_v61 = vpop.eup %6660 }
0x2bb6   : > { %6242 = vmatmul.msk.f32.vlgmr.msrb.gmra.mxu0 %vm501_vm2, %v3971_v42  ;;  %v6663_v53 = vpop.eup %6662 }
0x2bbe   : > { %6243 = vmatmul.msk.f32.gmra.mxu0 %vm501_vm2, %v3972_v29 }
0x2c33   : > { %v4077_v51 = vpop.f32.mrf.mxu0 }
0x2c34   : > { %v8048_v27 = vmul.f32 0.25, %v4077_v51  ;;  %v6508_v51 = vunpack.i.h.bf16 %v7909_v52 }
0x2c3b   : > { %v4080_v1 = vpop.f32.mrf.mxu0 }
0x2c3c   : > { %v8046_v44 = vmul.f32 0.25, %v4080_v1 }
0x2c3e   : > { %4099 = vmatpush.msra.mxu1 %v8046_v44 }
0x2c40   : > { %4100 = vmatpush.msra.mxu1 %v8048_v27 }
0x2c41   : > { %6244 = vmatmul.msk.f32.vlgmr.msra.gmra.mxu1 %vm501_vm2, %v7737_v62  ;;  %v6498_v62 = vunpack.i.h.bf16 %v7907_v17  ;;  %v3440_v17 = vmul.f32 %v6661_v61, %v7896_v9  ;;  %v6262_v9 = vld [vmem:[%s8663_s4 + $0x80] sm:$0xff] }
0x2c49   : > { %6245 = vmatmul.msk.f32.gmra.mxu1 %vm501_vm2, %v7742_v56  ;;  %v6502_v56 = vunpack.i.l.bf16 %v7887_v45  ;;  %v3441_v45 = vmul.f32 %v6663_v53, %v7913_v18  ;;  %v6263_v18 = vld [vmem:[%s8663_s4 + $0x88] sm:$0xff] }
0x2cbe   : > { %v4102_v23 = vpop.f32.mrf.mxu1 }
0x2cbf   : > { %v4108_v55 = vsub.f32 %v7032_v21, %v4102_v23 }
0x2cc6   : > { %v4105_v42 = vpop.f32.mrf.mxu1 }
0x2cc7   : > { %v4109_v29 = vsub.f32 %v7030_v20, %v4105_v42 }
0x2cc9   : > { %4130 = vmatpush.msrb.mxu2 %v4109_v29 }
0x2ccb   : > { %4131 = vmatpush.msrb.mxu2 %v4108_v55 }
0x2ccc   : > { %6246 = vmatmul.msk.f32.vlgmr.msrb.gmra.mxu2 %vm501_vm2, %v4102_v23 }
0x2ccd   : > { %4300 = vmatpush.msra.mxu2 %v6492_v16 }
0x2ccf   : > { %4301 = vmatpush.msra.mxu2 %v6493_v28 }
0x2cd1   : > { %4302 = vmatpush.msra.mxu2 %v6497_v0 }
0x2cd3   : > { %4303 = vmatpush.msra.mxu2 %v6498_v62 }
0x2cd4   : > { %6247 = vmatmul.msk.f32.gmra.mxu2 %vm501_vm2, %v4105_v42 }
0x2cd5   : > { %4304 = vmatpush.msra.mxu2 %v6502_v56 }
0x2cd7   : > { %4305 = vmatpush.msra.mxu2 %v6503_v43 }
0x2cd9   : > { %4306 = vmatpush.msra.mxu2 %v6507_v38 }
0x2cdb   : > { %4307 = vmatpush.msra.mxu2 %v6508_v51 }
0x2cdc   : > { %6260 = vmatmul.msk.f32.vlgmr.msra.gmra.mxu2 %vm324_vm0, %v3440_v17 }
0x2ce4   : > { %6261 = vmatmul.msk.f32.gmra.mxu2 %vm324_vm0, %v3441_v45 }
0x2d4f   : > { %v4133_v1 = vpop.f32.mrf.mxu2 }
0x2d50   : > { %v4139_v52 = vsub.f32 %v7040_v31, %v4133_v1 }
0x2d57   : > { %v4136_v29 = vpop.f32.mrf.mxu2 }
0x2d58   : > { %v4140_v55 = vsub.f32 %v7038_v30, %v4136_v29 }
0x2d5a   : > { %4155 = vmatpush.msrb.mxu3 %v4140_v55 }
0x2d5c   : > { %4156 = vmatpush.msrb.mxu3 %v4139_v52 }
0x2d5d   : > { %6248 = vmatmul.msk.f32.vlgmr.msrb.gmra.mxu3 %vm501_vm2, %v4102_v23  ;;  %v6265_v23 = vld [vmem:[%s8663_s4 + $0x98] sm:$0xff] }
0x2d5e   : > { %4356 = vmatpush.msra.mxu3 %v6492_v16  ;;  %v6267_v16 = vld [vmem:[%s8663_s4 + $0xa8] sm:$0xff] }
0x2d60   : > { %4357 = vmatpush.msra.mxu3 %v6493_v28  ;;  %v6268_v28 = vld [vmem:[%s8663_s4 + $0xb0] sm:$0xff] }
0x2d62   : > { %4358 = vmatpush.msra.mxu3 %v6497_v0  ;;  %v6269_v0 = vld [vmem:[%s8663_s4 + $0xb8] sm:$0xff] }
0x2d64   : > { %4359 = vmatpush.msra.mxu3 %v6498_v62 }
0x2d65   : > { %6249 = vmatmul.msk.f32.gmra.mxu3 %vm501_vm2, %v4105_v42  ;;  %v6266_v42 = vld [vmem:[%s8663_s4 + $0xa0] sm:$0xff] }
0x2d66   : > { %4360 = vmatpush.msra.mxu3 %v6502_v56  ;;  %v4309_v56 = vpop.f32.mrf.mxu2 }
0x2d68   : > { %4361 = vmatpush.msra.mxu3 %v6503_v43 }
0x2d6a   : > { %4362 = vmatpush.msra.mxu3 %v6507_v38 }
0x2d6c   : > { %4363 = vmatpush.msra.mxu3 %v6508_v51 }
0x2d6d   : > { %6270 = vmatmul.msk.f32.vlgmr.msra.gmra.mxu3 %vm324_vm0, %v6262_v9 }
0x2d6e   : > { %6300 = vmatpush.xpose.msk.msrb.mxu3 %vm429_vm1, %v7972_v39  ;;  %v4312_v51 = vpop.f32.mrf.mxu2 }
0x2d72   : > { %6301 = vmatpush.xpose.msk.msrb.mxu3 %vm429_vm1, %v7911_v26 }
0x2d75   : > { %6271 = vmatmul.msk.f32.gmra.mxu3 %vm324_vm0, %v6263_v18 }
0x2d7d   : > { %6272 = vmatmul.msk.f32.gmra.mxu3 %vm324_vm0, %v6264_v54 }
0x2d85   : > { %6273 = vmatmul.msk.f32.gmra.mxu3 %vm324_vm0, %v6265_v23  ;;  %v3274_v23 = vpop.xlane.xlu1 %3273 }
0x2d86   : > { %6664 = vrcp.f32 %v3274_v23 }
0x2d8d   : > { %6274 = vmatmul.msk.f32.gmra.mxu3 %vm324_vm0, %v6266_v42 }
0x2d95   : > { %6275 = vmatmul.msk.f32.gmra.mxu3 %vm324_vm0, %v6267_v16  ;;  %v3277_v16 = vpop.xlane.xlu0 %3276 }
0x2d96   : > { %6666 = vrcp.f32 %v3277_v16 }
0x2d9d   : > { %6276 = vmatmul.msk.f32.gmra.mxu3 %vm324_vm0, %v6268_v28  ;;  %v3286_v23 = vpop.xlane.xlu0 %3285 }
0x2da5   : > { %6277 = vmatmul.msk.f32.gmra.mxu3 %vm324_vm0, %v6269_v0  ;;  %v6665_v0 = vpop.eup %6664 }
0x2dad   : > { %6302 = vmatmul.msk.f32.vlgmr.msrb.gmra.mxu3 %vm429_vm1, %v7965_v57 }
0x2db5   : > { %6303 = vmatmul.msk.f32.gmra.mxu3 %vm429_vm1, %v7974_v2 }
0x2de0   : > { %v4158_v62 = vpop.f32.mrf.mxu3 }
0x2de1   : > { %v4164_v61 = vsub.f32 %v7048_v40, %v4158_v62 }
0x2de8   : > { %v4161_v43 = vpop.f32.mrf.mxu3 }
0x2de9   : > { %v4165_v38 = vsub.f32 %v7046_v37, %v4161_v43  ;;  %v3304_v43 = vmul.f32 %v6665_v0, %v7945_v46 }
0x2deb   : > { %4186 = vmatpush.msra.mxu0 %v4165_v38  ;;  %v3280_v38 = vpop.xlane.xlu1 %3279 }
0x2dec   : > { %6668 = vrcp.f32 %v3280_v38 }
0x2ded   : > { %4187 = vmatpush.msra.mxu0 %v4164_v61  ;;  %v6667_v61 = vpop.eup %6666 }
0x2dee   : > { %6250 = vmatmul.msk.f32.vlgmr.msra.gmra.mxu0 %vm501_vm2, %v8048_v27 }
0x2def   : > { %4427 = vmatpush.msrb.mxu0 %v4312_v51  ;;  %v3305_v51 = vmul.f32 %v6667_v61, %v7950_v32 }
0x2df0   : > { %v8122_v17 = vpop.f32.mrf.mxu3 }
0x2df1   : > { %4428 = vmatpush.msrb.mxu0 %v4309_v56 }
0x2df3   : > { %v3289_v16 = vpop.xlane.xlu1 %3288 }
0x2df6   : > { %6251 = vmatmul.msk.f32.gmra.mxu0 %vm501_vm2, %v8046_v44 }
0x2df8   : > { %v8126_v53 = vpop.f32.mrf.mxu3 }
0x2e00   : > { %v8128_v45 = vpop.f32.mrf.mxu3 }
0x2e08   : > { %v8130_v1 = vpop.f32.mrf.mxu3 }
0x2e10   : > { %v8132_v29 = vpop.f32.mrf.mxu3 }
0x2e18   : > { %v8134_v55 = vpop.f32.mrf.mxu3 }
0x2e20   : > { %v8136_v52 = vpop.f32.mrf.mxu3 }
0x2e28   : > { %v8138_v27 = vpop.f32.mrf.mxu3 }
0x2e30   : > { %v4704_v9 = vpop.f32.mrf.mxu3 }
0x2e31   : > { %v4710_v18 = vsel %vm501_vm2, %v4704_v9, -inf }
0x2e32   : > { %4711 = vmax.xlane.f32.xlu1 %v4710_v18  ;;  %v3283_v18 = vpop.xlane.xlu2 %3282 }
0x2e33   : > { %6670 = vrcp.f32 %v3283_v18 }
0x2e34   : > { %6672 = vrcp.f32 %v3286_v23 }
0x2e35   : > { %6674 = vrcp.f32 %v3289_v16 }
0x2e38   : > { %v4707_v54 = vpop.f32.mrf.mxu3 }
0x2e39   : > { %v4713_v44 = vsel %vm501_vm2, %v4707_v54, -inf }
0x2e3a   : > { %4714 = vmax.xlane.f32.xlu2 %v4713_v44  ;;  %v6669_v44 = vpop.eup %6668 }
0x2e3b   : > { %v3306_v46 = vmul.f32 %v6669_v44, %v7968_v35 }
0x2e6b   : > { %v4189_v42 = vpop.f32.mrf.mxu0 }
0x2e6c   : > { %v4195_v56 = vmul.f32 0.25, %v4189_v42  ;;  %v6671_v42 = vpop.eup %6670 }
0x2e73   : > { %v4192_v28 = vpop.f32.mrf.mxu0 }
0x2e74   : > { %v4196_v62 = vmul.f32 0.25, %v4192_v28  ;;  %v3292_v28 = vpop.xlane.xlu2 %3291 }
0x2e75   : > { %6676 = vrcp.f32 %v3292_v28 }
0x2e76   : > { %4235 = vmatpush.msrb.mxu1 %v4196_v62  ;;  %v3295_v62 = vpop.xlane.xlu0 %3294 }
0x2e77   : > { %6678 = vrcp.f32 %v3295_v62 }
0x2e78   : > { %4236 = vmatpush.msrb.mxu1 %v4195_v56 }
0x2e79   : > { %6252 = vmatmul.msk.f32.vlgmr.msrb.gmra.mxu1 %vm501_vm2, %v3304_v43 }
0x2e7a   : > { %6290 = vmatpush.xpose.msk.msra.mxu1 %vm429_vm1, %v7972_v39  ;;  %v3307_v39 = vmul.f32 %v6671_v42, %v7976_v41 }
0x2e7e   : > { %6291 = vmatpush.xpose.msk.msra.mxu1 %vm429_vm1, %v7911_v26  ;;  %v6673_v26 = vpop.eup %6672 }
0x2e7f   : > { %v3308_v32 = vmul.f32 %v6673_v26, %v7982_v60  ;;  %v6675_v0 = vpop.eup %6674 }
0x2e80   : > { %v3309_v35 = vmul.f32 %v6675_v0, %v7988_v7  ;;  %v6677_v56 = vpop.eup %6676 }
0x2e81   : > { %6253 = vmatmul.msk.f32.gmra.mxu1 %vm501_vm2, %v3305_v51  ;;  %v3310_v38 = vmul.f32 %v6677_v56, %v7992_v22  ;;  %v6679_v60 = vpop.eup %6678 }
0x2e82   : > { %v3311_v44 = vmul.f32 %v6679_v60, %v7996_v34 }
0x2e89   : > { %6254 = vmatmul.msk.f32.gmra.mxu1 %vm501_vm2, %v3306_v46 }
0x2e91   : > { %6255 = vmatmul.msk.f32.gmra.mxu1 %vm501_vm2, %v3307_v39 }
0x2e99   : > { %6256 = vmatmul.msk.f32.gmra.mxu1 %vm501_vm2, %v3308_v32 }
0x2ea1   : > { %6257 = vmatmul.msk.f32.gmra.mxu1 %vm501_vm2, %v3309_v35 }
0x2ea5   : > { %v4712_v41 = vpop.xlane.xlu1 %4711 }
0x2ea6   : > { %v4716_v43 = vsub.f32 %v4704_v9, %v4712_v41 }
0x2ea8   : > { %v4718_v61 = vmul.f32 1.442695, %v4716_v43 }
0x2ea9   : > { %6258 = vmatmul.msk.f32.gmra.mxu1 %vm501_vm2, %v3310_v38 }
0x2eaa   : > { %6680 = vpow2.f32 %v4718_v61 }
0x2ead   : > { %v4715_v51 = vpop.xlane.xlu2 %4714 }
0x2eae   : > { %v4717_v18 = vsub.f32 %v4707_v54, %v4715_v51 }
0x2eb0   : > { %v6681_v46 = vpop.eup %6680  ;;  %v4720_v7 = vmul.f32 1.442695, %v4717_v18 }
0x2eb1   : > { %6259 = vmatmul.msk.f32.gmra.mxu1 %vm501_vm2, %v3311_v44  ;;  %v4722_v23 = vsel %vm501_vm2, %v6681_v46, 0.0 }
0x2eb2   : > { %6682 = vpow2.f32 %v4720_v7  ;;  %4723 = vadd.xlane.f32.xlu0 %v4722_v23 }
0x2eb8   : > { %v6683_v9 = vpop.eup %6682 }
0x2eb9   : > { %v4725_v22 = vsel %vm501_vm2, %v6683_v9, 0.0 }
0x2eba   : > { %4726 = vadd.xlane.f32.xlu1 %v4725_v22 }
0x2ef6   : > { %v4238_v42 = vpop.f32.mrf.mxu1 }
0x2ef7   : > { %6278 = vmatmul.msk.f32.vlgmr.msrb.gmra.mxu0 %vm501_vm2, %v4238_v42 }
0x2efe   : > { %v4241_v39 = vpop.f32.mrf.mxu1 }
0x2eff   : > { %6279 = vmatmul.msk.f32.gmra.mxu0 %vm501_vm2, %v4241_v39 }
0x2f06   : > { %v4244_v54 = vpop.f32.mrf.mxu1 }
0x2f07   : > { %6280 = vmatmul.msk.f32.gmra.mxu0 %vm501_vm2, %v4244_v54  ;;  %v8186_v54 = vld [vmem:[%s6827_s29 + $0x28] sm:$0xff] }
0x2f0e   : > { %v4247_v34 = vpop.f32.mrf.mxu1 }
0x2f0f   : > { %6281 = vmatmul.msk.f32.gmra.mxu0 %vm501_vm2, %v4247_v34  ;;  %v322_v34 = vld [vmem:[%s8664_s5 + $0x8] sm:$0xf] }
0x2f16   : > { %v4250_v16 = vpop.f32.mrf.mxu1 }
0x2f17   : > { %6282 = vmatmul.msk.f32.gmra.mxu0 %vm501_vm2, %v4250_v16  ;;  %v4471_v16 = vsel %vm1735_vm7, %v322_v34, 0 }
0x2f18   : > { %4480 = vmatpush.bf16.msrb.mxu2 %v4471_v16 }
0x2f1e   : > { %v4253_v26 = vpop.f32.mrf.mxu1 }
0x2f1f   : > { %6283 = vmatmul.msk.f32.gmra.mxu0 %vm501_vm2, %v4253_v26  ;;  %v8195_v26 = vld [vmem:[%s6827_s29 + $0x18] sm:$0xff] }
0x2f25   : > { %v4724_v32 = vpop.xlane.xlu0 %4723 }
0x2f26   : > { %v4256_v28 = vpop.f32.mrf.mxu1  ;;  %6684 = vrcp.f32 %v4724_v32  ;;  %v8199_v32 = vld [vmem:[%s6827_s29 + $0x30] sm:$0xff] }
0x2f27   : > { %6284 = vmatmul.msk.f32.gmra.mxu0 %vm501_vm2, %v4256_v28  ;;  %v8204_v28 = vld [vmem:[%s6827_s29 + $0x8] sm:$0xff] }
0x2f2c   : > { %v6685_v0 = vpop.eup %6684 }
0x2f2d   : > { %v8171_v35 = vmul.f32 %v6685_v0, %v6681_v46  ;;  %v4727_v62 = vpop.xlane.xlu1 %4726  ;;  %v8208_v0 = vld [vmem:[%s6827_s29 + $0x20] sm:$0xff] }
0x2f2e   : > { %v4259_v56 = vpop.f32.mrf.mxu1  ;;  %6686 = vrcp.f32 %v4727_v62  ;;  %v8214_v62 = vld [vmem:[%s6827_s29 + $0x10] sm:$0xff] }
0x2f2f   : > { %6285 = vmatmul.msk.f32.gmra.mxu0 %vm501_vm2, %v4259_v56  ;;  %v4809_v41 = vand.u32 2147483647, %v8171_v35 }
0x2f31   : > { %v4811_v43 = vsel %vm501_vm2, %v4809_v41, 0.0  ;;  %v8220_v41 = vld [vmem:[%s6827_s29] sm:$0xff] }
0x2f32   : > { %4812 = vadd.xlane.f32.xlu2 %v4811_v43 }
0x2f34   : > { %v6687_v38 = vpop.eup %6686 }
0x2f35   : > { %v8176_v61 = vmul.f32 %v6687_v38, %v6683_v9  ;;  %v8182_v9 = vld [vmem:[%s6827_s29 + $0x38] sm:$0xff] }
0x2f37   : > { %v4810_v60 = vand.u32 2147483647, %v8176_v61 }
0x2f39   : > { %v4814_v51 = vsel %vm501_vm2, %v4810_v60, 0.0 }
0x2f3a   : > { %v4825_v18 = vadd.f32 %v4814_v51, %v4811_v43  ;;  %4815 = vadd.xlane.f32.xlu0 %v4814_v51 }
0x2f3c   : > { %v4826_v44 = vrot.slane %v4825_v18, 4 }
0x2f3e   : > { %v4827_v46 = vadd.f32 %v4826_v44, %v4825_v18 }
0x2f40   : > { %v4828_v7 = vrot.slane %v4827_v46, 2 }
0x2f42   : > { %v4829_v23 = vadd.f32 %v4828_v7, %v4827_v46 }
0x2f44   : > { %v4830_v22 = vrot.slane %v4829_v23, 1 }
0x2f46   : > { %v4831_v42 = vadd.f32 %v4830_v22, %v4829_v23 }
0x2f48   : > { %v4832_v39 = vsel %vm501_vm2, %v4831_v42, -inf }
0x2f49   : > { %4833 = vmax.xlane.f32.xlu1 %v4832_v39 }
0x2f4e   : > { %4746 = vrot.lane.b32.xlu0 %v8182_v9, %s6771_s28 }
0x2f56   : > { %4742 = vrot.lane.b32.xlu0 %v8186_v54, %s6771_s28 }
0x2f5b   : > { %4837 = vxpose.xlu2.b32.start [1/2] (short) (narrow) %v8171_v35, 16 }
0x2f5e   : > { %4738 = vrot.lane.b32.xlu0 %v8195_v26, %s6771_s28 }
0x2f62   : > { %4744 = vrot.lane.b32.xlu1 %v8199_v32, %s6771_s28 }
0x2f63   : > { %4838 = vxpose.xlu2.b32.end [2/2] (short) (narrow) %v8176_v61, 16 }
0x2f66   : > { %4734 = vrot.lane.b32.xlu0 %v8204_v28, %s6771_s28 }
0x2f6a   : > { %4740 = vrot.lane.b32.xlu1 %v8208_v0, %s6771_s28 }
0x2f6e   : > { %4510 = vrot.lane.b32.xlu0 %v6890_v15, %s6769_s27 }
0x2f72   : > { %4736 = vrot.lane.b32.xlu1 %v8214_v62, %s6771_s28 }
0x2f74   : > { %v4430_v56 = vpop.f32.mrf.mxu0 }
0x2f75   : > { %v4431_v38 = vadd.f32 %v4430_v56, %v8122_v17 }
0x2f76   : > { %4516 = vrot.lane.b32.xlu0 %v6866_v10, %s6769_s27 }
0x2f7a   : > { %4732 = vrot.lane.b32.xlu1 %v8220_v41, %s6771_s28 }
0x2f7c   : > { %v4433_v43 = vpop.f32.mrf.mxu0 }
0x2f7d   : > { %v4434_v60 = vadd.f32 %v4433_v43, %v8126_v53 }
0x2f7e   : > { %4520 = vrot.lane.b32.xlu0 %v6852_v6, %s6769_s27 }
0x2f7f   : > { %v4454_v51 = vpack.c.bf16 %v4434_v60, %v4431_v38 }
0x2f81   : > { %6286 = vmatmul.msk.bf16.vlgmr.msrb.gmra.mxu2 %vm429_vm1, %v4454_v51 }
0x2f82   : > { %4514 = vrot.lane.b32.xlu1 %v6872_v11, %s6769_s27 }
0x2f84   : > { %v4436_v15 = vpop.f32.mrf.mxu0 }
0x2f85   : > { %v4437_v17 = vadd.f32 %v4436_v15, %v8128_v45 }
0x2f86   : > { %4524 = vrot.lane.b32.xlu0 %v6841_v3, %s6769_s27 }
0x2f8a   : > { %4518 = vrot.lane.b32.xlu1 %v6859_v8, %s6769_s27 }
0x2f8c   : > { %v4439_v10 = vpop.f32.mrf.mxu0 }
0x2f8d   : > { %v4440_v53 = vadd.f32 %v4439_v10, %v8130_v1 }
0x2f8f   : > { %v4455_v18 = vpack.c.bf16 %v4440_v53, %v4437_v17 }
0x2f91   : > { %6287 = vmatmul.msk.bf16.gmra.mxu2 %vm429_vm1, %v4455_v18 }
0x2f92   : > { %4522 = vrot.lane.b32.xlu1 %v6844_v4, %s6769_s27 }
0x2f94   : > { %v4442_v6 = vpop.f32.mrf.mxu0 }
0x2f95   : > { %v4443_v44 = vadd.f32 %v4442_v6, %v8132_v29 }
0x2f9c   : > { %v4445_v11 = vpop.f32.mrf.mxu0 }
0x2f9d   : > { %v4446_v3 = vadd.f32 %v4445_v11, %v8134_v55 }
0x2f9f   : > { %v4456_v46 = vpack.c.bf16 %v4446_v3, %v4443_v44 }
0x2fa1   : > { %6288 = vmatmul.msk.bf16.gmra.mxu2 %vm429_vm1, %v4456_v46 }
0x2fa4   : > { %v4448_v8 = vpop.f32.mrf.mxu0 }
0x2fa5   : > { %v4449_v45 = vadd.f32 %v4448_v8, %v8136_v52  ;;  %v4813_v23 = vpop.xlane.xlu2 %4812 }
0x2fac   : > { %v4451_v7 = vpop.f32.mrf.mxu0 }
0x2fad   : > { %v4452_v1 = vadd.f32 %v4451_v7, %v8138_v27  ;;  %v4816_v22 = vpop.xlane.xlu0 %4815 }
0x2fae   : > { %v4817_v39 = vmax.f32 %v4813_v23, %v4816_v22 }
0x2faf   : > { %v4457_v42 = vpack.c.bf16 %v4452_v1, %v4449_v45 }
0x2fb0   : > { %v4818_v4 = vrot.slane %v4817_v39, 4 }
0x2fb1   : > { %6289 = vmatmul.msk.bf16.gmra.mxu2 %vm429_vm1, %v4457_v42 }
0x2fb2   : > { %v4819_v34 = vmax.f32 %v4817_v39, %v4818_v4 }
0x2fb4   : > { %v4820_v29 = vrot.slane %v4819_v34, 2 }
0x2fb6   : > { %v4821_v16 = vmax.f32 %v4819_v34, %v4820_v29 }
0x2fb8   : > { %v4822_v55 = vrot.slane %v4821_v16, 1 }
0x2fba   : > { %v4823_v56 = vmax.f32 %v4821_v16, %v4822_v55 }
0x2fbc   : > { %v4834_v43 = vpop.xlane.xlu1 %4833  ;;  %6425 = vpush %v4823_v56 }
0x2fbd   : > { %6427 = vpush %v4834_v43 }
0x2fc0   : > { %v4747_v38 = vpop.permute.xlu0 %4746 }
0x2fc1   : > { %6304 = vmatpush.xpose.msk.msra.mxu0 %vm429_vm1, %v4747_v38 }
0x2fc8   : > { %v4743_v52 = vpop.permute.xlu0 %4742 }
0x2fcc   : > { %4512 = vrot.lane.b32.xlu2 %v6880_v13, %s6769_s27 }
0x2fd0   : > { %v4739_v51 = vpop.permute.xlu0 %4738 }
0x2fd4   : > { %v4745_v27 = vpop.permute.xlu1 %4744 }
0x2fd5   : > { %6305 = vmatpush.xpose.msk.msra.mxu0 %vm429_vm1, %v4745_v27 }
0x2fd8   : > { %v4735_v10 = vpop.permute.xlu0 %4734 }
0x2fd9   : > { %6306 = vmatpush.xpose.msk.msra.mxu0 %vm429_vm1, %v4743_v52 }
0x2fdc   : > { %v4741_v60 = vpop.permute.xlu1 %4740 }
0x2fdd   : > { %6307 = vmatpush.xpose.msk.msra.mxu0 %vm429_vm1, %v4741_v60 }
0x2fe0   : > { %v4511_v3 = vpop.permute.xlu0 %4510 }
0x2fe1   : > { %6308 = vmatpush.xpose.msk.msra.mxu0 %vm429_vm1, %v4739_v51  ;;  %6292 = vmatmul.msk.f32.vlgmr.msra.gmra.mxu1 %vm429_vm1, %v4511_v3  ;;  %v6509_v3 = vpack.i.bf16 %v8199_v32, %v8182_v9 }
0x2fe4   : > { %v4737_v15 = vpop.permute.xlu1 %4736 }
0x2fe5   : > { %6309 = vmatpush.xpose.msk.msra.mxu0 %vm429_vm1, %v4737_v15 }
0x2fe8   : > { %v4517_v4 = vpop.permute.xlu0 %4516 }
0x2fe9   : > { %6310 = vmatpush.xpose.msk.msra.mxu0 %vm429_vm1, %v4735_v10 }
0x2fec   : > { %v4733_v17 = vpop.permute.xlu1 %4732 }
0x2fed   : > { %6311 = vmatpush.xpose.msk.msra.mxu0 %vm429_vm1, %v4733_v17  ;;  %s6426_s29 = spop %6425 }
0x2fee   : > { %s6428_s27 = spop %6427 }
0x2fef   : > { %s4836_s9 = smul.f32 %s6428_s27, %s6426_s29 }
0x2ff0   : > { %6312 = vmatmul.msk.f32.vlgmr.msra.gmra.mxu0 %vm429_vm1, %v7965_v57  ;;  %v4521_v56 = vpop.permute.xlu0 %4520 }
0x2ff1   : > { %v4869_v13 = vstv %s4836_s9 }
0x2ff2   : > { %6688 = vrcp.f32 %v4869_v13  ;;  %v4881_v44 = vand.u32 2147483648, %v4869_v13  ;;  %v4879_v8 = vand.u32 2147483647, %v4869_v13  ;;  %vm4875_vm4 = vweird.f32 %v4869_v13 }
0x2ff4   : > { %v4853_v53 = vpop.trf.xlu2  ;;  %v4882_v57 = vor.u32 1.1754944e-38, %v4881_v44  ;;  %vm4880_vm6 = vcmp.eq.f32.partialorder %v4879_v8, 8.507059e+37  ;;  %v4515_v39 = vpop.permute.xlu1 %4514 }
0x2ff8   : > { %v6689_v18 = vpop.eup %6688  ;;  %6313 = vmatmul.msk.f32.gmra.mxu0 %vm429_vm1, %v7974_v2 }
0x2ff9   : > { %v4871_v6 = vmul.f32 %v6689_v18, %v4869_v13  ;;  %vm4876_vm3 = vweird.f32 %v6689_v18 }
0x2ffa   : > { %vm4877_vm5 = vmor %vm4875_vm4, %vm4876_vm3 }
0x2ffb   : > { %v4872_v11 = vsub.f32 1.0, %v4871_v6 }
0x2ffc   : > { %v4854_v45 = vpop.trf.xlu2  ;;  %v4519_v16 = vpop.permute.xlu1 %4518 }
0x2ffd   : > { %v4873_v46 = vmul.f32 %v6689_v18, %v4872_v11 }
0x2fff   : > { %v4874_v7 = vadd.f32 %v6689_v18, %v4873_v46  ;;  %v6514_v46 = vpack.i.bf16 %v8208_v0, %v8186_v54 }
0x3001   : > { %v4878_v1 = vsel %vm4877_vm5, %v6689_v18, %v4874_v7 }
0x3002   : > { %v4883_v23 = vsel %vm4880_vm6, %v4882_v57, %v4878_v1 }
0x3003   : > { %v8260_v22 = vmul.f32 %v4883_v23, %v4854_v45  ;;  %v8262_v2 = vmul.f32 %v4883_v23, %v4853_v53 }
0x3004   : > { %v8273_v34 = vpop.f32.mrf.mxu2 }
0x3005   : > { %4906 = vmatpush.msra.mxu2 %v8260_v22 }
0x3007   : > { %4907 = vmatpush.msra.mxu2 %v8262_v2 }
0x3008   : > { %6314 = vmatmul.msk.f32.vlgmr.msra.gmra.mxu2 %vm501_vm2, %v8171_v35 }
0x300c   : > { %v8275_v29 = vpop.f32.mrf.mxu2 }
0x3010   : > { %6315 = vmatmul.msk.f32.gmra.mxu2 %vm501_vm2, %v8176_v61 }
0x3014   : > { %v8278_v55 = vpop.f32.mrf.mxu2 }
0x301c   : > { %v8281_v43 = vpop.f32.mrf.mxu2 }
0x3024   : > { %v8283_v38 = vpop.f32.mrf.mxu2 }
0x3026   : > { %v4513_v42 = vpop.permute.xlu2 %4512 }
0x3027   : > { %6293 = vmatmul.msk.f32.gmra.mxu1 %vm429_vm1, %v4513_v42  ;;  %v4523_v42 = vpop.permute.xlu1 %4522 }
0x302c   : > { %v8285_v52 = vpop.f32.mrf.mxu2 }
0x302f   : > { %6294 = vmatmul.msk.f32.gmra.mxu1 %vm429_vm1, %v4515_v39  ;;  %v6524_v39 = vpack.i.bf16 %v8220_v41, %v8204_v28 }
0x3034   : > { %v8287_v27 = vpop.f32.mrf.mxu2 }
0x3037   : > { %6295 = vmatmul.msk.f32.gmra.mxu1 %vm429_vm1, %v4517_v4  ;;  %v4525_v4 = vpop.permute.xlu0 %4524 }
0x303c   : > { %v8289_v60 = vpop.f32.mrf.mxu2 }
0x303f   : > { %6296 = vmatmul.msk.f32.gmra.mxu1 %vm429_vm1, %v4519_v16 }
0x3047   : > { %6297 = vmatmul.msk.f32.gmra.mxu1 %vm429_vm1, %v4521_v56 }
0x304f   : > { %6298 = vmatmul.msk.f32.gmra.mxu1 %vm429_vm1, %v4523_v42 }
0x3057   : > { %6299 = vmatmul.msk.f32.gmra.mxu1 %vm429_vm1, %v4525_v4 }
0x305e   : > { %v8291_v51 = vpop.f32.mrf.mxu1 }
0x305f   : > { %v4591_v15 = vsel %vm501_vm2, %v8291_v51, -inf }
0x3060   : > { %4592 = vmax.xlane.f32.xlu1 %v4591_v15 }
0x306d   : > { %v4781_v8 = vpop.f32.mrf.mxu0 }
0x306e   : > { %v4787_v23 = vsel %vm324_vm0, %v4781_v8, -inf }
0x3075   : > { %v4784_v45 = vpop.f32.mrf.mxu0 }
0x3076   : > { %v4790_v9 = vsel %vm324_vm0, %v4784_v45, -inf }
0x308b   : > { %v4909_v10 = vpop.f32.mrf.mxu2 }
0x308c   : > { %v4915_v53 = vsub.f32 %v7032_v21, %v4909_v10 }
0x3093   : > { %v4912_v17 = vpop.f32.mrf.mxu2 }
0x3094   : > { %v4916_v13 = vsub.f32 %v7030_v20, %v4912_v17 }
0x3096   : > { %4937 = vmatpush.msra.mxu3 %v4916_v13 }
0x3098   : > { %4938 = vmatpush.msra.mxu3 %v4915_v53 }
0x3099   : > { %6316 = vmatmul.msk.f32.vlgmr.msra.gmra.mxu3 %vm501_vm2, %v4909_v10 }
0x30a1   : > { %6317 = vmatmul.msk.f32.gmra.mxu3 %vm501_vm2, %v4912_v17 }
0x30a4   : > { %v8299_v18 = vpop.f32.mrf.mxu1 }
0x30a5   : > { %v4594_v6 = vsel %vm501_vm2, %v8299_v18, -inf }
0x30a6   : > { %4595 = vmax.xlane.f32.xlu0 %v4594_v6 }
0x30ac   : > { %v8303_v11 = vpop.f32.mrf.mxu1 }
0x30ad   : > { %v4597_v44 = vsel %vm501_vm2, %v8303_v11, -inf }
0x30ae   : > { %4598 = vmax.xlane.f32.xlu1 %v4597_v44 }
0x30b4   : > { %v8313_v7 = vpop.f32.mrf.mxu1 }
0x30b5   : > { %v4600_v57 = vsel %vm501_vm2, %v8313_v7, -inf }
0x30ba   : > { %6510 = vrot.lane.b32.xlu0 %v6509_v3, %s6772_s10 }
0x30bc   : > { %v8317_v1 = vpop.f32.mrf.mxu1 }
0x30bd   : > { %v4603_v32 = vsel %vm501_vm2, %v8317_v1, -inf }
0x30c4   : > { %v8322_v54 = vpop.f32.mrf.mxu1 }
0x30c5   : > { %v4606_v0 = vsel %vm501_vm2, %v8322_v54, -inf }
0x30c7   : > { %6515 = vrot.lane.b32.xlu1 %v6514_v46, %s6772_s10 }
0x30d3   : > { %v8338_v28 = vpop.xlane.xlu1 %4592 }
0x30e4   : > { %4601 = vmax.xlane.f32.xlu0 %v4600_v57 }
0x30ec   : > { %4791 = vmax.xlane.f32.xlu0 %v4790_v9 }
0x30f1   : > { %4604 = vmax.xlane.f32.xlu1 %v4603_v32 }
0x30f9   : > { %4607 = vmax.xlane.f32.xlu1 %v4606_v0 }
0x3101   : > { %4788 = vmax.xlane.f32.xlu1 %v4787_v23 }
0x3119   : > { %v8336_v53 = vpop.xlane.xlu0 %4595 }
0x311a   : > { %6525 = vrot.lane.b32.xlu1 %v6524_v39, %s6772_s10 }
0x311c   : > { %v4940_v16 = vpop.f32.mrf.mxu3 }
0x311d   : > { %v4946_v13 = vsub.f32 %v7040_v31, %v4940_v16 }
0x3121   : > { %v8342_v6 = vpop.xlane.xlu1 %4598 }
0x3124   : > { %v4943_v56 = vpop.f32.mrf.mxu3 }
0x3125   : > { %v4947_v15 = vsub.f32 %v7038_v30, %v4943_v56 }
0x3127   : > { %4962 = vmatpush.msrb.mxu0 %v4947_v15 }
0x3129   : > { %4963 = vmatpush.msrb.mxu0 %v4946_v13 }
0x312a   : > { %6318 = vmatmul.msk.f32.vlgmr.msrb.gmra.mxu0 %vm501_vm2, %v4909_v10 }
0x312c   : > { %v8340_v41 = vpop.permute.xlu0 %6510 }
0x3132   : > { %6319 = vmatmul.msk.f32.gmra.mxu0 %vm501_vm2, %v4912_v17 }
0x3139   : > { %v8346_v3 = vpop.permute.xlu1 %6515 }
0x3157   : > { %v8344_v44 = vpop.xlane.xlu0 %4601 }
0x315f   : > { %v4792_v46 = vpop.xlane.xlu0 %4791 }
0x3160   : > { %v4794_v57 = vsub.f32 %v4784_v45, %v4792_v46 }
0x3162   : > { %v4797_v9 = vmul.f32 1.442695, %v4794_v57 }
0x3164   : > { %6690 = vpow2.f32 %v4797_v9  ;;  %v8348_v32 = vpop.xlane.xlu1 %4604 }
0x316a   : > { %v8350_v10 = vpop.eup %6690 }
0x316b   : > { %v4802_v17 = vsel %vm324_vm0, %v8350_v10, 0.0 }
0x316c   : > { %v8354_v0 = vpop.xlane.xlu1 %4607  ;;  %4803 = vadd.xlane.f32.xlu1 %v4802_v17 }
0x3174   : > { %v4789_v23 = vpop.xlane.xlu1 %4788 }
0x3175   : > { %v4793_v42 = vsub.f32 %v4781_v8, %v4789_v23 }
0x3177   : > { %v4795_v39 = vmul.f32 1.442695, %v4793_v42 }
0x3179   : > { %6692 = vpow2.f32 %v4795_v39 }
0x317f   : > { %v8356_v4 = vpop.eup %6692 }
0x3180   : > { %v4799_v45 = vsel %vm324_vm0, %v8356_v4, 0.0 }
0x3181   : > { %4800 = vadd.xlane.f32.xlu2 %v4799_v45 }
0x31a7   : > { %v4965_v16 = vpop.f32.mrf.mxu0 }
0x31a8   : > { %v4971_v13 = vsub.f32 %v7048_v40, %v4965_v16 }
0x31af   : > { %v4968_v56 = vpop.f32.mrf.mxu0 }
0x31b0   : > { %v4972_v15 = vsub.f32 %v7046_v37, %v4968_v56 }
0x31b2   : > { %4993 = vmatpush.msrb.mxu2 %v4972_v15 }
0x31b4   : > { %4994 = vmatpush.msrb.mxu2 %v4971_v13 }
0x31b5   : > { %6320 = vmatmul.msk.f32.vlgmr.msrb.gmra.mxu2 %vm501_vm2, %v8262_v2 }
0x31bd   : > { %6321 = vmatmul.msk.f32.gmra.mxu2 %vm501_vm2, %v8260_v22 }
0x3238   : > { %v4996_v8 = vpop.f32.mrf.mxu2 }
0x3239   : > { %v5002_v9 = vmul.f32 0.25, %v4996_v8 }
0x3240   : > { %v4999_v46 = vpop.f32.mrf.mxu2 }
0x3241   : > { %v5003_v57 = vmul.f32 0.25, %v4999_v46  ;;  %v6519_v46 = vpack.i.bf16 %v8214_v62, %v8195_v26 }
0x3243   : > { %5018 = vmatpush.msrb.mxu3 %v5003_v57  ;;  %6520 = vrot.lane.b32.xlu0 %v6519_v46, %s6772_s10  ;;  %s8597_s10 = scalar_lea.vmem %s8660_s1, %s6821_s26 }
0x3245   : > { %5019 = vmatpush.msrb.mxu3 %v5002_v9 }
0x3246   : > { %6322 = vmatmul.msk.f32.vlgmr.msrb.gmra.mxu3 %vm501_vm2, %v8171_v35 }
0x324e   : > { %6323 = vmatmul.msk.f32.gmra.mxu3 %vm501_vm2, %v8176_v61 }
0x32c9   : > { %v5021_v17 = vpop.f32.mrf.mxu3 }
0x32ca   : > { %v5027_v2 = vsub.f32 %v7032_v21, %v5021_v17 }
0x32d1   : > { %v5024_v23 = vpop.f32.mrf.mxu3 }
0x32d2   : > { %v5028_v42 = vsub.f32 %v7030_v20, %v5024_v23 }
0x32d4   : > { %5049 = vmatpush.msra.mxu0 %v5028_v42 }
0x32d6   : > { %5050 = vmatpush.msra.mxu0 %v5027_v2  ;;  %v4585_v2 = vpop.f32.mrf.mxu1 }
0x32d7   : > { %6324 = vmatmul.msk.f32.vlgmr.msra.gmra.mxu0 %vm501_vm2, %v5021_v17 }
0x32df   : > { %6325 = vmatmul.msk.f32.gmra.mxu0 %vm501_vm2, %v5024_v23 }
0x3354   : > { %v5052_v22 = vpop.f32.mrf.mxu0 }
0x3355   : > { %v5058_v16 = vsub.f32 %v7040_v31, %v5052_v22 }
0x335c   : > { %v5055_v39 = vpop.f32.mrf.mxu0 }
0x335d   : > { %v5059_v45 = vsub.f32 %v7038_v30, %v5055_v39 }
0x335f   : > { %5074 = vmatpush.msra.mxu2 %v5059_v45 }
0x3361   : > { %5075 = vmatpush.msra.mxu2 %v5058_v16 }
0x3362   : > { %6326 = vmatmul.msk.f32.vlgmr.msra.gmra.mxu2 %vm501_vm2, %v5021_v17  ;;  %v4615_v17 = vsub.f32 %v8291_v51, %v8338_v28  ;;  %v4616_v28 = vsub.f32 %v8299_v18, %v8336_v53  ;;  %v4619_v18 = vsub.f32 %v8317_v1, %v8348_v32 }
0x3364   : > { %v4625_v16 = vmul.f32 1.442695, %v4616_v28  ;;  %v4631_v53 = vmul.f32 1.442695, %v4619_v18 }
0x336a   : > { %6327 = vmatmul.msk.f32.gmra.mxu2 %vm501_vm2, %v5024_v23  ;;  %v4623_v23 = vmul.f32 1.442695, %v4615_v17 }
0x336c   : > { %6694 = vpow2.f32 %v4623_v23 }
0x336d   : > { %6696 = vpow2.f32 %v4625_v16 }
0x3372   : > { %v8387_v42 = vpop.eup %6694 }
0x3373   : > { %v4639_v22 = vsel %vm501_vm2, %v8387_v42, 0.0 }
0x3374   : > { %4640 = vadd.xlane.f32.xlu2 %v4639_v22 }
0x33e5   : > { %v5077_v56 = vpop.f32.mrf.mxu2 }
0x33e6   : > { %v5083_v8 = vsub.f32 %v7048_v40, %v5077_v56  ;;  %v4617_v56 = vsub.f32 %v8303_v11, %v8342_v6 }
0x33ed   : > { %v5080_v15 = vpop.f32.mrf.mxu2 }
0x33ee   : > { %v5084_v13 = vsub.f32 %v7046_v37, %v5080_v15  ;;  %v4627_v15 = vmul.f32 1.442695, %v4617_v56 }
0x33f0   : > { %5105 = vmatpush.msra.mxu3 %v5084_v13  ;;  %v8407_v13 = vpop.eup %6696  ;;  %6698 = vpow2.f32 %v4627_v15 }
0x33f1   : > { %v4642_v46 = vsel %vm501_vm2, %v8407_v13, 0.0 }
0x33f2   : > { %5106 = vmatpush.msra.mxu3 %v5083_v8  ;;  %v4618_v8 = vsub.f32 %v8313_v7, %v8344_v44  ;;  %v4620_v7 = vsub.f32 %v8322_v54, %v8354_v0 }
0x33f3   : > { %6328 = vmatmul.msk.f32.vlgmr.msra.gmra.mxu3 %vm501_vm2, %v5002_v9  ;;  %v4609_v9 = vsel %vm501_vm2, %v4585_v2, -inf }
0x33f4   : > { %4610 = vmax.xlane.f32.xlu0 %v4609_v9  ;;  %v4629_v17 = vmul.f32 1.442695, %v4618_v8  ;;  %v4633_v22 = vmul.f32 1.442695, %v4620_v7  ;;  %v8425_v9 = vpop.xlane.xlu2 %4800 }
0x33f6   : > { %v8413_v23 = vpop.eup %6698  ;;  %6700 = vpow2.f32 %v4629_v17 }
0x33f7   : > { %v4645_v11 = vsel %vm501_vm2, %v8413_v23, 0.0  ;;  %6702 = vpow2.f32 %v4631_v53 }
0x33f8   : > { %6704 = vpow2.f32 %v4633_v22 }
0x33fb   : > { %6329 = vmatmul.msk.f32.gmra.mxu3 %vm501_vm2, %v5003_v57  ;;  %v4588_v57 = vpop.f32.mrf.mxu1 }
0x33fc   : > { %v4612_v26 = vsel %vm501_vm2, %v4588_v57, -inf  ;;  %4643 = vadd.xlane.f32.xlu0 %v4642_v46  ;;  %v8419_v6 = vpop.eup %6700 }
0x33fd   : > { %4613 = vmax.xlane.f32.xlu2 %v4612_v26  ;;  %v4648_v44 = vsel %vm501_vm2, %v8419_v6, 0.0  ;;  %v8427_v26 = vpop.permute.xlu0 %6520  ;;  %v8429_v1 = vpop.eup %6702 }
0x33fe   : > { %v4651_v32 = vsel %vm501_vm2, %v8429_v1, 0.0  ;;  %v8435_v54 = vpop.eup %6704 }
0x33ff   : > { %v4654_v16 = vsel %vm501_vm2, %v8435_v54, 0.0 }
0x3404   : > { %4649 = vadd.xlane.f32.xlu0 %v4648_v44 }
0x3405   : > { %4646 = vadd.xlane.f32.xlu2 %v4645_v11 }
0x340c   : > { %4655 = vadd.xlane.f32.xlu0 %v4654_v16 }
0x340d   : > { %4652 = vadd.xlane.f32.xlu2 %v4651_v32 }
0x3476   : > { %v5108_v62 = vpop.f32.mrf.mxu3 }
0x3477   : > { %v8395_v51 = vmul.f32 0.25, %v5108_v62  ;;  %v8433_v62 = vpop.xlane.xlu2 %4640 }
0x347e   : > { %v5111_v39 = vpop.f32.mrf.mxu3 }
0x347f   : > { %v8393_v45 = vmul.f32 0.25, %v5111_v39  ;;  %v4611_v39 = vpop.xlane.xlu0 %4610  ;;  %v4614_v56 = vpop.xlane.xlu2 %4613 }
0x3480   : > { %v4621_v0 = vsub.f32 %v4585_v2, %v4611_v39  ;;  %v4622_v15 = vsub.f32 %v4588_v57, %v4614_v56 }
0x3481   : > { %5130 = vmatpush.msrb.mxu0 %v8393_v45 }
0x3482   : > { %v4635_v28 = vmul.f32 1.442695, %v4621_v0  ;;  %v4637_v46 = vmul.f32 1.442695, %v4622_v15 }
0x3483   : > { %5131 = vmatpush.msrb.mxu0 %v8395_v51 }
0x3484   : > { %6330 = vmatmul.msk.f32.vlgmr.msrb.gmra.mxu0 %vm501_vm2, %v8171_v35  ;;  %6706 = vpow2.f32 %v4635_v28 }
0x3485   : > { %6708 = vpow2.f32 %v4637_v46 }
0x3486   : > { %6710 = vrcp.f32 %v8425_v9 }
0x348a   : > { %v8439_v8 = vpop.eup %6706 }
0x348b   : > { %v4657_v17 = vsel %vm501_vm2, %v8439_v8, 0.0  ;;  %v8443_v18 = vpop.eup %6708 }
0x348c   : > { %6331 = vmatmul.msk.f32.gmra.mxu0 %vm501_vm2, %v8176_v61  ;;  %4658 = vadd.xlane.f32.xlu1 %v4657_v17  ;;  %v4660_v2 = vsel %vm501_vm2, %v8443_v18, 0.0 }
0x348d   : > { %4661 = vadd.xlane.f32.xlu2 %v4660_v2 }
0x3501   : > { %v5133_v11 = vpop.f32.mrf.mxu0 }
0x3502   : > { %v5139_v57 = vsub.f32 %v7032_v21, %v5133_v11 }
0x3509   : > { %v5136_v53 = vpop.f32.mrf.mxu0 }
0x350a   : > { %v5140_v7 = vsub.f32 %v7030_v20, %v5136_v53 }
0x350c   : > { %5161 = vmatpush.msrb.mxu1 %v5140_v7 }
0x350e   : > { %5162 = vmatpush.msrb.mxu1 %v5139_v57 }
0x350f   : > { %6332 = vmatmul.msk.f32.vlgmr.msrb.gmra.mxu1 %vm501_vm2, %v5133_v11 }
0x3517   : > { %6333 = vmatmul.msk.f32.gmra.mxu1 %vm501_vm2, %v5136_v53 }
0x358c   : > { %v5164_v44 = vpop.f32.mrf.mxu1 }
0x358d   : > { %v5170_v39 = vsub.f32 %v7040_v31, %v5164_v44 }
0x3594   : > { %v5167_v22 = vpop.f32.mrf.mxu1 }
0x3595   : > { %v5171_v32 = vsub.f32 %v7038_v30, %v5167_v22 }
0x3597   : > { %5186 = vmatpush.msrb.mxu2 %v5171_v32 }
0x3599   : > { %5187 = vmatpush.msrb.mxu2 %v5170_v39 }
0x359a   : > { %6334 = vmatmul.msk.f32.vlgmr.msrb.gmra.mxu2 %vm501_vm2, %v5133_v11 }
0x35a2   : > { %6335 = vmatmul.msk.f32.gmra.mxu2 %vm501_vm2, %v5136_v53 }
0x361d   : > { %v5189_v0 = vpop.f32.mrf.mxu2 }
0x361e   : > { %v5195_v56 = vsub.f32 %v7048_v40, %v5189_v0 }
0x3625   : > { %v5192_v28 = vpop.f32.mrf.mxu2 }
0x3626   : > { %v5196_v16 = vsub.f32 %v7046_v37, %v5192_v28 }
0x3628   : > { %5217 = vmatpush.msrb.mxu3 %v5196_v16 }
0x362a   : > { %5218 = vmatpush.msrb.mxu3 %v5195_v56 }
0x362b   : > { %6336 = vmatmul.msk.f32.vlgmr.msrb.gmra.mxu3 %vm501_vm2, %v8395_v51 }
0x3633   : > { %6337 = vmatmul.msk.f32.gmra.mxu3 %vm501_vm2, %v8393_v45 }
0x36ae   : > { %v5220_v15 = vpop.f32.mrf.mxu3 }
0x36af   : > { %v5226_v2 = vmul.f32 0.25, %v5220_v15 }
0x36b6   : > { %v5223_v46 = vpop.f32.mrf.mxu3 }
0x36b7   : > { %v5227_v17 = vmul.f32 0.25, %v5223_v46 }
0x36b9   : > { %5242 = vmatpush.msra.mxu0 %v5227_v17 }
0x36bb   : > { %5243 = vmatpush.msra.mxu0 %v5226_v2 }
0x36bc   : > { %6338 = vmatmul.msk.f32.vlgmr.msra.gmra.mxu0 %vm501_vm2, %v8171_v35 }
0x36c4   : > { %6339 = vmatmul.msk.f32.gmra.mxu0 %vm501_vm2, %v8176_v61 }
0x3739   : > { %v5245_v11 = vpop.f32.mrf.mxu0 }
0x373a   : > { %v5251_v51 = vsub.f32 %v7032_v21, %v5245_v11 }
0x3741   : > { %v5248_v53 = vpop.f32.mrf.mxu0 }
0x3742   : > { %v5252_v7 = vsub.f32 %v7030_v20, %v5248_v53 }
0x3744   : > { %5273 = vmatpush.msra.mxu1 %v5252_v7 }
0x3746   : > { %5274 = vmatpush.msra.mxu1 %v5251_v51 }
0x3747   : > { %6340 = vmatmul.msk.f32.vlgmr.msra.gmra.mxu1 %vm501_vm2, %v5245_v11 }
0x374f   : > { %6341 = vmatmul.msk.f32.gmra.mxu1 %vm501_vm2, %v5248_v53 }
0x37c4   : > { %v5276_v45 = vpop.f32.mrf.mxu1 }
0x37c5   : > { %v5282_v22 = vsub.f32 %v7040_v31, %v5276_v45 }
0x37cc   : > { %v5279_v57 = vpop.f32.mrf.mxu1 }
0x37cd   : > { %v5283_v44 = vsub.f32 %v7038_v30, %v5279_v57 }
0x37cf   : > { %5298 = vmatpush.msra.mxu2 %v5283_v44 }
0x37d1   : > { %5299 = vmatpush.msra.mxu2 %v5282_v22 }
0x37d2   : > { %6342 = vmatmul.msk.f32.vlgmr.msra.gmra.mxu2 %vm501_vm2, %v5245_v11 }
0x37da   : > { %6343 = vmatmul.msk.f32.gmra.mxu2 %vm501_vm2, %v5248_v53 }
0x3855   : > { %v5301_v32 = vpop.f32.mrf.mxu2 }
0x3856   : > { %v5307_v28 = vsub.f32 %v7048_v40, %v5301_v32 }
0x385d   : > { %v5304_v39 = vpop.f32.mrf.mxu2 }
0x385e   : > { %v5308_v0 = vsub.f32 %v7046_v37, %v5304_v39 }
0x3860   : > { %5329 = vmatpush.msra.mxu3 %v5308_v0 }
0x3862   : > { %5330 = vmatpush.msra.mxu3 %v5307_v28 }
0x3863   : > { %6344 = vmatmul.msk.f32.vlgmr.msra.gmra.mxu3 %vm501_vm2, %v5226_v2 }
0x386b   : > { %6345 = vmatmul.msk.f32.gmra.mxu3 %vm501_vm2, %v5227_v17 }
0x38e6   : > { %v5332_v16 = vpop.f32.mrf.mxu3 }
0x38e7   : > { %v5338_v46 = vmul.f32 0.25, %v5332_v16 }
0x38ee   : > { %v5335_v56 = vpop.f32.mrf.mxu3 }
0x38ef   : > { %v5339_v15 = vmul.f32 0.25, %v5335_v56 }
0x38f1   : > { %5354 = vmatpush.msrb.mxu0 %v5339_v15 }
0x38f3   : > { %5355 = vmatpush.msrb.mxu0 %v5338_v46 }
0x38f4   : > { %6346 = vmatmul.msk.f32.vlgmr.msrb.gmra.mxu0 %vm501_vm2, %v8171_v35 }
0x38fc   : > { %6347 = vmatmul.msk.f32.gmra.mxu0 %vm501_vm2, %v8176_v61 }
0x3971   : > { %v5357_v11 = vpop.f32.mrf.mxu0 }
0x3972   : > { %v5363_v2 = vsub.f32 %v7032_v21, %v5357_v11 }
0x3979   : > { %v5360_v53 = vpop.f32.mrf.mxu0 }
0x397a   : > { %v5364_v7 = vsub.f32 %v7030_v20, %v5360_v53 }
0x397c   : > { %5385 = vmatpush.msrb.mxu1 %v5364_v7 }
0x397e   : > { %5386 = vmatpush.msrb.mxu1 %v5363_v2  ;;  %v6513_v2 = vunpack.i.h.bf16 %v8340_v41 }
0x397f   : > { %6348 = vmatmul.msk.f32.vlgmr.msrb.gmra.mxu1 %vm501_vm2, %v5357_v11 }
0x3987   : > { %6349 = vmatmul.msk.f32.gmra.mxu1 %vm501_vm2, %v5360_v53 }
0x39fc   : > { %v5388_v17 = vpop.f32.mrf.mxu1 }
0x39fd   : > { %v5394_v57 = vsub.f32 %v7040_v31, %v5388_v17  ;;  %v6526_v17 = vpop.permute.xlu1 %6525 }
0x3a04   : > { %v5391_v51 = vpop.f32.mrf.mxu1 }
0x3a05   : > { %v5395_v45 = vsub.f32 %v7038_v30, %v5391_v51  ;;  %v4804_v51 = vpop.xlane.xlu1 %4803 }
0x3a06   : > { %6712 = vrcp.f32 %v4804_v51 }
0x3a07   : > { %5410 = vmatpush.msrb.mxu2 %v5395_v45  ;;  %v6711_v45 = vpop.eup %6710  ;;  %6714 = vrcp.f32 %v8433_v62 }
0x3a09   : > { %5411 = vmatpush.msrb.mxu2 %v5394_v57  ;;  %v6528_v57 = vunpack.i.h.bf16 %v6526_v17 }
0x3a0a   : > { %6350 = vmatmul.msk.f32.vlgmr.msrb.gmra.mxu2 %vm501_vm2, %v5357_v11 }
0x3a0c   : > { %v6713_v9 = vpop.eup %6712 }
0x3a0d   : > { %v4659_v51 = vpop.xlane.xlu1 %4658 }
0x3a12   : > { %6351 = vmatmul.msk.f32.gmra.mxu2 %vm501_vm2, %v5360_v53  ;;  %v6512_v53 = vunpack.i.l.bf16 %v8340_v41  ;;  %v6527_v41 = vunpack.i.l.bf16 %v6526_v17 }
0x3a8d   : > { %v5413_v44 = vpop.f32.mrf.mxu2 }
0x3a8e   : > { %v5419_v39 = vsub.f32 %v7048_v40, %v5413_v44  ;;  %v4808_v44 = vmul.f32 %v6713_v9, %v8350_v10 }
0x3a95   : > { %v5416_v22 = vpop.f32.mrf.mxu2 }
0x3a96   : > { %v5420_v32 = vsub.f32 %v7046_v37, %v5416_v22 }
0x3a98   : > { %5441 = vmatpush.msrb.mxu3 %v5420_v32 }
0x3a9a   : > { %5442 = vmatpush.msrb.mxu3 %v5419_v39 }
0x3a9b   : > { %6352 = vmatmul.msk.f32.vlgmr.msrb.gmra.mxu3 %vm501_vm2, %v5338_v46 }
0x3aa3   : > { %6353 = vmatmul.msk.f32.gmra.mxu3 %vm501_vm2, %v5339_v15 }
0x3b1e   : > { %v5444_v0 = vpop.f32.mrf.mxu3 }
0x3b1f   : > { %v8495_v56 = vmul.f32 0.25, %v5444_v0 }
0x3b26   : > { %v5447_v28 = vpop.f32.mrf.mxu3 }
0x3b27   : > { %v8493_v16 = vmul.f32 0.25, %v5447_v28 }
0x3b29   : > { %5466 = vmatpush.msra.mxu0 %v8493_v16 }
0x3b2b   : > { %5467 = vmatpush.msra.mxu0 %v8495_v56 }
0x3b2c   : > { %6354 = vmatmul.msk.f32.vlgmr.msra.gmra.mxu0 %vm501_vm2, %v8171_v35  ;;  %v6517_v35 = vunpack.i.l.bf16 %v8346_v3 }
0x3b34   : > { %6355 = vmatmul.msk.f32.gmra.mxu0 %vm501_vm2, %v8176_v61  ;;  %v6518_v61 = vunpack.i.h.bf16 %v8346_v3  ;;  %v4807_v3 = vmul.f32 %v6711_v45, %v8356_v4 }
0x3ba9   : > { %v5469_v11 = vpop.f32.mrf.mxu0 }
0x3baa   : > { %v5475_v7 = vsub.f32 %v7032_v21, %v5469_v11  ;;  %v6523_v21 = vunpack.i.h.bf16 %v8427_v26 }
0x3bb1   : > { %v5472_v46 = vpop.f32.mrf.mxu0 }
0x3bb2   : > { %v5476_v15 = vsub.f32 %v7030_v20, %v5472_v46  ;;  %v6522_v20 = vunpack.i.l.bf16 %v8427_v26 }
0x3bb4   : > { %5497 = vmatpush.msra.mxu1 %v5476_v15 }
0x3bb6   : > { %5498 = vmatpush.msra.mxu1 %v5475_v7 }
0x3bb7   : > { %6356 = vmatmul.msk.f32.vlgmr.msra.gmra.mxu1 %vm501_vm2, %v5469_v11 }
0x3bb8   : > { %5667 = vmatpush.msrb.mxu1 %v6512_v53 }
0x3bba   : > { %5668 = vmatpush.msrb.mxu1 %v6513_v2 }
0x3bbc   : > { %5669 = vmatpush.msrb.mxu1 %v6517_v35 }
0x3bbe   : > { %5670 = vmatpush.msrb.mxu1 %v6518_v61 }
0x3bbf   : > { %6357 = vmatmul.msk.f32.gmra.mxu1 %vm501_vm2, %v5472_v46 }
0x3bc0   : > { %5671 = vmatpush.msrb.mxu1 %v6522_v20 }
0x3bc2   : > { %5672 = vmatpush.msrb.mxu1 %v6523_v21 }
0x3bc4   : > { %5673 = vmatpush.msrb.mxu1 %v6527_v41 }
0x3bc6   : > { %5674 = vmatpush.msrb.mxu1 %v6528_v57 }
0x3bc7   : > { %6370 = vmatmul.msk.f32.vlgmr.msrb.gmra.mxu1 %vm324_vm0, %v4807_v3 }
0x3bcf   : > { %6371 = vmatmul.msk.f32.gmra.mxu1 %vm324_vm0, %v4808_v44 }
0x3c34   : > { %v5500_v26 = vpop.f32.mrf.mxu1 }
0x3c35   : > { %v5506_v39 = vsub.f32 %v7040_v31, %v5500_v26 }
0x3c3c   : > { %v5503_v22 = vpop.f32.mrf.mxu1 }
0x3c3d   : > { %v5507_v32 = vsub.f32 %v7038_v30, %v5503_v22  ;;  %v6376_v22 = vld [vmem:[%s8663_s4 + $0xe0] sm:$0xff] }
0x3c3f   : > { %5522 = vmatpush.msra.mxu2 %v5507_v32 }
0x3c41   : > { %5523 = vmatpush.msra.mxu2 %v5506_v39  ;;  %v6377_v39 = vld [vmem:[%s8663_s4 + $0xe8] sm:$0xff] }
0x3c42   : > { %6358 = vmatmul.msk.f32.vlgmr.msra.gmra.mxu2 %vm501_vm2, %v5469_v11 }
0x3c43   : > { %5723 = vmatpush.msrb.mxu2 %v6512_v53  ;;  %v6715_v53 = vpop.eup %6714 }
0x3c44   : > { %v5676_v4 = vpop.f32.mrf.mxu1  ;;  %v4671_v7 = vmul.f32 %v6715_v53, %v8387_v42 }
0x3c45   : > { %5724 = vmatpush.msrb.mxu2 %v6513_v2 }
0x3c47   : > { %5725 = vmatpush.msrb.mxu2 %v6517_v35 }
0x3c49   : > { %5726 = vmatpush.msrb.mxu2 %v6518_v61 }
0x3c4a   : > { %6359 = vmatmul.msk.f32.gmra.mxu2 %vm501_vm2, %v5472_v46  ;;  %v4644_v46 = vpop.xlane.xlu0 %4643 }
0x3c4b   : > { %5727 = vmatpush.msrb.mxu2 %v6522_v20  ;;  %6716 = vrcp.f32 %v4644_v46 }
0x3c4c   : > { %v5679_v28 = vpop.f32.mrf.mxu1 }
0x3c4d   : > { %5728 = vmatpush.msrb.mxu2 %v6523_v21 }
0x3c4f   : > { %5729 = vmatpush.msrb.mxu2 %v6527_v41 }
0x3c51   : > { %5730 = vmatpush.msrb.mxu2 %v6528_v57  ;;  %v6717_v2 = vpop.eup %6716 }
0x3c52   : > { %v4650_v62 = vpop.xlane.xlu0 %4649 }
0x3c5a   : > { %v4656_v21 = vpop.xlane.xlu0 %4655 }
0x3cc5   : > { %v5525_v10 = vpop.f32.mrf.mxu2 }
0x3cc6   : > { %v5531_v31 = vsub.f32 %v7048_v40, %v5525_v10 }
0x3ccd   : > { %v5528_v0 = vpop.f32.mrf.mxu2 }
0x3cce   : > { %v5532_v30 = vsub.f32 %v7046_v37, %v5528_v0 }
0x3cd0   : > { %5553 = vmatpush.msra.mxu3 %v5532_v30  ;;  %v6379_v30 = vld [vmem:[%s8663_s4 + $0xf8] sm:$0xff] }
0x3cd2   : > { %5554 = vmatpush.msra.mxu3 %v5531_v31 }
0x3cd3   : > { %6360 = vmatmul.msk.f32.vlgmr.msra.gmra.mxu3 %vm501_vm2, %v8495_v56  ;;  %v4647_v56 = vpop.xlane.xlu2 %4646 }
0x3cd4   : > { %5794 = vmatpush.msrb.mxu3 %v5679_v28  ;;  %6718 = vrcp.f32 %v4647_v56 }
0x3cd5   : > { %6720 = vrcp.f32 %v4650_v62 }
0x3cd6   : > { %5795 = vmatpush.msrb.mxu3 %v5676_v4  ;;  %v6378_v4 = vld [vmem:[%s8663_s4 + $0xf0] sm:$0xff] }
0x3cda   : > { %v6719_v17 = vpop.eup %6718 }
0x3cdb   : > { %6361 = vmatmul.msk.f32.gmra.mxu3 %vm501_vm2, %v8493_v16  ;;  %v4672_v16 = vmul.f32 %v6717_v2, %v8407_v13  ;;  %v4673_v35 = vmul.f32 %v6719_v17, %v8413_v23  ;;  %v4653_v61 = vpop.xlane.xlu2 %4652  ;;  %v6721_v20 = vpop.eup %6720 }
0x3cdc   : > { %6722 = vrcp.f32 %v4653_v61  ;;  %v4674_v42 = vmul.f32 %v6721_v20, %v8419_v6 }
0x3cdd   : > { %6724 = vrcp.f32 %v4656_v21 }
0x3cde   : > { %6726 = vrcp.f32 %v4659_v51 }
0x3ce2   : > { %v6723_v41 = vpop.eup %6722 }
0x3ce3   : > { %v4675_v13 = vmul.f32 %v6723_v41, %v8429_v1  ;;  %v6725_v45 = vpop.eup %6724  ;;  %v4662_v57 = vpop.xlane.xlu2 %4661  ;;  %v6372_v1 = vld [vmem:[%s8663_s4 + $0xc0] sm:$0xff] }
0x3ce4   : > { %v4676_v23 = vmul.f32 %v6725_v45, %v8435_v54  ;;  %v6727_v3 = vpop.eup %6726  ;;  %6728 = vrcp.f32 %v4662_v57  ;;  %6380 = vmatmul.msk.f32.vlgmr.msrb.gmra.mxu2 %vm324_vm0, %v6372_v1  ;;  %v6373_v54 = vld [vmem:[%s8663_s4 + $0xc8] sm:$0xff] }
0x3ce5   : > { %v4677_v6 = vmul.f32 %v6727_v3, %v8439_v8  ;;  %v6374_v8 = vld [vmem:[%s8663_s4 + $0xd0] sm:$0xff] }
0x3cea   : > { %v6729_v9 = vpop.eup %6728 }
0x3ceb   : > { %v4678_v44 = vmul.f32 %v6729_v9, %v8443_v18  ;;  %v6375_v18 = vld [vmem:[%s8663_s4 + $0xd8] sm:$0xff] }
0x3cec   : > { %6381 = vmatmul.msk.f32.gmra.mxu2 %vm324_vm0, %v6373_v54 }
0x3cf4   : > { %6382 = vmatmul.msk.f32.gmra.mxu2 %vm324_vm0, %v6374_v8 }
0x3cfc   : > { %6383 = vmatmul.msk.f32.gmra.mxu2 %vm324_vm0, %v6375_v18 }
0x3d04   : > { %6384 = vmatmul.msk.f32.gmra.mxu2 %vm324_vm0, %v6376_v22  ;;  %v6529_v22 = vld [vmem:[%s8665_s6] ss:$0 sm:$0xff] }
0x3d0c   : > { %6385 = vmatmul.msk.f32.gmra.mxu2 %vm324_vm0, %v6377_v39 }
0x3d14   : > { %6386 = vmatmul.msk.f32.gmra.mxu2 %vm324_vm0, %v6378_v4  ;;  %v410_v4 = vld [vmem:[%s8597_s10 + $0x8] sm:$0xff] }
0x3d1c   : > { %6387 = vmatmul.msk.f32.gmra.mxu2 %vm324_vm0, %v6379_v30  ;;  %v422_v30 = vadd.f32 %v6529_v22, %v410_v4  ;;  %vm5877_vm0 = vcmask 261120  }
0x3d56   : > { %v5556_v11 = vpop.f32.mrf.mxu3 }
0x3d57   : > { %v5562_v40 = vmul.f32 0.25, %v5556_v11 }
0x3d5e   : > { %v5559_v15 = vpop.f32.mrf.mxu3 }
0x3d5f   : > { %v5563_v37 = vmul.f32 0.25, %v5559_v15  ;;  %v323_v15 = vld [vmem:[%s8664_s5 + $0xc] sm:$0xf] }
0x3d60   : > { %v5838_v53 = vsel %vm1735_vm7, %v323_v15, 0 }
0x3d61   : > { %5602 = vmatpush.msrb.mxu0 %v5563_v37  ;;  %5847 = vmatpush.bf16.msra.mxu1 %v5838_v53 }
0x3d63   : > { %5603 = vmatpush.msrb.mxu0 %v5562_v40 }
0x3d64   : > { %6362 = vmatmul.msk.f32.vlgmr.msrb.gmra.mxu0 %vm501_vm2, %v4671_v7 }
0x3d67   : > { %v5732_v37 = vpop.f32.mrf.mxu2 }
0x3d6c   : > { %6363 = vmatmul.msk.f32.gmra.mxu0 %vm501_vm2, %v4672_v16 }
0x3d6f   : > { %v5735_v40 = vpop.f32.mrf.mxu2 }
0x3d74   : > { %6364 = vmatmul.msk.f32.gmra.mxu0 %vm501_vm2, %v4673_v35 }
0x3d77   : > { %v5738_v56 = vpop.f32.mrf.mxu2 }
0x3d7c   : > { %6365 = vmatmul.msk.f32.gmra.mxu0 %vm501_vm2, %v4674_v42 }
0x3d7f   : > { %v5741_v35 = vpop.f32.mrf.mxu2 }
0x3d84   : > { %6366 = vmatmul.msk.f32.gmra.mxu0 %vm501_vm2, %v4675_v13 }
0x3d87   : > { %v5744_v42 = vpop.f32.mrf.mxu2 }
0x3d8c   : > { %6367 = vmatmul.msk.f32.gmra.mxu0 %vm501_vm2, %v4676_v23 }
0x3d8f   : > { %v5747_v45 = vpop.f32.mrf.mxu2 }
0x3d94   : > { %6368 = vmatmul.msk.f32.gmra.mxu0 %vm501_vm2, %v4677_v6 }
0x3d97   : > { %v5750_v9 = vpop.f32.mrf.mxu2 }
0x3d9c   : > { %6369 = vmatmul.msk.f32.gmra.mxu0 %vm501_vm2, %v4678_v44 }
0x3d9f   : > { %v5753_v1 = vpop.f32.mrf.mxu2 }
0x3de1   : > { %v5605_v26 = vpop.f32.mrf.mxu0 }
0x3de2   : > { %6388 = vmatmul.msk.f32.vlgmr.msrb.gmra.mxu3 %vm501_vm2, %v5605_v26 }
0x3de9   : > { %v5608_v32 = vpop.f32.mrf.mxu0 }
0x3dea   : > { %6389 = vmatmul.msk.f32.gmra.mxu3 %vm501_vm2, %v5608_v32  ;;  %v409_v32 = vld [vmem:[%s8597_s10] sm:$0xff] }
0x3deb   : > { %v421_v39 = vadd.f32 %v6529_v22, %v409_v32 }
0x3df1   : > { %v5611_v10 = vpop.f32.mrf.mxu0 }
0x3df2   : > { %6390 = vmatmul.msk.f32.gmra.mxu3 %vm501_vm2, %v5611_v10  ;;  %v1768_v10 = vadd.f32 %v7405_v25, %v421_v39  ;;  %v411_v25 = vld [vmem:[%s8597_s10 + $0x10] sm:$0xff] }
0x3df9   : > { %v5614_v0 = vpop.f32.mrf.mxu0 }
0x3dfa   : > { %6391 = vmatmul.msk.f32.gmra.mxu3 %vm501_vm2, %v5614_v0  ;;  %v3135_v0 = vadd.f32 %v7843_v12, %v1768_v10 }
0x3e01   : > { %v5617_v31 = vpop.f32.mrf.mxu0 }
0x3e02   : > { %6392 = vmatmul.msk.f32.gmra.mxu3 %vm501_vm2, %v5617_v31  ;;  %v4502_v31 = vadd.f32 %v8273_v34, %v3135_v0  ;;  %v423_v34 = vadd.f32 %v6529_v22, %v411_v25 }
0x3e09   : > { %v5620_v28 = vpop.f32.mrf.mxu0 }
0x3e0a   : > { %6393 = vmatmul.msk.f32.gmra.mxu3 %vm501_vm2, %v5620_v28 }
0x3e11   : > { %v5623_v11 = vpop.f32.mrf.mxu0 }
0x3e12   : > { %6394 = vmatmul.msk.f32.gmra.mxu3 %vm501_vm2, %v5623_v11 }
0x3e19   : > { %v5626_v46 = vpop.f32.mrf.mxu0 }
0x3e1a   : > { %6395 = vmatmul.msk.f32.gmra.mxu3 %vm501_vm2, %v5626_v46  ;;  %v1769_v46 = vadd.f32 %v7408_v24, %v422_v30 }
0x3e1c   : > { %v3136_v12 = vadd.f32 %v7845_v14, %v1769_v46 }
0x3e1e   : > { %v4503_v15 = vadd.f32 %v8275_v29, %v3136_v12  ;;  %v413_v29 = vld [vmem:[%s8597_s10 + $0x20] sm:$0xff] }
0x3e65   : > { %v5797_v7 = vpop.f32.mrf.mxu3 }
0x3e66   : > { %v5798_v16 = vadd.f32 %v5797_v7, %v5732_v37  ;;  %v412_v7 = vld [vmem:[%s8597_s10 + $0x18] sm:$0xff] }
0x3e6d   : > { %v5800_v2 = vpop.f32.mrf.mxu3 }
0x3e6e   : > { %v5801_v62 = vadd.f32 %v5800_v2, %v5735_v40  ;;  %v1770_v40 = vadd.f32 %v7411_v48, %v423_v34 }
0x3e70   : > { %v5821_v17 = vpack.c.bf16 %v5801_v62, %v5798_v16  ;;  %v3137_v24 = vadd.f32 %v7848_v5, %v1770_v40 }
0x3e72   : > { %6396 = vmatmul.msk.bf16.vlgmr.msra.gmra.mxu1 %vm429_vm1, %v5821_v17  ;;  %v4504_v2 = vadd.f32 %v8278_v55, %v3137_v24  ;;  %v425_v17 = vadd.f32 %v6529_v22, %v413_v29  ;;  %v414_v55 = vld [vmem:[%s8597_s10 + $0x28] sm:$0xff] }
0x3e74   : > { %v1772_v5 = vadd.f32 %v7419_v36, %v425_v17 }
0x3e75   : > { %v5803_v61 = vpop.f32.mrf.mxu3 }
0x3e76   : > { %v5804_v21 = vadd.f32 %v5803_v61, %v5738_v56  ;;  %v424_v56 = vadd.f32 %v6529_v22, %v412_v7 }
0x3e78   : > { %v1771_v14 = vadd.f32 %v7413_v63, %v424_v56  ;;  %v3139_v63 = vadd.f32 %v7856_v50, %v1772_v5 }
0x3e7a   : > { %v3138_v48 = vadd.f32 %v7852_v47, %v1771_v14 }
0x3e7d   : > { %v5806_v20 = vpop.f32.mrf.mxu3 }
0x3e7e   : > { %v5807_v41 = vadd.f32 %v5806_v20, %v5741_v35  ;;  %v4505_v35 = vadd.f32 %v8281_v43, %v3138_v48  ;;  %v415_v43 = vld [vmem:[%s8597_s10 + $0x30] sm:$0xff] }
0x3e80   : > { %v5822_v13 = vpack.c.bf16 %v5807_v41, %v5804_v21  ;;  %v4506_v21 = vadd.f32 %v8283_v38, %v3139_v63  ;;  %v416_v38 = vld [vmem:[%s8597_s10 + $0x38] sm:$0xff] }
0x3e82   : > { %6397 = vmatmul.msk.bf16.gmra.mxu1 %vm429_vm1, %v5822_v13 }
0x3e85   : > { %v5809_v51 = vpop.f32.mrf.mxu3 }
0x3e86   : > { %v5810_v57 = vadd.f32 %v5809_v51, %v5744_v42  ;;  %v426_v42 = vadd.f32 %v6529_v22, %v414_v55  ;;  %v427_v51 = vadd.f32 %v6529_v22, %v415_v43 }
0x3e88   : > { %v1773_v47 = vadd.f32 %v7425_v58, %v426_v42  ;;  %v1774_v50 = vadd.f32 %v7432_v49, %v427_v51  ;;  %v428_v58 = vadd.f32 %v6529_v22, %v416_v38 }
0x3e8a   : > { %v3140_v36 = vadd.f32 %v7858_v19, %v1773_v47  ;;  %v1775_v19 = vadd.f32 %v7438_v59, %v428_v58 }
0x3e8d   : > { %v5812_v23 = vpop.f32.mrf.mxu3 }
0x3e8e   : > { %v5813_v3 = vadd.f32 %v5812_v23, %v5747_v45  ;;  %v4507_v45 = vadd.f32 %v8285_v52, %v3140_v36  ;;  %v8668_v52 = vld [vmem:[#allocation2_spill] sm:$0xff] }
0x3e90   : > { %v5823_v6 = vpack.c.bf16 %v5813_v3, %v5810_v57  ;;  %v3141_v3 = vadd.f32 %v7864_v33, %v1774_v50 }
0x3e92   : > { %6398 = vmatmul.msk.bf16.gmra.mxu1 %vm429_vm1, %v5823_v6  ;;  %v4508_v6 = vadd.f32 %v8287_v27, %v3141_v3 }
0x3e95   : > { %v5815_v44 = vpop.f32.mrf.mxu3 }
0x3e96   : > { %v5816_v8 = vadd.f32 %v5815_v44, %v5750_v9 }
0x3e9d   : > { %v5818_v54 = vpop.f32.mrf.mxu3 }
0x3e9e   : > { %v5819_v18 = vadd.f32 %v5818_v54, %v5753_v1  ;;  %v3142_v1 = vadd.f32 %v8668_v52, %v1775_v19 }
0x3ea0   : > { %v5824_v26 = vpack.c.bf16 %v5819_v18, %v5816_v8  ;;  %v4509_v54 = vadd.f32 %v8289_v60, %v3142_v1 }
0x3ea2   : > { %6399 = vmatmul.msk.bf16.gmra.mxu1 %vm429_vm1, %v5824_v26 }
0x3eef   : > { %v5849_v28 = vpop.f32.mrf.mxu1 }
0x3ef0   : > { %v5869_v11 = vadd.f32 %v5849_v28, %v4502_v31 }
0x3ef2   : > { %5878 = vst.msk [vmem:[%s8611_s16] sm:$0xff] %vm5877_vm0, %v5869_v11 }
0x3ef7   : > { %v5851_v53 = vpop.f32.mrf.mxu1 }
0x3ef8   : > { %v5870_v37 = vadd.f32 %v5851_v53, %v4503_v15 }
0x3efa   : > { %5879 = vst.msk [vmem:[%s8611_s16 + $0x8] sm:$0xff] %vm5877_vm0, %v5870_v37 }
0x3eff   : > { %v5854_v16 = vpop.f32.mrf.mxu1 }
0x3f00   : > { %v5871_v62 = vadd.f32 %v5854_v16, %v4504_v2 }
0x3f02   : > { %5880 = vst.msk [vmem:[%s8611_s16 + $0x10] sm:$0xff] %vm5877_vm0, %v5871_v62 }
0x3f07   : > { %v5856_v61 = vpop.f32.mrf.mxu1 }
0x3f08   : > { %v5872_v20 = vadd.f32 %v5856_v61, %v4505_v35 }
0x3f0a   : > { %5881 = vst.msk [vmem:[%s8611_s16 + $0x18] sm:$0xff] %vm5877_vm0, %v5872_v20 }
0x3f0f   : > { %v5859_v41 = vpop.f32.mrf.mxu1 }
0x3f10   : > { %v5873_v13 = vadd.f32 %v5859_v41, %v4506_v21 }
0x3f12   : > { %5882 = vst.msk [vmem:[%s8611_s16 + $0x20] sm:$0xff] %vm5877_vm0, %v5873_v13 }
0x3f17   : > { %v5861_v23 = vpop.f32.mrf.mxu1 }
0x3f18   : > { %v5874_v57 = vadd.f32 %v5861_v23, %v4507_v45 }
0x3f1a   : > { %5883 = vst.msk [vmem:[%s8611_s16 + $0x28] sm:$0xff] %vm5877_vm0, %v5874_v57 }
0x3f1f   : > { %v5864_v9 = vpop.f32.mrf.mxu1 }
0x3f20   : > { %v5875_v44 = vadd.f32 %v5864_v9, %v4508_v6 }
0x3f22   : > { %5884 = vst.msk [vmem:[%s8611_s16 + $0x30] sm:$0xff] %vm5877_vm0, %v5875_v44 }
0x3f27   : > { %v5866_v8 = vpop.f32.mrf.mxu1 }
0x3f28   : > { %v5876_v49 = vadd.f32 %v5866_v8, %v4509_v54 }
0x3f2a   : > { %5885 = vst.msk [vmem:[%s8611_s16 + $0x38] sm:$0xff] %vm5877_vm0, %v5876_v49 }
0x3f2b PF: > { %s17_s24 = sadd.s32 1, %s6760_s24  }
0x3f2c   : > { %p14_p4 = scmp.ge.s32.totalorder %s17_s24, 4  }
0x3f2e   :  { %16 = sbr.rel (!%p14_p4) target bundleno = 1 (0x1), region = 84 }

</bundles_post_ra>
